<compile_context>
chip_gen: v5e
topology: v5e:2x2
jax: 0.10.0
libtpu: 0.0.40
codegen_flags: <defaults>
</compile_context>

<pallas_src>
import functools

import jax
import jax.numpy as jnp
import numpy as np
from jax.experimental import pallas as pl
from jax.experimental.pallas import tpu as pltpu

EPS = 1e-5
K = 3  # conv kernel size used throughout the model


# ------------------------------------------------------------------ kernels --

def _conv_stack_kernel(x_ref,
                       w0_ref, b0_ref,
                       s1a, t1a, w1a, b1a, s2a, t2a, w2a, b2a,
                       s1b, t1b, w1b, b1b, s2b, t2b, w2b, b2b,
                       wl_ref, bl_ref,
                       o_ref, *, L, dil):
    """Fused conv -> ResidualLayer1D -> ResidualLayer1D -> conv.

    Activations are (C, N) with N = B*L stacked on the 128-lane axis
    (batch-major blocks of length L).  Every K=3 'same'-padded (dilated) conv
    is one MXU matmul against a (K*Cin, N) operand built from lane-rolled,
    edge-masked copies of the activation.
    """
    N = x_ref.shape[-1]
    # lane position within each length-L batch block (for 'same'-pad masking)
    pos = jax.lax.broadcasted_iota(jnp.int32, (1, N), 1) % L

    def conv3(act, w_ref, b_ref, d):
        # 'same'-padded conv, kernel size 3, dilation d  (pad = d)
        pad = d * (K - 1) // 2
        cin = act.shape[0]
        parts = []
        for t in range(K):
            off = t * d - pad                       # -pad, 0, +pad
            if off == 0:
                parts.append(act)
            else:
                rolled = pltpu.roll(act, shift=(-off) % N, axis=1)
                valid = jnp.logical_and(pos + off >= 0, pos + off < L)
                parts.append(jnp.where(valid, rolled, 0.0))
        if cin % 8 == 0:
            # single MXU matmul over the stacked (K*Cin, N) operand
            stacked = jnp.concatenate(parts, axis=0)
            y = jnp.dot(w_ref[...], stacked, preferred_element_type=jnp.float32)
        else:
            # tiny-channel case (encoder input, Cin=4): avoid sublane-misaligned
            # concat, 3 small matmuls are negligible here.
            w = w_ref[...]
            y = jnp.zeros((w.shape[0], N), jnp.float32)
            for t in range(K):
                y = y + jnp.dot(w[:, t * cin:(t + 1) * cin], parts[t],
                                preferred_element_type=jnp.float32)
        return y + b_ref[...]

    def residual(act, s1, t1, w1, b1, s2, t2, w2, b2):
        # ResidualLayer1D: x + Conv1x1(ReLU(BN(Conv_dil(ReLU(BN(x))))))
        a1 = jnp.maximum(act * s1[...] + t1[...], 0.0)          # folded BN+ReLU
        mid = conv3(a1, w1, b1, dil)                            # dilated conv
        a2 = jnp.maximum(mid * s2[...] + t2[...], 0.0)          # folded BN+ReLU
        out = jnp.dot(w2[...], a2, preferred_element_type=jnp.float32) + b2[...]
        return act + out                                        # skip connection

    h = conv3(x_ref[...], w0_ref, b0_ref, 1)
    h = residual(h, s1a, t1a, w1a, b1a, s2a, t2a, w2a, b2a)
    h = residual(h, s1b, t1b, w1b, b1b, s2b, t2b, w2b, b2b)
    o_ref[...] = conv3(h, wl_ref, bl_ref, 1)


def _latent_kernel(flat_ref, w1_ref, b1_ref, w2_ref, b2_ref, z_ref, xr_ref):
    """Fused Flatten->Linear->ReLU->Linear->ReLU (bf16 MXU, f32 accumulation)."""
    flat = flat_ref[...].astype(jnp.bfloat16)
    z = jnp.dot(flat, w1_ref[...], preferred_element_type=jnp.float32) + b1_ref[...]
    z = jnp.maximum(z, 0.0)
    z_ref[...] = z                                              # one-shot store
    xr = jnp.dot(z.astype(jnp.bfloat16), w2_ref[...],
                 preferred_element_type=jnp.float32) + b2_ref[...]
    xr_ref[...] = jnp.maximum(xr, 0.0)


# ----------------------------------------------------------------- wrappers --

_VMEM_SPEC = pl.BlockSpec(memory_space=pltpu.MemorySpace.VMEM)


def conv_stack(xk, p_first, res_a, res_b, p_last, *, L, dil):
    """xk: (Cin, B*L) batch-stacked activation; returns (Cout, B*L)."""
    N = xk.shape[1]
    Cout = p_last['w'].shape[0]
    args = [xk, p_first['w'], p_first['b']]
    for r in (res_a, res_b):
        args += [r['s1'], r['t1'], r['w1'], r['b1'],
                 r['s2'], r['t2'], r['w2'], r['b2']]
    args += [p_last['w'], p_last['b']]
    return pl.pallas_call(
        functools.partial(_conv_stack_kernel, L=L, dil=dil),
        out_shape=jax.ShapeDtypeStruct((Cout, N), jnp.float32),
        in_specs=[_VMEM_SPEC] * len(args),
        out_specs=_VMEM_SPEC,
    )(*args)


def latent_stage(flat, w1, b1, w2, b2):
    B = flat.shape[0]
    return pl.pallas_call(
        _latent_kernel,
        out_shape=(jax.ShapeDtypeStruct((B, w1.shape[1]), jnp.float32),
                   jax.ShapeDtypeStruct((B, w2.shape[1]), jnp.float32)),
        in_specs=[_VMEM_SPEC] * 5,
        out_specs=(_VMEM_SPEC, _VMEM_SPEC),
    )(flat, w1, b1, w2, b2)


# -------------------------------------------------- parameter preprocessing --

def _prep_conv(w, b):
    # (Cout, Cin, K) -> lane-dense (Cout, K*Cin) matching the in-kernel
    # t-major stacking order; bias -> (Cout, 1).
    Cout, Cin, Kk = w.shape
    return dict(w=jnp.transpose(w, (0, 2, 1)).reshape(Cout, Kk * Cin),
                b=b.reshape(Cout, 1))


def _prep_bn(p):
    scale = p['gamma'] / jnp.sqrt(p['var'] + EPS)
    shift = p['beta'] - p['mean'] * scale
    return scale.reshape(-1, 1), shift.reshape(-1, 1)


def _prep_res(p):
    s1, t1 = _prep_bn(p['bn1'])
    s2, t2 = _prep_bn(p['bn2'])
    Fb, F, Kk = p['w1'].shape
    return dict(s1=s1, t1=t1,
                w1=jnp.transpose(p['w1'], (0, 2, 1)).reshape(Fb, Kk * F),
                b1=p['b1'].reshape(Fb, 1),
                s2=s2, t2=t2,
                w2=p['w2'][:, :, 0],                 # 1x1 conv -> (F, Fb)
                b2=p['b2'].reshape(F, 1))


def prepare_params(params):
    """One-time: fold BN, flip ConvTranspose weight, reshape conv weights 2D,
    cast latent weights to bf16."""
    # ConvTranspose1d(stride=1, padding=1) == Conv1d with channel-transposed,
    # tap-flipped weight and identical 'same' padding.
    w_dec0 = jnp.flip(jnp.transpose(params['dec0_w'], (1, 0, 2)), axis=2)
    return dict(
        enc0=_prep_conv(params['enc0_w'], params['enc0_b']),
        enc_res0=_prep_res(params['enc_res0']),
        enc_res1=_prep_res(params['enc_res1']),
        enc_last=_prep_conv(params['enc_last_w'], params['enc_last_b']),
        to_latent_w=params['to_latent_w'].astype(jnp.bfloat16),
        to_latent_b=params['to_latent_b'].reshape(1, -1),
        from_latent_w=params['from_latent_w'].astype(jnp.bfloat16),
        from_latent_b=params['from_latent_b'].reshape(1, -1),
        dec0=_prep_conv(w_dec0, params['dec0_b']),
        dec_res0=_prep_res(params['dec_res0']),
        dec_res1=_prep_res(params['dec_res1']),
        dec_last=_prep_conv(params['dec_last_w'], params['dec_last_b']),
    )


# ------------------------------------------------------------------ forward --

def seq2seq_forward(kp, x):
    B, C, L = x.shape
    # batch-stacked layout: (Cin, B*L)
    xk = jnp.transpose(x, (1, 0, 2)).reshape(C, B * L)

    h = conv_stack(xk, kp['enc0'], kp['enc_res0'], kp['enc_res1'],
                   kp['enc_last'], L=L, dil=3)                   # (64, B*L)
    R = h.shape[0]
    # Flatten(1): flat[b, c*L + l] = h[b, c, l]   (tiny 64 KB relayout glue)
    flat = h.reshape(R, B, L).transpose(1, 0, 2).reshape(B, R * L)

    z, xr_flat = latent_stage(flat, kp['to_latent_w'], kp['to_latent_b'],
                              kp['from_latent_w'], kp['from_latent_b'])

    xr_k = xr_flat.reshape(B, R, L).transpose(1, 0, 2).reshape(R, B * L)
    out = conv_stack(xr_k, kp['dec0'], kp['dec_res0'], kp['dec_res1'],
                     kp['dec_last'], L=L, dil=3)                 # (4, B*L)
    Cout = out.shape[0]
    x_rec = out.reshape(Cout, B, L).transpose(1, 0, 2)           # (B, 4, L)
    return x_rec, z


# --------------------------------------------------------------- parameters --

def init_params(key):
    keys = jax.random.split(key, 64)
    kit = iter(keys)

    def u(shape, fan_in):
        bound = 1.0 / np.sqrt(fan_in)
        return jax.random.uniform(next(kit), shape, jnp.float32, -bound, bound)

    def bn_p(c):  # PyTorch default BN params / running stats (eval mode)
        return dict(gamma=jnp.ones((c,), jnp.float32),
                    beta=jnp.zeros((c,), jnp.float32),
                    mean=jnp.zeros((c,), jnp.float32),
                    var=jnp.ones((c,), jnp.float32))

    def res_p(F, Fb, Kk):
        return dict(bn1=bn_p(F),
                    w1=u((Fb, F, Kk), F * Kk), b1=u((Fb,), F * Kk),
                    bn2=bn_p(Fb),
                    w2=u((F, Fb, 1), Fb), b2=u((F,), Fb))

    Emb, F, Kk, Fb, Rr, Lat = 4, 32, 3, 16, 64, 16
    return dict(
        enc0_w=u((F, Emb, Kk), Emb * Kk), enc0_b=u((F,), Emb * Kk),
        enc_res0=res_p(F, Fb, Kk), enc_res1=res_p(F, Fb, Kk),
        enc_last_w=u((Rr, F, Kk), F * Kk), enc_last_b=u((Rr,), F * Kk),
        to_latent_w=u((128 * 64, Lat), 128 * 64), to_latent_b=u((Lat,), 128 * 64),
        from_latent_w=u((Lat, 128 * 64), Lat), from_latent_b=u((128 * 64,), Lat),
        dec0_w=u((Rr, F, Kk), Rr * Kk), dec0_b=u((F,), Rr * Kk),  # ConvTranspose1d (in,out,K)
        dec_res0=res_p(F, Fb, Kk), dec_res1=res_p(F, Fb, Kk),
        dec_last_w=u((Emb, F, Kk), F * Kk), dec_last_b=u((Emb,), F * Kk),
    )


# ----------------------------------------------------------- pure-JAX check --

def ref_forward(params, x):
    P = jax.lax.Precision.HIGHEST

    def conv(x, w, b, dilation=1):
        pad = dilation * (w.shape[2] - 1) // 2
        y = jax.lax.conv_general_dilated(
            x, w, (1,), [(pad, pad)], rhs_dilation=(dilation,),
            dimension_numbers=('NCH', 'OIH', 'NCH'), precision=P)
        return y + b[None, :, None]

    def bn(x, p):
        scale = p['gamma'] / jnp.sqrt(p['var'] + EPS)
        shift = p['beta'] - p['mean'] * scale
        return x * scale[None, :, None] + shift[None, :, None]

    def res(x, p):
        h = jax.nn.relu(bn(x, p['bn1']))
        h = conv(h, p['w1'], p['b1'], dilation=3)
        h = jax.nn.relu(bn(h, p['bn2']))
        h = conv(h, p['w2'], p['b2'], dilation=1)
        return x + h

    B, C, L = x.shape
    h = conv(x, params['enc0_w'], params['enc0_b'])
    h = res(h, params['enc_res0'])
    h = res(h, params['enc_res1'])
    h = conv(h, params['enc_last_w'], params['enc_last_b'])
    flat = h.reshape(B, -1)
    z = jax.nn.relu(jnp.dot(flat, params['to_latent_w'], precision=P)
                    + params['to_latent_b'])
    xr = jax.nn.relu(jnp.dot(z, params['from_latent_w'], precision=P)
                     + params['from_latent_b'])
    xr = xr.reshape(B, -1, L)
    w_dec0 = jnp.flip(jnp.transpose(params['dec0_w'], (1, 0, 2)), axis=2)
    xr = conv(xr, w_dec0, params['dec0_b'])
    xr = res(xr, params['dec_res0'])
    xr = res(xr, params['dec_res1'])
    xr = conv(xr, params['dec_last_w'], params['dec_last_b'])
    return xr, z


# TODO(synk): training utilities (Adam optimizer, LR schedulers, fit/test/pred,
# mse loss) are not part of the forward pass and are not implemented.

if __name__ == "__main__":
    key = jax.random.PRNGKey(0)
    pkey, xkey = jax.random.split(key)
    params = init_params(pkey)
    kparams = prepare_params(params)     # one-time BN fold / weight re-layout

    B, C, L = 2, 4, 128  # L=128 is forced by nn.Linear(128*64, latent_dim)
    x = jax.random.normal(xkey, (B, C, L), jnp.float32)

    fwd = jax.jit(seq2seq_forward)
    x_rec, z = fwd(kparams, x)
    jax.block_until_ready((x_rec, z))

    xr_ref, z_ref = ref_forward(params, x)
    assert x_rec.shape == (B, C, L) and z.shape == (B, 16)
    # atol on x_rec loosened slightly vs f32 reference to absorb the bf16
    # latent-stage matmuls (f32 accumulation).
    assert np.allclose(np.asarray(z), np.asarray(z_ref), rtol=2e-2, atol=2e-3)
    assert np.allclose(np.asarray(x_rec), np.asarray(xr_ref), rtol=2e-2, atol=5e-3)
    print("KERNEL_OK")
</pallas_src>

<mosaic_0001>
module attributes {stable_mosaic.version = 11 : i64} {
  func.func @_latent_kernel(%arg0: memref<2x8192xf32, #tpu.memory_space<vmem>>, %arg1: memref<8192x16xbf16, #tpu.memory_space<vmem>>, %arg2: memref<1x16xf32, #tpu.memory_space<vmem>>, %arg3: memref<16x8192xbf16, #tpu.memory_space<vmem>>, %arg4: memref<1x8192xf32, #tpu.memory_space<vmem>>, %arg5: memref<2x16xf32, #tpu.memory_space<vmem>>, %arg6: memref<2x8192xf32, #tpu.memory_space<vmem>>) attributes {dimension_semantics = [], scalar_prefetch = 0 : i64, scratch_operands = 0 : i64, tpu.core_type = #tpu.core_type<tc>} {
    %c0 = arith.constant 0 : index
    %c0_0 = arith.constant 0 : index
    %0 = vector.load %arg0[%c0, %c0_0] : memref<2x8192xf32, #tpu.memory_space<vmem>>, vector<2x8192xf32>
    %1 = arith.truncf %0 : vector<2x8192xf32> to vector<2x8192xbf16>
    %c0_1 = arith.constant 0 : index
    %c0_2 = arith.constant 0 : index
    %2 = vector.load %arg1[%c0_1, %c0_2] : memref<8192x16xbf16, #tpu.memory_space<vmem>>, vector<8192x16xbf16>
    %cst = arith.constant dense<0.000000e+00> : vector<2x16xf32>
    %3 = tpu.matmul %1, %2, %cst {dimension_numbers = #tpu.dot_dimension_numbers<[1], [0], [0], [1], [0, 0, 1, 1], [], []>} : vector<2x8192xbf16>, vector<8192x16xbf16>, vector<2x16xf32> -> vector<2x16xf32>
    %c0_3 = arith.constant 0 : index
    %c0_4 = arith.constant 0 : index
    %4 = vector.load %arg2[%c0_3, %c0_4] : memref<1x16xf32, #tpu.memory_space<vmem>>, vector<1x16xf32>
    %5 = vector.broadcast %4 : vector<1x16xf32> to vector<2x16xf32>
    %6 = arith.addf %3, %5 : vector<2x16xf32>
    %cst_5 = arith.constant 0.000000e+00 : f32
    %7 = vector.broadcast %cst_5 : f32 to vector<2x16xf32>
    %8 = arith.maximumf %6, %7 : vector<2x16xf32>
    %c0_6 = arith.constant 0 : index
    %c0_7 = arith.constant 0 : index
    %9 = vector.load %arg5[%c0_6, %c0_7] : memref<2x16xf32, #tpu.memory_space<vmem>>, vector<2x16xf32>
    tpu.vector_store %arg5[%c0_6, %c0_7], %8 {strides = array<i32>} : memref<2x16xf32, #tpu.memory_space<vmem>>, vector<2x16xf32>,
    %10 = arith.truncf %8 : vector<2x16xf32> to vector<2x16xbf16>
    %c0_8 = arith.constant 0 : index
    %c0_9 = arith.constant 0 : index
    %11 = vector.load %arg3[%c0_8, %c0_9] : memref<16x8192xbf16, #tpu.memory_space<vmem>>, vector<16x8192xbf16>
    %cst_10 = arith.constant dense<0.000000e+00> : vector<2x8192xf32>
    %12 = tpu.matmul %10, %11, %cst_10 {dimension_numbers = #tpu.dot_dimension_numbers<[1], [0], [0], [1], [0, 0, 1, 1], [], []>} : vector<2x16xbf16>, vector<16x8192xbf16>, vector<2x8192xf32> -> vector<2x8192xf32>
    %c0_11 = arith.constant 0 : index
    %c0_12 = arith.constant 0 : index
    %13 = vector.load %arg4[%c0_11, %c0_12] : memref<1x8192xf32, #tpu.memory_space<vmem>>, vector<1x8192xf32>
    %14 = vector.broadcast %13 : vector<1x8192xf32> to vector<2x8192xf32>
    %15 = arith.addf %12, %14 : vector<2x8192xf32>
    %cst_13 = arith.constant 0.000000e+00 : f32
    %16 = vector.broadcast %cst_13 : f32 to vector<2x8192xf32>
    %17 = arith.maximumf %15, %16 : vector<2x8192xf32>
    %c0_14 = arith.constant 0 : index
    %c0_15 = arith.constant 0 : index
    %18 = vector.load %arg6[%c0_14, %c0_15] : memref<2x8192xf32, #tpu.memory_space<vmem>>, vector<2x8192xf32>
    tpu.vector_store %arg6[%c0_14, %c0_15], %17 {strides = array<i32>} : memref<2x8192xf32, #tpu.memory_space<vmem>>, vector<2x8192xf32>,
    return
  }
}

module attributes {stable_mosaic.version = 11 : i64} {
  func.func @_conv_stack_kernel(%arg0: memref<4x256xf32, #tpu.memory_space<vmem>>, %arg1: memref<32x12xf32, #tpu.memory_space<vmem>>, %arg2: memref<32x1xf32, #tpu.memory_space<vmem>>, %arg3: memref<32x1xf32, #tpu.memory_space<vmem>>, %arg4: memref<32x1xf32, #tpu.memory_space<vmem>>, %arg5: memref<16x96xf32, #tpu.memory_space<vmem>>, %arg6: memref<16x1xf32, #tpu.memory_space<vmem>>, %arg7: memref<16x1xf32, #tpu.memory_space<vmem>>, %arg8: memref<16x1xf32, #tpu.memory_space<vmem>>, %arg9: memref<32x16xf32, #tpu.memory_space<vmem>>, %arg10: memref<32x1xf32, #tpu.memory_space<vmem>>, %arg11: memref<32x1xf32, #tpu.memory_space<vmem>>, %arg12: memref<32x1xf32, #tpu.memory_space<vmem>>, %arg13: memref<16x96xf32, #tpu.memory_space<vmem>>, %arg14: memref<16x1xf32, #tpu.memory_space<vmem>>, %arg15: memref<16x1xf32, #tpu.memory_space<vmem>>, %arg16: memref<16x1xf32, #tpu.memory_space<vmem>>, %arg17: memref<32x16xf32, #tpu.memory_space<vmem>>, %arg18: memref<32x1xf32, #tpu.memory_space<vmem>>, %arg19: memref<64x96xf32, #tpu.memory_space<vmem>>, %arg20: memref<64x1xf32, #tpu.memory_space<vmem>>, %arg21: memref<64x256xf32, #tpu.memory_space<vmem>>) attributes {dimension_semantics = [], scalar_prefetch = 0 : i64, scratch_operands = 0 : i64, tpu.core_type = #tpu.core_type<tc>} {
    %0 = tpu.iota {dimensions = array<i32: 1>} : vector<1x256xi32>
    %c128_i32 = arith.constant 128 : i32
    %c0_i32 = arith.constant 0 : i32
    %1 = arith.cmpi eq, %c128_i32, %c0_i32 : i32
    %c1_i32 = arith.constant 1 : i32
    %2 = arith.select %1, %c1_i32, %c128_i32 : i32
    %3 = vector.broadcast %2 : i32 to vector<1x256xi32>
    %4 = arith.remsi %0, %3 : vector<1x256xi32>
    %c0_i32_0 = arith.constant 0 : i32
    %5 = vector.broadcast %c0_i32_0 : i32 to vector<1x256xi32>
    %6 = arith.cmpi ne, %4, %5 : vector<1x256xi32>
    %c0_i32_1 = arith.constant 0 : i32
    %7 = vector.broadcast %c0_i32_1 : i32 to vector<1x256xi32>
    %8 = arith.cmpi slt, %4, %7 : vector<1x256xi32>
    %c0_i32_2 = arith.constant 0 : i32
    %9 = arith.cmpi slt, %2, %c0_i32_2 : i32
    %10 = vector.broadcast %9 : i1 to vector<1x256xi1>
    %11 = vector.broadcast %10 : vector<1x256xi1> to vector<1x256xi1>
    %12 = arith.xori %8, %11 : vector<1x256xi1>
    %13 = arith.andi %12, %6 : vector<1x256xi1>
    %14 = vector.broadcast %2 : i32 to vector<1x256xi32>
    %15 = arith.addi %4, %14 : vector<1x256xi32>
    %16 = arith.select %13, %15, %4 : vector<1x256xi1>, vector<1x256xi32>
    %c0 = arith.constant 0 : index
    %c0_3 = arith.constant 0 : index
    %17 = vector.load %arg0[%c0, %c0_3] : memref<4x256xf32, #tpu.memory_space<vmem>>, vector<4x256xf32>
    %c1_i32_4 = arith.constant 1 : i32
    %18 = tpu.dynamic_rotate %17 by %c1_i32_4 dim 1 : vector<4x256xf32>, i32 -> vector<4x256xf32>
    %c-1_i32 = arith.constant -1 : i32
    %19 = vector.broadcast %c-1_i32 : i32 to vector<1x256xi32>
    %20 = arith.addi %16, %19 : vector<1x256xi32>
    %c0_i32_5 = arith.constant 0 : i32
    %21 = vector.broadcast %c0_i32_5 : i32 to vector<1x256xi32>
    %22 = arith.cmpi sge, %20, %21 : vector<1x256xi32>
    %c-1_i32_6 = arith.constant -1 : i32
    %23 = vector.broadcast %c-1_i32_6 : i32 to vector<1x256xi32>
    %24 = arith.addi %16, %23 : vector<1x256xi32>
    %c128_i32_7 = arith.constant 128 : i32
    %25 = vector.broadcast %c128_i32_7 : i32 to vector<1x256xi32>
    %26 = arith.cmpi slt, %24, %25 : vector<1x256xi32>
    %27 = arith.andi %22, %26 : vector<1x256xi1>
    %cst = arith.constant 0.000000e+00 : f32
    %28 = vector.shape_cast %27 : vector<1x256xi1> to vector<1x256xi1>
    %29 = vector.broadcast %28 : vector<1x256xi1> to vector<4x256xi1>
    %30 = vector.broadcast %cst : f32 to vector<4x256xf32>
    %31 = arith.select %29, %18, %30 : vector<4x256xi1>, vector<4x256xf32>
    %c255_i32 = arith.constant 255 : i32
    %32 = tpu.dynamic_rotate %17 by %c255_i32 dim 1 : vector<4x256xf32>, i32 -> vector<4x256xf32>
    %c1_i32_8 = arith.constant 1 : i32
    %33 = vector.broadcast %c1_i32_8 : i32 to vector<1x256xi32>
    %34 = arith.addi %16, %33 : vector<1x256xi32>
    %c0_i32_9 = arith.constant 0 : i32
    %35 = vector.broadcast %c0_i32_9 : i32 to vector<1x256xi32>
    %36 = arith.cmpi sge, %34, %35 : vector<1x256xi32>
    %c1_i32_10 = arith.constant 1 : i32
    %37 = vector.broadcast %c1_i32_10 : i32 to vector<1x256xi32>
    %38 = arith.addi %16, %37 : vector<1x256xi32>
    %c128_i32_11 = arith.constant 128 : i32
    %39 = vector.broadcast %c128_i32_11 : i32 to vector<1x256xi32>
    %40 = arith.cmpi slt, %38, %39 : vector<1x256xi32>
    %41 = arith.andi %36, %40 : vector<1x256xi1>
    %cst_12 = arith.constant 0.000000e+00 : f32
    %42 = vector.shape_cast %41 : vector<1x256xi1> to vector<1x256xi1>
    %43 = vector.broadcast %42 : vector<1x256xi1> to vector<4x256xi1>
    %44 = vector.broadcast %cst_12 : f32 to vector<4x256xf32>
    %45 = arith.select %43, %32, %44 : vector<4x256xi1>, vector<4x256xf32>
    %c0_13 = arith.constant 0 : index
    %c0_14 = arith.constant 0 : index
    %46 = vector.load %arg1[%c0_13, %c0_14] : memref<32x12xf32, #tpu.memory_space<vmem>>, vector<32x12xf32>
    %cst_15 = arith.constant 0.000000e+00 : f32
    %47 = vector.broadcast %cst_15 : f32 to vector<32x256xf32>
    %48 = vector.extract_strided_slice %46 {offsets = [0, 0], sizes = [32, 4], strides = [1, 1]} : vector<32x12xf32> to vector<32x4xf32>
    %cst_16 = arith.constant dense<0.000000e+00> : vector<32x256xf32>
    %49 = tpu.matmul %48, %31, %cst_16 {dimension_numbers = #tpu.dot_dimension_numbers<[1], [0], [0], [1], [0, 0, 1, 1], [], []>} : vector<32x4xf32>, vector<4x256xf32>, vector<32x256xf32> -> vector<32x256xf32>
    %50 = arith.addf %47, %49 : vector<32x256xf32>
    %51 = vector.extract_strided_slice %46 {offsets = [0, 4], sizes = [32, 4], strides = [1, 1]} : vector<32x12xf32> to vector<32x4xf32>
    %cst_17 = arith.constant dense<0.000000e+00> : vector<32x256xf32>
    %52 = tpu.matmul %51, %17, %cst_17 {dimension_numbers = #tpu.dot_dimension_numbers<[1], [0], [0], [1], [0, 0, 1, 1], [], []>} : vector<32x4xf32>, vector<4x256xf32>, vector<32x256xf32> -> vector<32x256xf32>
    %53 = arith.addf %50, %52 : vector<32x256xf32>
    %54 = vector.extract_strided_slice %46 {offsets = [0, 8], sizes = [32, 4], strides = [1, 1]} : vector<32x12xf32> to vector<32x4xf32>
    %cst_18 = arith.constant dense<0.000000e+00> : vector<32x256xf32>
    %55 = tpu.matmul %54, %45, %cst_18 {dimension_numbers = #tpu.dot_dimension_numbers<[1], [0], [0], [1], [0, 0, 1, 1], [], []>} : vector<32x4xf32>, vector<4x256xf32>, vector<32x256xf32> -> vector<32x256xf32>
    %56 = arith.addf %53, %55 : vector<32x256xf32>
    %c0_19 = arith.constant 0 : index
    %c0_20 = arith.constant 0 : index
    %57 = vector.load %arg2[%c0_19, %c0_20] : memref<32x1xf32, #tpu.memory_space<vmem>>, vector<32x1xf32>
    %58 = vector.broadcast %57 : vector<32x1xf32> to vector<32x256xf32>
    %59 = arith.addf %56, %58 : vector<32x256xf32>
    %c0_21 = arith.constant 0 : index
    %c0_22 = arith.constant 0 : index
    %60 = vector.load %arg3[%c0_21, %c0_22] : memref<32x1xf32, #tpu.memory_space<vmem>>, vector<32x1xf32>
    %61 = vector.broadcast %60 : vector<32x1xf32> to vector<32x256xf32>
    %62 = arith.mulf %59, %61 : vector<32x256xf32>
    %c0_23 = arith.constant 0 : index
    %c0_24 = arith.constant 0 : index
    %63 = vector.load %arg4[%c0_23, %c0_24] : memref<32x1xf32, #tpu.memory_space<vmem>>, vector<32x1xf32>
    %64 = vector.broadcast %63 : vector<32x1xf32> to vector<32x256xf32>
    %65 = arith.addf %62, %64 : vector<32x256xf32>
    %cst_25 = arith.constant 0.000000e+00 : f32
    %66 = vector.broadcast %cst_25 : f32 to vector<32x256xf32>
    %67 = arith.maximumf %65, %66 : vector<32x256xf32>
    %c3_i32 = arith.constant 3 : i32
    %68 = tpu.dynamic_rotate %67 by %c3_i32 dim 1 : vector<32x256xf32>, i32 -> vector<32x256xf32>
    %c-3_i32 = arith.constant -3 : i32
    %69 = vector.broadcast %c-3_i32 : i32 to vector<1x256xi32>
    %70 = arith.addi %16, %69 : vector<1x256xi32>
    %c0_i32_26 = arith.constant 0 : i32
    %71 = vector.broadcast %c0_i32_26 : i32 to vector<1x256xi32>
    %72 = arith.cmpi sge, %70, %71 : vector<1x256xi32>
    %c-3_i32_27 = arith.constant -3 : i32
    %73 = vector.broadcast %c-3_i32_27 : i32 to vector<1x256xi32>
    %74 = arith.addi %16, %73 : vector<1x256xi32>
    %c128_i32_28 = arith.constant 128 : i32
    %75 = vector.broadcast %c128_i32_28 : i32 to vector<1x256xi32>
    %76 = arith.cmpi slt, %74, %75 : vector<1x256xi32>
    %77 = arith.andi %72, %76 : vector<1x256xi1>
    %cst_29 = arith.constant 0.000000e+00 : f32
    %78 = vector.shape_cast %77 : vector<1x256xi1> to vector<1x256xi1>
    %79 = vector.broadcast %78 : vector<1x256xi1> to vector<32x256xi1>
    %80 = vector.broadcast %cst_29 : f32 to vector<32x256xf32>
    %81 = arith.select %79, %68, %80 : vector<32x256xi1>, vector<32x256xf32>
    %c253_i32 = arith.constant 253 : i32
    %82 = tpu.dynamic_rotate %67 by %c253_i32 dim 1 : vector<32x256xf32>, i32 -> vector<32x256xf32>
    %c3_i32_30 = arith.constant 3 : i32
    %83 = vector.broadcast %c3_i32_30 : i32 to vector<1x256xi32>
    %84 = arith.addi %16, %83 : vector<1x256xi32>
    %c0_i32_31 = arith.constant 0 : i32
    %85 = vector.broadcast %c0_i32_31 : i32 to vector<1x256xi32>
    %86 = arith.cmpi sge, %84, %85 : vector<1x256xi32>
    %c3_i32_32 = arith.constant 3 : i32
    %87 = vector.broadcast %c3_i32_32 : i32 to vector<1x256xi32>
    %88 = arith.addi %16, %87 : vector<1x256xi32>
    %c128_i32_33 = arith.constant 128 : i32
    %89 = vector.broadcast %c128_i32_33 : i32 to vector<1x256xi32>
    %90 = arith.cmpi slt, %88, %89 : vector<1x256xi32>
    %91 = arith.andi %86, %90 : vector<1x256xi1>
    %cst_34 = arith.constant 0.000000e+00 : f32
    %92 = vector.shape_cast %91 : vector<1x256xi1> to vector<1x256xi1>
    %93 = vector.broadcast %92 : vector<1x256xi1> to vector<32x256xi1>
    %94 = vector.broadcast %cst_34 : f32 to vector<32x256xf32>
    %95 = arith.select %93, %82, %94 : vector<32x256xi1>, vector<32x256xf32>
    %96 = tpu.concatenate %81, %67, %95 in 0 : vector<32x256xf32>, vector<32x256xf32>, vector<32x256xf32> -> vector<96x256xf32>
    %c0_35 = arith.constant 0 : index
    %c0_36 = arith.constant 0 : index
    %97 = vector.load %arg5[%c0_35, %c0_36] : memref<16x96xf32, #tpu.memory_space<vmem>>, vector<16x96xf32>
    %cst_37 = arith.constant dense<0.000000e+00> : vector<16x256xf32>
    %98 = tpu.matmul %97, %96, %cst_37 {dimension_numbers = #tpu.dot_dimension_numbers<[1], [0], [0], [1], [0, 0, 1, 1], [], []>} : vector<16x96xf32>, vector<96x256xf32>, vector<16x256xf32> -> vector<16x256xf32>
    %c0_38 = arith.constant 0 : index
    %c0_39 = arith.constant 0 : index
    %99 = vector.load %arg6[%c0_38, %c0_39] : memref<16x1xf32, #tpu.memory_space<vmem>>, vector<16x1xf32>
    %100 = vector.broadcast %99 : vector<16x1xf32> to vector<16x256xf32>
    %101 = arith.addf %98, %100 : vector<16x256xf32>
    %c0_40 = arith.constant 0 : index
    %c0_41 = arith.constant 0 : index
    %102 = vector.load %arg7[%c0_40, %c0_41] : memref<16x1xf32, #tpu.memory_space<vmem>>, vector<16x1xf32>
    %103 = vector.broadcast %102 : vector<16x1xf32> to vector<16x256xf32>
    %104 = arith.mulf %101, %103 : vector<16x256xf32>
    %c0_42 = arith.constant 0 : index
    %c0_43 = arith.constant 0 : index
    %105 = vector.load %arg8[%c0_42, %c0_43] : memref<16x1xf32, #tpu.memory_space<vmem>>, vector<16x1xf32>
    %106 = vector.broadcast %105 : vector<16x1xf32> to vector<16x256xf32>
    %107 = arith.addf %104, %106 : vector<16x256xf32>
    %cst_44 = arith.constant 0.000000e+00 : f32
    %108 = vector.broadcast %cst_44 : f32 to vector<16x256xf32>
    %109 = arith.maximumf %107, %108 : vector<16x256xf32>
    %c0_45 = arith.constant 0 : index
    %c0_46 = arith.constant 0 : index
    %110 = vector.load %arg9[%c0_45, %c0_46] : memref<32x16xf32, #tpu.memory_space<vmem>>, vector<32x16xf32>
    %cst_47 = arith.constant dense<0.000000e+00> : vector<32x256xf32>
    %111 = tpu.matmul %110, %109, %cst_47 {dimension_numbers = #tpu.dot_dimension_numbers<[1], [0], [0], [1], [0, 0, 1, 1], [], []>} : vector<32x16xf32>, vector<16x256xf32>, vector<32x256xf32> -> vector<32x256xf32>
    %c0_48 = arith.constant 0 : index
    %c0_49 = arith.constant 0 : index
    %112 = vector.load %arg10[%c0_48, %c0_49] : memref<32x1xf32, #tpu.memory_space<vmem>>, vector<32x1xf32>
    %113 = vector.broadcast %112 : vector<32x1xf32> to vector<32x256xf32>
    %114 = arith.addf %111, %113 : vector<32x256xf32>
    %115 = arith.addf %59, %114 : vector<32x256xf32>
    %c0_50 = arith.constant 0 : index
    %c0_51 = arith.constant 0 : index
    %116 = vector.load %arg11[%c0_50, %c0_51] : memref<32x1xf32, #tpu.memory_space<vmem>>, vector<32x1xf32>
    %117 = vector.broadcast %116 : vector<32x1xf32> to vector<32x256xf32>
    %118 = arith.mulf %115, %117 : vector<32x256xf32>
    %c0_52 = arith.constant 0 : index
    %c0_53 = arith.constant 0 : index
    %119 = vector.load %arg12[%c0_52, %c0_53] : memref<32x1xf32, #tpu.memory_space<vmem>>, vector<32x1xf32>
    %120 = vector.broadcast %119 : vector<32x1xf32> to vector<32x256xf32>
    %121 = arith.addf %118, %120 : vector<32x256xf32>
    %cst_54 = arith.constant 0.000000e+00 : f32
    %122 = vector.broadcast %cst_54 : f32 to vector<32x256xf32>
    %123 = arith.maximumf %121, %122 : vector<32x256xf32>
    %c3_i32_55 = arith.constant 3 : i32
    %124 = tpu.dynamic_rotate %123 by %c3_i32_55 dim 1 : vector<32x256xf32>, i32 -> vector<32x256xf32>
    %c-3_i32_56 = arith.constant -3 : i32
    %125 = vector.broadcast %c-3_i32_56 : i32 to vector<1x256xi32>
    %126 = arith.addi %16, %125 : vector<1x256xi32>
    %c0_i32_57 = arith.constant 0 : i32
    %127 = vector.broadcast %c0_i32_57 : i32 to vector<1x256xi32>
    %128 = arith.cmpi sge, %126, %127 : vector<1x256xi32>
    %c-3_i32_58 = arith.constant -3 : i32
    %129 = vector.broadcast %c-3_i32_58 : i32 to vector<1x256xi32>
    %130 = arith.addi %16, %129 : vector<1x256xi32>
    %c128_i32_59 = arith.constant 128 : i32
    %131 = vector.broadcast %c128_i32_59 : i32 to vector<1x256xi32>
    %132 = arith.cmpi slt, %130, %131 : vector<1x256xi32>
    %133 = arith.andi %128, %132 : vector<1x256xi1>
    %cst_60 = arith.constant 0.000000e+00 : f32
    %134 = vector.shape_cast %133 : vector<1x256xi1> to vector<1x256xi1>
    %135 = vector.broadcast %134 : vector<1x256xi1> to vector<32x256xi1>
    %136 = vector.broadcast %cst_60 : f32 to vector<32x256xf32>
    %137 = arith.select %135, %124, %136 : vector<32x256xi1>, vector<32x256xf32>
    %c253_i32_61 = arith.constant 253 : i32
    %138 = tpu.dynamic_rotate %123 by %c253_i32_61 dim 1 : vector<32x256xf32>, i32 -> vector<32x256xf32>
    %c3_i32_62 = arith.constant 3 : i32
    %139 = vector.broadcast %c3_i32_62 : i32 to vector<1x256xi32>
    %140 = arith.addi %16, %139 : vector<1x256xi32>
    %c0_i32_63 = arith.constant 0 : i32
    %141 = vector.broadcast %c0_i32_63 : i32 to vector<1x256xi32>
    %142 = arith.cmpi sge, %140, %141 : vector<1x256xi32>
    %c3_i32_64 = arith.constant 3 : i32
    %143 = vector.broadcast %c3_i32_64 : i32 to vector<1x256xi32>
    %144 = arith.addi %16, %143 : vector<1x256xi32>
    %c128_i32_65 = arith.constant 128 : i32
    %145 = vector.broadcast %c128_i32_65 : i32 to vector<1x256xi32>
    %146 = arith.cmpi slt, %144, %145 : vector<1x256xi32>
    %147 = arith.andi %142, %146 : vector<1x256xi1>
    %cst_66 = arith.constant 0.000000e+00 : f32
    %148 = vector.shape_cast %147 : vector<1x256xi1> to vector<1x256xi1>
    %149 = vector.broadcast %148 : vector<1x256xi1> to vector<32x256xi1>
    %150 = vector.broadcast %cst_66 : f32 to vector<32x256xf32>
    %151 = arith.select %149, %138, %150 : vector<32x256xi1>, vector<32x256xf32>
    %152 = tpu.concatenate %137, %123, %151 in 0 : vector<32x256xf32>, vector<32x256xf32>, vector<32x256xf32> -> vector<96x256xf32>
    %c0_67 = arith.constant 0 : index
    %c0_68 = arith.constant 0 : index
    %153 = vector.load %arg13[%c0_67, %c0_68] : memref<16x96xf32, #tpu.memory_space<vmem>>, vector<16x96xf32>
    %cst_69 = arith.constant dense<0.000000e+00> : vector<16x256xf32>
    %154 = tpu.matmul %153, %152, %cst_69 {dimension_numbers = #tpu.dot_dimension_numbers<[1], [0], [0], [1], [0, 0, 1, 1], [], []>} : vector<16x96xf32>, vector<96x256xf32>, vector<16x256xf32> -> vector<16x256xf32>
    %c0_70 = arith.constant 0 : index
    %c0_71 = arith.constant 0 : index
    %155 = vector.load %arg14[%c0_70, %c0_71] : memref<16x1xf32, #tpu.memory_space<vmem>>, vector<16x1xf32>
    %156 = vector.broadcast %155 : vector<16x1xf32> to vector<16x256xf32>
    %157 = arith.addf %154, %156 : vector<16x256xf32>
    %c0_72 = arith.constant 0 : index
    %c0_73 = arith.constant 0 : index
    %158 = vector.load %arg15[%c0_72, %c0_73] : memref<16x1xf32, #tpu.memory_space<vmem>>, vector<16x1xf32>
    %159 = vector.broadcast %158 : vector<16x1xf32> to vector<16x256xf32>
    %160 = arith.mulf %157, %159 : vector<16x256xf32>
    %c0_74 = arith.constant 0 : index
    %c0_75 = arith.constant 0 : index
    %161 = vector.load %arg16[%c0_74, %c0_75] : memref<16x1xf32, #tpu.memory_space<vmem>>, vector<16x1xf32>
    %162 = vector.broadcast %161 : vector<16x1xf32> to vector<16x256xf32>
    %163 = arith.addf %160, %162 : vector<16x256xf32>
    %cst_76 = arith.constant 0.000000e+00 : f32
    %164 = vector.broadcast %cst_76 : f32 to vector<16x256xf32>
    %165 = arith.maximumf %163, %164 : vector<16x256xf32>
    %c0_77 = arith.constant 0 : index
    %c0_78 = arith.constant 0 : index
    %166 = vector.load %arg17[%c0_77, %c0_78] : memref<32x16xf32, #tpu.memory_space<vmem>>, vector<32x16xf32>
    %cst_79 = arith.constant dense<0.000000e+00> : vector<32x256xf32>
    %167 = tpu.matmul %166, %165, %cst_79 {dimension_numbers = #tpu.dot_dimension_numbers<[1], [0], [0], [1], [0, 0, 1, 1], [], []>} : vector<32x16xf32>, vector<16x256xf32>, vector<32x256xf32> -> vector<32x256xf32>
    %c0_80 = arith.constant 0 : index
    %c0_81 = arith.constant 0 : index
    %168 = vector.load %arg18[%c0_80, %c0_81] : memref<32x1xf32, #tpu.memory_space<vmem>>, vector<32x1xf32>
    %169 = vector.broadcast %168 : vector<32x1xf32> to vector<32x256xf32>
    %170 = arith.addf %167, %169 : vector<32x256xf32>
    %171 = arith.addf %115, %170 : vector<32x256xf32>
    %c1_i32_82 = arith.constant 1 : i32
    %172 = tpu.dynamic_rotate %171 by %c1_i32_82 dim 1 : vector<32x256xf32>, i32 -> vector<32x256xf32>
    %c-1_i32_83 = arith.constant -1 : i32
    %173 = vector.broadcast %c-1_i32_83 : i32 to vector<1x256xi32>
    %174 = arith.addi %16, %173 : vector<1x256xi32>
    %c0_i32_84 = arith.constant 0 : i32
    %175 = vector.broadcast %c0_i32_84 : i32 to vector<1x256xi32>
    %176 = arith.cmpi sge, %174, %175 : vector<1x256xi32>
    %c-1_i32_85 = arith.constant -1 : i32
    %177 = vector.broadcast %c-1_i32_85 : i32 to vector<1x256xi32>
    %178 = arith.addi %16, %177 : vector<1x256xi32>
    %c128_i32_86 = arith.constant 128 : i32
    %179 = vector.broadcast %c128_i32_86 : i32 to vector<1x256xi32>
    %180 = arith.cmpi slt, %178, %179 : vector<1x256xi32>
    %181 = arith.andi %176, %180 : vector<1x256xi1>
    %cst_87 = arith.constant 0.000000e+00 : f32
    %182 = vector.shape_cast %181 : vector<1x256xi1> to vector<1x256xi1>
    %183 = vector.broadcast %182 : vector<1x256xi1> to vector<32x256xi1>
    %184 = vector.broadcast %cst_87 : f32 to vector<32x256xf32>
    %185 = arith.select %183, %172, %184 : vector<32x256xi1>, vector<32x256xf32>
    %c255_i32_88 = arith.constant 255 : i32
    %186 = tpu.dynamic_rotate %171 by %c255_i32_88 dim 1 : vector<32x256xf32>, i32 -> vector<32x256xf32>
    %c1_i32_89 = arith.constant 1 : i32
    %187 = vector.broadcast %c1_i32_89 : i32 to vector<1x256xi32>
    %188 = arith.addi %16, %187 : vector<1x256xi32>
    %c0_i32_90 = arith.constant 0 : i32
    %189 = vector.broadcast %c0_i32_90 : i32 to vector<1x256xi32>
    %190 = arith.cmpi sge, %188, %189 : vector<1x256xi32>
    %c1_i32_91 = arith.constant 1 : i32
    %191 = vector.broadcast %c1_i32_91 : i32 to vector<1x256xi32>
    %192 = arith.addi %16, %191 : vector<1x256xi32>
    %c128_i32_92 = arith.constant 128 : i32
    %193 = vector.broadcast %c128_i32_92 : i32 to vector<1x256xi32>
    %194 = arith.cmpi slt, %192, %193 : vector<1x256xi32>
    %195 = arith.andi %190, %194 : vector<1x256xi1>
    %cst_93 = arith.constant 0.000000e+00 : f32
    %196 = vector.shape_cast %195 : vector<1x256xi1> to vector<1x256xi1>
    %197 = vector.broadcast %196 : vector<1x256xi1> to vector<32x256xi1>
    %198 = vector.broadcast %cst_93 : f32 to vector<32x256xf32>
    %199 = arith.select %197, %186, %198 : vector<32x256xi1>, vector<32x256xf32>
    %200 = tpu.concatenate %185, %171, %199 in 0 : vector<32x256xf32>, vector<32x256xf32>, vector<32x256xf32> -> vector<96x256xf32>
    %c0_94 = arith.constant 0 : index
    %c0_95 = arith.constant 0 : index
    %201 = vector.load %arg19[%c0_94, %c0_95] : memref<64x96xf32, #tpu.memory_space<vmem>>, vector<64x96xf32>
    %cst_96 = arith.constant dense<0.000000e+00> : vector<64x256xf32>
    %202 = tpu.matmul %201, %200, %cst_96 {dimension_numbers = #tpu.dot_dimension_numbers<[1], [0], [0], [1], [0, 0, 1, 1], [], []>} : vector<64x96xf32>, vector<96x256xf32>, vector<64x256xf32> -> vector<64x256xf32>
    %c0_97 = arith.constant 0 : index
    %c0_98 = arith.constant 0 : index
    %203 = vector.load %arg20[%c0_97, %c0_98] : memref<64x1xf32, #tpu.memory_space<vmem>>, vector<64x1xf32>
    %204 = vector.broadcast %203 : vector<64x1xf32> to vector<64x256xf32>
    %205 = arith.addf %202, %204 : vector<64x256xf32>
    %c0_99 = arith.constant 0 : index
    %c0_100 = arith.constant 0 : index
    %206 = vector.load %arg21[%c0_99, %c0_100] : memref<64x256xf32, #tpu.memory_space<vmem>>, vector<64x256xf32>
    tpu.vector_store %arg21[%c0_99, %c0_100], %205 {strides = array<i32>} : memref<64x256xf32, #tpu.memory_space<vmem>>, vector<64x256xf32>,
    return
  }
}

module attributes {stable_mosaic.version = 11 : i64} {
  func.func @_conv_stack_kernel(%arg0: memref<64x256xf32, #tpu.memory_space<vmem>>, %arg1: memref<32x192xf32, #tpu.memory_space<vmem>>, %arg2: memref<32x1xf32, #tpu.memory_space<vmem>>, %arg3: memref<32x1xf32, #tpu.memory_space<vmem>>, %arg4: memref<32x1xf32, #tpu.memory_space<vmem>>, %arg5: memref<16x96xf32, #tpu.memory_space<vmem>>, %arg6: memref<16x1xf32, #tpu.memory_space<vmem>>, %arg7: memref<16x1xf32, #tpu.memory_space<vmem>>, %arg8: memref<16x1xf32, #tpu.memory_space<vmem>>, %arg9: memref<32x16xf32, #tpu.memory_space<vmem>>, %arg10: memref<32x1xf32, #tpu.memory_space<vmem>>, %arg11: memref<32x1xf32, #tpu.memory_space<vmem>>, %arg12: memref<32x1xf32, #tpu.memory_space<vmem>>, %arg13: memref<16x96xf32, #tpu.memory_space<vmem>>, %arg14: memref<16x1xf32, #tpu.memory_space<vmem>>, %arg15: memref<16x1xf32, #tpu.memory_space<vmem>>, %arg16: memref<16x1xf32, #tpu.memory_space<vmem>>, %arg17: memref<32x16xf32, #tpu.memory_space<vmem>>, %arg18: memref<32x1xf32, #tpu.memory_space<vmem>>, %arg19: memref<4x96xf32, #tpu.memory_space<vmem>>, %arg20: memref<4x1xf32, #tpu.memory_space<vmem>>, %arg21: memref<4x256xf32, #tpu.memory_space<vmem>>) attributes {dimension_semantics = [], scalar_prefetch = 0 : i64, scratch_operands = 0 : i64, tpu.core_type = #tpu.core_type<tc>} {
    %0 = tpu.iota {dimensions = array<i32: 1>} : vector<1x256xi32>
    %c128_i32 = arith.constant 128 : i32
    %c0_i32 = arith.constant 0 : i32
    %1 = arith.cmpi eq, %c128_i32, %c0_i32 : i32
    %c1_i32 = arith.constant 1 : i32
    %2 = arith.select %1, %c1_i32, %c128_i32 : i32
    %3 = vector.broadcast %2 : i32 to vector<1x256xi32>
    %4 = arith.remsi %0, %3 : vector<1x256xi32>
    %c0_i32_0 = arith.constant 0 : i32
    %5 = vector.broadcast %c0_i32_0 : i32 to vector<1x256xi32>
    %6 = arith.cmpi ne, %4, %5 : vector<1x256xi32>
    %c0_i32_1 = arith.constant 0 : i32
    %7 = vector.broadcast %c0_i32_1 : i32 to vector<1x256xi32>
    %8 = arith.cmpi slt, %4, %7 : vector<1x256xi32>
    %c0_i32_2 = arith.constant 0 : i32
    %9 = arith.cmpi slt, %2, %c0_i32_2 : i32
    %10 = vector.broadcast %9 : i1 to vector<1x256xi1>
    %11 = vector.broadcast %10 : vector<1x256xi1> to vector<1x256xi1>
    %12 = arith.xori %8, %11 : vector<1x256xi1>
    %13 = arith.andi %12, %6 : vector<1x256xi1>
    %14 = vector.broadcast %2 : i32 to vector<1x256xi32>
    %15 = arith.addi %4, %14 : vector<1x256xi32>
    %16 = arith.select %13, %15, %4 : vector<1x256xi1>, vector<1x256xi32>
    %c0 = arith.constant 0 : index
    %c0_3 = arith.constant 0 : index
    %17 = vector.load %arg0[%c0, %c0_3] : memref<64x256xf32, #tpu.memory_space<vmem>>, vector<64x256xf32>
    %c1_i32_4 = arith.constant 1 : i32
    %18 = tpu.dynamic_rotate %17 by %c1_i32_4 dim 1 : vector<64x256xf32>, i32 -> vector<64x256xf32>
    %c-1_i32 = arith.constant -1 : i32
    %19 = vector.broadcast %c-1_i32 : i32 to vector<1x256xi32>
    %20 = arith.addi %16, %19 : vector<1x256xi32>
    %c0_i32_5 = arith.constant 0 : i32
    %21 = vector.broadcast %c0_i32_5 : i32 to vector<1x256xi32>
    %22 = arith.cmpi sge, %20, %21 : vector<1x256xi32>
    %c-1_i32_6 = arith.constant -1 : i32
    %23 = vector.broadcast %c-1_i32_6 : i32 to vector<1x256xi32>
    %24 = arith.addi %16, %23 : vector<1x256xi32>
    %c128_i32_7 = arith.constant 128 : i32
    %25 = vector.broadcast %c128_i32_7 : i32 to vector<1x256xi32>
    %26 = arith.cmpi slt, %24, %25 : vector<1x256xi32>
    %27 = arith.andi %22, %26 : vector<1x256xi1>
    %cst = arith.constant 0.000000e+00 : f32
    %28 = vector.shape_cast %27 : vector<1x256xi1> to vector<1x256xi1>
    %29 = vector.broadcast %28 : vector<1x256xi1> to vector<64x256xi1>
    %30 = vector.broadcast %cst : f32 to vector<64x256xf32>
    %31 = arith.select %29, %18, %30 : vector<64x256xi1>, vector<64x256xf32>
    %c255_i32 = arith.constant 255 : i32
    %32 = tpu.dynamic_rotate %17 by %c255_i32 dim 1 : vector<64x256xf32>, i32 -> vector<64x256xf32>
    %c1_i32_8 = arith.constant 1 : i32
    %33 = vector.broadcast %c1_i32_8 : i32 to vector<1x256xi32>
    %34 = arith.addi %16, %33 : vector<1x256xi32>
    %c0_i32_9 = arith.constant 0 : i32
    %35 = vector.broadcast %c0_i32_9 : i32 to vector<1x256xi32>
    %36 = arith.cmpi sge, %34, %35 : vector<1x256xi32>
    %c1_i32_10 = arith.constant 1 : i32
    %37 = vector.broadcast %c1_i32_10 : i32 to vector<1x256xi32>
    %38 = arith.addi %16, %37 : vector<1x256xi32>
    %c128_i32_11 = arith.constant 128 : i32
    %39 = vector.broadcast %c128_i32_11 : i32 to vector<1x256xi32>
    %40 = arith.cmpi slt, %38, %39 : vector<1x256xi32>
    %41 = arith.andi %36, %40 : vector<1x256xi1>
    %cst_12 = arith.constant 0.000000e+00 : f32
    %42 = vector.shape_cast %41 : vector<1x256xi1> to vector<1x256xi1>
    %43 = vector.broadcast %42 : vector<1x256xi1> to vector<64x256xi1>
    %44 = vector.broadcast %cst_12 : f32 to vector<64x256xf32>
    %45 = arith.select %43, %32, %44 : vector<64x256xi1>, vector<64x256xf32>
    %46 = tpu.concatenate %31, %17, %45 in 0 : vector<64x256xf32>, vector<64x256xf32>, vector<64x256xf32> -> vector<192x256xf32>
    %c0_13 = arith.constant 0 : index
    %c0_14 = arith.constant 0 : index
    %47 = vector.load %arg1[%c0_13, %c0_14] : memref<32x192xf32, #tpu.memory_space<vmem>>, vector<32x192xf32>
    %cst_15 = arith.constant dense<0.000000e+00> : vector<32x256xf32>
    %48 = tpu.matmul %47, %46, %cst_15 {dimension_numbers = #tpu.dot_dimension_numbers<[1], [0], [0], [1], [0, 0, 1, 1], [], []>} : vector<32x192xf32>, vector<192x256xf32>, vector<32x256xf32> -> vector<32x256xf32>
    %c0_16 = arith.constant 0 : index
    %c0_17 = arith.constant 0 : index
    %49 = vector.load %arg2[%c0_16, %c0_17] : memref<32x1xf32, #tpu.memory_space<vmem>>, vector<32x1xf32>
    %50 = vector.broadcast %49 : vector<32x1xf32> to vector<32x256xf32>
    %51 = arith.addf %48, %50 : vector<32x256xf32>
    %c0_18 = arith.constant 0 : index
    %c0_19 = arith.constant 0 : index
    %52 = vector.load %arg3[%c0_18, %c0_19] : memref<32x1xf32, #tpu.memory_space<vmem>>, vector<32x1xf32>
    %53 = vector.broadcast %52 : vector<32x1xf32> to vector<32x256xf32>
    %54 = arith.mulf %51, %53 : vector<32x256xf32>
    %c0_20 = arith.constant 0 : index
    %c0_21 = arith.constant 0 : index
    %55 = vector.load %arg4[%c0_20, %c0_21] : memref<32x1xf32, #tpu.memory_space<vmem>>, vector<32x1xf32>
    %56 = vector.broadcast %55 : vector<32x1xf32> to vector<32x256xf32>
    %57 = arith.addf %54, %56 : vector<32x256xf32>
    %cst_22 = arith.constant 0.000000e+00 : f32
    %58 = vector.broadcast %cst_22 : f32 to vector<32x256xf32>
    %59 = arith.maximumf %57, %58 : vector<32x256xf32>
    %c3_i32 = arith.constant 3 : i32
    %60 = tpu.dynamic_rotate %59 by %c3_i32 dim 1 : vector<32x256xf32>, i32 -> vector<32x256xf32>
    %c-3_i32 = arith.constant -3 : i32
    %61 = vector.broadcast %c-3_i32 : i32 to vector<1x256xi32>
    %62 = arith.addi %16, %61 : vector<1x256xi32>
    %c0_i32_23 = arith.constant 0 : i32
    %63 = vector.broadcast %c0_i32_23 : i32 to vector<1x256xi32>
    %64 = arith.cmpi sge, %62, %63 : vector<1x256xi32>
    %c-3_i32_24 = arith.constant -3 : i32
    %65 = vector.broadcast %c-3_i32_24 : i32 to vector<1x256xi32>
    %66 = arith.addi %16, %65 : vector<1x256xi32>
    %c128_i32_25 = arith.constant 128 : i32
    %67 = vector.broadcast %c128_i32_25 : i32 to vector<1x256xi32>
    %68 = arith.cmpi slt, %66, %67 : vector<1x256xi32>
    %69 = arith.andi %64, %68 : vector<1x256xi1>
    %cst_26 = arith.constant 0.000000e+00 : f32
    %70 = vector.shape_cast %69 : vector<1x256xi1> to vector<1x256xi1>
    %71 = vector.broadcast %70 : vector<1x256xi1> to vector<32x256xi1>
    %72 = vector.broadcast %cst_26 : f32 to vector<32x256xf32>
    %73 = arith.select %71, %60, %72 : vector<32x256xi1>, vector<32x256xf32>
    %c253_i32 = arith.constant 253 : i32
    %74 = tpu.dynamic_rotate %59 by %c253_i32 dim 1 : vector<32x256xf32>, i32 -> vector<32x256xf32>
    %c3_i32_27 = arith.constant 3 : i32
    %75 = vector.broadcast %c3_i32_27 : i32 to vector<1x256xi32>
    %76 = arith.addi %16, %75 : vector<1x256xi32>
    %c0_i32_28 = arith.constant 0 : i32
    %77 = vector.broadcast %c0_i32_28 : i32 to vector<1x256xi32>
    %78 = arith.cmpi sge, %76, %77 : vector<1x256xi32>
    %c3_i32_29 = arith.constant 3 : i32
    %79 = vector.broadcast %c3_i32_29 : i32 to vector<1x256xi32>
    %80 = arith.addi %16, %79 : vector<1x256xi32>
    %c128_i32_30 = arith.constant 128 : i32
    %81 = vector.broadcast %c128_i32_30 : i32 to vector<1x256xi32>
    %82 = arith.cmpi slt, %80, %81 : vector<1x256xi32>
    %83 = arith.andi %78, %82 : vector<1x256xi1>
    %cst_31 = arith.constant 0.000000e+00 : f32
    %84 = vector.shape_cast %83 : vector<1x256xi1> to vector<1x256xi1>
    %85 = vector.broadcast %84 : vector<1x256xi1> to vector<32x256xi1>
    %86 = vector.broadcast %cst_31 : f32 to vector<32x256xf32>
    %87 = arith.select %85, %74, %86 : vector<32x256xi1>, vector<32x256xf32>
    %88 = tpu.concatenate %73, %59, %87 in 0 : vector<32x256xf32>, vector<32x256xf32>, vector<32x256xf32> -> vector<96x256xf32>
    %c0_32 = arith.constant 0 : index
    %c0_33 = arith.constant 0 : index
    %89 = vector.load %arg5[%c0_32, %c0_33] : memref<16x96xf32, #tpu.memory_space<vmem>>, vector<16x96xf32>
    %cst_34 = arith.constant dense<0.000000e+00> : vector<16x256xf32>
    %90 = tpu.matmul %89, %88, %cst_34 {dimension_numbers = #tpu.dot_dimension_numbers<[1], [0], [0], [1], [0, 0, 1, 1], [], []>} : vector<16x96xf32>, vector<96x256xf32>, vector<16x256xf32> -> vector<16x256xf32>
    %c0_35 = arith.constant 0 : index
    %c0_36 = arith.constant 0 : index
    %91 = vector.load %arg6[%c0_35, %c0_36] : memref<16x1xf32, #tpu.memory_space<vmem>>, vector<16x1xf32>
    %92 = vector.broadcast %91 : vector<16x1xf32> to vector<16x256xf32>
    %93 = arith.addf %90, %92 : vector<16x256xf32>
    %c0_37 = arith.constant 0 : index
    %c0_38 = arith.constant 0 : index
    %94 = vector.load %arg7[%c0_37, %c0_38] : memref<16x1xf32, #tpu.memory_space<vmem>>, vector<16x1xf32>
    %95 = vector.broadcast %94 : vector<16x1xf32> to vector<16x256xf32>
    %96 = arith.mulf %93, %95 : vector<16x256xf32>
    %c0_39 = arith.constant 0 : index
    %c0_40 = arith.constant 0 : index
    %97 = vector.load %arg8[%c0_39, %c0_40] : memref<16x1xf32, #tpu.memory_space<vmem>>, vector<16x1xf32>
    %98 = vector.broadcast %97 : vector<16x1xf32> to vector<16x256xf32>
    %99 = arith.addf %96, %98 : vector<16x256xf32>
    %cst_41 = arith.constant 0.000000e+00 : f32
    %100 = vector.broadcast %cst_41 : f32 to vector<16x256xf32>
    %101 = arith.maximumf %99, %100 : vector<16x256xf32>
    %c0_42 = arith.constant 0 : index
    %c0_43 = arith.constant 0 : index
    %102 = vector.load %arg9[%c0_42, %c0_43] : memref<32x16xf32, #tpu.memory_space<vmem>>, vector<32x16xf32>
    %cst_44 = arith.constant dense<0.000000e+00> : vector<32x256xf32>
    %103 = tpu.matmul %102, %101, %cst_44 {dimension_numbers = #tpu.dot_dimension_numbers<[1], [0], [0], [1], [0, 0, 1, 1], [], []>} : vector<32x16xf32>, vector<16x256xf32>, vector<32x256xf32> -> vector<32x256xf32>
    %c0_45 = arith.constant 0 : index
    %c0_46 = arith.constant 0 : index
    %104 = vector.load %arg10[%c0_45, %c0_46] : memref<32x1xf32, #tpu.memory_space<vmem>>, vector<32x1xf32>
    %105 = vector.broadcast %104 : vector<32x1xf32> to vector<32x256xf32>
    %106 = arith.addf %103, %105 : vector<32x256xf32>
    %107 = arith.addf %51, %106 : vector<32x256xf32>
    %c0_47 = arith.constant 0 : index
    %c0_48 = arith.constant 0 : index
    %108 = vector.load %arg11[%c0_47, %c0_48] : memref<32x1xf32, #tpu.memory_space<vmem>>, vector<32x1xf32>
    %109 = vector.broadcast %108 : vector<32x1xf32> to vector<32x256xf32>
    %110 = arith.mulf %107, %109 : vector<32x256xf32>
    %c0_49 = arith.constant 0 : index
    %c0_50 = arith.constant 0 : index
    %111 = vector.load %arg12[%c0_49, %c0_50] : memref<32x1xf32, #tpu.memory_space<vmem>>, vector<32x1xf32>
    %112 = vector.broadcast %111 : vector<32x1xf32> to vector<32x256xf32>
    %113 = arith.addf %110, %112 : vector<32x256xf32>
    %cst_51 = arith.constant 0.000000e+00 : f32
    %114 = vector.broadcast %cst_51 : f32 to vector<32x256xf32>
    %115 = arith.maximumf %113, %114 : vector<32x256xf32>
    %c3_i32_52 = arith.constant 3 : i32
    %116 = tpu.dynamic_rotate %115 by %c3_i32_52 dim 1 : vector<32x256xf32>, i32 -> vector<32x256xf32>
    %c-3_i32_53 = arith.constant -3 : i32
    %117 = vector.broadcast %c-3_i32_53 : i32 to vector<1x256xi32>
    %118 = arith.addi %16, %117 : vector<1x256xi32>
    %c0_i32_54 = arith.constant 0 : i32
    %119 = vector.broadcast %c0_i32_54 : i32 to vector<1x256xi32>
    %120 = arith.cmpi sge, %118, %119 : vector<1x256xi32>
    %c-3_i32_55 = arith.constant -3 : i32
    %121 = vector.broadcast %c-3_i32_55 : i32 to vector<1x256xi32>
    %122 = arith.addi %16, %121 : vector<1x256xi32>
    %c128_i32_56 = arith.constant 128 : i32
    %123 = vector.broadcast %c128_i32_56 : i32 to vector<1x256xi32>
    %124 = arith.cmpi slt, %122, %123 : vector<1x256xi32>
    %125 = arith.andi %120, %124 : vector<1x256xi1>
    %cst_57 = arith.constant 0.000000e+00 : f32
    %126 = vector.shape_cast %125 : vector<1x256xi1> to vector<1x256xi1>
    %127 = vector.broadcast %126 : vector<1x256xi1> to vector<32x256xi1>
    %128 = vector.broadcast %cst_57 : f32 to vector<32x256xf32>
    %129 = arith.select %127, %116, %128 : vector<32x256xi1>, vector<32x256xf32>
    %c253_i32_58 = arith.constant 253 : i32
    %130 = tpu.dynamic_rotate %115 by %c253_i32_58 dim 1 : vector<32x256xf32>, i32 -> vector<32x256xf32>
    %c3_i32_59 = arith.constant 3 : i32
    %131 = vector.broadcast %c3_i32_59 : i32 to vector<1x256xi32>
    %132 = arith.addi %16, %131 : vector<1x256xi32>
    %c0_i32_60 = arith.constant 0 : i32
    %133 = vector.broadcast %c0_i32_60 : i32 to vector<1x256xi32>
    %134 = arith.cmpi sge, %132, %133 : vector<1x256xi32>
    %c3_i32_61 = arith.constant 3 : i32
    %135 = vector.broadcast %c3_i32_61 : i32 to vector<1x256xi32>
    %136 = arith.addi %16, %135 : vector<1x256xi32>
    %c128_i32_62 = arith.constant 128 : i32
    %137 = vector.broadcast %c128_i32_62 : i32 to vector<1x256xi32>
    %138 = arith.cmpi slt, %136, %137 : vector<1x256xi32>
    %139 = arith.andi %134, %138 : vector<1x256xi1>
    %cst_63 = arith.constant 0.000000e+00 : f32
    %140 = vector.shape_cast %139 : vector<1x256xi1> to vector<1x256xi1>
    %141 = vector.broadcast %140 : vector<1x256xi1> to vector<32x256xi1>
    %142 = vector.broadcast %cst_63 : f32 to vector<32x256xf32>
    %143 = arith.select %141, %130, %142 : vector<32x256xi1>, vector<32x256xf32>
    %144 = tpu.concatenate %129, %115, %143 in 0 : vector<32x256xf32>, vector<32x256xf32>, vector<32x256xf32> -> vector<96x256xf32>
    %c0_64 = arith.constant 0 : index
    %c0_65 = arith.constant 0 : index
    %145 = vector.load %arg13[%c0_64, %c0_65] : memref<16x96xf32, #tpu.memory_space<vmem>>, vector<16x96xf32>
    %cst_66 = arith.constant dense<0.000000e+00> : vector<16x256xf32>
    %146 = tpu.matmul %145, %144, %cst_66 {dimension_numbers = #tpu.dot_dimension_numbers<[1], [0], [0], [1], [0, 0, 1, 1], [], []>} : vector<16x96xf32>, vector<96x256xf32>, vector<16x256xf32> -> vector<16x256xf32>
    %c0_67 = arith.constant 0 : index
    %c0_68 = arith.constant 0 : index
    %147 = vector.load %arg14[%c0_67, %c0_68] : memref<16x1xf32, #tpu.memory_space<vmem>>, vector<16x1xf32>
    %148 = vector.broadcast %147 : vector<16x1xf32> to vector<16x256xf32>
    %149 = arith.addf %146, %148 : vector<16x256xf32>
    %c0_69 = arith.constant 0 : index
    %c0_70 = arith.constant 0 : index
    %150 = vector.load %arg15[%c0_69, %c0_70] : memref<16x1xf32, #tpu.memory_space<vmem>>, vector<16x1xf32>
    %151 = vector.broadcast %150 : vector<16x1xf32> to vector<16x256xf32>
    %152 = arith.mulf %149, %151 : vector<16x256xf32>
    %c0_71 = arith.constant 0 : index
    %c0_72 = arith.constant 0 : index
    %153 = vector.load %arg16[%c0_71, %c0_72] : memref<16x1xf32, #tpu.memory_space<vmem>>, vector<16x1xf32>
    %154 = vector.broadcast %153 : vector<16x1xf32> to vector<16x256xf32>
    %155 = arith.addf %152, %154 : vector<16x256xf32>
    %cst_73 = arith.constant 0.000000e+00 : f32
    %156 = vector.broadcast %cst_73 : f32 to vector<16x256xf32>
    %157 = arith.maximumf %155, %156 : vector<16x256xf32>
    %c0_74 = arith.constant 0 : index
    %c0_75 = arith.constant 0 : index
    %158 = vector.load %arg17[%c0_74, %c0_75] : memref<32x16xf32, #tpu.memory_space<vmem>>, vector<32x16xf32>
    %cst_76 = arith.constant dense<0.000000e+00> : vector<32x256xf32>
    %159 = tpu.matmul %158, %157, %cst_76 {dimension_numbers = #tpu.dot_dimension_numbers<[1], [0], [0], [1], [0, 0, 1, 1], [], []>} : vector<32x16xf32>, vector<16x256xf32>, vector<32x256xf32> -> vector<32x256xf32>
    %c0_77 = arith.constant 0 : index
    %c0_78 = arith.constant 0 : index
    %160 = vector.load %arg18[%c0_77, %c0_78] : memref<32x1xf32, #tpu.memory_space<vmem>>, vector<32x1xf32>
    %161 = vector.broadcast %160 : vector<32x1xf32> to vector<32x256xf32>
    %162 = arith.addf %159, %161 : vector<32x256xf32>
    %163 = arith.addf %107, %162 : vector<32x256xf32>
    %c1_i32_79 = arith.constant 1 : i32
    %164 = tpu.dynamic_rotate %163 by %c1_i32_79 dim 1 : vector<32x256xf32>, i32 -> vector<32x256xf32>
    %c-1_i32_80 = arith.constant -1 : i32
    %165 = vector.broadcast %c-1_i32_80 : i32 to vector<1x256xi32>
    %166 = arith.addi %16, %165 : vector<1x256xi32>
    %c0_i32_81 = arith.constant 0 : i32
    %167 = vector.broadcast %c0_i32_81 : i32 to vector<1x256xi32>
    %168 = arith.cmpi sge, %166, %167 : vector<1x256xi32>
    %c-1_i32_82 = arith.constant -1 : i32
    %169 = vector.broadcast %c-1_i32_82 : i32 to vector<1x256xi32>
    %170 = arith.addi %16, %169 : vector<1x256xi32>
    %c128_i32_83 = arith.constant 128 : i32
    %171 = vector.broadcast %c128_i32_83 : i32 to vector<1x256xi32>
    %172 = arith.cmpi slt, %170, %171 : vector<1x256xi32>
    %173 = arith.andi %168, %172 : vector<1x256xi1>
    %cst_84 = arith.constant 0.000000e+00 : f32
    %174 = vector.shape_cast %173 : vector<1x256xi1> to vector<1x256xi1>
    %175 = vector.broadcast %174 : vector<1x256xi1> to vector<32x256xi1>
    %176 = vector.broadcast %cst_84 : f32 to vector<32x256xf32>
    %177 = arith.select %175, %164, %176 : vector<32x256xi1>, vector<32x256xf32>
    %c255_i32_85 = arith.constant 255 : i32
    %178 = tpu.dynamic_rotate %163 by %c255_i32_85 dim 1 : vector<32x256xf32>, i32 -> vector<32x256xf32>
    %c1_i32_86 = arith.constant 1 : i32
    %179 = vector.broadcast %c1_i32_86 : i32 to vector<1x256xi32>
    %180 = arith.addi %16, %179 : vector<1x256xi32>
    %c0_i32_87 = arith.constant 0 : i32
    %181 = vector.broadcast %c0_i32_87 : i32 to vector<1x256xi32>
    %182 = arith.cmpi sge, %180, %181 : vector<1x256xi32>
    %c1_i32_88 = arith.constant 1 : i32
    %183 = vector.broadcast %c1_i32_88 : i32 to vector<1x256xi32>
    %184 = arith.addi %16, %183 : vector<1x256xi32>
    %c128_i32_89 = arith.constant 128 : i32
    %185 = vector.broadcast %c128_i32_89 : i32 to vector<1x256xi32>
    %186 = arith.cmpi slt, %184, %185 : vector<1x256xi32>
    %187 = arith.andi %182, %186 : vector<1x256xi1>
    %cst_90 = arith.constant 0.000000e+00 : f32
    %188 = vector.shape_cast %187 : vector<1x256xi1> to vector<1x256xi1>
    %189 = vector.broadcast %188 : vector<1x256xi1> to vector<32x256xi1>
    %190 = vector.broadcast %cst_90 : f32 to vector<32x256xf32>
    %191 = arith.select %189, %178, %190 : vector<32x256xi1>, vector<32x256xf32>
    %192 = tpu.concatenate %177, %163, %191 in 0 : vector<32x256xf32>, vector<32x256xf32>, vector<32x256xf32> -> vector<96x256xf32>
    %c0_91 = arith.constant 0 : index
    %c0_92 = arith.constant 0 : index
    %193 = vector.load %arg19[%c0_91, %c0_92] : memref<4x96xf32, #tpu.memory_space<vmem>>, vector<4x96xf32>
    %cst_93 = arith.constant dense<0.000000e+00> : vector<4x256xf32>
    %194 = tpu.matmul %193, %192, %cst_93 {dimension_numbers = #tpu.dot_dimension_numbers<[1], [0], [0], [1], [0, 0, 1, 1], [], []>} : vector<4x96xf32>, vector<96x256xf32>, vector<4x256xf32> -> vector<4x256xf32>
    %c0_94 = arith.constant 0 : index
    %c0_95 = arith.constant 0 : index
    %195 = vector.load %arg20[%c0_94, %c0_95] : memref<4x1xf32, #tpu.memory_space<vmem>>, vector<4x1xf32>
    %196 = vector.broadcast %195 : vector<4x1xf32> to vector<4x256xf32>
    %197 = arith.addf %194, %196 : vector<4x256xf32>
    %c0_96 = arith.constant 0 : index
    %c0_97 = arith.constant 0 : index
    %198 = vector.load %arg21[%c0_96, %c0_97] : memref<4x256xf32, #tpu.memory_space<vmem>>, vector<4x256xf32>
    tpu.vector_store %arg21[%c0_96, %c0_97], %197 {strides = array<i32>} : memref<4x256xf32, #tpu.memory_space<vmem>>, vector<4x256xf32>,
    return
  }
}

</mosaic_0001>

<bundles_post_ra>
// kernel: seq2seq_forward.3
= control target key start
LH: loop header
LB: loop body
LE: loop exit
PB: predicated region body
PF: predicated region fallthrough
CT: control target
= control target key end

     0   :  { %s2713_s0 = inlined_call_operand.hbm [shape: f32[4,256], index: 0, kind: input, shape index: {}]   ;;  %s2714_s1 = inlined_call_operand.vmem [shape: f32[32,12], index: 1, kind: input, shape index: {}]   ;;  %s2715_s2 = inlined_call_operand.vmem [shape: f32[32,1], index: 2, kind: input, shape index: {}]   ;;  %s2716_s3 = inlined_call_operand.vmem [shape: f32[32,1], index: 3, kind: input, shape index: {}]   ;;  %s2717_s4 = inlined_call_operand.vmem [shape: f32[32,1], index: 4, kind: input, shape index: {}]   ;;  %s2718_s5 = inlined_call_operand.hbm [shape: f32[16,96], index: 5, kind: input, shape index: {}]   ;;  %s2719_s6 = inlined_call_operand.vmem [shape: f32[16,1], index: 6, kind: input, shape index: {}]   ;;  %s2720_s7 = inlined_call_operand.vmem [shape: f32[16,1], index: 7, kind: input, shape index: {}]   ;;  %s2721_s8 = inlined_call_operand.vmem [shape: f32[16,1], index: 8, kind: input, shape index: {}]   ;;  %s2722_s9 = inlined_call_operand.vmem [shape: f32[32,16], index: 9, kind: input, shape index: {}]   ;;  %s2723_s10 = inlined_call_operand.vmem [shape: f32[32,1], index: 10, kind: input, shape index: {}]   ;;  %s2724_s11 = inlined_call_operand.vmem [shape: f32[32,1], index: 11, kind: input, shape index: {}]   ;;  %s2725_s12 = inlined_call_operand.vmem [shape: f32[32,1], index: 12, kind: input, shape index: {}]   ;;  %s2726_s13 = inlined_call_operand.hbm [shape: f32[16,96], index: 13, kind: input, shape index: {}]   ;;  %s2727_s14 = inlined_call_operand.vmem [shape: f32[16,1], index: 14, kind: input, shape index: {}]   ;;  %s2728_s15 = inlined_call_operand.vmem [shape: f32[16,1], index: 15, kind: input, shape index: {}]   ;;  %s2729_s16 = inlined_call_operand.vmem [shape: f32[16,1], index: 16, kind: input, shape index: {}]   ;;  %s2730_s17 = inlined_call_operand.vmem [shape: f32[32,16], index: 17, kind: input, shape index: {}]   ;;  %s2731_s18 = inlined_call_operand.vmem [shape: f32[32,1], index: 18, kind: input, shape index: {}]   ;;  %s2732_s19 = inlined_call_operand.hbm [shape: f32[64,96], index: 19, kind: input, shape index: {}]   ;;  %s2733_s20 = inlined_call_operand.vmem [shape: f32[64,1], index: 20, kind: input, shape index: {}]   ;;  %s2734_s21 = inlined_call_operand.vmem [shape: f32[64,256], index: 21, kind: output, shape index: {}]  }
   0x1   :  { %2741 = sst [smem:[#allocation12_spill]] %s2713_s0 }
   0x2   :  { %2742 = sst [smem:[#allocation13_spill]] %s2714_s1 }
   0x3   :  { %2743 = sst [smem:[#allocation14_spill]] %s2715_s2 }
   0x4   :  { %2744 = sst [smem:[#allocation15_spill]] %s2716_s3 }
   0x5   :  { %2745 = sst [smem:[#allocation16_spill]] %s2717_s4 }
   0x6   :  { %2746 = sst [smem:[#allocation17_spill]] %s2718_s5 }
   0x7   :  { %2747 = sst [smem:[#allocation18_spill]] %s2733_s20 }
   0x8   :  { %2748 = sst [smem:[#allocation19_spill]] %s2734_s21 }
   0x9   :  { %26 = vsyncpa [#allocation3], 0 }
   0xa   :  { %27 = vsyncpa [#allocation5], 0  ;;  %s2749_s26 = sld [smem:[#allocation17_spill]] }
  0x10   :  { %s52_s27 = sshll.u32 %s2749_s26, 4  ;;  %s53_s27 = int_to_ptr.hbm [resolvable:$true] %s52_s27 }
  0x11   :  { %28 = vsyncpa [#allocation8], 0  ;;  %s1718_s3 = smov [#allocation4]   ;;  %s2750_s4 = sld [smem:[#allocation12_spill]] }
  0x12   :  { %s54_s28 = sshll.u32 %s1718_s3, 4  ;;  %s1719_s5 = smov 128   ;;  %s55_s28 = int_to_ptr.vmem [resolvable:$true] %s54_s28 }
  0x13   :  { %s1720_s22 = smov 8   ;;  %s1721_s23 = smov [#allocation2]  }
  0x14   :  { %60 = dma.hbm_to_vmem [thread:$0]  %s53_s27, 256, %s55_s28, [#allocation5], %s1719_s5, %s1719_s5, %s1720_s22  }
  0x15   :  { %s36_s1 = sshll.u32 %s1721_s23, 4  ;;  %s79_s2 = sshll.u32 %s2726_s13, 4  ;;  %s37_s1 = int_to_ptr.vmem [resolvable:$true] %s36_s1  ;;  %s80_s2 = int_to_ptr.hbm [resolvable:$true] %s79_s2 }
  0x16   :  { %s102_s3 = sshll.u32 %s2732_s19, 4  ;;  %s1722_s20 = smov [#allocation6]   ;;  %s103_s3 = int_to_ptr.hbm [resolvable:$true] %s102_s3 }
  0x17   :  { %s34_s30 = sshll.u32 %s2750_s4, 4  ;;  %s81_s29 = sshll.u32 %s1722_s20, 4  ;;  %s35_s30 = int_to_ptr.hbm [resolvable:$true] %s34_s30  ;;  %s82_s29 = int_to_ptr.vmem [resolvable:$true] %s81_s29 }
  0x18   :  { %39 = dma.hbm_to_vmem [thread:$0]  %s35_s30, 128, %s37_s1, [#allocation3]  }
  0x19   :  { %87 = dma.hbm_to_vmem [thread:$0]  %s80_s2, 256, %s82_s29, [#allocation5], %s1719_s5, %s1719_s5, %s1720_s22  }
  0x1a   :  { %s1723_s27 = smov [#allocation7]  }
  0x1b   :  { %s104_s28 = sshll.u32 %s1723_s27, 4  ;;  %s105_s28 = int_to_ptr.vmem [resolvable:$true] %s104_s28 }
  0x1c   :  { %110 = dma.hbm_to_vmem [thread:$0]  %s103_s3, 1024, %s105_s28, [#allocation8], %s1719_s5, %s1719_s5, %s1720_s22  }
  0x1d   :  { %1712 = dma.done.wait [#allocation3], 128  }
  0x1e   :  { %1713 = vsyncadd [#allocation3], 4294967168 }
  0x1f   :  { %1714 = dma.done.wait [#allocation5], 512  }
  0x20   :  { %1715 = vsyncadd [#allocation5], 4294966784 }
  0x21   :  { %1716 = dma.done.wait [#allocation8], 1024  }
  0x22   :  { %1717 = vsyncadd [#allocation8], 4294966272  ;;  %s2751_s0 = sld [smem:[#allocation13_spill]]  ;;  %s1724_s4 = smov 124   ;;  %v156_v2 = vld [vmem:[#allocation2] sm:$0xff]  ;;  %vm238_vm0 = vcmask 1043456   ;;  %v129_v16 = vlaneseq }
  0x23   :  { %158 = vst [vmem:[#allocation1] ss:$2 sm:$0xff] %v156_v2  ;;  %s1725_s22 = smov 1   ;;  %s1726_s24 = smov 127   ;;  %v1728_v11 = vmov 0   ;;  %vm229_vm1 = vcmask 31744  }
  0x24   :  { %s1727_s2 = smov 120   ;;  %1614 = vset.pattern.permute.xlu1 %v1728_v11  ;;  %s2752_s3 = sld [smem:[#allocation14_spill]]  ;;  %1613 = vset.pattern.permute.xlu0 %v1728_v11  ;;  %v1899_v17 = vand.u32 127, %v129_v16  ;;  %vm669_vm14 = vcmask 785408   ;;  %vm786_vm15 = vcmask 130048  }
  0x25   :  { %1615 = vset.pattern.permute.xlu2 %v1728_v11  ;;  %s2753_s19 = sld [smem:[#allocation16_spill]] }
  0x26   :  { %v131_v20 = vadd.s32 128, %v1899_v17  ;;  %v1919_v26 = vadd.s32 4294967295, %v1899_v17  ;;  %vm167_vm2 = vcmp.lt.s32.totalorder %v1899_v17, 1  ;;  %v1943_v36 = vadd.s32 1, %v1899_v17  ;;  %s2755_s25 = sld [smem:[#allocation18_spill]] }
  0x27   :  { %vm193_vm5 = vcmp.lt.s32.totalorder %v1899_v17, 127  ;;  %vm626_vm10 = vcmp.lt.s32.totalorder %v1899_v17, 125  ;;  %vm581_vm13 = vcmp.lt.s32.totalorder %v1899_v17, 3  ;;  %s2756_s30 = sld [smem:[#allocation19_spill]] }
  0x28   :  { %v1856_v0 = vld [vmem:[%s2751_s0 + $0x10] sm:$0xff]  ;;  %v1861_v1 = vld [vmem:[%s2751_s0] sm:$0xff]  ;;  %v1868_v3 = vld [vmem:[%s2751_s0 + $0x8] sm:$0xff]  ;;  %v1908_v23 = vand.u32 127, %v131_v20  ;;  %vm172_vm3 = vcmp.ge.s32.totalorder %v1919_v26, 0  ;;  %vm200_vm6 = vcmp.lt.s32.totalorder %v1943_v36, 128 }
  0x29   :  { %222 = vrot.lane.b32.xlu1 %v1856_v0, %s1724_s4  ;;  %218 = vrot.lane.b32.xlu0 %v1861_v1, %s1724_s4  ;;  %v1876_v6 = vld [vmem:[%s2751_s0 + $0x18] sm:$0xff]  ;;  %v1277_v26 = vld [vmem:[#allocation7 + $0x20] sm:$0xff] }
  0x2a   :  { %v159_v4 = vld.sshfl [vmem:[#allocation1] sm:$0xff pattern:$0x75316420]  ;;  %v160_v5 = vld.sshfl [vmem:[#allocation1 + $0x8] sm:$0xff pattern:$0x75316420] }
  0x2b   :  { %184 = vst [vmem:[#allocation1] ss:$2 sm:$0xff] %v156_v2  ;;  %165 = vrot.lane.b32.xlu2 %v160_v5, %s1725_s22  ;;  %v463_v12 = vld [vmem:[%s2752_s3 + $0x10] sm:$0xff]  ;;  %v464_v13 = vld [vmem:[%s2752_s3 + $0x18] sm:$0xff]  ;;  %v462_v14 = vld [vmem:[%s2752_s3 + $0x8] sm:$0xff]  ;;  %v1922_v27 = vadd.s32 4294967295, %v1908_v23 }
  0x2c   :  { %v528_v15 = vld [vmem:[%s2753_s19 + $0x18] sm:$0xff]  ;;  %v461_v18 = vld [vmem:[%s2752_s3] sm:$0xff]  ;;  %v527_v19 = vld [vmem:[%s2753_s19 + $0x10] sm:$0xff]  ;;  %v1946_v37 = vadd.s32 1, %v1908_v23 }
  0x2d   :  { %v525_v25 = vld [vmem:[%s2753_s19] sm:$0xff]  ;;  %vm173_vm4 = vcmp.ge.s32.totalorder %v1922_v27, 0  ;;  %v526_v48 = vld [vmem:[%s2753_s19 + $0x8] sm:$0xff]  ;;  %s1729_s19 = smov 125   ;;  %v1278_v27 = vld [vmem:[#allocation7 + $0x28] sm:$0xff] }
  0x2e   :  { %vm201_vm7 = vcmp.lt.s32.totalorder %v1946_v37, 128 }
  0x31   :  { %220 = vrot.lane.b32.xlu0 %v1868_v3, %s1724_s4  ;;  %163 = vrot.lane.b32.xlu1 %v159_v4, %s1725_s22 }
  0x32   :  { %v186_v7 = vld.sshfl [vmem:[#allocation1 + $0x8] sm:$0xff pattern:$0x75316420]  ;;  %v185_v8 = vld.sshfl [vmem:[#allocation1] sm:$0xff pattern:$0x75316420] }
  0x33   :  { %226 = vst [vmem:[#allocation1] ss:$2 sm:$0xff] %v156_v2  ;;  %224 = vrot.lane.b32.xlu2 %v1876_v6, %s1724_s4  ;;  %s1730_s4 = smov 3  }
  0x39   :  { %191 = vrot.lane.b32.xlu1 %v186_v7, %s1726_s24  ;;  %189 = vrot.lane.b32.xlu0 %v185_v8, %s1726_s24 }
  0x3a   :  { %v227_v9 = vld.sshfl [vmem:[#allocation1] sm:$0xff pattern:$0x75316420]  ;;  %v228_v10 = vld.sshfl [vmem:[#allocation1 + $0x8] sm:$0xff pattern:$0x75316420] }
  0x3b   :  { %373 = vrot.lane.b32.xlu2 %v1861_v1, %s1727_s2  ;;  %1458 = vmatpush.msk.msra.mxu0 %vm238_vm0, %v227_v9 }
  0x3c   :  { %1463 = vmatpush.msk.msra.mxu1 %vm238_vm0, %v228_v10 }
  0x41   :  { %375 = vrot.lane.b32.xlu0 %v1868_v3, %s1727_s2  ;;  %377 = vrot.lane.b32.xlu1 %v1856_v0, %s1727_s2 }
  0x43   :  { %379 = vrot.lane.b32.xlu2 %v1876_v6, %s1727_s2  ;;  %s2754_s2 = sld [smem:[#allocation15_spill]] }
  0x49   :  { %477 = vperm.xlu1 %1614, %v463_v12   ;;  %482 = vperm.xlu0 %1613, %v464_v13   ;;  %v493_v24 = vld [vmem:[%s2754_s2] sm:$0xff]  ;;  %v496_v31 = vld [vmem:[%s2754_s2 + $0x18] sm:$0xff]  ;;  %v495_v40 = vld [vmem:[%s2754_s2 + $0x10] sm:$0xff] }
  0x4a   :  { %v494_v46 = vld [vmem:[%s2754_s2 + $0x8] sm:$0xff] }
  0x4b   :  { %514 = vperm.xlu2 %1615, %v496_v31  }
  0x51   :  { %472 = vperm.xlu1 %1614, %v462_v14   ;;  %546 = vperm.xlu0 %1613, %v528_v15  }
  0x53   :  { %509 = vperm.xlu2 %1615, %v495_v40  }
  0x59   :  { %467 = vperm.xlu1 %1614, %v461_v18   ;;  %541 = vperm.xlu0 %1613, %v527_v19  }
  0x5b   :  { %504 = vperm.xlu2 %1615, %v494_v46  }
  0x61   :  { %499 = vperm.xlu1 %1614, %v493_v24   ;;  %531 = vperm.xlu0 %1613, %v525_v25  }
  0x63   :  { %536 = vperm.xlu2 %1615, %v526_v48  }
  0x85   :  { %v166_v28 = vpop.permute.xlu2 %165 }
  0x8d   :  { %v225_v45 = vpop.permute.xlu2 %224 }
  0x95   :  { %v374_v47 = vpop.permute.xlu2 %373 }
  0x9b   :  { %v223_v21 = vpop.permute.xlu1 %222  ;;  %v219_v22 = vpop.permute.xlu0 %218 }
  0x9c   :  { %1459 = vmatmul.msk.f32.vlgmr.msra.gmra.mxu0 %vm229_vm1, %v219_v22  ;;  %1464 = vmatmul.msk.f32.vlgmr.msra.gmra.mxu1 %vm229_vm1, %v219_v22 }
  0x9d   :  { %v380_v51 = vpop.permute.xlu2 %379 }
  0xa3   :  { %v221_v29 = vpop.permute.xlu0 %220  ;;  %v164_v30 = vpop.permute.xlu1 %163 }
  0xa4   :  { %1460 = vmatmul.msk.f32.gmra.mxu0 %vm229_vm1, %v221_v29  ;;  %1465 = vmatmul.msk.f32.gmra.mxu1 %vm229_vm1, %v221_v29  ;;  %v169_v32 = vsel %vm167_vm2, %v166_v28, %v164_v30  ;;  %v168_v33 = vsel %vm167_vm2, %v164_v30, %v166_v28 }
  0xa5   :  { %v182_v34 = vsel %vm172_vm3, %v169_v32, 0.0  ;;  %v183_v35 = vsel %vm173_vm4, %v168_v33, 0.0  ;;  %v2002_v59 = vpop.permute.xlu2 %514 }
  0xa6   :  { %1468 = vmatpush.msk.msra.mxu2 %vm238_vm0, %v182_v34  ;;  %1473 = vmatpush.msk.msra.mxu3 %vm238_vm0, %v183_v35 }
  0xa7   :  { %1469 = vmatmul.msk.f32.vlgmr.msra.gmra.mxu2 %vm229_vm1, %v1861_v1  ;;  %1474 = vmatmul.msk.f32.vlgmr.msra.gmra.mxu3 %vm229_vm1, %v1861_v1 }
  0xab   :  { %v192_v38 = vpop.permute.xlu1 %191  ;;  %v190_v39 = vpop.permute.xlu0 %189 }
  0xac   :  { %1461 = vmatmul.msk.f32.gmra.mxu0 %vm229_vm1, %v223_v21  ;;  %1466 = vmatmul.msk.f32.gmra.mxu1 %vm229_vm1, %v223_v21  ;;  %v194_v41 = vsel %vm193_vm5, %v190_v39, %v192_v38  ;;  %v195_v42 = vsel %vm193_vm5, %v192_v38, %v190_v39 }
  0xad   :  { %v208_v43 = vsel %vm200_vm6, %v194_v41, 0.0  ;;  %v209_v44 = vsel %vm201_vm7, %v195_v42, 0.0  ;;  %v510_v4 = vpop.permute.xlu2 %509 }
  0xae   :  { %1478 = vmatpush.msk.msrb.mxu0 %vm238_vm0, %v208_v43  ;;  %1483 = vmatpush.msk.msrb.mxu1 %vm238_vm0, %v209_v44 }
  0xaf   :  { %1470 = vmatmul.msk.f32.gmra.mxu2 %vm229_vm1, %v1868_v3  ;;  %1475 = vmatmul.msk.f32.gmra.mxu3 %vm229_vm1, %v1868_v3 }
  0xb3   :  { %v376_v49 = vpop.permute.xlu0 %375  ;;  %v378_v50 = vpop.permute.xlu1 %377 }
  0xb4   :  { %1462 = vmatmul.msk.f32.gmra.mxu0 %vm229_vm1, %v225_v45  ;;  %1467 = vmatmul.msk.f32.gmra.mxu1 %vm229_vm1, %v225_v45 }
  0xb5   :  { %v505_v14 = vpop.permute.xlu2 %504 }
  0xb7   :  { %1471 = vmatmul.msk.f32.gmra.mxu2 %vm229_vm1, %v1856_v0  ;;  %1476 = vmatmul.msk.f32.gmra.mxu3 %vm229_vm1, %v1856_v0 }
  0xbb   :  { %v478_v54 = vpop.permute.xlu1 %477  ;;  %v2000_v55 = vpop.permute.xlu0 %482 }
  0xbc   :  { %1479 = vmatmul.msk.f32.vlgmr.msrb.gmra.mxu0 %vm229_vm1, %v374_v47  ;;  %1484 = vmatmul.msk.f32.vlgmr.msrb.gmra.mxu1 %vm229_vm1, %v374_v47 }
  0xbd   :  { %v537_v35 = vpop.permute.xlu2 %536 }
  0xbf   :  { %1472 = vmatmul.msk.f32.gmra.mxu2 %vm229_vm1, %v1876_v6  ;;  %1477 = vmatmul.msk.f32.gmra.mxu3 %vm229_vm1, %v1876_v6 }
  0xc3   :  { %v473_v58 = vpop.permute.xlu1 %472  ;;  %v2004_v62 = vpop.permute.xlu0 %546 }
  0xc4   :  { %1480 = vmatmul.msk.f32.gmra.mxu0 %vm229_vm1, %v376_v49  ;;  %1485 = vmatmul.msk.f32.gmra.mxu1 %vm229_vm1, %v376_v49 }
  0xcb   :  { %v2006_v3 = vpop.permute.xlu1 %467  ;;  %v542_v5 = vpop.permute.xlu0 %541 }
  0xcc   :  { %1481 = vmatmul.msk.f32.gmra.mxu0 %vm229_vm1, %v378_v50  ;;  %1486 = vmatmul.msk.f32.gmra.mxu1 %vm229_vm1, %v378_v50 }
  0xd3   :  { %v500_v13 = vpop.permute.xlu1 %499  ;;  %v2012_v16 = vpop.permute.xlu0 %531 }
  0xd4   :  { %1482 = vmatmul.msk.f32.gmra.mxu0 %vm229_vm1, %v380_v51  ;;  %1487 = vmatmul.msk.f32.gmra.mxu1 %vm229_vm1, %v380_v51 }
 0x119   :  { %v260_v52 = vpop.f32.mrf.mxu0  ;;  %v1998_v53 = vpop.f32.mrf.mxu1 }
 0x121   :  { %v263_v56 = vpop.f32.mrf.mxu0  ;;  %v292_v57 = vpop.f32.mrf.mxu1 }
 0x129   :  { %v266_v60 = vpop.f32.mrf.mxu0  ;;  %v295_v61 = vpop.f32.mrf.mxu1 }
 0x12a   :  { %v332_v63 = vpop.f32.mrf.mxu2  ;;  %v361_v0 = vpop.f32.mrf.mxu3 }
 0x12b   :  { %v333_v6 = vadd.f32 %v332_v63, %v260_v52 }
 0x131   :  { %v269_v1 = vpop.f32.mrf.mxu0  ;;  %v298_v2 = vpop.f32.mrf.mxu1 }
 0x132   :  { %v335_v7 = vpop.f32.mrf.mxu2  ;;  %v364_v8 = vpop.f32.mrf.mxu3 }
 0x133   :  { %v336_v18 = vadd.f32 %v335_v7, %v263_v56  ;;  %v365_v19 = vadd.f32 %v364_v8, %v292_v57  ;;  %v362_v57 = vadd.f32 %v361_v0, %v1998_v53 }
 0x139   :  { %v412_v9 = vpop.f32.mrf.mxu0  ;;  %v441_v10 = vpop.f32.mrf.mxu1 }
 0x13a   :  { %v453_v11 = vadd.f32 %v412_v9, %v333_v6  ;;  %v338_v29 = vpop.f32.mrf.mxu2  ;;  %v367_v30 = vpop.f32.mrf.mxu3 }
 0x13b   :  { %v339_v38 = vadd.f32 %v338_v29, %v266_v60  ;;  %v368_v39 = vadd.f32 %v367_v30, %v295_v61  ;;  %v763_v29 = vld [vmem:[%s2723_s10 + $0x8] sm:$0xff]  ;;  %v868_v30 = vld [vmem:[%s2724_s11 + $0x18] sm:$0xff] }
 0x13c   :  { %v2009_v12 = vadd.f32 %v2006_v3, %v453_v11 }
 0x13e   :  { %v517_v15 = vmul.f32 %v500_v13, %v2009_v12 }
 0x140   :  { %v549_v20 = vadd.f32 %v2012_v16, %v517_v15 }
 0x141   :  { %v415_v21 = vpop.f32.mrf.mxu0  ;;  %v444_v22 = vpop.f32.mrf.mxu1 }
 0x142   :  { %v455_v24 = vadd.f32 %v415_v21, %v336_v18  ;;  %v456_v25 = vadd.f32 %v444_v22, %v365_v19  ;;  %v2015_v28 = vmax.f32 %v549_v20, 0.0  ;;  %v341_v50 = vpop.f32.mrf.mxu2  ;;  %v370_v51 = vpop.f32.mrf.mxu3  ;;  %v723_v19 = vld [vmem:[%s2720_s7 + $0x8] sm:$0xff]  ;;  %v722_v20 = vld [vmem:[%s2720_s7] sm:$0xff]  ;;  %v764_v21 = vld [vmem:[%s2723_s10 + $0x10] sm:$0xff] }
 0x143   :  { %v371_v60 = vadd.f32 %v370_v51, %v298_v2  ;;  %v738_v22 = vld [vmem:[%s2721_s8] sm:$0xff] }
 0x144   :  { %v2017_v31 = vadd.f32 %v473_v58, %v455_v24  ;;  %v2019_v32 = vadd.f32 %v473_v58, %v456_v25  ;;  %610 = vrot.lane.b32.xlu1 %v2015_v28, %s1729_s19  ;;  %v342_v58 = vadd.f32 %v341_v50, %v269_v1  ;;  %v765_v24 = vld [vmem:[%s2723_s10 + $0x18] sm:$0xff]  ;;  %v762_v25 = vld [vmem:[%s2723_s10] sm:$0xff] }
 0x146   :  { %v519_v33 = vmul.f32 %v505_v14, %v2017_v31  ;;  %v520_v34 = vmul.f32 %v505_v14, %v2019_v32 }
 0x148   :  { %v552_v40 = vadd.f32 %v537_v35, %v520_v34  ;;  %v551_v41 = vadd.f32 %v537_v35, %v519_v33  ;;  %v866_v33 = vld [vmem:[%s2724_s11 + $0x8] sm:$0xff]  ;;  %v867_v34 = vld [vmem:[%s2724_s11 + $0x10] sm:$0xff]  ;;  %v900_v35 = vld [vmem:[%s2725_s12 + $0x18] sm:$0xff] }
 0x149   :  { %v418_v42 = vpop.f32.mrf.mxu0  ;;  %v447_v43 = vpop.f32.mrf.mxu1 }
 0x14a   :  { %v457_v44 = vadd.f32 %v418_v42, %v339_v38  ;;  %v458_v45 = vadd.f32 %v447_v43, %v368_v39  ;;  %v2025_v46 = vmax.f32 %v552_v40, 0.0  ;;  %v2027_v47 = vmax.f32 %v551_v41, 0.0  ;;  %v898_v38 = vld [vmem:[%s2725_s12 + $0x8] sm:$0xff]  ;;  %v899_v39 = vld [vmem:[%s2725_s12 + $0x10] sm:$0xff]  ;;  %v865_v40 = vld [vmem:[%s2724_s11] sm:$0xff] }
 0x14b   :  { %v897_v41 = vld [vmem:[%s2725_s12] sm:$0xff] }
 0x14c   :  { %v2029_v48 = vadd.f32 %v478_v54, %v457_v44  ;;  %v2031_v49 = vadd.f32 %v478_v54, %v458_v45  ;;  %620 = vrot.lane.b32.xlu0 %v2025_v46, %s1729_s19  ;;  %612 = vrot.lane.b32.xlu2 %v2027_v47, %s1729_s19  ;;  %v454_v54 = vadd.f32 %v441_v10, %v362_v57 }
 0x14e   :  { %v521_v52 = vmul.f32 %v510_v4, %v2029_v48  ;;  %v522_v56 = vmul.f32 %v510_v4, %v2031_v49  ;;  %v2055_v53 = vadd.f32 %v2006_v3, %v454_v54 }
 0x150   :  { %v554_v61 = vadd.f32 %v542_v5, %v522_v56  ;;  %v553_v63 = vadd.f32 %v542_v5, %v521_v52  ;;  %v518_v5 = vmul.f32 %v500_v13, %v2055_v53  ;;  %v658_v13 = vld [vmem:[%s2719_s6 + $0x8] sm:$0xff]  ;;  %v2148_v52 = vadd.s32 3, %v1899_v17 }
 0x151   :  { %v421_v6 = vpop.f32.mrf.mxu0  ;;  %v450_v7 = vpop.f32.mrf.mxu1  ;;  %v2151_v56 = vadd.s32 3, %v1908_v23 }
 0x152   :  { %v459_v8 = vadd.f32 %v421_v6, %v342_v58  ;;  %v460_v9 = vadd.f32 %v450_v7, %v371_v60  ;;  %v2040_v11 = vmax.f32 %v554_v61, 0.0  ;;  %v2042_v14 = vmax.f32 %v553_v63, 0.0 }
 0x153   :  { %vm639_vm8 = vcmp.lt.s32.totalorder %v2148_v52, 128  ;;  %vm640_vm9 = vcmp.lt.s32.totalorder %v2151_v56, 128 }
 0x154   :  { %v2045_v15 = vadd.f32 %v2000_v55, %v459_v8  ;;  %v2048_v4 = vadd.f32 %v2000_v55, %v460_v9  ;;  %622 = vrot.lane.b32.xlu1 %v2040_v11, %s1729_s19  ;;  %614 = vrot.lane.b32.xlu0 %v2042_v14, %s1729_s19 }
 0x156   :  { %v523_v0 = vmul.f32 %v2002_v59, %v2045_v15  ;;  %v524_v1 = vmul.f32 %v2002_v59, %v2048_v4  ;;  %v550_v59 = vadd.f32 %v2012_v16, %v518_v5  ;;  %v739_v16 = vld [vmem:[%s2721_s8 + $0x8] sm:$0xff]  ;;  %v2194_v5 = vadd.s32 4294967293, %v1908_v23 }
 0x158   :  { %v556_v2 = vadd.f32 %v2004_v62, %v524_v1  ;;  %v555_v55 = vadd.f32 %v2004_v62, %v523_v0  ;;  %v2075_v3 = vmax.f32 %v550_v59, 0.0  ;;  %v657_v62 = vld [vmem:[%s2719_s6] sm:$0xff]  ;;  %vm593_vm12 = vcmp.ge.s32.totalorder %v2194_v5, 0 }
 0x15a   :  { %v2064_v10 = vmax.f32 %v556_v2, 0.0  ;;  %v2066_v18 = vmax.f32 %v555_v55, 0.0  ;;  %v2191_v55 = vadd.s32 4294967293, %v1899_v17  ;;  %v1274_v17 = vld [vmem:[#allocation7 + $0x8] sm:$0xff] }
 0x15c   :  { %624 = vrot.lane.b32.xlu2 %v2064_v10, %s1729_s19  ;;  %577 = vrot.lane.b32.xlu0 %v2040_v11, %s1730_s4  ;;  %vm592_vm11 = vcmp.ge.s32.totalorder %v2191_v55, 0 }
 0x15d   :  { %616 = vrot.lane.b32.xlu1 %v2066_v18, %s1729_s19 }
 0x164   :  { %618 = vrot.lane.b32.xlu2 %v2075_v3, %s1729_s19  ;;  %571 = vrot.lane.b32.xlu0 %v2066_v18, %s1730_s4 }
 0x165   :  { %567 = vrot.lane.b32.xlu1 %v2027_v47, %s1730_s4 }
 0x16c   :  { %569 = vrot.lane.b32.xlu2 %v2042_v14, %s1730_s4  ;;  %565 = vrot.lane.b32.xlu0 %v2015_v28, %s1730_s4 }
 0x16d   :  { %579 = vrot.lane.b32.xlu1 %v2064_v10, %s1730_s4 }
 0x174   :  { %575 = vrot.lane.b32.xlu2 %v2025_v46, %s1730_s4  ;;  %661 = vperm.xlu0 %1613, %v657_v62  }
 0x175   :  { %573 = vrot.lane.b32.xlu1 %v2075_v3, %s1730_s4 }
 0x17c   :  { %666 = vperm.xlu2 %1615, %v658_v13   ;;  %747 = vperm.xlu0 %1613, %v739_v16   ;;  %v655_v13 = vld [vmem:[#allocation4] sm:$0xff] }
 0x17d   :  { %731 = vperm.xlu1 %1614, %v723_v19  }
 0x184   :  { %726 = vperm.xlu2 %1615, %v722_v20   ;;  %778 = vperm.xlu0 %1613, %v764_v21   ;;  %v656_v20 = vld [vmem:[#allocation4 + $0x8] sm:$0xff] }
 0x185   :  { %742 = vperm.xlu1 %1614, %v738_v22  }
 0x18c   :  { %783 = vperm.xlu2 %1615, %v765_v24   ;;  %768 = vperm.xlu0 %1613, %v762_v25  }
 0x18d   :  { %773 = vperm.xlu1 %1614, %v763_v29  }
 0x194   :  { %886 = vperm.xlu2 %1615, %v868_v30   ;;  %876 = vperm.xlu0 %1613, %v866_v33  }
 0x195   :  { %881 = vperm.xlu1 %1614, %v867_v34  }
 0x19c   :  { %918 = vperm.xlu2 %1615, %v900_v35   ;;  %908 = vperm.xlu0 %1613, %v898_v38  }
 0x19d   :  { %913 = vperm.xlu1 %1614, %v899_v39  }
 0x1a4   :  { %871 = vperm.xlu2 %1615, %v865_v40  }
 0x1a5   :  { %903 = vperm.xlu1 %1614, %v897_v41  }
 0x1a6   :  { %v613_v42 = vpop.permute.xlu2 %612 }
 0x1b6   :  { %v611_v43 = vpop.permute.xlu1 %610  ;;  %v625_v45 = vpop.permute.xlu2 %624 }
 0x1be   :  { %v621_v44 = vpop.permute.xlu0 %620  ;;  %v619_v57 = vpop.permute.xlu2 %618 }
 0x1bf   :  { %v628_v7 = vsel %vm626_vm10, %v613_v42, %v621_v44  ;;  %v632_v8 = vsel %vm626_vm10, %v621_v44, %v613_v42  ;;  %v627_v9 = vsel %vm626_vm10, %v611_v43, %v619_v57  ;;  %v631_v0 = vsel %vm626_vm10, %v619_v57, %v611_v43 }
 0x1c6   :  { %v623_v50 = vpop.permute.xlu1 %622  ;;  %v615_v51 = vpop.permute.xlu0 %614 }
 0x1c7   :  { %v629_v63 = vsel %vm626_vm10, %v615_v51, %v623_v50  ;;  %v633_v54 = vsel %vm626_vm10, %v623_v50, %v615_v51  ;;  %v570_v2 = vpop.permute.xlu2 %569 }
 0x1ce   :  { %v578_v6 = vpop.permute.xlu0 %577 }
 0x1cf   :  { %v617_v58 = vpop.permute.xlu1 %616 }
 0x1d0   :  { %v630_v60 = vsel %vm626_vm10, %v617_v58, %v625_v45  ;;  %v634_v61 = vsel %vm626_vm10, %v625_v45, %v617_v58 }
 0x1d1   :  { %1488 = vmatpush.msk.msrb.mxu2 %vm639_vm8, %v630_v60  ;;  %1498 = vmatpush.msk.msrb.mxu3 %vm640_vm9, %v634_v61 }
 0x1d3   :  { %1489 = vmatpush.msk.msrb.mxu2 %vm639_vm8, %v629_v63  ;;  %1499 = vmatpush.msk.msrb.mxu3 %vm640_vm9, %v633_v54 }
 0x1d5   :  { %1490 = vmatpush.msk.msrb.mxu2 %vm639_vm8, %v628_v7  ;;  %1500 = vmatpush.msk.msrb.mxu3 %vm640_vm9, %v632_v8  ;;  %v758_v7 = vld [vmem:[%s2722_s9] sm:$0xff]  ;;  %v759_v8 = vld [vmem:[%s2722_s9 + $0x8] sm:$0xff] }
 0x1d6   :  { %v572_v59 = vpop.permute.xlu0 %571 }
 0x1d7   :  { %1491 = vmatpush.msk.msrb.mxu2 %vm639_vm8, %v627_v9  ;;  %1501 = vmatpush.msk.msrb.mxu3 %vm640_vm9, %v631_v0  ;;  %v568_v1 = vpop.permute.xlu1 %567  ;;  %v760_v9 = vld [vmem:[%s2722_s9 + $0x10] sm:$0xff]  ;;  %v761_v0 = vld [vmem:[%s2722_s9 + $0x18] sm:$0xff] }
 0x1d9   :  { %684 = vmatpush.msrb.mxu2 %v2066_v18  ;;  %707 = vmatpush.msrb.mxu3 %v2064_v10 }
 0x1db   :  { %685 = vmatpush.msrb.mxu2 %v2042_v14  ;;  %708 = vmatpush.msrb.mxu3 %v2040_v11 }
 0x1dd   :  { %686 = vmatpush.msrb.mxu2 %v2027_v47  ;;  %709 = vmatpush.msrb.mxu3 %v2025_v46  ;;  %v584_v46 = vsel %vm581_vm13, %v570_v2, %v578_v6  ;;  %v576_v47 = vpop.permute.xlu2 %575 }
 0x1de   :  { %v587_v14 = vsel %vm581_vm13, %v576_v47, %v568_v1  ;;  %v583_v18 = vsel %vm581_vm13, %v568_v1, %v576_v47 }
 0x1df   :  { %687 = vmatpush.msrb.mxu2 %v2015_v28  ;;  %710 = vmatpush.msrb.mxu3 %v2075_v3  ;;  %v580_v10 = vpop.permute.xlu1 %579  ;;  %v588_v28 = vsel %vm581_vm13, %v578_v6, %v570_v2  ;;  %v566_v3 = vpop.permute.xlu0 %565 }
 0x1e0   :  { %v589_v23 = vsel %vm581_vm13, %v580_v10, %v572_v59  ;;  %v585_v11 = vsel %vm581_vm13, %v572_v59, %v580_v10 }
 0x1e1   :  { %1492 = vmatpush.msk.msrb.mxu2 %vm592_vm11, %v589_v23  ;;  %1502 = vmatpush.msk.msrb.mxu3 %vm593_vm12, %v585_v11 }
 0x1e3   :  { %1493 = vmatpush.msk.msrb.mxu2 %vm592_vm11, %v588_v28  ;;  %1503 = vmatpush.msk.msrb.mxu3 %vm593_vm12, %v584_v46 }
 0x1e5   :  { %1494 = vmatpush.msk.msrb.mxu2 %vm592_vm11, %v587_v14  ;;  %1504 = vmatpush.msk.msrb.mxu3 %vm593_vm12, %v583_v18  ;;  %v667_v21 = vpop.permute.xlu2 %666 }
 0x1e7   :  { %v574_v62 = vpop.permute.xlu1 %573  ;;  %v662_v25 = vpop.permute.xlu0 %661 }
 0x1e8   :  { %v586_v16 = vsel %vm581_vm13, %v574_v62, %v566_v3  ;;  %v582_v19 = vsel %vm581_vm13, %v566_v3, %v574_v62 }
 0x1e9   :  { %1495 = vmatpush.msk.msrb.mxu2 %vm592_vm11, %v586_v16  ;;  %1505 = vmatpush.msk.msrb.mxu3 %vm593_vm12, %v582_v19 }
 0x1ea   :  { %1496 = vmatmul.msk.f32.vlgmr.msrb.gmra.mxu2 %vm669_vm14, %v655_v13  ;;  %1506 = vmatmul.msk.f32.vlgmr.msrb.gmra.mxu3 %vm669_vm14, %v655_v13 }
 0x1ed   :  { %v727_v34 = vpop.permute.xlu2 %726 }
 0x1ef   :  { %v732_v29 = vpop.permute.xlu1 %731  ;;  %v748_v45 = vpop.permute.xlu0 %747 }
 0x1f2   :  { %1497 = vmatmul.msk.f32.gmra.mxu2 %vm669_vm14, %v656_v20  ;;  %1507 = vmatmul.msk.f32.gmra.mxu3 %vm669_vm14, %v656_v20 }
 0x1f5   :  { %v784_v1 = vpop.permute.xlu2 %783 }
 0x1f7   :  { %v743_v50 = vpop.permute.xlu1 %742  ;;  %v779_v10 = vpop.permute.xlu0 %778 }
 0x1fd   :  { %v887_v59 = vpop.permute.xlu2 %886 }
 0x1ff   :  { %v774_v2 = vpop.permute.xlu1 %773  ;;  %v769_v28 = vpop.permute.xlu0 %768 }
 0x205   :  { %v919_v11 = vpop.permute.xlu2 %918 }
 0x207   :  { %v882_v23 = vpop.permute.xlu1 %881  ;;  %v877_v13 = vpop.permute.xlu0 %876 }
 0x20d   :  { %v872_v62 = vpop.permute.xlu2 %871 }
 0x20f   :  { %v914_v46 = vpop.permute.xlu1 %913 }
 0x217   :  { %v904_v19 = vpop.permute.xlu1 %903 }
 0x26d   :  { %v693_v22 = vpop.f32.mrf.mxu2  ;;  %v716_v24 = vpop.f32.mrf.mxu3 }
 0x26e   :  { %v694_v30 = vadd.f32 %v693_v22, %v662_v25  ;;  %v717_v33 = vadd.f32 %v716_v24, %v662_v25 }
 0x270   :  { %v734_v39 = vmul.f32 %v727_v34, %v694_v30  ;;  %v735_v40 = vmul.f32 %v727_v34, %v717_v33 }
 0x272   :  { %v750_v58 = vadd.f32 %v743_v50, %v734_v39  ;;  %v751_v60 = vadd.f32 %v743_v50, %v735_v40 }
 0x274   :  { %v754_v54 = vmax.f32 %v750_v58, 0.0  ;;  %v755_v6 = vmax.f32 %v751_v60, 0.0 }
 0x275   :  { %v696_v35 = vpop.f32.mrf.mxu2  ;;  %v719_v38 = vpop.f32.mrf.mxu3 }
 0x276   :  { %v697_v41 = vadd.f32 %v696_v35, %v667_v21  ;;  %v720_v42 = vadd.f32 %v719_v38, %v667_v21  ;;  %v909_v35 = vpop.permute.xlu0 %908 }
 0x278   :  { %v736_v43 = vmul.f32 %v732_v29, %v697_v41  ;;  %v737_v44 = vmul.f32 %v732_v29, %v720_v42 }
 0x27a   :  { %v752_v51 = vadd.f32 %v748_v45, %v736_v43  ;;  %v753_v57 = vadd.f32 %v748_v45, %v737_v44 }
 0x27c   :  { %v756_v61 = vmax.f32 %v752_v51, 0.0  ;;  %v757_v63 = vmax.f32 %v753_v57, 0.0 }
 0x27e   :  { %813 = vmatpush.msra.mxu2 %v756_v61  ;;  %842 = vmatpush.msra.mxu3 %v757_v63 }
 0x280   :  { %814 = vmatpush.msra.mxu2 %v754_v54  ;;  %843 = vmatpush.msra.mxu3 %v755_v6 }
 0x281   :  { %1508 = vmatmul.msk.f32.vlgmr.msra.gmra.mxu2 %vm786_vm15, %v758_v7  ;;  %1512 = vmatmul.msk.f32.vlgmr.msra.gmra.mxu3 %vm786_vm15, %v758_v7 }
 0x289   :  { %1509 = vmatmul.msk.f32.gmra.mxu2 %vm786_vm15, %v759_v8  ;;  %1513 = vmatmul.msk.f32.gmra.mxu3 %vm786_vm15, %v759_v8 }
 0x291   :  { %1510 = vmatmul.msk.f32.gmra.mxu2 %vm786_vm15, %v760_v9  ;;  %1514 = vmatmul.msk.f32.gmra.mxu3 %vm786_vm15, %v760_v9 }
 0x299   :  { %1511 = vmatmul.msk.f32.gmra.mxu2 %vm786_vm15, %v761_v0  ;;  %1515 = vmatmul.msk.f32.gmra.mxu3 %vm786_vm15, %v761_v0 }
 0x304   :  { %v816_v47 = vpop.f32.mrf.mxu2  ;;  %v845_v14 = vpop.f32.mrf.mxu3 }
 0x305   :  { %v817_v18 = vadd.f32 %v816_v47, %v769_v28  ;;  %v846_v60 = vadd.f32 %v845_v14, %v769_v28  ;;  %v1068_v47 = vld [vmem:[%s2728_s15 + $0x8] sm:$0xff]  ;;  %v1067_v14 = vld [vmem:[%s2728_s15] sm:$0xff] }
 0x307   :  { %v2262_v3 = vadd.f32 %v817_v18, %v2009_v12  ;;  %v2308_v9 = vadd.f32 %v846_v60, %v2055_v53  ;;  %v1109_v18 = vld [vmem:[%s2731_s18 + $0x10] sm:$0xff] }
 0x309   :  { %v889_v16 = vmul.f32 %v872_v62, %v2262_v3 }
 0x30b   :  { %v921_v20 = vadd.f32 %v904_v19, %v889_v16  ;;  %v1108_v16 = vld [vmem:[%s2731_s18 + $0x8] sm:$0xff] }
 0x30c   :  { %v819_v21 = vpop.f32.mrf.mxu2  ;;  %v848_v22 = vpop.f32.mrf.mxu3 }
 0x30d   :  { %v820_v24 = vadd.f32 %v819_v21, %v774_v2  ;;  %v849_v25 = vadd.f32 %v848_v22, %v774_v2  ;;  %v2265_v29 = vmax.f32 %v921_v20, 0.0 }
 0x30f   :  { %v2268_v30 = vadd.f32 %v820_v24, %v2017_v31  ;;  %v2271_v33 = vadd.f32 %v849_v25, %v2019_v32  ;;  %969 = vrot.lane.b32.xlu2 %v2265_v29, %s1729_s19 }
 0x311   :  { %v891_v12 = vmul.f32 %v877_v13, %v2268_v30  ;;  %v892_v34 = vmul.f32 %v877_v13, %v2271_v33  ;;  %v1110_v13 = vld [vmem:[%s2731_s18 + $0x18] sm:$0xff] }
 0x313   :  { %v924_v38 = vadd.f32 %v909_v35, %v892_v34  ;;  %v923_v39 = vadd.f32 %v909_v35, %v891_v12 }
 0x314   :  { %v822_v40 = vpop.f32.mrf.mxu2  ;;  %v851_v41 = vpop.f32.mrf.mxu3 }
 0x315   :  { %v823_v42 = vadd.f32 %v822_v40, %v779_v10  ;;  %v852_v43 = vadd.f32 %v851_v41, %v779_v10  ;;  %v2277_v44 = vmax.f32 %v924_v38, 0.0  ;;  %v2279_v31 = vmax.f32 %v923_v39, 0.0 }
 0x317   :  { %v2282_v32 = vadd.f32 %v823_v42, %v2029_v48  ;;  %v2285_v45 = vadd.f32 %v852_v43, %v2031_v49  ;;  %979 = vrot.lane.b32.xlu1 %v2277_v44, %s1729_s19  ;;  %971 = vrot.lane.b32.xlu0 %v2279_v31, %s1729_s19 }
 0x319   :  { %v893_v50 = vmul.f32 %v882_v23, %v2282_v32  ;;  %v894_v51 = vmul.f32 %v882_v23, %v2285_v45 }
 0x31b   :  { %v925_v57 = vadd.f32 %v914_v46, %v893_v50  ;;  %v926_v58 = vadd.f32 %v914_v46, %v894_v51  ;;  %v1084_v46 = vld [vmem:[%s2729_s16 + $0x8] sm:$0xff] }
 0x31c   :  { %v825_v61 = vpop.f32.mrf.mxu2  ;;  %v854_v63 = vpop.f32.mrf.mxu3 }
 0x31d   :  { %v826_v48 = vadd.f32 %v825_v61, %v784_v1  ;;  %v855_v54 = vadd.f32 %v854_v63, %v784_v1  ;;  %v2293_v6 = vmax.f32 %v925_v57, 0.0  ;;  %v2295_v49 = vmax.f32 %v926_v58, 0.0 }
 0x31f   :  { %v2298_v7 = vadd.f32 %v826_v48, %v2045_v15  ;;  %v2301_v8 = vadd.f32 %v855_v54, %v2048_v4  ;;  %973 = vrot.lane.b32.xlu1 %v2293_v6, %s1729_s19  ;;  %981 = vrot.lane.b32.xlu2 %v2295_v49, %s1729_s19  ;;  %v890_v15 = vmul.f32 %v872_v62, %v2308_v9  ;;  %v1083_v62 = vld [vmem:[%s2729_s16] sm:$0xff] }
 0x321   :  { %v895_v0 = vmul.f32 %v887_v59, %v2298_v7  ;;  %v896_v1 = vmul.f32 %v887_v59, %v2301_v8  ;;  %v922_v28 = vadd.f32 %v904_v19, %v890_v15  ;;  %v1003_v59 = vld [vmem:[%s2727_s14] sm:$0xff] }
 0x322   :  { %v1107_v19 = vld [vmem:[%s2731_s18] sm:$0xff] }
 0x323   :  { %v928_v2 = vadd.f32 %v919_v11, %v896_v1  ;;  %v927_v10 = vadd.f32 %v919_v11, %v895_v0  ;;  %v2317_v53 = vmax.f32 %v922_v28, 0.0  ;;  %v1004_v11 = vld [vmem:[%s2727_s14 + $0x8] sm:$0xff]  ;;  %v1001_v0 = vld [vmem:[#allocation6] sm:$0xff] }
 0x325   :  { %v936_v23 = vmax.f32 %v928_v2, 0.0  ;;  %v935_v4 = vmax.f32 %v927_v10, 0.0  ;;  %v1002_v10 = vld [vmem:[#allocation6 + $0x8] sm:$0xff] }
 0x327   :  { %983 = vrot.lane.b32.xlu0 %v936_v23, %s1729_s19  ;;  %949 = vrot.lane.b32.xlu1 %v2295_v49, %s1730_s4 }
 0x328   :  { %975 = vrot.lane.b32.xlu2 %v935_v4, %s1729_s19 }
 0x32f   :  { %943 = vrot.lane.b32.xlu1 %v935_v4, %s1730_s4  ;;  %977 = vrot.lane.b32.xlu0 %v2317_v53, %s1729_s19 }
 0x330   :  { %939 = vrot.lane.b32.xlu2 %v2279_v31, %s1730_s4 }
 0x337   :  { %941 = vrot.lane.b32.xlu0 %v2293_v6, %s1730_s4  ;;  %937 = vrot.lane.b32.xlu1 %v2265_v29, %s1730_s4 }
 0x338   :  { %951 = vrot.lane.b32.xlu2 %v936_v23, %s1730_s4 }
 0x33f   :  { %947 = vrot.lane.b32.xlu0 %v2277_v44, %s1730_s4  ;;  %1007 = vperm.xlu1 %1614, %v1003_v59  }
 0x340   :  { %945 = vrot.lane.b32.xlu2 %v2317_v53, %s1730_s4 }
 0x347   :  { %1012 = vperm.xlu0 %1613, %v1004_v11   ;;  %1092 = vperm.xlu1 %1614, %v1084_v46  }
 0x348   :  { %1076 = vperm.xlu2 %1615, %v1068_v47  }
 0x34f   :  { %1071 = vperm.xlu0 %1613, %v1067_v14   ;;  %1123 = vperm.xlu1 %1614, %v1109_v18  }
 0x350   :  { %1087 = vperm.xlu2 %1615, %v1083_v62  }
 0x357   :  { %1128 = vperm.xlu0 %1613, %v1110_v13  }
 0x358   :  { %1118 = vperm.xlu2 %1615, %v1108_v16  }
 0x35f   :  { %1113 = vperm.xlu0 %1613, %v1107_v19  }
 0x369   :  { %v970_v20 = vpop.permute.xlu2 %969 }
 0x379   :  { %v982_v22 = vpop.permute.xlu2 %981 }
 0x382   :  { %v976_v12 = vpop.permute.xlu2 %975 }
 0x389   :  { %v980_v21 = vpop.permute.xlu1 %979  ;;  %v972_v24 = vpop.permute.xlu0 %971 }
 0x38a   :  { %v986_v42 = vsel %vm626_vm10, %v972_v24, %v980_v21  ;;  %v990_v43 = vsel %vm626_vm10, %v980_v21, %v972_v24  ;;  %v940_v50 = vpop.permute.xlu2 %939 }
 0x391   :  { %v974_v25 = vpop.permute.xlu1 %973 }
 0x392   :  { %v987_v39 = vsel %vm626_vm10, %v974_v25, %v982_v22  ;;  %v991_v40 = vsel %vm626_vm10, %v982_v22, %v974_v25  ;;  %v952_v61 = vpop.permute.xlu2 %951 }
 0x399   :  { %v984_v34 = vpop.permute.xlu0 %983  ;;  %v950_v41 = vpop.permute.xlu1 %949 }
 0x39a   :  { %v988_v35 = vsel %vm626_vm10, %v976_v12, %v984_v34  ;;  %v992_v38 = vsel %vm626_vm10, %v984_v34, %v976_v12 }
 0x39b   :  { %1516 = vmatpush.msk.msra.mxu0 %vm639_vm8, %v988_v35  ;;  %1526 = vmatpush.msk.msra.mxu1 %vm640_vm9, %v992_v38 }
 0x39d   :  { %1517 = vmatpush.msk.msra.mxu0 %vm639_vm8, %v987_v39  ;;  %1527 = vmatpush.msk.msra.mxu1 %vm640_vm9, %v991_v40  ;;  %v1103_v39 = vld [vmem:[%s2730_s17] sm:$0xff]  ;;  %v1104_v40 = vld [vmem:[%s2730_s17 + $0x8] sm:$0xff] }
 0x39f   :  { %1518 = vmatpush.msk.msra.mxu0 %vm639_vm8, %v986_v42  ;;  %1528 = vmatpush.msk.msra.mxu1 %vm640_vm9, %v990_v43  ;;  %v1106_v42 = vld [vmem:[%s2730_s17 + $0x18] sm:$0xff] }
 0x3a1   :  { %v978_v51 = vpop.permute.xlu0 %977  ;;  %v944_v60 = vpop.permute.xlu1 %943 }
 0x3a2   :  { %v985_v57 = vsel %vm626_vm10, %v970_v20, %v978_v51  ;;  %v989_v58 = vsel %vm626_vm10, %v978_v51, %v970_v20  ;;  %v956_v52 = vsel %vm581_vm13, %v944_v60, %v952_v61  ;;  %v960_v56 = vsel %vm581_vm13, %v952_v61, %v944_v60 }
 0x3a3   :  { %1519 = vmatpush.msk.msra.mxu0 %vm639_vm8, %v985_v57  ;;  %1529 = vmatpush.msk.msra.mxu1 %vm640_vm9, %v989_v58 }
 0x3a5   :  { %1029 = vmatpush.msra.mxu0 %v935_v4  ;;  %1052 = vmatpush.msra.mxu1 %v936_v23 }
 0x3a7   :  { %1030 = vmatpush.msra.mxu0 %v2293_v6  ;;  %1053 = vmatpush.msra.mxu1 %v2295_v49  ;;  %v946_v49 = vpop.permute.xlu2 %945 }
 0x3a9   :  { %v942_v63 = vpop.permute.xlu0 %941  ;;  %1031 = vmatpush.msra.mxu0 %v2279_v31  ;;  %1054 = vmatpush.msra.mxu1 %v2277_v44  ;;  %v938_v44 = vpop.permute.xlu1 %937 }
 0x3aa   :  { %v955_v31 = vsel %vm581_vm13, %v942_v63, %v950_v41  ;;  %v953_v1 = vsel %vm581_vm13, %v938_v44, %v946_v49  ;;  %v957_v2 = vsel %vm581_vm13, %v946_v49, %v938_v44 }
 0x3ab   :  { %1032 = vmatpush.msra.mxu0 %v2265_v29  ;;  %1055 = vmatpush.msra.mxu1 %v2317_v53  ;;  %v959_v29 = vsel %vm581_vm13, %v950_v41, %v942_v63  ;;  %v1105_v41 = vld [vmem:[%s2730_s17 + $0x10] sm:$0xff] }
 0x3ad   :  { %1520 = vmatpush.msk.msra.mxu0 %vm592_vm11, %v960_v56  ;;  %1530 = vmatpush.msk.msra.mxu1 %vm593_vm12, %v956_v52 }
 0x3af   :  { %1521 = vmatpush.msk.msra.mxu0 %vm592_vm11, %v959_v29  ;;  %1531 = vmatpush.msk.msra.mxu1 %vm593_vm12, %v955_v31  ;;  %v1077_v28 = vpop.permute.xlu2 %1076 }
 0x3b1   :  { %v948_v48 = vpop.permute.xlu0 %947  ;;  %v1008_v53 = vpop.permute.xlu1 %1007 }
 0x3b2   :  { %v954_v54 = vsel %vm581_vm13, %v940_v50, %v948_v48  ;;  %v958_v6 = vsel %vm581_vm13, %v948_v48, %v940_v50 }
 0x3b3   :  { %1522 = vmatpush.msk.msra.mxu0 %vm592_vm11, %v958_v6  ;;  %1532 = vmatpush.msk.msra.mxu1 %vm593_vm12, %v954_v54 }
 0x3b5   :  { %1523 = vmatpush.msk.msra.mxu0 %vm592_vm11, %v957_v2  ;;  %1533 = vmatpush.msk.msra.mxu1 %vm593_vm12, %v953_v1 }
 0x3b6   :  { %1524 = vmatmul.msk.f32.vlgmr.msra.gmra.mxu0 %vm669_vm14, %v1001_v0  ;;  %1534 = vmatmul.msk.f32.vlgmr.msra.gmra.mxu1 %vm669_vm14, %v1001_v0 }
 0x3b7   :  { %v1088_v19 = vpop.permute.xlu2 %1087 }
 0x3b9   :  { %v1013_v15 = vpop.permute.xlu0 %1012  ;;  %v1093_v20 = vpop.permute.xlu1 %1092 }
 0x3be   :  { %1525 = vmatmul.msk.f32.gmra.mxu0 %vm669_vm14, %v1002_v10  ;;  %1535 = vmatmul.msk.f32.gmra.mxu1 %vm669_vm14, %v1002_v10 }
 0x3bf   :  { %v1119_v61 = vpop.permute.xlu2 %1118 }
 0x3c1   :  { %v1072_v11 = vpop.permute.xlu0 %1071 }
 0x3c9   :  { %v1129_v43 = vpop.permute.xlu0 %1128 }
 0x3d1   :  { %v1114_v50 = vpop.permute.xlu0 %1113 }
 0x433   :  { %v1038_v23 = vpop.f32.mrf.mxu0  ;;  %v1061_v4 = vpop.f32.mrf.mxu1 }
 0x434   :  { %v1039_v59 = vadd.f32 %v1038_v23, %v1008_v53  ;;  %v1062_v55 = vadd.f32 %v1061_v4, %v1008_v53  ;;  %v1285_v4 = vld [vmem:[%s2755_s25 + $0x20] sm:$0xff]  ;;  %v1284_v53 = vld [vmem:[%s2755_s25 + $0x18] sm:$0xff] }
 0x436   :  { %v1079_v47 = vmul.f32 %v1072_v11, %v1039_v59  ;;  %v1080_v14 = vmul.f32 %v1072_v11, %v1062_v55  ;;  %v1288_v59 = vld [vmem:[%s2755_s25 + $0x38] sm:$0xff]  ;;  %v1287_v55 = vld [vmem:[%s2755_s25 + $0x30] sm:$0xff] }
 0x438   :  { %v1095_v24 = vadd.f32 %v1088_v19, %v1079_v47  ;;  %v1096_v25 = vadd.f32 %v1088_v19, %v1080_v14 }
 0x43a   :  { %v1099_v35 = vmax.f32 %v1095_v24, 0.0  ;;  %v1100_v38 = vmax.f32 %v1096_v25, 0.0 }
 0x43b   :  { %v1041_v46 = vpop.f32.mrf.mxu0  ;;  %v1064_v5 = vpop.f32.mrf.mxu1 }
 0x43c   :  { %v1042_v18 = vadd.f32 %v1041_v46, %v1013_v15  ;;  %v1065_v62 = vadd.f32 %v1064_v5, %v1013_v15 }
 0x43e   :  { %v1081_v13 = vmul.f32 %v1077_v28, %v1042_v18  ;;  %v1082_v16 = vmul.f32 %v1077_v28, %v1065_v62  ;;  %v1286_v28 = vld [vmem:[%s2755_s25 + $0x28] sm:$0xff] }
 0x440   :  { %v1097_v21 = vadd.f32 %v1093_v20, %v1081_v13  ;;  %v1098_v22 = vadd.f32 %v1093_v20, %v1082_v16 }
 0x442   :  { %v1101_v12 = vmax.f32 %v1097_v21, 0.0  ;;  %v1102_v34 = vmax.f32 %v1098_v22, 0.0 }
 0x444   :  { %1157 = vmatpush.msrb.mxu0 %v1101_v12  ;;  %1186 = vmatpush.msrb.mxu1 %v1102_v34 }
 0x446   :  { %1158 = vmatpush.msrb.mxu0 %v1099_v35  ;;  %1187 = vmatpush.msrb.mxu1 %v1100_v38 }
 0x447   :  { %1536 = vmatmul.msk.f32.vlgmr.msrb.gmra.mxu0 %vm786_vm15, %v1103_v39  ;;  %1540 = vmatmul.msk.f32.vlgmr.msrb.gmra.mxu1 %vm786_vm15, %v1103_v39 }
 0x44f   :  { %1537 = vmatmul.msk.f32.gmra.mxu0 %vm786_vm15, %v1104_v40  ;;  %1541 = vmatmul.msk.f32.gmra.mxu1 %vm786_vm15, %v1104_v40 }
 0x457   :  { %1538 = vmatmul.msk.f32.gmra.mxu0 %vm786_vm15, %v1105_v41  ;;  %1542 = vmatmul.msk.f32.gmra.mxu1 %vm786_vm15, %v1105_v41 }
 0x45f   :  { %1539 = vmatmul.msk.f32.gmra.mxu0 %vm786_vm15, %v1106_v42  ;;  %1543 = vmatmul.msk.f32.gmra.mxu1 %vm786_vm15, %v1106_v42 }
 0x4c4   :  { %v1160_v51 = vpop.f32.mrf.mxu0  ;;  %v1189_v57 = vpop.f32.mrf.mxu1 }
 0x4c5   :  { %v1161_v58 = vadd.f32 %v1160_v51, %v1114_v50 }
 0x4c7   :  { %v2458_v60 = vadd.f32 %v1161_v58, %v2262_v3  ;;  %v1124_v3 = vpop.permute.xlu1 %1123 }
 0x4c9   :  { %1241 = vrot.lane.b32.xlu1 %v2458_v60, %s1726_s24 }
 0x4cc   :  { %v1163_v63 = vpop.f32.mrf.mxu0  ;;  %v1192_v52 = vpop.f32.mrf.mxu1 }
 0x4cd   :  { %v1164_v56 = vadd.f32 %v1163_v63, %v1119_v61  ;;  %v1193_v31 = vadd.f32 %v1192_v52, %v1119_v61  ;;  %v1273_v63 = vld [vmem:[#allocation7] sm:$0xff]  ;;  %v1275_v52 = vld [vmem:[#allocation7 + $0x10] sm:$0xff] }
 0x4cf   :  { %v2463_v29 = vadd.f32 %v1164_v56, %v2268_v30  ;;  %v2466_v44 = vadd.f32 %v1193_v31, %v2271_v33  ;;  %v1276_v56 = vld [vmem:[#allocation7 + $0x18] sm:$0xff]  ;;  %v1279_v31 = vld [vmem:[#allocation7 + $0x30] sm:$0xff] }
 0x4d1   :  { %1251 = vrot.lane.b32.xlu0 %v2466_v44, %s1726_s24  ;;  %1243 = vrot.lane.b32.xlu2 %v2463_v29, %s1726_s24 }
 0x4d4   :  { %v1166_v48 = vpop.f32.mrf.mxu0  ;;  %v1195_v54 = vpop.f32.mrf.mxu1 }
 0x4d5   :  { %v1167_v6 = vadd.f32 %v1166_v48, %v1124_v3  ;;  %v1196_v49 = vadd.f32 %v1195_v54, %v1124_v3 }
 0x4d7   :  { %v2473_v0 = vadd.f32 %v1167_v6, %v2282_v32  ;;  %v2476_v30 = vadd.f32 %v1196_v49, %v2285_v45  ;;  %v1190_v32 = vadd.f32 %v1189_v57, %v1114_v50 }
 0x4d9   :  { %1253 = vrot.lane.b32.xlu1 %v2476_v30, %s1726_s24  ;;  %1245 = vrot.lane.b32.xlu0 %v2473_v0, %s1726_s24  ;;  %v2495_v45 = vadd.f32 %v1190_v32, %v2308_v9  ;;  %v1281_v9 = vld [vmem:[%s2755_s25] sm:$0xff] }
 0x4dc   :  { %v1169_v33 = vpop.f32.mrf.mxu0  ;;  %v1198_v1 = vpop.f32.mrf.mxu1 }
 0x4dd   :  { %v1170_v2 = vadd.f32 %v1169_v33, %v1129_v43  ;;  %v1199_v10 = vadd.f32 %v1198_v1, %v1129_v43 }
 0x4df   :  { %v2483_v15 = vadd.f32 %v1170_v2, %v2298_v7  ;;  %v2486_v23 = vadd.f32 %v1199_v10, %v2301_v8  ;;  %v1282_v7 = vld [vmem:[%s2755_s25 + $0x8] sm:$0xff]  ;;  %v1283_v8 = vld [vmem:[%s2755_s25 + $0x10] sm:$0xff] }
 0x4e1   :  { %1255 = vrot.lane.b32.xlu2 %v2486_v23, %s1726_s24  ;;  %1247 = vrot.lane.b32.xlu1 %v2483_v15, %s1726_s24 }
 0x4e2   :  { %1221 = vrot.lane.b32.xlu0 %v2476_v30, %s1725_s22 }
 0x4e9   :  { %1249 = vrot.lane.b32.xlu2 %v2495_v45, %s1726_s24  ;;  %1211 = vrot.lane.b32.xlu1 %v2463_v29, %s1725_s22 }
 0x4ea   :  { %1215 = vrot.lane.b32.xlu0 %v2483_v15, %s1725_s22 }
 0x4f1   :  { %1223 = vrot.lane.b32.xlu1 %v2486_v23, %s1725_s22  ;;  %1213 = vrot.lane.b32.xlu2 %v2473_v0, %s1725_s22 }
 0x4f2   :  { %1209 = vrot.lane.b32.xlu0 %v2458_v60, %s1725_s22 }
 0x4f9   :  { %1217 = vrot.lane.b32.xlu1 %v2495_v45, %s1725_s22  ;;  %1219 = vrot.lane.b32.xlu2 %v2466_v44, %s1725_s22 }
 0x4fa   :  { %1296 = vperm.xlu0 %1613, %v1282_v7  }
 0x501   :  { %1301 = vperm.xlu1 %1614, %v1283_v8   ;;  %1291 = vperm.xlu2 %1615, %v1281_v9  }
 0x502   :  { %1311 = vperm.xlu0 %1613, %v1285_v4  }
 0x509   :  { %1316 = vperm.xlu1 %1614, %v1286_v28   ;;  %1306 = vperm.xlu2 %1615, %v1284_v53  }
 0x50a   :  { %1326 = vperm.xlu0 %1613, %v1288_v59  }
 0x511   :  { %1321 = vperm.xlu2 %1615, %v1287_v55  }
 0x52b   :  { %v1244_v11 = vpop.permute.xlu2 %1243 }
 0x53b   :  { %v1242_v46 = vpop.permute.xlu1 %1241  ;;  %v1256_v47 = vpop.permute.xlu2 %1255 }
 0x543   :  { %v1252_v5 = vpop.permute.xlu0 %1251  ;;  %v1250_v62 = vpop.permute.xlu2 %1249 }
 0x544   :  { %v1258_v24 = vsel %vm193_vm5, %v1244_v11, %v1252_v5  ;;  %v1262_v25 = vsel %vm193_vm5, %v1252_v5, %v1244_v11  ;;  %v1257_v12 = vsel %vm193_vm5, %v1242_v46, %v1250_v62  ;;  %v1261_v34 = vsel %vm193_vm5, %v1250_v62, %v1242_v46 }
 0x54b   :  { %v1254_v14 = vpop.permute.xlu1 %1253  ;;  %v1246_v18 = vpop.permute.xlu0 %1245 }
 0x54c   :  { %v1259_v20 = vsel %vm193_vm5, %v1246_v18, %v1254_v14  ;;  %v1263_v21 = vsel %vm193_vm5, %v1254_v14, %v1246_v18  ;;  %v1214_v38 = vpop.permute.xlu2 %1213 }
 0x553   :  { %v1248_v13 = vpop.permute.xlu1 %1247 }
 0x554   :  { %v1260_v16 = vsel %vm193_vm5, %v1248_v13, %v1256_v47  ;;  %v1264_v19 = vsel %vm193_vm5, %v1256_v47, %v1248_v13  ;;  %v1222_v22 = vpop.permute.xlu0 %1221  ;;  %v1220_v42 = vpop.permute.xlu2 %1219 }
 0x555   :  { %1544 = vmatpush.msk.msra.mxu0 %vm200_vm6, %v1260_v16  ;;  %1576 = vmatpush.msk.msrb.mxu2 %vm200_vm6, %v1260_v16  ;;  %v1231_v41 = vsel %vm167_vm2, %v1222_v22, %v1214_v38  ;;  %v1227_v43 = vsel %vm167_vm2, %v1214_v38, %v1222_v22 }
 0x556   :  { %1560 = vmatpush.msk.msra.mxu1 %vm201_vm7, %v1264_v19  ;;  %1588 = vmatpush.msk.msrb.mxu3 %vm201_vm7, %v1264_v19 }
 0x557   :  { %1545 = vmatpush.msk.msra.mxu0 %vm200_vm6, %v1259_v20  ;;  %1577 = vmatpush.msk.msrb.mxu2 %vm200_vm6, %v1259_v20 }
 0x558   :  { %1561 = vmatpush.msk.msra.mxu1 %vm201_vm7, %v1263_v21  ;;  %1589 = vmatpush.msk.msrb.mxu3 %vm201_vm7, %v1263_v21 }
 0x559   :  { %1546 = vmatpush.msk.msra.mxu0 %vm200_vm6, %v1258_v24  ;;  %1578 = vmatpush.msk.msrb.mxu2 %vm200_vm6, %v1258_v24 }
 0x55a   :  { %1562 = vmatpush.msk.msra.mxu1 %vm201_vm7, %v1262_v25  ;;  %1590 = vmatpush.msk.msrb.mxu3 %vm201_vm7, %v1262_v25 }
 0x55b   :  { %1547 = vmatpush.msk.msra.mxu0 %vm200_vm6, %v1257_v12  ;;  %1579 = vmatpush.msk.msrb.mxu2 %vm200_vm6, %v1257_v12  ;;  %v1212_v35 = vpop.permute.xlu1 %1211 }
 0x55c   :  { %1563 = vmatpush.msk.msra.mxu1 %vm201_vm7, %v1261_v34  ;;  %1591 = vmatpush.msk.msrb.mxu3 %vm201_vm7, %v1261_v34  ;;  %v1216_v36 = vpop.permute.xlu0 %1215  ;;  %v1230_v50 = vsel %vm167_vm2, %v1220_v42, %v1212_v35  ;;  %v1226_v51 = vsel %vm167_vm2, %v1212_v35, %v1220_v42 }
 0x55d   :  { %1361 = vmatpush.msra.mxu0 %v2483_v15  ;;  %1580 = vmatpush.msrb.mxu2 %v2483_v15 }
 0x55e   :  { %1402 = vmatpush.msra.mxu1 %v2486_v23  ;;  %1592 = vmatpush.msrb.mxu3 %v2486_v23 }
 0x55f   :  { %1362 = vmatpush.msra.mxu0 %v2473_v0  ;;  %1581 = vmatpush.msrb.mxu2 %v2473_v0 }
 0x560   :  { %1403 = vmatpush.msra.mxu1 %v2476_v30  ;;  %1593 = vmatpush.msrb.mxu3 %v2476_v30 }
 0x561   :  { %1363 = vmatpush.msra.mxu0 %v2463_v29  ;;  %1582 = vmatpush.msrb.mxu2 %v2463_v29  ;;  %v1280_v29 = vld [vmem:[#allocation7 + $0x38] sm:$0xff] }
 0x562   :  { %1404 = vmatpush.msra.mxu1 %v2466_v44  ;;  %1594 = vmatpush.msrb.mxu3 %v2466_v44  ;;  %v1292_v44 = vpop.permute.xlu2 %1291 }
 0x563   :  { %1364 = vmatpush.msra.mxu0 %v2458_v60  ;;  %1583 = vmatpush.msrb.mxu2 %v2458_v60  ;;  %v1224_v37 = vpop.permute.xlu1 %1223 }
 0x564   :  { %1405 = vmatpush.msra.mxu1 %v2495_v45  ;;  %1595 = vmatpush.msrb.mxu3 %v2495_v45  ;;  %v1228_v39 = vsel %vm167_vm2, %v1216_v36, %v1224_v37  ;;  %v1232_v40 = vsel %vm167_vm2, %v1224_v37, %v1216_v36  ;;  %v1210_v57 = vpop.permute.xlu0 %1209 }
 0x565   :  { %1548 = vmatpush.msk.msra.mxu0 %vm172_vm3, %v1232_v40  ;;  %1584 = vmatpush.msk.msrb.mxu2 %vm172_vm3, %v1232_v40 }
 0x566   :  { %1564 = vmatpush.msk.msra.mxu1 %vm173_vm4, %v1228_v39  ;;  %1596 = vmatpush.msk.msrb.mxu3 %vm173_vm4, %v1228_v39 }
 0x567   :  { %1549 = vmatpush.msk.msra.mxu0 %vm172_vm3, %v1231_v41  ;;  %1585 = vmatpush.msk.msrb.mxu2 %vm172_vm3, %v1231_v41 }
 0x568   :  { %1565 = vmatpush.msk.msra.mxu1 %vm173_vm4, %v1227_v43  ;;  %1597 = vmatpush.msk.msrb.mxu3 %vm173_vm4, %v1227_v43 }
 0x569   :  { %1550 = vmatpush.msk.msra.mxu0 %vm172_vm3, %v1230_v50  ;;  %1586 = vmatpush.msk.msrb.mxu2 %vm172_vm3, %v1230_v50 }
 0x56a   :  { %1566 = vmatpush.msk.msra.mxu1 %vm173_vm4, %v1226_v51  ;;  %1598 = vmatpush.msk.msrb.mxu3 %vm173_vm4, %v1226_v51  ;;  %v1307_v45 = vpop.permute.xlu2 %1306 }
 0x56b   :  { %v1218_v58 = vpop.permute.xlu1 %1217 }
 0x56c   :  { %v1225_v60 = vsel %vm167_vm2, %v1210_v57, %v1218_v58  ;;  %v1229_v61 = vsel %vm167_vm2, %v1218_v58, %v1210_v57  ;;  %v1297_v1 = vpop.permute.xlu0 %1296 }
 0x56d   :  { %1551 = vmatpush.msk.msra.mxu0 %vm172_vm3, %v1229_v61  ;;  %1587 = vmatpush.msk.msrb.mxu2 %vm172_vm3, %v1229_v61 }
 0x56e   :  { %1567 = vmatpush.msk.msra.mxu1 %vm173_vm4, %v1225_v60  ;;  %1599 = vmatpush.msk.msrb.mxu3 %vm173_vm4, %v1225_v60 }
 0x56f   :  { %1552 = vmatmul.msk.f32.vlgmr.msra.gmra.mxu0 %vm669_vm14, %v1273_v63  ;;  %1554 = vmatmul.msk.f32.vlgmr.msrb.gmra.mxu2 %vm669_vm14, %v1275_v52 }
 0x570   :  { %1568 = vmatmul.msk.f32.vlgmr.msra.gmra.mxu1 %vm669_vm14, %v1273_v63  ;;  %1570 = vmatmul.msk.f32.vlgmr.msrb.gmra.mxu3 %vm669_vm14, %v1275_v52 }
 0x572   :  { %v1322_v62 = vpop.permute.xlu2 %1321 }
 0x573   :  { %v1302_v49 = vpop.permute.xlu1 %1301 }
 0x574   :  { %v1312_v28 = vpop.permute.xlu0 %1311 }
 0x577   :  { %1553 = vmatmul.msk.f32.gmra.mxu0 %vm669_vm14, %v1274_v17  ;;  %1555 = vmatmul.msk.f32.gmra.mxu2 %vm669_vm14, %v1276_v56 }
 0x578   :  { %1569 = vmatmul.msk.f32.gmra.mxu1 %vm669_vm14, %v1274_v17  ;;  %1571 = vmatmul.msk.f32.gmra.mxu3 %vm669_vm14, %v1276_v56 }
 0x57b   :  { %v1317_v46 = vpop.permute.xlu1 %1316 }
 0x57c   :  { %v1327_v21 = vpop.permute.xlu0 %1326 }
 0x57f   :  { %1556 = vmatmul.msk.f32.gmra.mxu2 %vm669_vm14, %v1277_v26 }
 0x580   :  { %1572 = vmatmul.msk.f32.gmra.mxu3 %vm669_vm14, %v1277_v26 }
 0x587   :  { %1557 = vmatmul.msk.f32.gmra.mxu2 %vm669_vm14, %v1278_v27 }
 0x588   :  { %1573 = vmatmul.msk.f32.gmra.mxu3 %vm669_vm14, %v1278_v27 }
 0x58f   :  { %1558 = vmatmul.msk.f32.gmra.mxu2 %vm669_vm14, %v1279_v31 }
 0x590   :  { %1574 = vmatmul.msk.f32.gmra.mxu3 %vm669_vm14, %v1279_v31 }
 0x597   :  { %1559 = vmatmul.msk.f32.gmra.mxu2 %vm669_vm14, %v1280_v29 }
 0x598   :  { %1575 = vmatmul.msk.f32.gmra.mxu3 %vm669_vm14, %v1280_v29 }
 0x5ec   :  { %v1370_v3 = vpop.f32.mrf.mxu0 }
 0x5ed   :  { %v1371_v48 = vadd.f32 %v1370_v3, %v1292_v44  ;;  %v1411_v54 = vpop.f32.mrf.mxu1 }
 0x5ee   :  { %v1412_v6 = vadd.f32 %v1411_v54, %v1292_v44 }
 0x5ef   :  { %1435 = vst [vmem:[%s2756_s30] sm:$0xff] %v1371_v48 }
 0x5f0   :  { %1436 = vst [vmem:[%s2756_s30 + $0x8] sm:$0xff] %v1412_v6 }
 0x5f2   :  { %v1376_v0 = vpop.f32.mrf.mxu2 }
 0x5f3   :  { %v1377_v30 = vadd.f32 %v1376_v0, %v1302_v49  ;;  %v1417_v33 = vpop.f32.mrf.mxu3 }
 0x5f4   :  { %v1418_v2 = vadd.f32 %v1417_v33, %v1302_v49  ;;  %v1373_v10 = vpop.f32.mrf.mxu0 }
 0x5f5   :  { %1439 = vst [vmem:[%s2756_s30 + $0x20] sm:$0xff] %v1377_v30  ;;  %v1374_v15 = vadd.f32 %v1373_v10, %v1297_v1  ;;  %v1414_v23 = vpop.f32.mrf.mxu1 }
 0x5f6   :  { %1440 = vst [vmem:[%s2756_s30 + $0x28] sm:$0xff] %v1418_v2  ;;  %v1415_v32 = vadd.f32 %v1414_v23, %v1297_v1 }
 0x5f7   :  { %1437 = vst [vmem:[%s2756_s30 + $0x10] sm:$0xff] %v1374_v15 }
 0x5f8   :  { %1438 = vst [vmem:[%s2756_s30 + $0x18] sm:$0xff] %v1415_v32 }
 0x5fa   :  { %v1379_v7 = vpop.f32.mrf.mxu2 }
 0x5fb   :  { %v1380_v8 = vadd.f32 %v1379_v7, %v1307_v45  ;;  %v1420_v9 = vpop.f32.mrf.mxu3 }
 0x5fc   :  { %v1421_v4 = vadd.f32 %v1420_v9, %v1307_v45 }
 0x5fd   :  { %1441 = vst [vmem:[%s2756_s30 + $0x30] sm:$0xff] %v1380_v8 }
 0x5fe   :  { %1442 = vst [vmem:[%s2756_s30 + $0x38] sm:$0xff] %v1421_v4 }
 0x602   :  { %v1382_v53 = vpop.f32.mrf.mxu2 }
 0x603   :  { %v1383_v59 = vadd.f32 %v1382_v53, %v1312_v28  ;;  %v1423_v55 = vpop.f32.mrf.mxu3 }
 0x604   :  { %v1424_v11 = vadd.f32 %v1423_v55, %v1312_v28 }
 0x605   :  { %1443 = vst [vmem:[%s2756_s30 + $0x40] sm:$0xff] %v1383_v59 }
 0x606   :  { %1444 = vst [vmem:[%s2756_s30 + $0x48] sm:$0xff] %v1424_v11 }
 0x60a   :  { %v1385_v5 = vpop.f32.mrf.mxu2 }
 0x60b   :  { %v1386_v47 = vadd.f32 %v1385_v5, %v1317_v46  ;;  %v1426_v14 = vpop.f32.mrf.mxu3 }
 0x60c   :  { %v1427_v18 = vadd.f32 %v1426_v14, %v1317_v46 }
 0x60d   :  { %1445 = vst [vmem:[%s2756_s30 + $0x50] sm:$0xff] %v1386_v47 }
 0x60e   :  { %1446 = vst [vmem:[%s2756_s30 + $0x58] sm:$0xff] %v1427_v18 }
 0x612   :  { %v1388_v13 = vpop.f32.mrf.mxu2 }
 0x613   :  { %v1389_v16 = vadd.f32 %v1388_v13, %v1322_v62  ;;  %v1429_v19 = vpop.f32.mrf.mxu3 }
 0x614   :  { %v1430_v20 = vadd.f32 %v1429_v19, %v1322_v62 }
 0x615   :  { %1447 = vst [vmem:[%s2756_s30 + $0x60] sm:$0xff] %v1389_v16 }
 0x616   :  { %1448 = vst [vmem:[%s2756_s30 + $0x68] sm:$0xff] %v1430_v20 }
 0x61a   :  { %v1391_v22 = vpop.f32.mrf.mxu2 }
 0x61b   :  { %v1392_v24 = vadd.f32 %v1391_v22, %v1327_v21  ;;  %v1432_v25 = vpop.f32.mrf.mxu3 }
 0x61c   :  { %v1433_v12 = vadd.f32 %v1432_v25, %v1327_v21 }
 0x61d   :  { %1449 = vst [vmem:[%s2756_s30 + $0x70] sm:$0xff] %v1392_v24 }
 0x61e   :  { %1450 = vst [vmem:[%s2756_s30 + $0x78] sm:$0xff] %v1433_v12 }
 0x61f   :  { %1455 = vsyncpa [#allocation3], 1 }
 0x620   :  { %1456 = vsyncpa [#allocation5], 1 }
 0x621   :  { %1457 = vsyncpa [#allocation8], 1 }

// kernel: seq2seq_forward.5
= control target key start
LH: loop header
LB: loop body
LE: loop exit
PB: predicated region body
PF: predicated region fallthrough
CT: control target
= control target key end

     0   :  { %s2438_s0 = inlined_call_operand.vmem [shape: f32[64,256], index: 0, kind: input, shape index: {}]   ;;  %s2439_s1 = inlined_call_operand.vmem [shape: f32[32,192], index: 1, kind: input, shape index: {}]   ;;  %s2440_s2 = inlined_call_operand.vmem [shape: f32[32,1], index: 2, kind: input, shape index: {}]   ;;  %s2441_s3 = inlined_call_operand.vmem [shape: f32[32,1], index: 3, kind: input, shape index: {}]   ;;  %s2442_s4 = inlined_call_operand.vmem [shape: f32[32,1], index: 4, kind: input, shape index: {}]   ;;  %s2443_s5 = inlined_call_operand.vmem [shape: f32[16,96], index: 5, kind: input, shape index: {}]   ;;  %s2444_s6 = inlined_call_operand.vmem [shape: f32[16,1], index: 6, kind: input, shape index: {}]   ;;  %s2445_s7 = inlined_call_operand.vmem [shape: f32[16,1], index: 7, kind: input, shape index: {}]   ;;  %s2446_s8 = inlined_call_operand.vmem [shape: f32[16,1], index: 8, kind: input, shape index: {}]   ;;  %s2447_s9 = inlined_call_operand.vmem [shape: f32[32,16], index: 9, kind: input, shape index: {}]   ;;  %s2448_s10 = inlined_call_operand.vmem [shape: f32[32,1], index: 10, kind: input, shape index: {}]   ;;  %s2449_s11 = inlined_call_operand.vmem [shape: f32[32,1], index: 11, kind: input, shape index: {}]   ;;  %s2450_s12 = inlined_call_operand.vmem [shape: f32[32,1], index: 12, kind: input, shape index: {}]   ;;  %s2451_s13 = inlined_call_operand.vmem [shape: f32[16,96], index: 13, kind: input, shape index: {}]   ;;  %s2452_s14 = inlined_call_operand.vmem [shape: f32[16,1], index: 14, kind: input, shape index: {}]   ;;  %s2453_s15 = inlined_call_operand.vmem [shape: f32[16,1], index: 15, kind: input, shape index: {}]   ;;  %s2454_s16 = inlined_call_operand.vmem [shape: f32[16,1], index: 16, kind: input, shape index: {}]   ;;  %s2455_s17 = inlined_call_operand.vmem [shape: f32[32,16], index: 17, kind: input, shape index: {}]   ;;  %s2456_s18 = inlined_call_operand.vmem [shape: f32[32,1], index: 18, kind: input, shape index: {}]   ;;  %s2457_s19 = inlined_call_operand.vmem [shape: f32[4,96], index: 19, kind: input, shape index: {}]   ;;  %s2458_s20 = inlined_call_operand.vmem [shape: f32[4,1], index: 20, kind: input, shape index: {}]   ;;  %s2459_s21 = inlined_call_operand.hbm [shape: f32[4,256], index: 21, kind: output, shape index: {}]  }
   0x1   :  { %2466 = sst [smem:[#allocation5_spill]] %s2438_s0 }
   0x2   :  { %2467 = sst [smem:[#allocation6_spill]] %s2439_s1 }
   0x3   :  { %2468 = sst [smem:[#allocation7_spill]] %s2440_s2 }
   0x4   :  { %2469 = sst [smem:[#allocation8_spill]] %s2441_s3 }
   0x5   :  { %2470 = sst [smem:[#allocation9_spill]] %s2442_s4 }
   0x6   :  { %2471 = sst [smem:[#allocation10_spill]] %s2443_s5 }
   0x7   :  { %s2472_s26 = sld [smem:[#allocation5_spill]]  ;;  %s1437_s28 = smov 1  }
   0xd   :  { %v110_v0 = vld [vmem:[%s2472_s26 + $0x70] sm:$0xff]  ;;  %v108_v1 = vld [vmem:[%s2472_s26 + $0x60] sm:$0xff]  ;;  %v111_v2 = vld [vmem:[%s2472_s26 + $0x78] sm:$0xff] }
   0xe   :  { %126 = vrot.lane.b32.xlu0 %v110_v0, %s1437_s28  ;;  %124 = vrot.lane.b32.xlu1 %v108_v1, %s1437_s28  ;;  %v106_v3 = vld [vmem:[%s2472_s26 + $0x50] sm:$0xff]  ;;  %v109_v4 = vld [vmem:[%s2472_s26 + $0x68] sm:$0xff] }
   0xf   :  { %311 = vmatpush.msra.mxu0 %v110_v0  ;;  %369 = vmatpush.msra.mxu2 %v111_v2 }
  0x10   :  { %122 = vrot.lane.b32.xlu2 %v106_v3, %s1437_s28 }
  0x11   :  { %312 = vmatpush.msra.mxu0 %v108_v1  ;;  %370 = vmatpush.msra.mxu2 %v109_v4 }
  0x12   :  { %26 = vsyncpa [#allocation3], 0  ;;  %v107_v5 = vld [vmem:[%s2472_s26 + $0x58] sm:$0xff]  ;;  %v105_v6 = vld [vmem:[%s2472_s26 + $0x48] sm:$0xff]  ;;  %s1438_s2 = smov 127   ;;  %v69_v17 = vlaneseq  ;;  %v1439_v51 = vmov 0  }
  0x13   :  { %371 = vmatpush.msra.mxu2 %v107_v5  ;;  %313 = vmatpush.msra.mxu0 %v106_v3  ;;  %v104_v7 = vld [vmem:[%s2472_s26 + $0x40] sm:$0xff]  ;;  %v103_v8 = vld [vmem:[%s2472_s26 + $0x38] sm:$0xff]  ;;  %v102_v9 = vld [vmem:[%s2472_s26 + $0x30] sm:$0xff]  ;;  %s2473_s5 = sld [smem:[#allocation7_spill]]  ;;  %vm298_vm6 = vcmask 523264   ;;  %s1441_s25 = smov 3  }
  0x14   :  { %v101_v10 = vld [vmem:[%s2472_s26 + $0x28] sm:$0xff]  ;;  %v100_v11 = vld [vmem:[%s2472_s26 + $0x20] sm:$0xff]  ;;  %v98_v12 = vld [vmem:[%s2472_s26 + $0x10] sm:$0xff]  ;;  %v1633_v18 = vand.u32 127, %v69_v17  ;;  %1410 = vset.pattern.permute.xlu1 %v1439_v51  ;;  %1408 = vset.pattern.permute.xlu2 %v1439_v51  ;;  %s2474_s0 = sld [smem:[#allocation8_spill]]  ;;  %vm603_vm13 = vcmask 785408  }
  0x15   :  { %314 = vmatpush.msra.mxu0 %v104_v7  ;;  %372 = vmatpush.msra.mxu2 %v105_v6  ;;  %v99_v13 = vld [vmem:[%s2472_s26 + $0x18] sm:$0xff]  ;;  %v97_v14 = vld [vmem:[%s2472_s26 + $0x8] sm:$0xff]  ;;  %v96_v15 = vld [vmem:[%s2472_s26] sm:$0xff]  ;;  %s2475_s30 = sld [smem:[#allocation9_spill]]  ;;  %vm720_vm14 = vcmask 130048   ;;  %vm1260_vm15 = vcmask 1043456  }
  0x16   :  { %142 = vrot.lane.b32.xlu0 %v111_v2, %s1437_s28  ;;  %140 = vrot.lane.b32.xlu1 %v109_v4, %s1437_s28  ;;  %v71_v20 = vadd.s32 128, %v1633_v18  ;;  %v1639_v24 = vadd.s32 4294967295, %v1633_v18  ;;  %vm144_vm2 = vcmp.lt.s32.totalorder %v1633_v18, 1  ;;  %v1680_v40 = vadd.s32 1, %v1633_v18  ;;  %s2476_s29 = sld [smem:[#allocation6_spill]] }
  0x17   :  { %315 = vmatpush.msra.mxu0 %v102_v9  ;;  %373 = vmatpush.msra.mxu2 %v103_v8  ;;  %vm221_vm3 = vcmp.lt.s32.totalorder %v1633_v18, 127  ;;  %vm560_vm9 = vcmp.lt.s32.totalorder %v1633_v18, 125  ;;  %vm515_vm10 = vcmp.lt.s32.totalorder %v1633_v18, 3  ;;  %s2477_s22 = sld [smem:[#allocation10_spill]] }
  0x18   :  { %138 = vrot.lane.b32.xlu2 %v107_v5, %s1437_s28  ;;  %v1636_v21 = vand.u32 127, %v71_v20  ;;  %vm163_vm0 = vcmp.ge.s32.totalorder %v1639_v24, 0  ;;  %vm242_vm4 = vcmp.lt.s32.totalorder %v1680_v40, 128  ;;  %1409 = vset.pattern.permute.xlu0 %v1439_v51 }
  0x19   :  { %316 = vmatpush.msra.mxu0 %v100_v11  ;;  %374 = vmatpush.msra.mxu2 %v101_v10  ;;  %v275_v55 = vld [vmem:[%s2473_s5 + $0x8] sm:$0xff]  ;;  %v277_v56 = vld [vmem:[%s2473_s5 + $0x18] sm:$0xff]  ;;  %v276_v59 = vld [vmem:[%s2473_s5 + $0x10] sm:$0xff] }
  0x1a   :  { %v1642_v25 = vadd.s32 4294967295, %v1636_v21  ;;  %v1683_v41 = vadd.s32 1, %v1636_v21 }
  0x1b   :  { %317 = vmatpush.msra.mxu0 %v98_v12  ;;  %375 = vmatpush.msra.mxu2 %v99_v13  ;;  %v460_v20 = vld [vmem:[%s2475_s30 + $0x8] sm:$0xff] }
  0x1c   :  { %vm164_vm1 = vcmp.ge.s32.totalorder %v1642_v25, 0  ;;  %vm243_vm5 = vcmp.lt.s32.totalorder %v1683_v41, 128 }
  0x1d   :  { %376 = vmatpush.msra.mxu2 %v97_v14  ;;  %318 = vmatpush.msra.mxu0 %v96_v15 }
  0x1e   :  { %136 = vrot.lane.b32.xlu1 %v105_v6, %s1437_s28  ;;  %120 = vrot.lane.b32.xlu0 %v104_v7, %s1437_s28 }
  0x20   :  { %118 = vrot.lane.b32.xlu2 %v102_v9, %s1437_s28 }
  0x26   :  { %203 = vrot.lane.b32.xlu1 %v110_v0, %s1438_s2  ;;  %134 = vrot.lane.b32.xlu0 %v103_v8, %s1437_s28  ;;  %v274_v0 = vld [vmem:[%s2473_s5] sm:$0xff] }
  0x28   :  { %219 = vrot.lane.b32.xlu2 %v111_v2, %s1438_s2 }
  0x2e   :  { %132 = vrot.lane.b32.xlu1 %v101_v10, %s1437_s28  ;;  %116 = vrot.lane.b32.xlu0 %v100_v11, %s1437_s28 }
  0x30   :  { %201 = vrot.lane.b32.xlu2 %v108_v1, %s1438_s2  ;;  %v430_v1 = vld [vmem:[%s2474_s0 + $0x18] sm:$0xff] }
  0x36   :  { %217 = vrot.lane.b32.xlu0 %v109_v4, %s1438_s2  ;;  %114 = vrot.lane.b32.xlu1 %v98_v12, %s1437_s28 }
  0x38   :  { %130 = vrot.lane.b32.xlu2 %v99_v13, %s1437_s28 }
  0x3e   :  { %199 = vrot.lane.b32.xlu0 %v106_v3, %s1438_s2  ;;  %215 = vrot.lane.b32.xlu1 %v107_v5, %s1438_s2  ;;  %v462_v5 = vld [vmem:[%s2475_s30 + $0x18] sm:$0xff] }
  0x40   :  { %112 = vrot.lane.b32.xlu2 %v96_v15, %s1437_s28 }
  0x46   :  { %197 = vrot.lane.b32.xlu1 %v104_v7, %s1438_s2  ;;  %128 = vrot.lane.b32.xlu0 %v97_v14, %s1437_s28 }
  0x48   :  { %213 = vrot.lane.b32.xlu2 %v105_v6, %s1438_s2 }
  0x4e   :  { %211 = vrot.lane.b32.xlu1 %v103_v8, %s1438_s2  ;;  %195 = vrot.lane.b32.xlu0 %v102_v9, %s1438_s2  ;;  %v428_v8 = vld [vmem:[%s2474_s0 + $0x8] sm:$0xff]  ;;  %v429_v9 = vld [vmem:[%s2474_s0 + $0x10] sm:$0xff] }
  0x50   :  { %193 = vrot.lane.b32.xlu2 %v100_v11, %s1438_s2  ;;  %v427_v11 = vld [vmem:[%s2474_s0] sm:$0xff] }
  0x56   :  { %191 = vrot.lane.b32.xlu1 %v98_v12, %s1438_s2  ;;  %209 = vrot.lane.b32.xlu0 %v101_v10, %s1438_s2 }
  0x58   :  { %207 = vrot.lane.b32.xlu2 %v99_v13, %s1438_s2 }
  0x5e   :  { %205 = vrot.lane.b32.xlu1 %v97_v14, %s1438_s2  ;;  %189 = vrot.lane.b32.xlu0 %v96_v15, %s1438_s2 }
  0x60   :  { %295 = vperm.xlu2 %1408, %v277_v56  }
  0x66   :  { %285 = vperm.xlu1 %1410, %v275_v55   ;;  %290 = vperm.xlu0 %1409, %v276_v59  }
  0x68   :  { %448 = vperm.xlu2 %1408, %v430_v1  }
  0x6a   :  { %v123_v16 = vpop.permute.xlu2 %122 }
  0x6e   :  { %280 = vperm.xlu1 %1410, %v274_v0   ;;  %480 = vperm.xlu0 %1409, %v462_v5  }
  0x70   :  { %443 = vperm.xlu2 %1408, %v429_v9  }
  0x72   :  { %v139_v19 = vpop.permute.xlu2 %138 }
  0x73   :  { %v158_v33 = vsel %vm144_vm2, %v139_v19, %v123_v16  ;;  %v150_v34 = vsel %vm144_vm2, %v123_v16, %v139_v19  ;;  %v266_v19 = vld [vmem:[%s2476_s29] sm:$0xff] }
  0x76   :  { %438 = vperm.xlu1 %1410, %v428_v8   ;;  %433 = vperm.xlu0 %1409, %v427_v11  }
  0x7a   :  { %v119_v26 = vpop.permute.xlu2 %118 }
  0x7e   :  { %470 = vperm.xlu1 %1410, %v460_v20  }
  0x80   :  { %v127_v22 = vpop.permute.xlu0 %126  ;;  %v125_v23 = vpop.permute.xlu1 %124 }
  0x82   :  { %v220_v35 = vpop.permute.xlu2 %219 }
  0x88   :  { %v143_v27 = vpop.permute.xlu0 %142  ;;  %v141_v28 = vpop.permute.xlu1 %140 }
  0x89   :  { %v160_v29 = vsel %vm144_vm2, %v143_v27, %v127_v22  ;;  %v152_v30 = vsel %vm144_vm2, %v127_v22, %v143_v27  ;;  %v159_v31 = vsel %vm144_vm2, %v141_v28, %v125_v23  ;;  %v151_v32 = vsel %vm144_vm2, %v125_v23, %v141_v28  ;;  %v461_v22 = vld [vmem:[%s2475_s30 + $0x10] sm:$0xff] }
  0x8a   :  { %1280 = vmatpush.msk.msra.mxu0 %vm163_vm0, %v160_v29  ;;  %1300 = vmatpush.msk.msra.mxu2 %vm164_vm1, %v152_v30  ;;  %v202_v42 = vpop.permute.xlu2 %201  ;;  %v268_v30 = vld [vmem:[%s2476_s29 + $0x10] sm:$0xff] }
  0x8b   :  { %475 = vperm.xlu2 %1408, %v461_v22  }
  0x8c   :  { %1281 = vmatpush.msk.msra.mxu0 %vm163_vm0, %v159_v31  ;;  %1301 = vmatpush.msk.msra.mxu2 %vm164_vm1, %v151_v32  ;;  %v459_v31 = vld [vmem:[%s2475_s30] sm:$0xff] }
  0x8e   :  { %1282 = vmatpush.msk.msra.mxu0 %vm163_vm0, %v158_v33  ;;  %1302 = vmatpush.msk.msra.mxu2 %vm164_vm1, %v150_v34 }
  0x90   :  { %v137_v36 = vpop.permute.xlu1 %136  ;;  %v121_v37 = vpop.permute.xlu0 %120 }
  0x91   :  { %v157_v38 = vsel %vm144_vm2, %v137_v36, %v121_v37  ;;  %v149_v39 = vsel %vm144_vm2, %v121_v37, %v137_v36  ;;  %v270_v37 = vld [vmem:[%s2476_s29 + $0x20] sm:$0xff] }
  0x92   :  { %1283 = vmatpush.msk.msra.mxu0 %vm163_vm0, %v157_v38  ;;  %1303 = vmatpush.msk.msra.mxu2 %vm164_vm1, %v149_v39  ;;  %v131_v54 = vpop.permute.xlu2 %130 }
  0x93   :  { %465 = vperm.xlu2 %1408, %v459_v31  }
  0x98   :  { %v204_v43 = vpop.permute.xlu1 %203  ;;  %v135_v44 = vpop.permute.xlu0 %134 }
  0x99   :  { %v156_v45 = vsel %vm144_vm2, %v135_v44, %v119_v26  ;;  %v229_v46 = vsel %vm221_vm3, %v204_v43, %v220_v35  ;;  %v148_v47 = vsel %vm144_vm2, %v119_v26, %v135_v44  ;;  %v1696_v48 = vsel %vm221_vm3, %v220_v35, %v204_v43  ;;  %v267_v44 = vld [vmem:[%s2476_s29 + $0x8] sm:$0xff] }
  0x9a   :  { %1284 = vmatpush.msk.msra.mxu0 %vm163_vm0, %v156_v45  ;;  %1288 = vmatpush.msk.msra.mxu1 %vm242_vm4, %v229_v46  ;;  %v113_v2 = vpop.permute.xlu2 %112 }
  0x9b   :  { %1304 = vmatpush.msk.msra.mxu2 %vm164_vm1, %v148_v47  ;;  %1394 = vmatpush.msk.msra.mxu3 %vm243_vm5, %v1696_v48  ;;  %v272_v47 = vld [vmem:[%s2476_s29 + $0x30] sm:$0xff] }
  0xa0   :  { %v133_v49 = vpop.permute.xlu1 %132  ;;  %v117_v50 = vpop.permute.xlu0 %116 }
  0xa1   :  { %v155_v52 = vsel %vm144_vm2, %v133_v49, %v117_v50  ;;  %v147_v53 = vsel %vm144_vm2, %v117_v50, %v133_v49  ;;  %v271_v49 = vld [vmem:[%s2476_s29 + $0x28] sm:$0xff]  ;;  %v273_v50 = vld [vmem:[%s2476_s29 + $0x38] sm:$0xff] }
  0xa2   :  { %1285 = vmatpush.msk.msra.mxu0 %vm163_vm0, %v155_v52  ;;  %1305 = vmatpush.msk.msra.mxu2 %vm164_vm1, %v147_v53  ;;  %v214_v10 = vpop.permute.xlu2 %213 }
  0xa8   :  { %v218_v57 = vpop.permute.xlu0 %217  ;;  %v115_v58 = vpop.permute.xlu1 %114 }
  0xa9   :  { %v154_v60 = vsel %vm144_vm2, %v131_v54, %v115_v58  ;;  %v228_v61 = vsel %vm221_vm3, %v202_v42, %v218_v57  ;;  %v146_v62 = vsel %vm144_vm2, %v115_v58, %v131_v54  ;;  %v236_v63 = vsel %vm221_vm3, %v218_v57, %v202_v42 }
  0xaa   :  { %1286 = vmatpush.msk.msra.mxu0 %vm163_vm0, %v154_v60  ;;  %1289 = vmatpush.msk.msra.mxu1 %vm242_vm4, %v228_v61  ;;  %v194_v23 = vpop.permute.xlu2 %193 }
  0xab   :  { %1306 = vmatpush.msk.msra.mxu2 %vm164_vm1, %v146_v62  ;;  %1395 = vmatpush.msk.msra.mxu3 %vm243_vm5, %v236_v63 }
  0xb0   :  { %v200_v3 = vpop.permute.xlu0 %199  ;;  %v216_v4 = vpop.permute.xlu1 %215 }
  0xb1   :  { %v227_v6 = vsel %vm221_vm3, %v200_v3, %v216_v4  ;;  %v235_v7 = vsel %vm221_vm3, %v216_v4, %v200_v3 }
  0xb2   :  { %1290 = vmatpush.msk.msra.mxu1 %vm242_vm4, %v227_v6  ;;  %1396 = vmatpush.msk.msra.mxu3 %vm243_vm5, %v235_v7  ;;  %v208_v34 = vpop.permute.xlu2 %207 }
  0xb8   :  { %v198_v12 = vpop.permute.xlu1 %197  ;;  %v129_v13 = vpop.permute.xlu0 %128 }
  0xb9   :  { %v153_v14 = vsel %vm144_vm2, %v129_v13, %v113_v2  ;;  %v226_v15 = vsel %vm221_vm3, %v198_v12, %v214_v10  ;;  %v145_v16 = vsel %vm144_vm2, %v113_v2, %v129_v13  ;;  %v234_v17 = vsel %vm221_vm3, %v214_v10, %v198_v12 }
  0xba   :  { %1287 = vmatpush.msk.msra.mxu0 %vm163_vm0, %v153_v14  ;;  %1291 = vmatpush.msk.msra.mxu1 %vm242_vm4, %v226_v15  ;;  %v296_v51 = vpop.permute.xlu2 %295 }
  0xbb   :  { %1307 = vmatpush.msk.msra.mxu2 %vm164_vm1, %v145_v16  ;;  %1397 = vmatpush.msk.msra.mxu3 %vm243_vm5, %v234_v17 }
  0xbc   :  { %327 = vmatmul.f32.vlgmr.msra.gmra.mxu0 %v266_v19  ;;  %385 = vmatmul.f32.vlgmr.msra.gmra.mxu2 %v266_v19 }
  0xbd   :  { %1308 = vmatpush.msk.msrb.mxu0 %vm243_vm5, %v1696_v48  ;;  %v269_v48 = vld [vmem:[%s2476_s29 + $0x18] sm:$0xff]  ;;  %s1440_s29 = smov 125  }
  0xbf   :  { %1309 = vmatpush.msk.msrb.mxu0 %vm243_vm5, %v236_v63 }
  0xc0   :  { %v212_v26 = vpop.permute.xlu1 %211  ;;  %v196_v27 = vpop.permute.xlu0 %195 }
  0xc1   :  { %1310 = vmatpush.msk.msrb.mxu0 %vm243_vm5, %v235_v7  ;;  %v225_v28 = vsel %vm221_vm3, %v196_v27, %v212_v26  ;;  %v233_v29 = vsel %vm221_vm3, %v212_v26, %v196_v27 }
  0xc2   :  { %1292 = vmatpush.msk.msra.mxu1 %vm242_vm4, %v225_v28  ;;  %1398 = vmatpush.msk.msra.mxu3 %vm243_vm5, %v233_v29  ;;  %v1872_v52 = vpop.permute.xlu2 %448 }
  0xc3   :  { %1311 = vmatpush.msk.msrb.mxu0 %vm243_vm5, %v234_v17 }
  0xc4   :  { %330 = vmatmul.f32.gmra.mxu0 %v268_v30  ;;  %388 = vmatmul.f32.gmra.mxu2 %v268_v30 }
  0xc5   :  { %1312 = vmatpush.msk.msrb.mxu0 %vm243_vm5, %v233_v29 }
  0xc8   :  { %v192_v32 = vpop.permute.xlu1 %191  ;;  %v210_v33 = vpop.permute.xlu0 %209 }
  0xc9   :  { %v224_v35 = vsel %vm221_vm3, %v194_v23, %v210_v33  ;;  %v232_v36 = vsel %vm221_vm3, %v210_v33, %v194_v23  ;;  %v223_v38 = vsel %vm221_vm3, %v192_v32, %v208_v34  ;;  %v231_v39 = vsel %vm221_vm3, %v208_v34, %v192_v32 }
  0xca   :  { %1293 = vmatpush.msk.msra.mxu1 %vm242_vm4, %v224_v35  ;;  %1313 = vmatpush.msk.msrb.mxu0 %vm243_vm5, %v232_v36  ;;  %v444_v56 = vpop.permute.xlu2 %443 }
  0xcb   :  { %1399 = vmatpush.msk.msra.mxu3 %vm243_vm5, %v232_v36 }
  0xcc   :  { %333 = vmatmul.f32.gmra.mxu0 %v270_v37  ;;  %391 = vmatmul.f32.gmra.mxu2 %v270_v37 }
  0xcd   :  { %1294 = vmatpush.msk.msra.mxu1 %vm242_vm4, %v223_v38  ;;  %1314 = vmatpush.msk.msrb.mxu0 %vm243_vm5, %v231_v39 }
  0xce   :  { %1400 = vmatpush.msk.msra.mxu3 %vm243_vm5, %v231_v39 }
  0xd0   :  { %v206_v42 = vpop.permute.xlu1 %205  ;;  %v190_v43 = vpop.permute.xlu0 %189 }
  0xd1   :  { %v222_v45 = vsel %vm221_vm3, %v190_v43, %v206_v42  ;;  %v230_v46 = vsel %vm221_vm3, %v206_v42, %v190_v43 }
  0xd2   :  { %1295 = vmatpush.msk.msra.mxu1 %vm242_vm4, %v222_v45  ;;  %1315 = vmatpush.msk.msrb.mxu0 %vm243_vm5, %v230_v46 }
  0xd3   :  { %1401 = vmatpush.msk.msra.mxu3 %vm243_vm5, %v230_v46  ;;  %1296 = vmatmul.msk.f32.vlgmr.msra.gmra.mxu1 %vm298_vm6, %v267_v44 }
  0xd4   :  { %336 = vmatmul.f32.gmra.mxu0 %v272_v47  ;;  %394 = vmatmul.f32.gmra.mxu2 %v272_v47 }
  0xd5   :  { %1317 = vmatmul.msk.f32.vlgmr.msra.gmra.mxu3 %vm298_vm6, %v269_v48 }
  0xd8   :  { %v286_v53 = vpop.permute.xlu1 %285  ;;  %v291_v54 = vpop.permute.xlu0 %290 }
  0xdb   :  { %1297 = vmatmul.msk.f32.gmra.mxu1 %vm298_vm6, %v269_v48 }
  0xdc   :  { %1316 = vmatmul.msk.f32.vlgmr.msrb.gmra.mxu0 %vm298_vm6, %v267_v44 }
  0xdd   :  { %1318 = vmatmul.msk.f32.gmra.mxu3 %vm298_vm6, %v271_v49 }
  0xe0   :  { %v281_v58 = vpop.permute.xlu1 %280  ;;  %v481_v59 = vpop.permute.xlu0 %480 }
  0xe3   :  { %1298 = vmatmul.msk.f32.gmra.mxu1 %vm298_vm6, %v271_v49 }
  0xe5   :  { %1319 = vmatmul.msk.f32.gmra.mxu3 %vm298_vm6, %v273_v50  ;;  %v476_v61 = vpop.permute.xlu2 %475 }
  0xe8   :  { %v439_v2 = vpop.permute.xlu1 %438  ;;  %v434_v3 = vpop.permute.xlu0 %433 }
  0xeb   :  { %1299 = vmatmul.msk.f32.gmra.mxu1 %vm298_vm6, %v273_v50 }
  0xed   :  { %v466_v6 = vpop.permute.xlu2 %465 }
  0xf0   :  { %v471_v19 = vpop.permute.xlu1 %470 }
 0x139   :  { %v328_v55 = vpop.f32.mrf.mxu0 }
 0x13a   :  { %v329_v62 = vadd.f32 %v328_v55, %v281_v58 }
 0x13f   :  { %v386_v57 = vpop.f32.mrf.mxu2 }
 0x140   :  { %v387_v48 = vadd.f32 %v386_v57, %v281_v58 }
 0x141   :  { %v331_v60 = vpop.f32.mrf.mxu0 }
 0x142   :  { %v332_v8 = vadd.f32 %v331_v60, %v286_v53 }
 0x147   :  { %v389_v63 = vpop.f32.mrf.mxu2 }
 0x148   :  { %v390_v9 = vadd.f32 %v389_v63, %v286_v53  ;;  %v657_v63 = vld [vmem:[%s2445_s7 + $0x8] sm:$0xff] }
 0x149   :  { %v334_v4 = vpop.f32.mrf.mxu0 }
 0x14a   :  { %v335_v26 = vadd.f32 %v334_v4, %v291_v54  ;;  %v698_v4 = vld [vmem:[%s2448_s10 + $0x10] sm:$0xff] }
 0x14f   :  { %v392_v15 = vpop.f32.mrf.mxu2 }
 0x150   :  { %v357_v0 = vpop.f32.mrf.mxu1  ;;  %v393_v27 = vadd.f32 %v392_v15, %v291_v54  ;;  %v833_v15 = vld [vmem:[%s2450_s12 + $0x10] sm:$0xff] }
 0x151   :  { %v1874_v1 = vadd.f32 %v357_v0, %v329_v62  ;;  %v337_v20 = vpop.f32.mrf.mxu0  ;;  %v592_v62 = vld [vmem:[%s2444_s6 + $0x8] sm:$0xff] }
 0x152   :  { %v338_v39 = vadd.f32 %v337_v20, %v296_v51  ;;  %v673_v0 = vld [vmem:[%s2446_s8 + $0x8] sm:$0xff] }
 0x153   :  { %v451_v5 = vmul.f32 %v434_v3, %v1874_v1 }
 0x155   :  { %v483_v7 = vadd.f32 %v466_v6, %v451_v5  ;;  %v699_v5 = vld [vmem:[%s2448_s10 + $0x18] sm:$0xff] }
 0x157   :  { %v1877_v10 = vmax.f32 %v483_v7, 0.0  ;;  %v395_v36 = vpop.f32.mrf.mxu2  ;;  %v696_v7 = vld [vmem:[%s2448_s10] sm:$0xff] }
 0x158   :  { %v418_v11 = vpop.f32.mrf.mxu3  ;;  %v360_v12 = vpop.f32.mrf.mxu1  ;;  %v396_v42 = vadd.f32 %v395_v36, %v296_v51 }
 0x159   :  { %v1879_v13 = vadd.f32 %v418_v11, %v390_v9  ;;  %v1881_v14 = vadd.f32 %v360_v12, %v332_v8  ;;  %544 = vrot.lane.b32.xlu0 %v1877_v10, %s1440_s29  ;;  %v415_v43 = vpop.f32.mrf.mxu0  ;;  %v802_v8 = vld [vmem:[%s2449_s11 + $0x18] sm:$0xff]  ;;  %v801_v9 = vld [vmem:[%s2449_s11 + $0x10] sm:$0xff]  ;;  %v800_v11 = vld [vmem:[%s2449_s11 + $0x8] sm:$0xff] }
 0x15a   :  { %v1913_v53 = vadd.f32 %v415_v43, %v387_v48  ;;  %v834_v12 = vld [vmem:[%s2450_s12 + $0x18] sm:$0xff] }
 0x15b   :  { %v454_v16 = vmul.f32 %v439_v2, %v1879_v13  ;;  %v453_v17 = vmul.f32 %v439_v2, %v1881_v14  ;;  %v656_v2 = vld [vmem:[%s2445_s7] sm:$0xff] }
 0x15c   :  { %v452_v57 = vmul.f32 %v434_v3, %v1913_v53  ;;  %v672_v3 = vld [vmem:[%s2446_s8] sm:$0xff] }
 0x15d   :  { %v486_v22 = vadd.f32 %v471_v19, %v454_v16  ;;  %v485_v23 = vadd.f32 %v471_v19, %v453_v17  ;;  %v832_v16 = vld [vmem:[%s2450_s12 + $0x8] sm:$0xff]  ;;  %v799_v17 = vld [vmem:[%s2449_s11] sm:$0xff] }
 0x15e   :  { %v831_v19 = vld [vmem:[%s2450_s12] sm:$0xff] }
 0x15f   :  { %v1887_v28 = vmax.f32 %v486_v22, 0.0  ;;  %v1889_v29 = vmax.f32 %v485_v23, 0.0 }
 0x160   :  { %v421_v30 = vpop.f32.mrf.mxu3  ;;  %v363_v31 = vpop.f32.mrf.mxu1 }
 0x161   :  { %v1891_v32 = vadd.f32 %v421_v30, %v393_v27  ;;  %554 = vrot.lane.b32.xlu2 %v1887_v28, %s1440_s29  ;;  %v1895_v33 = vadd.f32 %v363_v31, %v335_v26  ;;  %546 = vrot.lane.b32.xlu1 %v1889_v29, %s1440_s29  ;;  %v2003_v30 = vadd.s32 3, %v1633_v18  ;;  %v2006_v31 = vadd.s32 3, %v1636_v21 }
 0x163   :  { %v456_v34 = vmul.f32 %v444_v56, %v1891_v32  ;;  %v455_v35 = vmul.f32 %v444_v56, %v1895_v33  ;;  %vm573_vm7 = vcmp.lt.s32.totalorder %v2003_v30, 128  ;;  %vm574_vm8 = vcmp.lt.s32.totalorder %v2006_v31, 128 }
 0x165   :  { %v488_v37 = vadd.f32 %v476_v61, %v456_v34  ;;  %v487_v38 = vadd.f32 %v476_v61, %v455_v35  ;;  %v484_v61 = vadd.f32 %v466_v6, %v452_v57  ;;  %v697_v6 = vld [vmem:[%s2448_s10 + $0x8] sm:$0xff]  ;;  %v2049_v57 = vadd.s32 4294967293, %v1636_v21 }
 0x167   :  { %v1901_v44 = vmax.f32 %v488_v37, 0.0  ;;  %v1903_v45 = vmax.f32 %v487_v38, 0.0  ;;  %vm527_vm12 = vcmp.ge.s32.totalorder %v2049_v57, 0 }
 0x168   :  { %v424_v46 = vpop.f32.mrf.mxu3  ;;  %v366_v47 = vpop.f32.mrf.mxu1 }
 0x169   :  { %v1905_v49 = vadd.f32 %v424_v46, %v396_v42  ;;  %556 = vrot.lane.b32.xlu0 %v1901_v44, %s1440_s29  ;;  %v1909_v50 = vadd.f32 %v366_v47, %v338_v39  ;;  %548 = vrot.lane.b32.xlu2 %v1903_v45, %s1440_s29 }
 0x16b   :  { %v458_v51 = vmul.f32 %v1872_v52, %v1905_v49  ;;  %v457_v54 = vmul.f32 %v1872_v52, %v1909_v50  ;;  %v1930_v52 = vmax.f32 %v484_v61, 0.0 }
 0x16d   :  { %v490_v55 = vadd.f32 %v481_v59, %v458_v51  ;;  %v489_v56 = vadd.f32 %v481_v59, %v457_v54  ;;  %v591_v59 = vld [vmem:[%s2444_s6] sm:$0xff] }
 0x16f   :  { %v1920_v58 = vmax.f32 %v490_v55, 0.0  ;;  %v1922_v60 = vmax.f32 %v489_v56, 0.0  ;;  %v2046_v56 = vadd.s32 4294967293, %v1633_v18 }
 0x171   :  { %558 = vrot.lane.b32.xlu1 %v1920_v58, %s1440_s29  ;;  %550 = vrot.lane.b32.xlu0 %v1922_v60, %s1440_s29  ;;  %vm526_vm11 = vcmp.ge.s32.totalorder %v2046_v56, 0 }
 0x172   :  { %505 = vrot.lane.b32.xlu2 %v1922_v60, %s1441_s25 }
 0x179   :  { %552 = vrot.lane.b32.xlu1 %v1930_v52, %s1440_s29  ;;  %501 = vrot.lane.b32.xlu0 %v1889_v29, %s1441_s25 }
 0x17a   :  { %511 = vrot.lane.b32.xlu2 %v1901_v44, %s1441_s25 }
 0x181   :  { %503 = vrot.lane.b32.xlu1 %v1903_v45, %s1441_s25  ;;  %513 = vrot.lane.b32.xlu0 %v1920_v58, %s1441_s25 }
 0x182   :  { %499 = vrot.lane.b32.xlu2 %v1877_v10, %s1441_s25 }
 0x189   :  { %509 = vrot.lane.b32.xlu1 %v1887_v28, %s1441_s25  ;;  %507 = vrot.lane.b32.xlu0 %v1930_v52, %s1441_s25 }
 0x18a   :  { %595 = vperm.xlu2 %1408, %v591_v59  }
 0x191   :  { %600 = vperm.xlu1 %1410, %v592_v62   ;;  %665 = vperm.xlu0 %1409, %v657_v63  }
 0x192   :  { %681 = vperm.xlu2 %1408, %v673_v0   ;;  %v589_v0 = vld [vmem:[%s2477_s22] sm:$0xff] }
 0x199   :  { %660 = vperm.xlu1 %1410, %v656_v2   ;;  %676 = vperm.xlu0 %1409, %v672_v3   ;;  %v590_v2 = vld [vmem:[%s2477_s22 + $0x8] sm:$0xff] }
 0x19a   :  { %712 = vperm.xlu2 %1408, %v698_v4  }
 0x1a1   :  { %717 = vperm.xlu1 %1410, %v699_v5   ;;  %707 = vperm.xlu0 %1409, %v697_v6  }
 0x1a2   :  { %702 = vperm.xlu2 %1408, %v696_v7  }
 0x1a9   :  { %820 = vperm.xlu1 %1410, %v802_v8   ;;  %815 = vperm.xlu0 %1409, %v801_v9  }
 0x1aa   :  { %810 = vperm.xlu2 %1408, %v800_v11  }
 0x1b1   :  { %852 = vperm.xlu1 %1410, %v834_v12   ;;  %847 = vperm.xlu0 %1409, %v833_v15  }
 0x1b2   :  { %842 = vperm.xlu2 %1408, %v832_v16  }
 0x1b9   :  { %805 = vperm.xlu1 %1410, %v799_v17   ;;  %837 = vperm.xlu0 %1409, %v831_v19  }
 0x1bb   :  { %v555_v22 = vpop.permute.xlu2 %554 }
 0x1c3   :  { %v549_v27 = vpop.permute.xlu2 %548 }
 0x1cb   :  { %v545_v20 = vpop.permute.xlu0 %544 }
 0x1cc   :  { %v506_v38 = vpop.permute.xlu2 %505 }
 0x1d3   :  { %v547_v23 = vpop.permute.xlu1 %546 }
 0x1d4   :  { %v562_v43 = vsel %vm560_vm9, %v547_v23, %v555_v22  ;;  %v566_v46 = vsel %vm560_vm9, %v555_v22, %v547_v23  ;;  %v512_v55 = vpop.permute.xlu2 %511 }
 0x1db   :  { %v557_v26 = vpop.permute.xlu0 %556 }
 0x1dc   :  { %v563_v39 = vsel %vm560_vm9, %v549_v27, %v557_v26  ;;  %v567_v42 = vsel %vm560_vm9, %v557_v26, %v549_v27 }
 0x1e3   :  { %v559_v34 = vpop.permute.xlu1 %558  ;;  %v551_v35 = vpop.permute.xlu0 %550 }
 0x1e4   :  { %v564_v36 = vsel %vm560_vm9, %v551_v35, %v559_v34  ;;  %v568_v37 = vsel %vm560_vm9, %v559_v34, %v551_v35 }
 0x1e5   :  { %1320 = vmatpush.msk.msrb.mxu1 %vm573_vm7, %v564_v36  ;;  %1330 = vmatpush.msk.msrb.mxu3 %vm574_vm8, %v568_v37 }
 0x1e7   :  { %1321 = vmatpush.msk.msrb.mxu1 %vm573_vm7, %v563_v39  ;;  %1331 = vmatpush.msk.msrb.mxu3 %vm574_vm8, %v567_v42 }
 0x1e9   :  { %1322 = vmatpush.msk.msrb.mxu1 %vm573_vm7, %v562_v43  ;;  %1332 = vmatpush.msk.msrb.mxu3 %vm574_vm8, %v566_v46 }
 0x1eb   :  { %v553_v47 = vpop.permute.xlu1 %552  ;;  %v502_v48 = vpop.permute.xlu0 %501 }
 0x1ec   :  { %v561_v51 = vsel %vm560_vm9, %v545_v20, %v553_v47  ;;  %v565_v54 = vsel %vm560_vm9, %v553_v47, %v545_v20  ;;  %v693_v47 = vld [vmem:[%s2447_s9 + $0x8] sm:$0xff] }
 0x1ed   :  { %1323 = vmatpush.msk.msrb.mxu1 %vm573_vm7, %v561_v51  ;;  %1333 = vmatpush.msk.msrb.mxu3 %vm574_vm8, %v565_v54  ;;  %v695_v51 = vld [vmem:[%s2447_s9 + $0x18] sm:$0xff] }
 0x1ef   :  { %618 = vmatpush.msrb.mxu1 %v1922_v60  ;;  %641 = vmatpush.msrb.mxu3 %v1920_v58 }
 0x1f1   :  { %619 = vmatpush.msrb.mxu1 %v1903_v45  ;;  %642 = vmatpush.msrb.mxu3 %v1901_v44 }
 0x1f3   :  { %620 = vmatpush.msrb.mxu1 %v1889_v29  ;;  %643 = vmatpush.msrb.mxu3 %v1887_v28  ;;  %v504_v61 = vpop.permute.xlu1 %503  ;;  %v514_v59 = vpop.permute.xlu0 %513 }
 0x1f4   :  { %v523_v58 = vsel %vm515_vm10, %v514_v59, %v506_v38  ;;  %v519_v21 = vsel %vm515_vm10, %v506_v38, %v514_v59  ;;  %v522_v28 = vsel %vm515_vm10, %v512_v55, %v504_v61  ;;  %v518_v29 = vsel %vm515_vm10, %v504_v61, %v512_v55  ;;  %v692_v38 = vld [vmem:[%s2447_s9] sm:$0xff] }
 0x1f5   :  { %621 = vmatpush.msrb.mxu1 %v1877_v10  ;;  %644 = vmatpush.msrb.mxu3 %v1930_v52  ;;  %v500_v10 = vpop.permute.xlu2 %499 }
 0x1f7   :  { %1324 = vmatpush.msk.msrb.mxu1 %vm526_vm11, %v523_v58  ;;  %1334 = vmatpush.msk.msrb.mxu3 %vm527_vm12, %v519_v21 }
 0x1f9   :  { %1325 = vmatpush.msk.msrb.mxu1 %vm526_vm11, %v522_v28  ;;  %1335 = vmatpush.msk.msrb.mxu3 %vm527_vm12, %v518_v29 }
 0x1fb   :  { %v510_v44 = vpop.permute.xlu1 %509  ;;  %v508_v45 = vpop.permute.xlu0 %507 }
 0x1fc   :  { %v521_v60 = vsel %vm515_vm10, %v510_v44, %v502_v48  ;;  %v517_v52 = vsel %vm515_vm10, %v502_v48, %v510_v44  ;;  %v520_v62 = vsel %vm515_vm10, %v508_v45, %v500_v10  ;;  %v516_v63 = vsel %vm515_vm10, %v500_v10, %v508_v45  ;;  %v694_v48 = vld [vmem:[%s2447_s9 + $0x10] sm:$0xff] }
 0x1fd   :  { %1326 = vmatpush.msk.msrb.mxu1 %vm526_vm11, %v521_v60  ;;  %1336 = vmatpush.msk.msrb.mxu3 %vm527_vm12, %v517_v52  ;;  %v596_v5 = vpop.permute.xlu2 %595 }
 0x1ff   :  { %1327 = vmatpush.msk.msrb.mxu1 %vm526_vm11, %v520_v62  ;;  %1337 = vmatpush.msk.msrb.mxu3 %vm527_vm12, %v516_v63 }
 0x200   :  { %1328 = vmatmul.msk.f32.vlgmr.msrb.gmra.mxu1 %vm603_vm13, %v589_v0  ;;  %1338 = vmatmul.msk.f32.vlgmr.msrb.gmra.mxu3 %vm603_vm13, %v589_v0 }
 0x203   :  { %v601_v3 = vpop.permute.xlu1 %600  ;;  %v666_v6 = vpop.permute.xlu0 %665 }
 0x205   :  { %v682_v19 = vpop.permute.xlu2 %681 }
 0x208   :  { %1329 = vmatmul.msk.f32.gmra.mxu1 %vm603_vm13, %v590_v2  ;;  %1339 = vmatmul.msk.f32.gmra.mxu3 %vm603_vm13, %v590_v2 }
 0x20b   :  { %v661_v9 = vpop.permute.xlu1 %660  ;;  %v677_v20 = vpop.permute.xlu0 %676 }
 0x20d   :  { %v713_v61 = vpop.permute.xlu2 %712 }
 0x213   :  { %v718_v54 = vpop.permute.xlu1 %717  ;;  %v708_v55 = vpop.permute.xlu0 %707 }
 0x215   :  { %v703_v21 = vpop.permute.xlu2 %702 }
 0x21b   :  { %v821_v59 = vpop.permute.xlu1 %820  ;;  %v816_v58 = vpop.permute.xlu0 %815 }
 0x21d   :  { %v811_v60 = vpop.permute.xlu2 %810 }
 0x223   :  { %v853_v28 = vpop.permute.xlu1 %852  ;;  %v848_v29 = vpop.permute.xlu0 %847 }
 0x22b   :  { %v806_v52 = vpop.permute.xlu1 %805  ;;  %v838_v63 = vpop.permute.xlu0 %837 }
 0x27d   :  { %v627_v4 = vpop.f32.mrf.mxu1 }
 0x27e   :  { %v628_v7 = vadd.f32 %v627_v4, %v596_v5 }
 0x280   :  { %v668_v12 = vmul.f32 %v661_v9, %v628_v7  ;;  %v843_v7 = vpop.permute.xlu2 %842 }
 0x282   :  { %v684_v23 = vadd.f32 %v677_v20, %v668_v12 }
 0x283   :  { %v650_v8 = vpop.f32.mrf.mxu3 }
 0x284   :  { %v651_v16 = vadd.f32 %v650_v8, %v596_v5  ;;  %v688_v37 = vmax.f32 %v684_v23, 0.0 }
 0x285   :  { %v630_v11 = vpop.f32.mrf.mxu1 }
 0x286   :  { %v631_v15 = vadd.f32 %v630_v11, %v601_v3  ;;  %v669_v27 = vmul.f32 %v661_v9, %v651_v16 }
 0x288   :  { %v670_v17 = vmul.f32 %v666_v6, %v631_v15  ;;  %v685_v42 = vadd.f32 %v677_v20, %v669_v27 }
 0x28a   :  { %v686_v22 = vadd.f32 %v682_v19, %v670_v17  ;;  %v689_v46 = vmax.f32 %v685_v42, 0.0 }
 0x28b   :  { %v653_v26 = vpop.f32.mrf.mxu3 }
 0x28c   :  { %v690_v34 = vmax.f32 %v686_v22, 0.0  ;;  %v654_v35 = vadd.f32 %v653_v26, %v601_v3 }
 0x28e   :  { %v671_v36 = vmul.f32 %v666_v6, %v654_v35  ;;  %747 = vmatpush.msra.mxu0 %v690_v34 }
 0x290   :  { %v687_v39 = vadd.f32 %v682_v19, %v671_v36  ;;  %748 = vmatpush.msra.mxu0 %v688_v37 }
 0x291   :  { %1340 = vmatmul.msk.f32.vlgmr.msra.gmra.mxu0 %vm720_vm14, %v692_v38 }
 0x292   :  { %v691_v43 = vmax.f32 %v687_v39, 0.0 }
 0x294   :  { %776 = vmatpush.msra.mxu1 %v691_v43 }
 0x296   :  { %777 = vmatpush.msra.mxu1 %v689_v46 }
 0x297   :  { %1344 = vmatmul.msk.f32.vlgmr.msra.gmra.mxu1 %vm720_vm14, %v692_v38 }
 0x299   :  { %1341 = vmatmul.msk.f32.gmra.mxu0 %vm720_vm14, %v693_v47 }
 0x29f   :  { %1345 = vmatmul.msk.f32.gmra.mxu1 %vm720_vm14, %v693_v47 }
 0x2a1   :  { %1342 = vmatmul.msk.f32.gmra.mxu0 %vm720_vm14, %v694_v48 }
 0x2a7   :  { %1346 = vmatmul.msk.f32.gmra.mxu1 %vm720_vm14, %v694_v48 }
 0x2a9   :  { %1343 = vmatmul.msk.f32.gmra.mxu0 %vm720_vm14, %v695_v51 }
 0x2af   :  { %1347 = vmatmul.msk.f32.gmra.mxu1 %vm720_vm14, %v695_v51 }
 0x30e   :  { %v750_v10 = vpop.f32.mrf.mxu0 }
 0x30f   :  { %v751_v44 = vadd.f32 %v750_v10, %v703_v21  ;;  %v1002_v10 = vld [vmem:[%s2453_s15 + $0x8] sm:$0xff] }
 0x311   :  { %v2123_v45 = vadd.f32 %v751_v44, %v1874_v1  ;;  %v1001_v44 = vld [vmem:[%s2453_s15] sm:$0xff] }
 0x313   :  { %v823_v62 = vmul.f32 %v806_v52, %v2123_v45 }
 0x314   :  { %v779_v0 = vpop.f32.mrf.mxu1 }
 0x315   :  { %v855_v2 = vadd.f32 %v838_v63, %v823_v62  ;;  %v780_v39 = vadd.f32 %v779_v0, %v703_v21  ;;  %v1044_v62 = vld [vmem:[%s2456_s18 + $0x18] sm:$0xff]  ;;  %v1041_v0 = vld [vmem:[%s2456_s18] sm:$0xff] }
 0x316   :  { %v753_v3 = vpop.f32.mrf.mxu0 }
 0x317   :  { %v754_v4 = vadd.f32 %v753_v3, %v708_v55  ;;  %v2126_v5 = vmax.f32 %v855_v2, 0.0 }
 0x319   :  { %v2129_v6 = vadd.f32 %v754_v4, %v1881_v14  ;;  %903 = vrot.lane.b32.xlu1 %v2126_v5, %s1440_s29 }
 0x31b   :  { %v825_v1 = vmul.f32 %v811_v60, %v2129_v6 }
 0x31c   :  { %v782_v8 = vpop.f32.mrf.mxu1 }
 0x31d   :  { %v783_v9 = vadd.f32 %v782_v8, %v708_v55  ;;  %v857_v11 = vadd.f32 %v843_v7, %v825_v1 }
 0x31e   :  { %v756_v12 = vpop.f32.mrf.mxu0 }
 0x31f   :  { %v2135_v15 = vadd.f32 %v783_v9, %v1879_v13  ;;  %v757_v16 = vadd.f32 %v756_v12, %v713_v61  ;;  %v2137_v17 = vmax.f32 %v857_v11, 0.0 }
 0x321   :  { %v826_v19 = vmul.f32 %v811_v60, %v2135_v15  ;;  %v2141_v14 = vadd.f32 %v757_v16, %v1895_v33  ;;  %905 = vrot.lane.b32.xlu2 %v2137_v17, %s1440_s29  ;;  %v1043_v60 = vld [vmem:[%s2456_s18 + $0x10] sm:$0xff] }
 0x323   :  { %v858_v20 = vadd.f32 %v843_v7, %v826_v19  ;;  %v827_v23 = vmul.f32 %v816_v58, %v2141_v14 }
 0x324   :  { %v785_v22 = vpop.f32.mrf.mxu1 }
 0x325   :  { %v786_v26 = vadd.f32 %v785_v22, %v713_v61  ;;  %v2146_v27 = vmax.f32 %v858_v20, 0.0  ;;  %v859_v37 = vadd.f32 %v848_v29, %v827_v23 }
 0x326   :  { %v759_v13 = vpop.f32.mrf.mxu0 }
 0x327   :  { %v2149_v34 = vadd.f32 %v786_v26, %v1891_v32  ;;  %v760_v35 = vadd.f32 %v759_v13, %v718_v54  ;;  %913 = vrot.lane.b32.xlu0 %v2146_v27, %s1440_s29  ;;  %v2158_v47 = vmax.f32 %v859_v37, 0.0 }
 0x329   :  { %v828_v33 = vmul.f32 %v816_v58, %v2149_v34  ;;  %v2155_v36 = vadd.f32 %v760_v35, %v1909_v50  ;;  %v2170_v50 = vadd.f32 %v780_v39, %v1913_v53  ;;  %v937_v53 = vld [vmem:[%s2452_s14] sm:$0xff] }
 0x32b   :  { %v860_v38 = vadd.f32 %v848_v29, %v828_v33  ;;  %v829_v43 = vmul.f32 %v821_v59, %v2155_v36  ;;  %v824_v61 = vmul.f32 %v806_v52, %v2170_v50  ;;  %v1017_v52 = vld [vmem:[%s2454_s16] sm:$0xff] }
 0x32c   :  { %v788_v42 = vpop.f32.mrf.mxu1 }
 0x32d   :  { %v789_v46 = vadd.f32 %v788_v42, %v718_v54  ;;  %v2160_v32 = vmax.f32 %v860_v38, 0.0  ;;  %v861_v55 = vadd.f32 %v853_v28, %v829_v43 }
 0x32f   :  { %v2163_v48 = vadd.f32 %v789_v46, %v1905_v49  ;;  %907 = vrot.lane.b32.xlu0 %v2158_v47, %s1440_s29  ;;  %915 = vrot.lane.b32.xlu1 %v2160_v32, %s1440_s29  ;;  %v869_v21 = vmax.f32 %v861_v55, 0.0  ;;  %v856_v49 = vadd.f32 %v838_v63, %v824_v61  ;;  %v1042_v63 = vld [vmem:[%s2456_s18 + $0x8] sm:$0xff] }
 0x331   :  { %v830_v51 = vmul.f32 %v821_v59, %v2163_v48  ;;  %v2177_v29 = vmax.f32 %v856_v49, 0.0  ;;  %v938_v59 = vld [vmem:[%s2452_s14 + $0x8] sm:$0xff] }
 0x333   :  { %v862_v54 = vadd.f32 %v853_v28, %v830_v51  ;;  %v1018_v28 = vld [vmem:[%s2454_s16 + $0x8] sm:$0xff] }
 0x335   :  { %v870_v58 = vmax.f32 %v862_v54, 0.0  ;;  %v936_v54 = vld [vmem:[%s2451_s13 + $0x8] sm:$0xff] }
 0x337   :  { %917 = vrot.lane.b32.xlu2 %v870_v58, %s1440_s29  ;;  %877 = vrot.lane.b32.xlu0 %v869_v21, %s1441_s25 }
 0x338   :  { %909 = vrot.lane.b32.xlu1 %v869_v21, %s1440_s29 }
 0x33f   :  { %883 = vrot.lane.b32.xlu0 %v2160_v32, %s1441_s25  ;;  %911 = vrot.lane.b32.xlu2 %v2177_v29, %s1440_s29 }
 0x340   :  { %873 = vrot.lane.b32.xlu1 %v2137_v17, %s1441_s25 }
 0x347   :  { %875 = vrot.lane.b32.xlu2 %v2158_v47, %s1441_s25  ;;  %871 = vrot.lane.b32.xlu0 %v2126_v5, %s1441_s25 }
 0x348   :  { %885 = vrot.lane.b32.xlu1 %v870_v58, %s1441_s25 }
 0x34f   :  { %881 = vrot.lane.b32.xlu2 %v2146_v27, %s1441_s25  ;;  %941 = vperm.xlu0 %1409, %v937_v53  }
 0x350   :  { %879 = vrot.lane.b32.xlu1 %v2177_v29, %s1441_s25  ;;  %s1271_s25 = sshll.u32 %s2459_s21, 4  ;;  %s1272_s25 = int_to_ptr.hbm [resolvable:$true] %s1271_s25 }
 0x357   :  { %946 = vperm.xlu2 %1408, %v938_v59   ;;  %1026 = vperm.xlu0 %1409, %v1018_v28  }
 0x358   :  { %1010 = vperm.xlu1 %1410, %v1002_v10  }
 0x35f   :  { %1005 = vperm.xlu2 %1408, %v1001_v44   ;;  %1057 = vperm.xlu0 %1409, %v1043_v60  }
 0x360   :  { %1021 = vperm.xlu1 %1410, %v1017_v52  }
 0x367   :  { %1062 = vperm.xlu2 %1408, %v1044_v62  }
 0x368   :  { %1052 = vperm.xlu1 %1410, %v1042_v63  }
 0x36f   :  { %1047 = vperm.xlu2 %1408, %v1041_v0  }
 0x37b   :  { %v906_v2 = vpop.permute.xlu2 %905 }
 0x38b   :  { %v904_v3 = vpop.permute.xlu1 %903 }
 0x391   :  { %v918_v1 = vpop.permute.xlu2 %917 }
 0x399   :  { %v914_v4 = vpop.permute.xlu0 %913  ;;  %v912_v9 = vpop.permute.xlu2 %911 }
 0x39a   :  { %v924_v23 = vsel %vm560_vm9, %v914_v4, %v906_v2  ;;  %v920_v26 = vsel %vm560_vm9, %v906_v2, %v914_v4  ;;  %v923_v13 = vsel %vm560_vm9, %v912_v9, %v904_v3  ;;  %v919_v35 = vsel %vm560_vm9, %v904_v3, %v912_v9 }
 0x3a1   :  { %v916_v7 = vpop.permute.xlu1 %915  ;;  %v908_v8 = vpop.permute.xlu0 %907 }
 0x3a2   :  { %v925_v19 = vsel %vm560_vm9, %v916_v7, %v908_v8  ;;  %v921_v20 = vsel %vm560_vm9, %v908_v8, %v916_v7  ;;  %v876_v37 = vpop.permute.xlu2 %875 }
 0x3a9   :  { %v878_v22 = vpop.permute.xlu0 %877 }
 0x3aa   :  { %v910_v11 = vpop.permute.xlu1 %909 }
 0x3ab   :  { %v926_v12 = vsel %vm560_vm9, %v918_v1, %v910_v11  ;;  %v922_v16 = vsel %vm560_vm9, %v910_v11, %v918_v1 }
 0x3ac   :  { %1348 = vmatpush.msk.msrb.mxu2 %vm573_vm7, %v922_v16  ;;  %1358 = vmatpush.msk.msra.mxu3 %vm574_vm8, %v926_v12  ;;  %v1037_v16 = vld [vmem:[%s2455_s17] sm:$0xff] }
 0x3ae   :  { %1349 = vmatpush.msk.msrb.mxu2 %vm573_vm7, %v921_v20  ;;  %1359 = vmatpush.msk.msra.mxu3 %vm574_vm8, %v925_v19  ;;  %v1038_v19 = vld [vmem:[%s2455_s17 + $0x8] sm:$0xff]  ;;  %v1039_v20 = vld [vmem:[%s2455_s17 + $0x10] sm:$0xff] }
 0x3b0   :  { %1350 = vmatpush.msk.msrb.mxu2 %vm573_vm7, %v920_v26  ;;  %1360 = vmatpush.msk.msra.mxu3 %vm574_vm8, %v924_v23 }
 0x3b1   :  { %v884_v38 = vpop.permute.xlu0 %883 }
 0x3b2   :  { %1351 = vmatpush.msk.msrb.mxu2 %vm573_vm7, %v919_v35  ;;  %1361 = vmatpush.msk.msra.mxu3 %vm574_vm8, %v923_v13  ;;  %v874_v33 = vpop.permute.xlu1 %873 }
 0x3b4   :  { %963 = vmatpush.msrb.mxu2 %v869_v21  ;;  %986 = vmatpush.msra.mxu3 %v870_v58 }
 0x3b6   :  { %964 = vmatpush.msrb.mxu2 %v2158_v47  ;;  %987 = vmatpush.msra.mxu3 %v2160_v32  ;;  %v935_v32 = vld [vmem:[%s2451_s13] sm:$0xff] }
 0x3b8   :  { %965 = vmatpush.msrb.mxu2 %v2137_v17  ;;  %988 = vmatpush.msra.mxu3 %v2146_v27  ;;  %v889_v17 = vsel %vm515_vm10, %v876_v37, %v884_v38  ;;  %v882_v27 = vpop.permute.xlu2 %881 }
 0x3b9   :  { %v888_v42 = vsel %vm515_vm10, %v874_v33, %v882_v27  ;;  %v892_v43 = vsel %vm515_vm10, %v882_v27, %v874_v33  ;;  %v872_v46 = vpop.permute.xlu0 %871 }
 0x3ba   :  { %966 = vmatpush.msrb.mxu2 %v2126_v5  ;;  %989 = vmatpush.msra.mxu3 %v2177_v29  ;;  %v886_v30 = vpop.permute.xlu1 %885  ;;  %v893_v5 = vsel %vm515_vm10, %v884_v38, %v876_v37 }
 0x3bb   :  { %v890_v31 = vsel %vm515_vm10, %v878_v22, %v886_v30  ;;  %v894_v39 = vsel %vm515_vm10, %v886_v30, %v878_v22  ;;  %v1040_v22 = vld [vmem:[%s2455_s17 + $0x18] sm:$0xff] }
 0x3bc   :  { %1352 = vmatpush.msk.msrb.mxu2 %vm526_vm11, %v894_v39  ;;  %1362 = vmatpush.msk.msra.mxu3 %vm527_vm12, %v890_v31 }
 0x3be   :  { %1353 = vmatpush.msk.msrb.mxu2 %vm526_vm11, %v893_v5  ;;  %1363 = vmatpush.msk.msra.mxu3 %vm527_vm12, %v889_v17 }
 0x3c0   :  { %1354 = vmatpush.msk.msrb.mxu2 %vm526_vm11, %v892_v43  ;;  %1364 = vmatpush.msk.msra.mxu3 %vm527_vm12, %v888_v42  ;;  %v947_v61 = vpop.permute.xlu2 %946 }
 0x3c1   :  { %v942_v56 = vpop.permute.xlu0 %941 }
 0x3c2   :  { %v880_v47 = vpop.permute.xlu1 %879 }
 0x3c3   :  { %v887_v51 = vsel %vm515_vm10, %v872_v46, %v880_v47  ;;  %v891_v55 = vsel %vm515_vm10, %v880_v47, %v872_v46 }
 0x3c4   :  { %1355 = vmatpush.msk.msrb.mxu2 %vm526_vm11, %v891_v55  ;;  %1365 = vmatpush.msk.msra.mxu3 %vm527_vm12, %v887_v51 }
 0x3c5   :  { %1356 = vmatmul.msk.f32.vlgmr.msrb.gmra.mxu2 %vm603_vm13, %v935_v32  ;;  %1366 = vmatmul.msk.f32.vlgmr.msra.gmra.mxu3 %vm603_vm13, %v935_v32 }
 0x3c8   :  { %v1006_v53 = vpop.permute.xlu2 %1005 }
 0x3c9   :  { %v1027_v0 = vpop.permute.xlu0 %1026 }
 0x3ca   :  { %v1011_v49 = vpop.permute.xlu1 %1010 }
 0x3cd   :  { %1357 = vmatmul.msk.f32.gmra.mxu2 %vm603_vm13, %v936_v54  ;;  %1367 = vmatmul.msk.f32.gmra.mxu3 %vm603_vm13, %v936_v54 }
 0x3d0   :  { %v1063_v23 = vpop.permute.xlu2 %1062 }
 0x3d2   :  { %v1022_v2 = vpop.permute.xlu1 %1021 }
 0x3d8   :  { %v1048_v26 = vpop.permute.xlu2 %1047 }
 0x3da   :  { %v1053_v38 = vpop.permute.xlu1 %1052 }
 0x448   :  { %v972_v58 = vpop.f32.mrf.mxu2  ;;  %v995_v21 = vpop.f32.mrf.mxu3 }
 0x449   :  { %v973_v29 = vadd.f32 %v972_v58, %v942_v56  ;;  %v996_v57 = vadd.f32 %v995_v21, %v942_v56 }
 0x44b   :  { %v1013_v10 = vmul.f32 %v1006_v53, %v973_v29  ;;  %v1014_v44 = vmul.f32 %v1006_v53, %v996_v57 }
 0x44d   :  { %v1029_v1 = vadd.f32 %v1022_v2, %v1013_v10  ;;  %v1030_v7 = vadd.f32 %v1022_v2, %v1014_v44 }
 0x44f   :  { %v1033_v11 = vmax.f32 %v1029_v1, 0.0  ;;  %v1034_v12 = vmax.f32 %v1030_v7, 0.0 }
 0x450   :  { %v975_v59 = vpop.f32.mrf.mxu2  ;;  %v998_v28 = vpop.f32.mrf.mxu3 }
 0x451   :  { %v976_v60 = vadd.f32 %v975_v59, %v947_v61  ;;  %v999_v52 = vadd.f32 %v998_v28, %v947_v61 }
 0x453   :  { %v1015_v62 = vmul.f32 %v1011_v49, %v976_v60  ;;  %v1016_v63 = vmul.f32 %v1011_v49, %v999_v52 }
 0x455   :  { %v1031_v3 = vadd.f32 %v1027_v0, %v1015_v62  ;;  %v1032_v4 = vadd.f32 %v1027_v0, %v1016_v63 }
 0x457   :  { %v1035_v8 = vmax.f32 %v1031_v3, 0.0  ;;  %v1036_v9 = vmax.f32 %v1032_v4, 0.0 }
 0x459   :  { %1091 = vmatpush.msra.mxu2 %v1035_v8  ;;  %1120 = vmatpush.msrb.mxu3 %v1036_v9 }
 0x45b   :  { %1092 = vmatpush.msra.mxu2 %v1033_v11  ;;  %1121 = vmatpush.msrb.mxu3 %v1034_v12 }
 0x45c   :  { %1368 = vmatmul.msk.f32.vlgmr.msra.gmra.mxu2 %vm720_vm14, %v1037_v16  ;;  %1372 = vmatmul.msk.f32.vlgmr.msrb.gmra.mxu3 %vm720_vm14, %v1037_v16 }
 0x464   :  { %1369 = vmatmul.msk.f32.gmra.mxu2 %vm720_vm14, %v1038_v19  ;;  %1373 = vmatmul.msk.f32.gmra.mxu3 %vm720_vm14, %v1038_v19 }
 0x46c   :  { %1370 = vmatmul.msk.f32.gmra.mxu2 %vm720_vm14, %v1039_v20  ;;  %1374 = vmatmul.msk.f32.gmra.mxu3 %vm720_vm14, %v1039_v20  ;;  %v1207_v20 = vld [vmem:[%s2457_s19] sm:$0xf]  ;;  %s1442_s19 = smov [#allocation2]  }
 0x474   :  { %1371 = vmatmul.msk.f32.gmra.mxu2 %vm720_vm14, %v1040_v22  ;;  %1375 = vmatmul.msk.f32.gmra.mxu3 %vm720_vm14, %v1040_v22 }
 0x4df   :  { %v1094_v13 = vpop.f32.mrf.mxu2  ;;  %v1123_v35 = vpop.f32.mrf.mxu3 }
 0x4e0   :  { %v1095_v33 = vadd.f32 %v1094_v13, %v1048_v26 }
 0x4e2   :  { %v2325_v37 = vadd.f32 %v1095_v33, %v2123_v45  ;;  %v1058_v45 = vpop.permute.xlu0 %1057 }
 0x4e4   :  { %1175 = vrot.lane.b32.xlu0 %v2325_v37, %s1438_s2 }
 0x4e7   :  { %v1097_v30 = vpop.f32.mrf.mxu2  ;;  %v1126_v31 = vpop.f32.mrf.mxu3 }
 0x4e8   :  { %v1098_v39 = vadd.f32 %v1097_v30, %v1053_v38  ;;  %v1127_v17 = vadd.f32 %v1126_v31, %v1053_v38 }
 0x4ea   :  { %v2330_v5 = vadd.f32 %v1098_v39, %v2129_v6  ;;  %v2333_v27 = vadd.f32 %v1127_v17, %v2135_v15 }
 0x4ec   :  { %1185 = vrot.lane.b32.xlu2 %v2333_v27, %s1438_s2  ;;  %1177 = vrot.lane.b32.xlu1 %v2330_v5, %s1438_s2 }
 0x4ef   :  { %v1100_v42 = vpop.f32.mrf.mxu2  ;;  %v1129_v43 = vpop.f32.mrf.mxu3 }
 0x4f0   :  { %v1101_v46 = vadd.f32 %v1100_v42, %v1058_v45  ;;  %v1130_v47 = vadd.f32 %v1129_v43, %v1058_v45 }
 0x4f2   :  { %v1139_v32 = vadd.f32 %v1101_v46, %v2141_v14  ;;  %v1140_v51 = vadd.f32 %v1130_v47, %v2149_v34  ;;  %v1124_v14 = vadd.f32 %v1123_v35, %v1048_v26 }
 0x4f4   :  { %1187 = vrot.lane.b32.xlu0 %v1140_v51, %s1438_s2  ;;  %1179 = vrot.lane.b32.xlu2 %v1139_v32, %s1438_s2  ;;  %v1136_v34 = vadd.f32 %v1124_v14, %v2170_v50 }
 0x4f7   :  { %v1103_v6 = vpop.f32.mrf.mxu2  ;;  %v1132_v15 = vpop.f32.mrf.mxu3 }
 0x4f8   :  { %v1104_v55 = vadd.f32 %v1103_v6, %v1063_v23  ;;  %v1133_v54 = vadd.f32 %v1132_v15, %v1063_v23 }
 0x4fa   :  { %v1141_v61 = vadd.f32 %v1104_v55, %v2155_v36  ;;  %v1142_v58 = vadd.f32 %v1133_v54, %v2163_v48  ;;  %v1208_v36 = vld [vmem:[%s2458_s20] sm:$0xf] }
 0x4fc   :  { %1181 = vrot.lane.b32.xlu0 %v1141_v61, %s1438_s2  ;;  %1155 = vrot.lane.b32.xlu2 %v1140_v51, %s1437_s28 }
 0x4fd   :  { %1189 = vrot.lane.b32.xlu1 %v1142_v58, %s1438_s2 }
 0x504   :  { %1149 = vrot.lane.b32.xlu2 %v1141_v61, %s1437_s28  ;;  %1145 = vrot.lane.b32.xlu0 %v2330_v5, %s1437_s28 }
 0x505   :  { %1183 = vrot.lane.b32.xlu1 %v1136_v34, %s1438_s2  ;;  %s1269_s2 = sshll.u32 %s1442_s19, 4  ;;  %s1270_s2 = int_to_ptr.vmem [resolvable:$true] %s1269_s2 }
 0x50c   :  { %1143 = vrot.lane.b32.xlu2 %v2325_v37, %s1437_s28  ;;  %1157 = vrot.lane.b32.xlu0 %v1142_v58, %s1437_s28 }
 0x50d   :  { %1147 = vrot.lane.b32.xlu1 %v1139_v32, %s1437_s28 }
 0x514   :  { %1151 = vrot.lane.b32.xlu0 %v1136_v34, %s1437_s28 }
 0x515   :  { %1153 = vrot.lane.b32.xlu1 %v2333_v27, %s1437_s28 }
 0x51d   :  { %1211 = vperm.xlu1 %1410, %v1208_v36  }
 0x546   :  { %v1186_v50 = vpop.permute.xlu2 %1185 }
 0x54e   :  { %v1180_v49 = vpop.permute.xlu2 %1179 }
 0x556   :  { %v1176_v48 = vpop.permute.xlu0 %1175  ;;  %v1156_v52 = vpop.permute.xlu2 %1155 }
 0x55e   :  { %v1178_v56 = vpop.permute.xlu1 %1177  ;;  %v1150_v4 = vpop.permute.xlu2 %1149 }
 0x55f   :  { %v1192_v44 = vsel %vm221_vm3, %v1178_v56, %v1186_v50  ;;  %v1196_v60 = vsel %vm221_vm3, %v1186_v50, %v1178_v56 }
 0x566   :  { %v1188_v21 = vpop.permute.xlu0 %1187  ;;  %v1144_v19 = vpop.permute.xlu2 %1143 }
 0x567   :  { %v1193_v28 = vsel %vm221_vm3, %v1180_v49, %v1188_v21  ;;  %v1197_v10 = vsel %vm221_vm3, %v1188_v21, %v1180_v49 }
 0x56e   :  { %v1182_v29 = vpop.permute.xlu0 %1181 }
 0x56f   :  { %v1190_v57 = vpop.permute.xlu1 %1189 }
 0x570   :  { %v1194_v53 = vsel %vm221_vm3, %v1182_v29, %v1190_v57  ;;  %v1198_v59 = vsel %vm221_vm3, %v1190_v57, %v1182_v29 }
 0x571   :  { %1376 = vmatpush.msk.msrb.mxu0 %vm242_vm4, %v1194_v53  ;;  %1385 = vmatpush.msk.msrb.mxu1 %vm243_vm5, %v1198_v59 }
 0x573   :  { %1377 = vmatpush.msk.msrb.mxu0 %vm242_vm4, %v1193_v28  ;;  %1386 = vmatpush.msk.msrb.mxu1 %vm243_vm5, %v1197_v10 }
 0x575   :  { %1378 = vmatpush.msk.msrb.mxu0 %vm242_vm4, %v1192_v44  ;;  %1387 = vmatpush.msk.msrb.mxu1 %vm243_vm5, %v1196_v60 }
 0x576   :  { %v1146_v62 = vpop.permute.xlu0 %1145 }
 0x577   :  { %v1184_v63 = vpop.permute.xlu1 %1183 }
 0x578   :  { %v1191_v0 = vsel %vm221_vm3, %v1176_v48, %v1184_v63  ;;  %v1195_v2 = vsel %vm221_vm3, %v1184_v63, %v1176_v48 }
 0x579   :  { %1379 = vmatpush.msk.msrb.mxu0 %vm242_vm4, %v1191_v0  ;;  %1388 = vmatpush.msk.msrb.mxu1 %vm243_vm5, %v1195_v2 }
 0x57b   :  { %1225 = vmatpush.msrb.mxu0 %v1141_v61  ;;  %1245 = vmatpush.msrb.mxu1 %v1142_v58 }
 0x57d   :  { %1226 = vmatpush.msrb.mxu0 %v1139_v32  ;;  %1246 = vmatpush.msrb.mxu1 %v1140_v51 }
 0x57e   :  { %v1158_v3 = vpop.permute.xlu0 %1157 }
 0x57f   :  { %1227 = vmatpush.msrb.mxu0 %v2330_v5  ;;  %1247 = vmatpush.msrb.mxu1 %v2333_v27  ;;  %v1148_v1 = vpop.permute.xlu1 %1147  ;;  %v1162_v40 = vsel %vm144_vm2, %v1150_v4, %v1158_v3  ;;  %v1166_v41 = vsel %vm144_vm2, %v1158_v3, %v1150_v4 }
 0x580   :  { %v1161_v7 = vsel %vm144_vm2, %v1148_v1, %v1156_v52  ;;  %v1165_v8 = vsel %vm144_vm2, %v1156_v52, %v1148_v1 }
 0x581   :  { %1228 = vmatpush.msrb.mxu0 %v2325_v37  ;;  %1248 = vmatpush.msrb.mxu1 %v1136_v34 }
 0x583   :  { %1380 = vmatpush.msk.msrb.mxu0 %vm163_vm0, %v1166_v41  ;;  %1389 = vmatpush.msk.msrb.mxu1 %vm164_vm1, %v1162_v40 }
 0x585   :  { %1381 = vmatpush.msk.msrb.mxu0 %vm163_vm0, %v1165_v8  ;;  %1390 = vmatpush.msk.msrb.mxu1 %vm164_vm1, %v1161_v7 }
 0x586   :  { %v1152_v9 = vpop.permute.xlu0 %1151 }
 0x587   :  { %v1154_v11 = vpop.permute.xlu1 %1153  ;;  %v1159_v22 = vsel %vm144_vm2, %v1144_v19, %v1152_v9  ;;  %v1163_v23 = vsel %vm144_vm2, %v1152_v9, %v1144_v19 }
 0x588   :  { %v1160_v12 = vsel %vm144_vm2, %v1146_v62, %v1154_v11  ;;  %v1164_v16 = vsel %vm144_vm2, %v1154_v11, %v1146_v62 }
 0x589   :  { %1382 = vmatpush.msk.msrb.mxu0 %vm163_vm0, %v1164_v16  ;;  %1391 = vmatpush.msk.msrb.mxu1 %vm164_vm1, %v1160_v12 }
 0x58b   :  { %1383 = vmatpush.msk.msrb.mxu0 %vm163_vm0, %v1163_v23  ;;  %1392 = vmatpush.msk.msrb.mxu1 %vm164_vm1, %v1159_v22 }
 0x58c   :  { %1384 = vmatmul.msk.f32.vlgmr.msrb.gmra.mxu0 %vm603_vm13, %v1207_v20  ;;  %1393 = vmatmul.msk.f32.vlgmr.msrb.gmra.mxu1 %vm603_vm13, %v1207_v20 }
 0x58f   :  { %v1212_v26 = vpop.permute.xlu1 %1211 }
 0x609   :  { %v1234_v13 = vpop.f32.mrf.mxu0  ;;  %v1254_v35 = vpop.f32.mrf.mxu1 }
 0x60a   :  { %v1255_v33 = vadd.f32 %v1254_v35, %v1212_v26  ;;  %v1235_v18 = vadd.f32 %v1234_v13, %v1212_v26 }
 0x60c   :  { %v1259_v24 = vrot.slane %v1255_v33, 4 }
 0x60e   :  { %v1261_v25 = vsel %vm1260_vm15, %v1235_v18, %v1259_v24 }
 0x60f   :  { %1263 = vst [vmem:[#allocation2] sm:$0xff] %v1261_v25 }
 0x610   :  { %1274 = dma.vmem_to_hbm [thread:$0]  %s1270_s2, 128, %s1272_s25, [#allocation3]  }
 0x611   :  { %1435 = dma.done.wait [#allocation3], 128  }
 0x612   :  { %1436 = vsyncadd [#allocation3], 4294967168 }
 0x613   :  { %1279 = vsyncpa [#allocation3], 1 }

// kernel: seq2seq_forward.4
= control target key start
LH: loop header
LB: loop body
LE: loop exit
PB: predicated region body
PF: predicated region fallthrough
CT: control target
= control target key end

     0   :  { %s12184_s0 = inlined_call_operand.vmem [shape: f32[2,8192], index: 0, kind: input, shape index: {}]   ;;  %s12185_s1 = inlined_call_operand.vmem [shape: bf16[8192,16], index: 1, kind: input, shape index: {}]   ;;  %s12186_s2 = inlined_call_operand.vmem [shape: f32[1,16], index: 2, kind: input, shape index: {}]   ;;  %s12187_s3 = inlined_call_operand.vmem [shape: bf16[16,8192], index: 3, kind: input, shape index: {}]   ;;  %s12188_s4 = inlined_call_operand.vmem [shape: f32[1,8192], index: 4, kind: input, shape index: {}]   ;;  %s12189_s5 = inlined_call_operand.hbm [shape: f32[2,16], index: 5, kind: output, shape index: {0}]   ;;  %s12190_s6 = inlined_call_operand.vmem [shape: f32[2,8192], index: 6, kind: output, shape index: {1}]  }
   0x1   :  { %v9219_v0 = vld [vmem:[%s12185_s1 + $0x38] sm:$0xff]  ;;  %v9218_v4 = vld [vmem:[%s12185_s1 + $0x30] sm:$0xff]  ;;  %v9217_v8 = vld [vmem:[%s12185_s1 + $0x28] sm:$0xff] }
   0x2   :  { %v9227_v1 = vld [vmem:[%s12185_s1 + $0x78] sm:$0xff]  ;;  %4365 = vmatpush.bf16.msra.mxu0 %v9219_v0  ;;  %v9226_v5 = vld [vmem:[%s12185_s1 + $0x70] sm:$0xff]  ;;  %v9225_v9 = vld [vmem:[%s12185_s1 + $0x68] sm:$0xff] }
   0x3   :  { %v9235_v2 = vld [vmem:[%s12185_s1 + $0xb8] sm:$0xff]  ;;  %4378 = vmatpush.bf16.msra.mxu1 %v9227_v1  ;;  %v9234_v6 = vld [vmem:[%s12185_s1 + $0xb0] sm:$0xff]  ;;  %v9233_v10 = vld [vmem:[%s12185_s1 + $0xa8] sm:$0xff] }
   0x4   :  { %v9243_v3 = vld [vmem:[%s12185_s1 + $0xf8] sm:$0xff]  ;;  %4391 = vmatpush.bf16.msra.mxu2 %v9235_v2  ;;  %v9242_v7 = vld [vmem:[%s12185_s1 + $0xf0] sm:$0xff]  ;;  %v9241_v11 = vld [vmem:[%s12185_s1 + $0xe8] sm:$0xff] }
   0x5   :  { %4404 = vmatpush.bf16.msra.mxu3 %v9243_v3  ;;  %v9216_v12 = vld [vmem:[%s12185_s1 + $0x20] sm:$0xff]  ;;  %v9215_v16 = vld [vmem:[%s12185_s1 + $0x18] sm:$0xff]  ;;  %v9214_v20 = vld [vmem:[%s12185_s1 + $0x10] sm:$0xff] }
   0x6   :  { %4366 = vmatpush.bf16.msra.mxu0 %v9218_v4  ;;  %v9224_v13 = vld [vmem:[%s12185_s1 + $0x60] sm:$0xff]  ;;  %v9223_v17 = vld [vmem:[%s12185_s1 + $0x58] sm:$0xff]  ;;  %v9222_v21 = vld [vmem:[%s12185_s1 + $0x50] sm:$0xff] }
   0x7   :  { %4379 = vmatpush.bf16.msra.mxu1 %v9226_v5  ;;  %v9232_v14 = vld [vmem:[%s12185_s1 + $0xa0] sm:$0xff]  ;;  %v9231_v18 = vld [vmem:[%s12185_s1 + $0x98] sm:$0xff] }
   0x8   :  { %4392 = vmatpush.bf16.msra.mxu2 %v9234_v6  ;;  %v9240_v15 = vld [vmem:[%s12185_s1 + $0xe0] sm:$0xff]  ;;  %v9239_v19 = vld [vmem:[%s12185_s1 + $0xd8] sm:$0xff] }
   0x9   :  { %4405 = vmatpush.bf16.msra.mxu3 %v9242_v7  ;;  %v24_v22 = vld [vmem:[%s12184_s0] sm:$0xff] }
   0xa   :  { %4367 = vmatpush.bf16.msra.mxu0 %v9217_v8  ;;  %56 = vst [vmem:[#allocation1] ss:$4 sm:$0xff] %v24_v22 }
   0xb   :  { %4380 = vmatpush.bf16.msra.mxu1 %v9225_v9 }
   0xc   :  { %4393 = vmatpush.bf16.msra.mxu2 %v9233_v10 }
   0xd   :  { %4406 = vmatpush.bf16.msra.mxu3 %v9241_v11 }
   0xe   :  { %4368 = vmatpush.bf16.msra.mxu0 %v9216_v12 }
   0xf   :  { %4381 = vmatpush.bf16.msra.mxu1 %v9224_v13 }
  0x10   :  { %4394 = vmatpush.bf16.msra.mxu2 %v9232_v14 }
  0x11   :  { %4407 = vmatpush.bf16.msra.mxu3 %v9240_v15 }
  0x12   :  { %4369 = vmatpush.bf16.msra.mxu0 %v9215_v16 }
  0x13   :  { %4382 = vmatpush.bf16.msra.mxu1 %v9223_v17 }
  0x14   :  { %12 = vsyncpa [#allocation3], 0  ;;  %4395 = vmatpush.bf16.msra.mxu2 %v9231_v18  ;;  %v9230_v23 = vld [vmem:[%s12185_s1 + $0x90] sm:$0xff]  ;;  %v9213_v25 = vld [vmem:[%s12185_s1 + $0x8] sm:$0xff]  ;;  %vm5198_vm0 = vcmask 123904   ;;  %vm5729_vm1 = vcmask 130048  }
  0x15   :  { %4408 = vmatpush.bf16.msra.mxu3 %v9239_v19  ;;  %v9238_v24 = vld [vmem:[%s12185_s1 + $0xd0] sm:$0xff]  ;;  %v9221_v26 = vld [vmem:[%s12185_s1 + $0x48] sm:$0xff]  ;;  %v9212_v29 = vld [vmem:[%s12185_s1] sm:$0xff]  ;;  %vm6741_vm2 = vcmask 1041408   ;;  %vm6743_vm3 = vcmask 1045508   ;;  %vm6745_vm4 = vcmask 1043456  }
  0x16   :  { %4370 = vmatpush.bf16.msra.mxu0 %v9214_v20  ;;  %v9229_v27 = vld [vmem:[%s12185_s1 + $0x88] sm:$0xff]  ;;  %v9220_v30 = vld [vmem:[%s12185_s1 + $0x40] sm:$0xff]  ;;  %v61_v32 = vld.sshfl [vmem:[#allocation1 + $0x10] sm:$0xff pattern:$0x73625140]  ;;  %s6831_s26 = sshll.u32 %s12189_s5, 4  ;;  %s6832_s26 = int_to_ptr.hbm [resolvable:$true] %s6831_s26 }
  0x17   :  { %4383 = vmatpush.bf16.msra.mxu1 %v9222_v21  ;;  %v9237_v28 = vld [vmem:[%s12185_s1 + $0xc8] sm:$0xff]  ;;  %v9228_v31 = vld [vmem:[%s12185_s1 + $0x80] sm:$0xff]  ;;  %v26_v35 = vld [vmem:[%s12184_s0 + $0x10] sm:$0xff]  ;;  %v203_v43 = vpack.c.bf16 %v61_v32, %v61_v32 }
  0x18   :  { %4396 = vmatpush.bf16.msra.mxu2 %v9230_v23  ;;  %v9236_v33 = vld [vmem:[%s12185_s1 + $0xc0] sm:$0xff]  ;;  %v62_v36 = vld.sshfl [vmem:[#allocation1 + $0x18] sm:$0xff pattern:$0x73625140]  ;;  %v25_v42 = vld [vmem:[%s12184_s0 + $0x8] sm:$0xff] }
  0x19   :  { %4409 = vmatpush.bf16.msra.mxu3 %v9238_v24  ;;  %v59_v34 = vld.sshfl [vmem:[#allocation1] sm:$0xff pattern:$0x73625140]  ;;  %v60_v37 = vld.sshfl [vmem:[#allocation1 + $0x8] sm:$0xff pattern:$0x73625140]  ;;  %v204_v45 = vpack.c.bf16 %v62_v36, %v62_v36 }
  0x1a   :  { %4371 = vmatpush.bf16.msra.mxu0 %v9213_v25  ;;  %v9251_v38 = vld [vmem:[%s12185_s1 + $0x138] sm:$0xff]  ;;  %67 = vst [vmem:[#allocation1] ss:$4 sm:$0xff] %v26_v35  ;;  %v201_v44 = vpack.c.bf16 %v59_v34, %v59_v34  ;;  %v202_v46 = vpack.c.bf16 %v60_v37, %v60_v37  ;;  %v9250_v47 = vld [vmem:[%s12185_s1 + $0x130] sm:$0xff]  ;;  %v9249_v51 = vld [vmem:[%s12185_s1 + $0x128] sm:$0xff] }
  0x1b   :  { %4384 = vmatpush.bf16.msra.mxu1 %v9221_v26  ;;  %v9259_v39 = vld [vmem:[%s12185_s1 + $0x178] sm:$0xff]  ;;  %58 = vst [vmem:[#allocation1 + $0x20] ss:$4 sm:$0xff] %v25_v42  ;;  %v9258_v48 = vld [vmem:[%s12185_s1 + $0x170] sm:$0xff]  ;;  %v9257_v52 = vld [vmem:[%s12185_s1 + $0x168] sm:$0xff] }
  0x1c   :  { %4397 = vmatpush.bf16.msra.mxu2 %v9229_v27  ;;  %v9267_v40 = vld [vmem:[%s12185_s1 + $0x1b8] sm:$0xff]  ;;  %v9266_v49 = vld [vmem:[%s12185_s1 + $0x1b0] sm:$0xff]  ;;  %v9265_v53 = vld [vmem:[%s12185_s1 + $0x1a8] sm:$0xff] }
  0x1d   :  { %4410 = vmatpush.bf16.msra.mxu3 %v9237_v28  ;;  %v9275_v41 = vld [vmem:[%s12185_s1 + $0x1f8] sm:$0xff]  ;;  %v9274_v50 = vld [vmem:[%s12185_s1 + $0x1f0] sm:$0xff]  ;;  %v9273_v54 = vld [vmem:[%s12185_s1 + $0x1e8] sm:$0xff] }
  0x1e   :  { %4372 = vmatpush.bf16.msra.mxu0 %v9212_v29  ;;  %v9248_v55 = vld [vmem:[%s12185_s1 + $0x120] sm:$0xff]  ;;  %v27_v59 = vld [vmem:[%s12184_s0 + $0x18] sm:$0xff]  ;;  %v9246_v4 = vld [vmem:[%s12185_s1 + $0x110] sm:$0xff] }
  0x1f   :  { %4385 = vmatpush.bf16.msra.mxu1 %v9220_v30  ;;  %v9256_v57 = vld [vmem:[%s12185_s1 + $0x160] sm:$0xff]  ;;  %v9247_v0 = vld [vmem:[%s12185_s1 + $0x118] sm:$0xff]  ;;  %v9254_v5 = vld [vmem:[%s12185_s1 + $0x150] sm:$0xff] }
  0x20   :  { %4398 = vmatpush.bf16.msra.mxu2 %v9228_v31  ;;  %v9264_v62 = vld [vmem:[%s12185_s1 + $0x1a0] sm:$0xff]  ;;  %v9255_v1 = vld [vmem:[%s12185_s1 + $0x158] sm:$0xff]  ;;  %v9262_v6 = vld [vmem:[%s12185_s1 + $0x190] sm:$0xff] }
  0x21   :  { %4411 = vmatpush.bf16.msra.mxu3 %v9236_v33  ;;  %4373 = vmatmul.bf16.vlgmr.msra.gmra.mxu0 %v201_v44  ;;  %v9272_v63 = vld [vmem:[%s12185_s1 + $0x1e0] sm:$0xff]  ;;  %v9263_v2 = vld [vmem:[%s12185_s1 + $0x198] sm:$0xff]  ;;  %v9270_v7 = vld [vmem:[%s12185_s1 + $0x1d0] sm:$0xff] }
  0x22   :  { %4417 = vmatpush.bf16.msrb.mxu0 %v9251_v38  ;;  %4386 = vmatmul.bf16.vlgmr.msra.gmra.mxu1 %v202_v46  ;;  %v9996_v56 = vld.sshfl [vmem:[#allocation1 + $0x30] sm:$0xff pattern:$0x73625140]  ;;  %v10001_v58 = vld.sshfl [vmem:[#allocation1 + $0x20] sm:$0xff pattern:$0x73625140] }
  0x23   :  { %4430 = vmatpush.bf16.msrb.mxu1 %v9259_v39  ;;  %4399 = vmatmul.bf16.vlgmr.msra.gmra.mxu2 %v203_v43  ;;  %v10006_v60 = vld.sshfl [vmem:[#allocation1 + $0x38] sm:$0xff pattern:$0x73625140]  ;;  %v10008_v61 = vld.sshfl [vmem:[#allocation1 + $0x28] sm:$0xff pattern:$0x73625140]  ;;  %v207_v21 = vpack.c.bf16 %v9996_v56, %v9996_v56  ;;  %v205_v22 = vpack.c.bf16 %v10001_v58, %v10001_v58 }
  0x24   :  { %4443 = vmatpush.bf16.msrb.mxu2 %v9267_v40  ;;  %4412 = vmatmul.bf16.vlgmr.msra.gmra.mxu3 %v204_v45  ;;  %68 = vst [vmem:[#allocation1 + $0x20] ss:$4 sm:$0xff] %v27_v59  ;;  %v9271_v3 = vld [vmem:[%s12185_s1 + $0x1d8] sm:$0xff]  ;;  %v9245_v8 = vld [vmem:[%s12185_s1 + $0x108] sm:$0xff]  ;;  %v9244_v12 = vld [vmem:[%s12185_s1 + $0x100] sm:$0xff]  ;;  %v208_v25 = vpack.c.bf16 %v10006_v60, %v10006_v60  ;;  %v206_v26 = vpack.c.bf16 %v10008_v61, %v10008_v61 }
  0x25   :  { %4456 = vmatpush.bf16.msrb.mxu3 %v9275_v41  ;;  %v9253_v9 = vld [vmem:[%s12185_s1 + $0x148] sm:$0xff]  ;;  %v9252_v13 = vld [vmem:[%s12185_s1 + $0x140] sm:$0xff]  ;;  %v9283_v16 = vld [vmem:[%s12185_s1 + $0x238] sm:$0xff] }
  0x26   :  { %4418 = vmatpush.bf16.msrb.mxu0 %v9250_v47  ;;  %v9261_v10 = vld [vmem:[%s12185_s1 + $0x188] sm:$0xff]  ;;  %v9260_v14 = vld [vmem:[%s12185_s1 + $0x180] sm:$0xff]  ;;  %v9291_v17 = vld [vmem:[%s12185_s1 + $0x278] sm:$0xff] }
  0x27   :  { %4431 = vmatpush.bf16.msrb.mxu1 %v9258_v48  ;;  %v9269_v11 = vld [vmem:[%s12185_s1 + $0x1c8] sm:$0xff]  ;;  %v9268_v15 = vld [vmem:[%s12185_s1 + $0x1c0] sm:$0xff]  ;;  %v9299_v18 = vld [vmem:[%s12185_s1 + $0x2b8] sm:$0xff] }
  0x28   :  { %4444 = vmatpush.bf16.msrb.mxu2 %v9266_v49  ;;  %v9307_v19 = vld [vmem:[%s12185_s1 + $0x2f8] sm:$0xff]  ;;  %v9282_v20 = vld [vmem:[%s12185_s1 + $0x230] sm:$0xff]  ;;  %v10093_v27 = vld.sshfl [vmem:[#allocation1] sm:$0xff pattern:$0x73625140] }
  0x29   :  { %4457 = vmatpush.bf16.msrb.mxu3 %v9274_v50  ;;  %v9290_v23 = vld [vmem:[%s12185_s1 + $0x270] sm:$0xff]  ;;  %v10097_v29 = vld.sshfl [vmem:[#allocation1 + $0x8] sm:$0xff pattern:$0x73625140]  ;;  %v28_v31 = vld [vmem:[%s12184_s0 + $0x20] sm:$0xff]  ;;  %v209_v61 = vpack.c.bf16 %v10093_v27, %v10093_v27 }
  0x2a   :  { %4419 = vmatpush.bf16.msrb.mxu0 %v9249_v51  ;;  %v9298_v24 = vld [vmem:[%s12185_s1 + $0x2b0] sm:$0xff]  ;;  %v10105_v32 = vld.sshfl [vmem:[#allocation1 + $0x18] sm:$0xff pattern:$0x73625140]  ;;  %v9281_v33 = vld [vmem:[%s12185_s1 + $0x228] sm:$0xff] }
  0x2b   :  { %4432 = vmatpush.bf16.msrb.mxu1 %v9257_v52  ;;  %v10095_v28 = vld.sshfl [vmem:[#allocation1 + $0x10] sm:$0xff pattern:$0x73625140]  ;;  %v9289_v34 = vld [vmem:[%s12185_s1 + $0x268] sm:$0xff]  ;;  %v9280_v37 = vld [vmem:[%s12185_s1 + $0x220] sm:$0xff] }
  0x2c   :  { %4445 = vmatpush.bf16.msrb.mxu2 %v9265_v53  ;;  %v9306_v30 = vld [vmem:[%s12185_s1 + $0x2f0] sm:$0xff]  ;;  %77 = vst [vmem:[#allocation1] ss:$4 sm:$0xff] %v28_v31  ;;  %v9297_v35 = vld [vmem:[%s12185_s1 + $0x2a8] sm:$0xff]  ;;  %v9288_v38 = vld [vmem:[%s12185_s1 + $0x260] sm:$0xff] }
  0x2d   :  { %4458 = vmatpush.bf16.msrb.mxu3 %v9273_v54  ;;  %v9305_v36 = vld [vmem:[%s12185_s1 + $0x2e8] sm:$0xff]  ;;  %v9296_v39 = vld [vmem:[%s12185_s1 + $0x2a0] sm:$0xff]  ;;  %v9279_v41 = vld [vmem:[%s12185_s1 + $0x218] sm:$0xff] }
  0x2e   :  { %4420 = vmatpush.bf16.msrb.mxu0 %v9248_v55  ;;  %v9304_v40 = vld [vmem:[%s12185_s1 + $0x2e0] sm:$0xff]  ;;  %v9287_v42 = vld [vmem:[%s12185_s1 + $0x258] sm:$0xff]  ;;  %v9278_v45 = vld [vmem:[%s12185_s1 + $0x210] sm:$0xff] }
  0x2f   :  { %4433 = vmatpush.bf16.msrb.mxu1 %v9256_v57  ;;  %v9295_v43 = vld [vmem:[%s12185_s1 + $0x298] sm:$0xff]  ;;  %v9286_v46 = vld [vmem:[%s12185_s1 + $0x250] sm:$0xff]  ;;  %v9277_v49 = vld [vmem:[%s12185_s1 + $0x208] sm:$0xff] }
  0x30   :  { %4446 = vmatpush.bf16.msrb.mxu2 %v9264_v62  ;;  %v9303_v44 = vld [vmem:[%s12185_s1 + $0x2d8] sm:$0xff]  ;;  %v9294_v47 = vld [vmem:[%s12185_s1 + $0x290] sm:$0xff]  ;;  %v9285_v50 = vld [vmem:[%s12185_s1 + $0x248] sm:$0xff]  ;;  %v211_v62 = vpack.c.bf16 %v10095_v28, %v10095_v28 }
  0x31   :  { %4459 = vmatpush.bf16.msrb.mxu3 %v9272_v63  ;;  %v9302_v48 = vld [vmem:[%s12185_s1 + $0x2d0] sm:$0xff]  ;;  %v9293_v51 = vld [vmem:[%s12185_s1 + $0x288] sm:$0xff]  ;;  %v9276_v53 = vld [vmem:[%s12185_s1 + $0x200] sm:$0xff] }
  0x32   :  { %4421 = vmatpush.bf16.msrb.mxu0 %v9247_v0  ;;  %v9301_v52 = vld [vmem:[%s12185_s1 + $0x2c8] sm:$0xff]  ;;  %v9284_v54 = vld [vmem:[%s12185_s1 + $0x240] sm:$0xff]  ;;  %v9315_v57 = vld [vmem:[%s12185_s1 + $0x338] sm:$0xff]  ;;  %v210_v0 = vpack.c.bf16 %v10097_v29, %v10097_v29 }
  0x33   :  { %4434 = vmatpush.bf16.msrb.mxu1 %v9255_v1  ;;  %v9292_v55 = vld [vmem:[%s12185_s1 + $0x280] sm:$0xff]  ;;  %v9323_v58 = vld [vmem:[%s12185_s1 + $0x378] sm:$0xff]  ;;  %v9314_v63 = vld [vmem:[%s12185_s1 + $0x330] sm:$0xff]  ;;  %v212_v1 = vpack.c.bf16 %v10105_v32, %v10105_v32 }
  0x34   :  { %4447 = vmatpush.bf16.msrb.mxu2 %v9263_v2  ;;  %v9300_v56 = vld [vmem:[%s12185_s1 + $0x2c0] sm:$0xff]  ;;  %v9331_v59 = vld [vmem:[%s12185_s1 + $0x3b8] sm:$0xff]  ;;  %v9322_v2 = vld [vmem:[%s12185_s1 + $0x370] sm:$0xff] }
  0x35   :  { %4460 = vmatpush.bf16.msrb.mxu3 %v9271_v3  ;;  %v9339_v60 = vld [vmem:[%s12185_s1 + $0x3f8] sm:$0xff]  ;;  %v9330_v3 = vld [vmem:[%s12185_s1 + $0x3b0] sm:$0xff]  ;;  %v9317_v27 = vld [vmem:[%s12185_s1 + $0x348] sm:$0xff] }
  0x36   :  { %4422 = vmatpush.bf16.msrb.mxu0 %v9246_v4  ;;  %v10208_v4 = vld.sshfl [vmem:[#allocation1 + $0x20] sm:$0xff pattern:$0x73625140]  ;;  %v9325_v28 = vld [vmem:[%s12185_s1 + $0x388] sm:$0xff] }
  0x37   :  { %4435 = vmatpush.bf16.msrb.mxu1 %v9254_v5  ;;  %v10210_v5 = vld.sshfl [vmem:[#allocation1 + $0x30] sm:$0xff pattern:$0x73625140]  ;;  %v9333_v29 = vld [vmem:[%s12185_s1 + $0x3c8] sm:$0xff]  ;;  %v9316_v31 = vld [vmem:[%s12185_s1 + $0x340] sm:$0xff] }
  0x38   :  { %4448 = vmatpush.bf16.msrb.mxu2 %v9262_v6  ;;  %v10212_v6 = vld.sshfl [vmem:[#allocation1 + $0x28] sm:$0xff pattern:$0x73625140]  ;;  %v9324_v32 = vld [vmem:[%s12185_s1 + $0x380] sm:$0xff] }
  0x39   :  { %4461 = vmatpush.bf16.msrb.mxu3 %v9270_v7  ;;  %v9338_v7 = vld [vmem:[%s12185_s1 + $0x3f0] sm:$0xff] }
  0x3a   :  { %4423 = vmatpush.bf16.msrb.mxu0 %v9245_v8  ;;  %v29_v8 = vld [vmem:[%s12184_s0 + $0x28] sm:$0xff] }
  0x3b   :  { %4436 = vmatpush.bf16.msrb.mxu1 %v9253_v9  ;;  %v10220_v9 = vld.sshfl [vmem:[#allocation1 + $0x38] sm:$0xff pattern:$0x73625140] }
  0x3c   :  { %4449 = vmatpush.bf16.msrb.mxu2 %v9261_v10  ;;  %78 = vst [vmem:[#allocation1 + $0x20] ss:$4 sm:$0xff] %v29_v8  ;;  %v9313_v10 = vld [vmem:[%s12185_s1 + $0x328] sm:$0xff]  ;;  %v79_v8 = vld.sshfl [vmem:[#allocation1] sm:$0xff pattern:$0x73625140] }
  0x3d   :  { %4462 = vmatpush.bf16.msrb.mxu3 %v9269_v11  ;;  %v9321_v11 = vld [vmem:[%s12185_s1 + $0x368] sm:$0xff] }
  0x3e   :  { %4424 = vmatpush.bf16.msrb.mxu0 %v9244_v12  ;;  %v9329_v12 = vld [vmem:[%s12185_s1 + $0x3a8] sm:$0xff] }
  0x3f   :  { %4437 = vmatpush.bf16.msrb.mxu1 %v9252_v13  ;;  %v9337_v13 = vld [vmem:[%s12185_s1 + $0x3e8] sm:$0xff] }
  0x40   :  { %4450 = vmatpush.bf16.msrb.mxu2 %v9260_v14  ;;  %v9312_v14 = vld [vmem:[%s12185_s1 + $0x320] sm:$0xff] }
  0x41   :  { %4463 = vmatpush.bf16.msrb.mxu3 %v9268_v15  ;;  %4425 = vmatmul.bf16.vlgmr.msrb.gmra.mxu0 %v205_v22  ;;  %v9320_v15 = vld [vmem:[%s12185_s1 + $0x360] sm:$0xff]  ;;  %v9310_v22 = vld [vmem:[%s12185_s1 + $0x310] sm:$0xff] }
  0x42   :  { %4469 = vmatpush.bf16.msra.mxu0 %v9283_v16  ;;  %4438 = vmatmul.bf16.vlgmr.msrb.gmra.mxu1 %v206_v26  ;;  %v9328_v16 = vld [vmem:[%s12185_s1 + $0x3a0] sm:$0xff]  ;;  %v9309_v26 = vld [vmem:[%s12185_s1 + $0x308] sm:$0xff] }
  0x43   :  { %4482 = vmatpush.bf16.msra.mxu1 %v9291_v17  ;;  %4451 = vmatmul.bf16.vlgmr.msrb.gmra.mxu2 %v207_v21  ;;  %v9336_v17 = vld [vmem:[%s12185_s1 + $0x3e0] sm:$0xff]  ;;  %v9335_v21 = vld [vmem:[%s12185_s1 + $0x3d8] sm:$0xff] }
  0x44   :  { %4495 = vmatpush.bf16.msra.mxu2 %v9299_v18  ;;  %4464 = vmatmul.bf16.vlgmr.msrb.gmra.mxu3 %v208_v25  ;;  %v9311_v18 = vld [vmem:[%s12185_s1 + $0x318] sm:$0xff]  ;;  %v9334_v25 = vld [vmem:[%s12185_s1 + $0x3d0] sm:$0xff] }
  0x45   :  { %4508 = vmatpush.bf16.msra.mxu3 %v9307_v19  ;;  %v9319_v19 = vld [vmem:[%s12185_s1 + $0x358] sm:$0xff] }
  0x46   :  { %4470 = vmatpush.bf16.msra.mxu0 %v9282_v20  ;;  %v9327_v20 = vld [vmem:[%s12185_s1 + $0x398] sm:$0xff] }
  0x47   :  { %4483 = vmatpush.bf16.msra.mxu1 %v9290_v23  ;;  %v9318_v23 = vld [vmem:[%s12185_s1 + $0x350] sm:$0xff] }
  0x48   :  { %4496 = vmatpush.bf16.msra.mxu2 %v9298_v24  ;;  %v9326_v24 = vld [vmem:[%s12185_s1 + $0x390] sm:$0xff] }
  0x49   :  { %4509 = vmatpush.bf16.msra.mxu3 %v9306_v30  ;;  %v9308_v30 = vld [vmem:[%s12185_s1 + $0x300] sm:$0xff] }
  0x4a   :  { %4471 = vmatpush.bf16.msra.mxu0 %v9281_v33  ;;  %v9332_v33 = vld [vmem:[%s12185_s1 + $0x3c0] sm:$0xff] }
  0x4b   :  { %4484 = vmatpush.bf16.msra.mxu1 %v9289_v34  ;;  %v9347_v34 = vld [vmem:[%s12185_s1 + $0x438] sm:$0xff] }
  0x4c   :  { %4497 = vmatpush.bf16.msra.mxu2 %v9297_v35  ;;  %v9355_v35 = vld [vmem:[%s12185_s1 + $0x478] sm:$0xff] }
  0x4d   :  { %4510 = vmatpush.bf16.msra.mxu3 %v9305_v36  ;;  %v9363_v36 = vld [vmem:[%s12185_s1 + $0x4b8] sm:$0xff] }
  0x4e   :  { %4472 = vmatpush.bf16.msra.mxu0 %v9280_v37  ;;  %v9371_v37 = vld [vmem:[%s12185_s1 + $0x4f8] sm:$0xff] }
  0x4f   :  { %4485 = vmatpush.bf16.msra.mxu1 %v9288_v38  ;;  %v213_v38 = vpack.c.bf16 %v10208_v4, %v10208_v4  ;;  %v9356_v4 = vld [vmem:[%s12185_s1 + $0x480] sm:$0xff] }
  0x50   :  { %4498 = vmatpush.bf16.msra.mxu2 %v9296_v39  ;;  %v215_v39 = vpack.c.bf16 %v10210_v5, %v10210_v5  ;;  %v9364_v5 = vld [vmem:[%s12185_s1 + $0x4c0] sm:$0xff] }
  0x51   :  { %4511 = vmatpush.bf16.msra.mxu3 %v9304_v40  ;;  %v214_v40 = vpack.c.bf16 %v10212_v6, %v10212_v6  ;;  %v9379_v6 = vld [vmem:[%s12185_s1 + $0x538] sm:$0xff] }
  0x52   :  { %4473 = vmatpush.bf16.msra.mxu0 %v9279_v41  ;;  %v216_v41 = vpack.c.bf16 %v10220_v9, %v10220_v9  ;;  %v81_v9 = vld.sshfl [vmem:[#allocation1 + $0x10] sm:$0xff pattern:$0x73625140] }
  0x53   :  { %4486 = vmatpush.bf16.msra.mxu1 %v9287_v42  ;;  %v9346_v42 = vld [vmem:[%s12185_s1 + $0x430] sm:$0xff] }
  0x54   :  { %4499 = vmatpush.bf16.msra.mxu2 %v9295_v43  ;;  %v9354_v43 = vld [vmem:[%s12185_s1 + $0x470] sm:$0xff] }
  0x55   :  { %4512 = vmatpush.bf16.msra.mxu3 %v9303_v44  ;;  %v9362_v44 = vld [vmem:[%s12185_s1 + $0x4b0] sm:$0xff] }
  0x56   :  { %4474 = vmatpush.bf16.msra.mxu0 %v9278_v45  ;;  %v9370_v45 = vld [vmem:[%s12185_s1 + $0x4f0] sm:$0xff] }
  0x57   :  { %4487 = vmatpush.bf16.msra.mxu1 %v9286_v46  ;;  %v9345_v46 = vld [vmem:[%s12185_s1 + $0x428] sm:$0xff] }
  0x58   :  { %4500 = vmatpush.bf16.msra.mxu2 %v9294_v47  ;;  %v9353_v47 = vld [vmem:[%s12185_s1 + $0x468] sm:$0xff] }
  0x59   :  { %4513 = vmatpush.bf16.msra.mxu3 %v9302_v48  ;;  %v9361_v48 = vld [vmem:[%s12185_s1 + $0x4a8] sm:$0xff] }
  0x5a   :  { %4475 = vmatpush.bf16.msra.mxu0 %v9277_v49  ;;  %v9369_v49 = vld [vmem:[%s12185_s1 + $0x4e8] sm:$0xff] }
  0x5b   :  { %4488 = vmatpush.bf16.msra.mxu1 %v9285_v50  ;;  %v9344_v50 = vld [vmem:[%s12185_s1 + $0x420] sm:$0xff] }
  0x5c   :  { %4501 = vmatpush.bf16.msra.mxu2 %v9293_v51  ;;  %v9352_v51 = vld [vmem:[%s12185_s1 + $0x460] sm:$0xff] }
  0x5d   :  { %4514 = vmatpush.bf16.msra.mxu3 %v9301_v52  ;;  %v9360_v52 = vld [vmem:[%s12185_s1 + $0x4a0] sm:$0xff] }
  0x5e   :  { %4476 = vmatpush.bf16.msra.mxu0 %v9276_v53  ;;  %v9368_v53 = vld [vmem:[%s12185_s1 + $0x4e0] sm:$0xff] }
  0x5f   :  { %4489 = vmatpush.bf16.msra.mxu1 %v9284_v54  ;;  %v9343_v54 = vld [vmem:[%s12185_s1 + $0x418] sm:$0xff] }
  0x60   :  { %4502 = vmatpush.bf16.msra.mxu2 %v9292_v55  ;;  %v9351_v55 = vld [vmem:[%s12185_s1 + $0x458] sm:$0xff] }
  0x61   :  { %4515 = vmatpush.bf16.msra.mxu3 %v9300_v56  ;;  %4477 = vmatmul.bf16.vlgmr.msra.gmra.mxu0 %v209_v61  ;;  %v9359_v56 = vld [vmem:[%s12185_s1 + $0x498] sm:$0xff]  ;;  %v9366_v61 = vld [vmem:[%s12185_s1 + $0x4d0] sm:$0xff] }
  0x62   :  { %4521 = vmatpush.bf16.msrb.mxu0 %v9315_v57  ;;  %4490 = vmatmul.bf16.vlgmr.msra.gmra.mxu1 %v210_v0  ;;  %v9367_v57 = vld [vmem:[%s12185_s1 + $0x4d8] sm:$0xff]  ;;  %v9357_v0 = vld [vmem:[%s12185_s1 + $0x488] sm:$0xff] }
  0x63   :  { %4534 = vmatpush.bf16.msrb.mxu1 %v9323_v58  ;;  %4503 = vmatmul.bf16.vlgmr.msra.gmra.mxu2 %v211_v62  ;;  %v9342_v58 = vld [vmem:[%s12185_s1 + $0x410] sm:$0xff]  ;;  %v9341_v62 = vld [vmem:[%s12185_s1 + $0x408] sm:$0xff] }
  0x64   :  { %4547 = vmatpush.bf16.msrb.mxu2 %v9331_v59  ;;  %4516 = vmatmul.bf16.vlgmr.msra.gmra.mxu3 %v212_v1  ;;  %v9350_v59 = vld [vmem:[%s12185_s1 + $0x450] sm:$0xff]  ;;  %v9365_v1 = vld [vmem:[%s12185_s1 + $0x4c8] sm:$0xff] }
  0x65   :  { %4560 = vmatpush.bf16.msrb.mxu3 %v9339_v60  ;;  %v9358_v60 = vld [vmem:[%s12185_s1 + $0x490] sm:$0xff] }
  0x66   :  { %4522 = vmatpush.bf16.msrb.mxu0 %v9314_v63  ;;  %v9349_v63 = vld [vmem:[%s12185_s1 + $0x448] sm:$0xff] }
  0x67   :  { %4535 = vmatpush.bf16.msrb.mxu1 %v9322_v2  ;;  %v9340_v2 = vld [vmem:[%s12185_s1 + $0x400] sm:$0xff] }
  0x68   :  { %4548 = vmatpush.bf16.msrb.mxu2 %v9330_v3  ;;  %v9348_v3 = vld [vmem:[%s12185_s1 + $0x440] sm:$0xff] }
  0x69   :  { %4561 = vmatpush.bf16.msrb.mxu3 %v9338_v7  ;;  %v9387_v7 = vld [vmem:[%s12185_s1 + $0x578] sm:$0xff] }
  0x6a   :  { %4523 = vmatpush.bf16.msrb.mxu0 %v9313_v10  ;;  %v80_v10 = vld.sshfl [vmem:[#allocation1 + $0x8] sm:$0xff pattern:$0x73625140] }
  0x6b   :  { %4536 = vmatpush.bf16.msrb.mxu1 %v9321_v11  ;;  %v82_v11 = vld.sshfl [vmem:[#allocation1 + $0x18] sm:$0xff pattern:$0x73625140] }
  0x6c   :  { %4549 = vmatpush.bf16.msrb.mxu2 %v9329_v12  ;;  %v9395_v12 = vld [vmem:[%s12185_s1 + $0x5b8] sm:$0xff] }
  0x6d   :  { %4562 = vmatpush.bf16.msrb.mxu3 %v9337_v13  ;;  %v9403_v13 = vld [vmem:[%s12185_s1 + $0x5f8] sm:$0xff] }
  0x6e   :  { %4524 = vmatpush.bf16.msrb.mxu0 %v9312_v14  ;;  %v217_v14 = vpack.c.bf16 %v79_v8, %v79_v8  ;;  %v9410_v8 = vld [vmem:[%s12185_s1 + $0x630] sm:$0xff] }
  0x6f   :  { %4537 = vmatpush.bf16.msrb.mxu1 %v9320_v15  ;;  %v219_v15 = vpack.c.bf16 %v81_v9, %v81_v9  ;;  %v9418_v9 = vld [vmem:[%s12185_s1 + $0x670] sm:$0xff] }
  0x70   :  { %4550 = vmatpush.bf16.msrb.mxu2 %v9328_v16  ;;  %v218_v16 = vpack.c.bf16 %v80_v10, %v80_v10  ;;  %v9426_v10 = vld [vmem:[%s12185_s1 + $0x6b0] sm:$0xff] }
  0x71   :  { %4563 = vmatpush.bf16.msrb.mxu3 %v9336_v17  ;;  %v220_v17 = vpack.c.bf16 %v82_v11, %v82_v11  ;;  %v9434_v11 = vld [vmem:[%s12185_s1 + $0x6f0] sm:$0xff] }
  0x72   :  { %4525 = vmatpush.bf16.msrb.mxu0 %v9311_v18  ;;  %v9378_v18 = vld [vmem:[%s12185_s1 + $0x530] sm:$0xff] }
  0x73   :  { %4538 = vmatpush.bf16.msrb.mxu1 %v9319_v19  ;;  %v9386_v19 = vld [vmem:[%s12185_s1 + $0x570] sm:$0xff] }
  0x74   :  { %4551 = vmatpush.bf16.msrb.mxu2 %v9327_v20  ;;  %v9394_v20 = vld [vmem:[%s12185_s1 + $0x5b0] sm:$0xff] }
  0x75   :  { %4564 = vmatpush.bf16.msrb.mxu3 %v9335_v21  ;;  %v9402_v21 = vld [vmem:[%s12185_s1 + $0x5f0] sm:$0xff] }
  0x76   :  { %4526 = vmatpush.bf16.msrb.mxu0 %v9310_v22  ;;  %v9377_v22 = vld [vmem:[%s12185_s1 + $0x528] sm:$0xff] }
  0x77   :  { %4539 = vmatpush.bf16.msrb.mxu1 %v9318_v23  ;;  %v9385_v23 = vld [vmem:[%s12185_s1 + $0x568] sm:$0xff] }
  0x78   :  { %4552 = vmatpush.bf16.msrb.mxu2 %v9326_v24  ;;  %v9789_v24 = vld [vmem:[%s12186_s2] ss:$0 sm:$0xff]  ;;  %s9816_s2 = smov [#allocation2]  }
  0x79   :  { %4565 = vmatpush.bf16.msrb.mxu3 %v9334_v25  ;;  %v9393_v25 = vld [vmem:[%s12185_s1 + $0x5a8] sm:$0xff]  ;;  %s6829_s23 = sshll.u32 %s9816_s2, 4  ;;  %s6830_s23 = int_to_ptr.vmem [resolvable:$true] %s6829_s23 }
  0x7a   :  { %4527 = vmatpush.bf16.msrb.mxu0 %v9309_v26  ;;  %v9401_v26 = vld [vmem:[%s12185_s1 + $0x5e8] sm:$0xff] }
  0x7b   :  { %4540 = vmatpush.bf16.msrb.mxu1 %v9317_v27 }
  0x7c   :  { %4553 = vmatpush.bf16.msrb.mxu2 %v9325_v28  ;;  %v9376_v28 = vld [vmem:[%s12185_s1 + $0x520] sm:$0xff] }
  0x7d   :  { %4566 = vmatpush.bf16.msrb.mxu3 %v9333_v29  ;;  %v9384_v29 = vld [vmem:[%s12185_s1 + $0x560] sm:$0xff] }
  0x7e   :  { %4528 = vmatpush.bf16.msrb.mxu0 %v9308_v30 }
  0x7f   :  { %4541 = vmatpush.bf16.msrb.mxu1 %v9316_v31 }
  0x80   :  { %4554 = vmatpush.bf16.msrb.mxu2 %v9324_v32  ;;  %v9392_v32 = vld [vmem:[%s12185_s1 + $0x5a0] sm:$0xff] }
  0x81   :  { %4567 = vmatpush.bf16.msrb.mxu3 %v9332_v33  ;;  %4529 = vmatmul.bf16.vlgmr.msrb.gmra.mxu0 %v213_v38  ;;  %v9400_v33 = vld [vmem:[%s12185_s1 + $0x5e0] sm:$0xff]  ;;  %v9399_v38 = vld [vmem:[%s12185_s1 + $0x5d8] sm:$0xff] }
  0x82   :  { %4573 = vmatpush.bf16.msra.mxu0 %v9347_v34  ;;  %4542 = vmatmul.bf16.vlgmr.msrb.gmra.mxu1 %v214_v40 }
  0x83   :  { %4586 = vmatpush.bf16.msra.mxu1 %v9355_v35  ;;  %4555 = vmatmul.bf16.vlgmr.msrb.gmra.mxu2 %v215_v39  ;;  %v9375_v35 = vld [vmem:[%s12185_s1 + $0x518] sm:$0xff] }
  0x84   :  { %4599 = vmatpush.bf16.msra.mxu2 %v9363_v36  ;;  %4568 = vmatmul.bf16.vlgmr.msrb.gmra.mxu3 %v216_v41  ;;  %v9383_v36 = vld [vmem:[%s12185_s1 + $0x558] sm:$0xff] }
  0x85   :  { %4612 = vmatpush.bf16.msra.mxu3 %v9371_v37  ;;  %v9391_v37 = vld [vmem:[%s12185_s1 + $0x598] sm:$0xff] }
  0x86   :  { %4574 = vmatpush.bf16.msra.mxu0 %v9346_v42 }
  0x87   :  { %4587 = vmatpush.bf16.msra.mxu1 %v9354_v43  ;;  %v9374_v43 = vld [vmem:[%s12185_s1 + $0x510] sm:$0xff] }
  0x88   :  { %4600 = vmatpush.bf16.msra.mxu2 %v9362_v44  ;;  %v9382_v44 = vld [vmem:[%s12185_s1 + $0x550] sm:$0xff] }
  0x89   :  { %4613 = vmatpush.bf16.msra.mxu3 %v9370_v45 }
  0x8a   :  { %4575 = vmatpush.bf16.msra.mxu0 %v9345_v46 }
  0x8b   :  { %4588 = vmatpush.bf16.msra.mxu1 %v9353_v47  ;;  %v9390_v47 = vld [vmem:[%s12185_s1 + $0x590] sm:$0xff] }
  0x8c   :  { %4601 = vmatpush.bf16.msra.mxu2 %v9361_v48  ;;  %v9398_v48 = vld [vmem:[%s12185_s1 + $0x5d0] sm:$0xff] }
  0x8d   :  { %4614 = vmatpush.bf16.msra.mxu3 %v9369_v49  ;;  %v9373_v49 = vld [vmem:[%s12185_s1 + $0x508] sm:$0xff] }
  0x8e   :  { %4576 = vmatpush.bf16.msra.mxu0 %v9344_v50  ;;  %v9381_v50 = vld [vmem:[%s12185_s1 + $0x548] sm:$0xff] }
  0x8f   :  { %4589 = vmatpush.bf16.msra.mxu1 %v9352_v51  ;;  %v30_v51 = vld [vmem:[%s12184_s0 + $0x30] sm:$0xff] }
  0x90   :  { %4602 = vmatpush.bf16.msra.mxu2 %v9360_v52  ;;  %v9389_v52 = vld [vmem:[%s12185_s1 + $0x588] sm:$0xff]  ;;  %87 = vst [vmem:[#allocation1] ss:$4 sm:$0xff] %v30_v51 }
  0x91   :  { %4615 = vmatpush.bf16.msra.mxu3 %v9368_v53  ;;  %v9397_v53 = vld [vmem:[%s12185_s1 + $0x5c8] sm:$0xff] }
  0x92   :  { %4577 = vmatpush.bf16.msra.mxu0 %v9343_v54 }
  0x93   :  { %4590 = vmatpush.bf16.msra.mxu1 %v9351_v55 }
  0x94   :  { %4603 = vmatpush.bf16.msra.mxu2 %v9359_v56  ;;  %v9372_v56 = vld [vmem:[%s12185_s1 + $0x500] sm:$0xff] }
  0x95   :  { %4616 = vmatpush.bf16.msra.mxu3 %v9367_v57  ;;  %v9380_v57 = vld [vmem:[%s12185_s1 + $0x540] sm:$0xff] }
  0x96   :  { %4578 = vmatpush.bf16.msra.mxu0 %v9342_v58  ;;  %v9388_v58 = vld [vmem:[%s12185_s1 + $0x580] sm:$0xff] }
  0x97   :  { %4591 = vmatpush.bf16.msra.mxu1 %v9350_v59  ;;  %v9396_v59 = vld [vmem:[%s12185_s1 + $0x5c0] sm:$0xff] }
  0x98   :  { %4604 = vmatpush.bf16.msra.mxu2 %v9358_v60  ;;  %v9411_v60 = vld [vmem:[%s12185_s1 + $0x638] sm:$0xff]  ;;  %v89_v51 = vld.sshfl [vmem:[#allocation1] sm:$0xff pattern:$0x73625140] }
  0x99   :  { %4617 = vmatpush.bf16.msra.mxu3 %v9366_v61  ;;  %v9419_v61 = vld [vmem:[%s12185_s1 + $0x678] sm:$0xff] }
  0x9a   :  { %4579 = vmatpush.bf16.msra.mxu0 %v9341_v62  ;;  %v83_v62 = vld.sshfl [vmem:[#allocation1 + $0x20] sm:$0xff pattern:$0x73625140] }
  0x9b   :  { %4592 = vmatpush.bf16.msra.mxu1 %v9349_v63  ;;  %v85_v63 = vld.sshfl [vmem:[#allocation1 + $0x30] sm:$0xff pattern:$0x73625140] }
  0x9c   :  { %4605 = vmatpush.bf16.msra.mxu2 %v9357_v0  ;;  %v84_v0 = vld.sshfl [vmem:[#allocation1 + $0x28] sm:$0xff pattern:$0x73625140] }
  0x9d   :  { %4618 = vmatpush.bf16.msra.mxu3 %v9365_v1  ;;  %v86_v1 = vld.sshfl [vmem:[#allocation1 + $0x38] sm:$0xff pattern:$0x73625140] }
  0x9e   :  { %4580 = vmatpush.bf16.msra.mxu0 %v9340_v2  ;;  %v4374_v27 = vpop.f32.mrf.mxu0  ;;  %v9427_v2 = vld [vmem:[%s12185_s1 + $0x6b8] sm:$0xff] }
  0x9f   :  { %4593 = vmatpush.bf16.msra.mxu1 %v9348_v3  ;;  %v4375_v30 = vadd.f32 %v9789_v24, %v4374_v27  ;;  %v4387_v31 = vpop.f32.mrf.mxu1  ;;  %v9435_v3 = vld [vmem:[%s12185_s1 + $0x6f8] sm:$0xff] }
  0xa0   :  { %4606 = vmatpush.bf16.msra.mxu2 %v9356_v4  ;;  %v221_v4 = vpack.c.bf16 %v83_v62, %v83_v62  ;;  %v9407_v24 = vld [vmem:[%s12185_s1 + $0x618] sm:$0xff]  ;;  %v9450_v62 = vld [vmem:[%s12185_s1 + $0x770] sm:$0xff] }
  0xa1   :  { %4619 = vmatpush.bf16.msra.mxu3 %v9364_v5  ;;  %4581 = vmatmul.bf16.vlgmr.msra.gmra.mxu0 %v217_v14  ;;  %v4388_v34 = vadd.f32 %v4387_v31, %v4375_v30  ;;  %v223_v5 = vpack.c.bf16 %v85_v63, %v85_v63  ;;  %v9425_v14 = vld [vmem:[%s12185_s1 + $0x6a8] sm:$0xff]  ;;  %v9431_v27 = vld [vmem:[%s12185_s1 + $0x6d8] sm:$0xff]  ;;  %v9458_v63 = vld [vmem:[%s12185_s1 + $0x7b0] sm:$0xff] }
  0xa2   :  { %4625 = vmatpush.bf16.msrb.mxu0 %v9379_v6  ;;  %4594 = vmatmul.bf16.vlgmr.msra.gmra.mxu1 %v218_v16  ;;  %v222_v6 = vpack.c.bf16 %v84_v0, %v84_v0  ;;  %v9466_v0 = vld [vmem:[%s12185_s1 + $0x7f0] sm:$0xff] }
  0xa3   :  { %4638 = vmatpush.bf16.msrb.mxu1 %v9387_v7  ;;  %4607 = vmatmul.bf16.vlgmr.msra.gmra.mxu2 %v219_v15  ;;  %v224_v7 = vpack.c.bf16 %v86_v1, %v86_v1  ;;  %v9433_v15 = vld [vmem:[%s12185_s1 + $0x6e8] sm:$0xff] }
  0xa4   :  { %4651 = vmatpush.bf16.msrb.mxu2 %v9395_v12  ;;  %4620 = vmatmul.bf16.vlgmr.msra.gmra.mxu3 %v220_v17  ;;  %v9409_v12 = vld [vmem:[%s12185_s1 + $0x628] sm:$0xff]  ;;  %v9408_v17 = vld [vmem:[%s12185_s1 + $0x620] sm:$0xff] }
  0xa5   :  { %4664 = vmatpush.bf16.msrb.mxu3 %v9403_v13  ;;  %v9417_v13 = vld [vmem:[%s12185_s1 + $0x668] sm:$0xff] }
  0xa6   :  { %4626 = vmatpush.bf16.msrb.mxu0 %v9378_v18  ;;  %v4400_v39 = vpop.f32.mrf.mxu2  ;;  %v4376_v42 = vpop.f32.mrf.mxu0  ;;  %v9416_v18 = vld [vmem:[%s12185_s1 + $0x660] sm:$0xff]  ;;  %v9441_v1 = vld [vmem:[%s12185_s1 + $0x728] sm:$0xff] }
  0xa7   :  { %4639 = vmatpush.bf16.msrb.mxu1 %v9386_v19  ;;  %v4401_v40 = vadd.f32 %v4400_v39, %v4388_v34  ;;  %v4413_v41 = vpop.f32.mrf.mxu3  ;;  %v4389_v46 = vpop.f32.mrf.mxu1  ;;  %v9413_v39 = vld [vmem:[%s12185_s1 + $0x648] sm:$0xff] }
  0xa8   :  { %4652 = vmatpush.bf16.msrb.mxu2 %v9394_v20  ;;  %v9429_v42 = vld [vmem:[%s12185_s1 + $0x6c8] sm:$0xff]  ;;  %v9412_v46 = vld [vmem:[%s12185_s1 + $0x640] sm:$0xff] }
  0xa9   :  { %4665 = vmatpush.bf16.msrb.mxu3 %v9402_v21  ;;  %v10467_v45 = vadd.f32 %v4413_v41, %v4401_v40  ;;  %v9424_v21 = vld [vmem:[%s12185_s1 + $0x6a0] sm:$0xff]  ;;  %v31_v40 = vld [vmem:[%s12184_s0 + $0x38] sm:$0xff]  ;;  %v9421_v41 = vld [vmem:[%s12185_s1 + $0x688] sm:$0xff] }
  0xaa   :  { %4627 = vmatpush.bf16.msrb.mxu0 %v9377_v22  ;;  %v9432_v22 = vld [vmem:[%s12185_s1 + $0x6e0] sm:$0xff]  ;;  %88 = vst [vmem:[#allocation1 + $0x20] ss:$4 sm:$0xff] %v31_v40 }
  0xab   :  { %4640 = vmatpush.bf16.msrb.mxu1 %v9385_v23 }
  0xac   :  { %4653 = vmatpush.bf16.msrb.mxu2 %v9393_v25  ;;  %v9415_v25 = vld [vmem:[%s12185_s1 + $0x658] sm:$0xff] }
  0xad   :  { %4666 = vmatpush.bf16.msrb.mxu3 %v9401_v26  ;;  %v9423_v26 = vld [vmem:[%s12185_s1 + $0x698] sm:$0xff] }
  0xae   :  { %4628 = vmatpush.bf16.msrb.mxu0 %v9376_v28  ;;  %v4402_v54 = vpop.f32.mrf.mxu2 }
  0xaf   :  { %4641 = vmatpush.bf16.msrb.mxu1 %v9384_v29  ;;  %v4415_v55 = vpop.f32.mrf.mxu3  ;;  %v92_v54 = vld.sshfl [vmem:[#allocation1 + $0x18] sm:$0xff pattern:$0x73625140] }
  0xb0   :  { %4654 = vmatpush.bf16.msrb.mxu2 %v9392_v32  ;;  %v9406_v32 = vld [vmem:[%s12185_s1 + $0x610] sm:$0xff]  ;;  %v9459_v55 = vld [vmem:[%s12185_s1 + $0x7b8] sm:$0xff] }
  0xb1   :  { %4667 = vmatpush.bf16.msrb.mxu3 %v9400_v33  ;;  %v9414_v33 = vld [vmem:[%s12185_s1 + $0x650] sm:$0xff]  ;;  %v93_v40 = vld.sshfl [vmem:[#allocation1 + $0x20] sm:$0xff pattern:$0x73625140] }
  0xb2   :  { %4629 = vmatpush.bf16.msrb.mxu0 %v9375_v35 }
  0xb3   :  { %4642 = vmatpush.bf16.msrb.mxu1 %v9383_v36  ;;  %v9422_v36 = vld [vmem:[%s12185_s1 + $0x690] sm:$0xff] }
  0xb4   :  { %4655 = vmatpush.bf16.msrb.mxu2 %v9391_v37  ;;  %v9430_v37 = vld [vmem:[%s12185_s1 + $0x6d0] sm:$0xff] }
  0xb5   :  { %4668 = vmatpush.bf16.msrb.mxu3 %v9399_v38  ;;  %v9405_v38 = vld [vmem:[%s12185_s1 + $0x608] sm:$0xff] }
  0xb6   :  { %4630 = vmatpush.bf16.msrb.mxu0 %v9374_v43 }
  0xb7   :  { %4643 = vmatpush.bf16.msrb.mxu1 %v9382_v44 }
  0xb8   :  { %4656 = vmatpush.bf16.msrb.mxu2 %v9390_v47  ;;  %v9420_v47 = vld [vmem:[%s12185_s1 + $0x680] sm:$0xff] }
  0xb9   :  { %4669 = vmatpush.bf16.msrb.mxu3 %v9398_v48  ;;  %v9428_v48 = vld [vmem:[%s12185_s1 + $0x6c0] sm:$0xff] }
  0xba   :  { %4631 = vmatpush.bf16.msrb.mxu0 %v9373_v49  ;;  %v9443_v49 = vld [vmem:[%s12185_s1 + $0x738] sm:$0xff] }
  0xbb   :  { %4644 = vmatpush.bf16.msrb.mxu1 %v9381_v50  ;;  %v9451_v50 = vld [vmem:[%s12185_s1 + $0x778] sm:$0xff] }
  0xbc   :  { %4657 = vmatpush.bf16.msrb.mxu2 %v9389_v52  ;;  %v91_v52 = vld.sshfl [vmem:[#allocation1 + $0x10] sm:$0xff pattern:$0x73625140] }
  0xbd   :  { %4670 = vmatpush.bf16.msrb.mxu3 %v9397_v53  ;;  %v90_v53 = vld.sshfl [vmem:[#allocation1 + $0x8] sm:$0xff pattern:$0x73625140] }
  0xbe   :  { %4632 = vmatpush.bf16.msrb.mxu0 %v9372_v56  ;;  %v4426_v16 = vpop.f32.mrf.mxu0  ;;  %v9467_v56 = vld [vmem:[%s12185_s1 + $0x7f8] sm:$0xff] }
  0xbf   :  { %4645 = vmatpush.bf16.msrb.mxu1 %v9380_v57  ;;  %v4427_v19 = vadd.f32 %v4426_v16, %v10467_v45  ;;  %v4439_v20 = vpop.f32.mrf.mxu1  ;;  %v9404_v45 = vld [vmem:[%s12185_s1 + $0x600] sm:$0xff]  ;;  %v225_v57 = vpack.c.bf16 %v89_v51, %v89_v51  ;;  %v9463_v16 = vld [vmem:[%s12185_s1 + $0x7d8] sm:$0xff]  ;;  %v9482_v51 = vld [vmem:[%s12185_s1 + $0x870] sm:$0xff] }
  0xc0   :  { %4658 = vmatpush.bf16.msrb.mxu2 %v9388_v58  ;;  %v227_v58 = vpack.c.bf16 %v91_v52, %v91_v52  ;;  %v9490_v52 = vld [vmem:[%s12185_s1 + $0x8b0] sm:$0xff] }
  0xc1   :  { %4671 = vmatpush.bf16.msrb.mxu3 %v9396_v59  ;;  %4633 = vmatmul.bf16.vlgmr.msrb.gmra.mxu0 %v221_v4  ;;  %v4440_v23 = vadd.f32 %v4439_v20, %v4427_v19  ;;  %v226_v59 = vpack.c.bf16 %v90_v53, %v90_v53  ;;  %v9465_v4 = vld [vmem:[%s12185_s1 + $0x7e8] sm:$0xff]  ;;  %v9498_v53 = vld [vmem:[%s12185_s1 + $0x8f0] sm:$0xff] }
  0xc2   :  { %4677 = vmatpush.bf16.msra.mxu0 %v9411_v60  ;;  %4646 = vmatmul.bf16.vlgmr.msrb.gmra.mxu1 %v222_v6  ;;  %v228_v60 = vpack.c.bf16 %v92_v54, %v92_v54  ;;  %v9473_v54 = vld [vmem:[%s12185_s1 + $0x828] sm:$0xff] }
  0xc3   :  { %4690 = vmatpush.bf16.msra.mxu1 %v9419_v61  ;;  %4659 = vmatmul.bf16.vlgmr.msrb.gmra.mxu2 %v223_v5  ;;  %v9442_v61 = vld [vmem:[%s12185_s1 + $0x730] sm:$0xff] }
  0xc4   :  { %4703 = vmatpush.bf16.msra.mxu2 %v9427_v2  ;;  %4672 = vmatmul.bf16.vlgmr.msrb.gmra.mxu3 %v224_v7  ;;  %v9449_v2 = vld [vmem:[%s12185_s1 + $0x768] sm:$0xff]  ;;  %v9440_v7 = vld [vmem:[%s12185_s1 + $0x720] sm:$0xff] }
  0xc5   :  { %4716 = vmatpush.bf16.msra.mxu3 %v9435_v3  ;;  %v9457_v3 = vld [vmem:[%s12185_s1 + $0x7a8] sm:$0xff] }
  0xc6   :  { %4678 = vmatpush.bf16.msra.mxu0 %v9410_v8  ;;  %v4452_v28 = vpop.f32.mrf.mxu2  ;;  %v4428_v31 = vpop.f32.mrf.mxu0  ;;  %v9448_v8 = vld [vmem:[%s12185_s1 + $0x760] sm:$0xff] }
  0xc7   :  { %4691 = vmatpush.bf16.msra.mxu1 %v9418_v9  ;;  %v4453_v29 = vadd.f32 %v4452_v28, %v4440_v23  ;;  %v4465_v30 = vpop.f32.mrf.mxu3  ;;  %v4441_v35 = vpop.f32.mrf.mxu1  ;;  %v9446_v23 = vld [vmem:[%s12185_s1 + $0x750] sm:$0xff]  ;;  %v9445_v28 = vld [vmem:[%s12185_s1 + $0x748] sm:$0xff] }
  0xc8   :  { %4704 = vmatpush.bf16.msra.mxu2 %v9426_v10  ;;  %v9456_v10 = vld [vmem:[%s12185_s1 + $0x7a0] sm:$0xff]  ;;  %v9461_v31 = vld [vmem:[%s12185_s1 + $0x7c8] sm:$0xff] }
  0xc9   :  { %4717 = vmatpush.bf16.msra.mxu3 %v9434_v11  ;;  %v10569_v34 = vadd.f32 %v4465_v30, %v4453_v29  ;;  %v9464_v11 = vld [vmem:[%s12185_s1 + $0x7e0] sm:$0xff]  ;;  %v9453_v30 = vld [vmem:[%s12185_s1 + $0x788] sm:$0xff] }
  0xca   :  { %4679 = vmatpush.bf16.msra.mxu0 %v9409_v12  ;;  %v32_v29 = vld [vmem:[%s12184_s0 + $0x40] sm:$0xff] }
  0xcb   :  { %4692 = vmatpush.bf16.msra.mxu1 %v9417_v13  ;;  %v9439_v13 = vld [vmem:[%s12185_s1 + $0x718] sm:$0xff]  ;;  %97 = vst [vmem:[#allocation1] ss:$4 sm:$0xff] %v32_v29  ;;  %v9444_v35 = vld [vmem:[%s12185_s1 + $0x740] sm:$0xff] }
  0xcc   :  { %4705 = vmatpush.bf16.msra.mxu2 %v9425_v14  ;;  %v9447_v14 = vld [vmem:[%s12185_s1 + $0x758] sm:$0xff] }
  0xcd   :  { %4718 = vmatpush.bf16.msra.mxu3 %v9433_v15  ;;  %v9455_v15 = vld [vmem:[%s12185_s1 + $0x798] sm:$0xff] }
  0xce   :  { %4680 = vmatpush.bf16.msra.mxu0 %v9408_v17  ;;  %v4454_v43 = vpop.f32.mrf.mxu2 }
  0xcf   :  { %4693 = vmatpush.bf16.msra.mxu1 %v9416_v18  ;;  %v4467_v44 = vpop.f32.mrf.mxu3  ;;  %v96_v43 = vld.sshfl [vmem:[#allocation1 + $0x38] sm:$0xff pattern:$0x73625140] }
  0xd0   :  { %4706 = vmatpush.bf16.msra.mxu2 %v9424_v21  ;;  %v9491_v44 = vld [vmem:[%s12185_s1 + $0x8b8] sm:$0xff] }
  0xd1   :  { %4719 = vmatpush.bf16.msra.mxu3 %v9432_v22  ;;  %v9438_v22 = vld [vmem:[%s12185_s1 + $0x710] sm:$0xff] }
  0xd2   :  { %4681 = vmatpush.bf16.msra.mxu0 %v9407_v24  ;;  %v99_v29 = vld.sshfl [vmem:[#allocation1] sm:$0xff pattern:$0x73625140] }
  0xd3   :  { %4694 = vmatpush.bf16.msra.mxu1 %v9415_v25  ;;  %v9454_v25 = vld [vmem:[%s12185_s1 + $0x790] sm:$0xff] }
  0xd4   :  { %4707 = vmatpush.bf16.msra.mxu2 %v9423_v26  ;;  %v9462_v26 = vld [vmem:[%s12185_s1 + $0x7d0] sm:$0xff] }
  0xd5   :  { %4720 = vmatpush.bf16.msra.mxu3 %v9431_v27  ;;  %v9437_v27 = vld [vmem:[%s12185_s1 + $0x708] sm:$0xff] }
  0xd6   :  { %4682 = vmatpush.bf16.msra.mxu0 %v9406_v32 }
  0xd7   :  { %4695 = vmatpush.bf16.msra.mxu1 %v9414_v33 }
  0xd8   :  { %4708 = vmatpush.bf16.msra.mxu2 %v9422_v36  ;;  %v9452_v36 = vld [vmem:[%s12185_s1 + $0x780] sm:$0xff] }
  0xd9   :  { %4721 = vmatpush.bf16.msra.mxu3 %v9430_v37  ;;  %v9460_v37 = vld [vmem:[%s12185_s1 + $0x7c0] sm:$0xff] }
  0xda   :  { %4683 = vmatpush.bf16.msra.mxu0 %v9405_v38  ;;  %v9475_v38 = vld [vmem:[%s12185_s1 + $0x838] sm:$0xff] }
  0xdb   :  { %4696 = vmatpush.bf16.msra.mxu1 %v9413_v39  ;;  %v9483_v39 = vld [vmem:[%s12185_s1 + $0x878] sm:$0xff] }
  0xdc   :  { %4709 = vmatpush.bf16.msra.mxu2 %v9421_v41  ;;  %v95_v41 = vld.sshfl [vmem:[#allocation1 + $0x30] sm:$0xff pattern:$0x73625140] }
  0xdd   :  { %4722 = vmatpush.bf16.msra.mxu3 %v9429_v42  ;;  %v94_v42 = vld.sshfl [vmem:[#allocation1 + $0x28] sm:$0xff pattern:$0x73625140] }
  0xde   :  { %4684 = vmatpush.bf16.msra.mxu0 %v9404_v45  ;;  %v4478_v5 = vpop.f32.mrf.mxu0  ;;  %v9499_v45 = vld [vmem:[%s12185_s1 + $0x8f8] sm:$0xff] }
  0xdf   :  { %4697 = vmatpush.bf16.msra.mxu1 %v9412_v46  ;;  %v4479_v6 = vadd.f32 %v4478_v5, %v10569_v34  ;;  %v4491_v9 = vpop.f32.mrf.mxu1  ;;  %v9436_v34 = vld [vmem:[%s12185_s1 + $0x700] sm:$0xff]  ;;  %v229_v46 = vpack.c.bf16 %v93_v40, %v93_v40  ;;  %v9495_v5 = vld [vmem:[%s12185_s1 + $0x8d8] sm:$0xff]  ;;  %v9514_v40 = vld [vmem:[%s12185_s1 + $0x970] sm:$0xff] }
  0xe0   :  { %4710 = vmatpush.bf16.msra.mxu2 %v9420_v47  ;;  %v231_v47 = vpack.c.bf16 %v95_v41, %v95_v41  ;;  %v9522_v41 = vld [vmem:[%s12185_s1 + $0x9b0] sm:$0xff] }
  0xe1   :  { %4723 = vmatpush.bf16.msra.mxu3 %v9428_v48  ;;  %4685 = vmatmul.bf16.vlgmr.msra.gmra.mxu0 %v225_v57  ;;  %v4492_v12 = vadd.f32 %v4491_v9, %v4479_v6  ;;  %v230_v48 = vpack.c.bf16 %v94_v42, %v94_v42  ;;  %v9497_v57 = vld [vmem:[%s12185_s1 + $0x8e8] sm:$0xff]  ;;  %v9530_v42 = vld [vmem:[%s12185_s1 + $0x9f0] sm:$0xff] }
  0xe2   :  { %4729 = vmatpush.bf16.msrb.mxu0 %v9443_v49  ;;  %4698 = vmatmul.bf16.vlgmr.msra.gmra.mxu1 %v226_v59  ;;  %v232_v49 = vpack.c.bf16 %v96_v43, %v96_v43  ;;  %v9505_v43 = vld [vmem:[%s12185_s1 + $0x928] sm:$0xff] }
  0xe3   :  { %4742 = vmatpush.bf16.msrb.mxu1 %v9451_v50  ;;  %4711 = vmatmul.bf16.vlgmr.msra.gmra.mxu2 %v227_v58  ;;  %v9474_v50 = vld [vmem:[%s12185_s1 + $0x830] sm:$0xff] }
  0xe4   :  { %4755 = vmatpush.bf16.msrb.mxu2 %v9459_v55  ;;  %4724 = vmatmul.bf16.vlgmr.msra.gmra.mxu3 %v228_v60  ;;  %v9481_v55 = vld [vmem:[%s12185_s1 + $0x868] sm:$0xff]  ;;  %v9472_v60 = vld [vmem:[%s12185_s1 + $0x820] sm:$0xff] }
  0xe5   :  { %4768 = vmatpush.bf16.msrb.mxu3 %v9467_v56  ;;  %v9489_v56 = vld [vmem:[%s12185_s1 + $0x8a8] sm:$0xff] }
  0xe6   :  { %4730 = vmatpush.bf16.msrb.mxu0 %v9442_v61  ;;  %v4504_v17 = vpop.f32.mrf.mxu2  ;;  %v4480_v20 = vpop.f32.mrf.mxu0  ;;  %v9480_v61 = vld [vmem:[%s12185_s1 + $0x860] sm:$0xff] }
  0xe7   :  { %4743 = vmatpush.bf16.msrb.mxu1 %v9450_v62  ;;  %v4505_v18 = vadd.f32 %v4504_v17, %v4492_v12  ;;  %v4517_v19 = vpop.f32.mrf.mxu3  ;;  %v4493_v24 = vpop.f32.mrf.mxu1  ;;  %v9478_v12 = vld [vmem:[%s12185_s1 + $0x850] sm:$0xff]  ;;  %v9477_v17 = vld [vmem:[%s12185_s1 + $0x848] sm:$0xff] }
  0xe8   :  { %4756 = vmatpush.bf16.msrb.mxu2 %v9458_v63  ;;  %v9488_v63 = vld [vmem:[%s12185_s1 + $0x8a0] sm:$0xff]  ;;  %v9493_v20 = vld [vmem:[%s12185_s1 + $0x8c8] sm:$0xff] }
  0xe9   :  { %4769 = vmatpush.bf16.msrb.mxu3 %v9466_v0  ;;  %v10665_v21 = vadd.f32 %v4517_v19, %v4505_v18  ;;  %v9496_v0 = vld [vmem:[%s12185_s1 + $0x8e0] sm:$0xff]  ;;  %v33_v18 = vld [vmem:[%s12184_s0 + $0x48] sm:$0xff] }
  0xea   :  { %4731 = vmatpush.bf16.msrb.mxu0 %v9441_v1  ;;  %v9485_v19 = vld [vmem:[%s12185_s1 + $0x888] sm:$0xff]  ;;  %98 = vst [vmem:[#allocation1 + $0x20] ss:$4 sm:$0xff] %v33_v18  ;;  %v9476_v24 = vld [vmem:[%s12185_s1 + $0x840] sm:$0xff] }
  0xeb   :  { %4744 = vmatpush.bf16.msrb.mxu1 %v9449_v2  ;;  %v9471_v2 = vld [vmem:[%s12185_s1 + $0x818] sm:$0xff] }
  0xec   :  { %4757 = vmatpush.bf16.msrb.mxu2 %v9457_v3  ;;  %v9479_v3 = vld [vmem:[%s12185_s1 + $0x858] sm:$0xff] }
  0xed   :  { %4770 = vmatpush.bf16.msrb.mxu3 %v9465_v4  ;;  %v9487_v4 = vld [vmem:[%s12185_s1 + $0x898] sm:$0xff] }
  0xee   :  { %4732 = vmatpush.bf16.msrb.mxu0 %v9440_v7  ;;  %v4506_v32 = vpop.f32.mrf.mxu2 }
  0xef   :  { %4745 = vmatpush.bf16.msrb.mxu1 %v9448_v8  ;;  %v4519_v33 = vpop.f32.mrf.mxu3  ;;  %v102_v32 = vld.sshfl [vmem:[#allocation1 + $0x18] sm:$0xff pattern:$0x73625140] }
  0xf0   :  { %4758 = vmatpush.bf16.msrb.mxu2 %v9456_v10  ;;  %v9523_v33 = vld [vmem:[%s12185_s1 + $0x9b8] sm:$0xff] }
  0xf1   :  { %4771 = vmatpush.bf16.msrb.mxu3 %v9464_v11  ;;  %v9470_v11 = vld [vmem:[%s12185_s1 + $0x810] sm:$0xff]  ;;  %v103_v18 = vld.sshfl [vmem:[#allocation1 + $0x20] sm:$0xff pattern:$0x73625140] }
  0xf2   :  { %4733 = vmatpush.bf16.msrb.mxu0 %v9439_v13 }
  0xf3   :  { %4746 = vmatpush.bf16.msrb.mxu1 %v9447_v14  ;;  %v9486_v14 = vld [vmem:[%s12185_s1 + $0x890] sm:$0xff] }
  0xf4   :  { %4759 = vmatpush.bf16.msrb.mxu2 %v9455_v15  ;;  %v9494_v15 = vld [vmem:[%s12185_s1 + $0x8d0] sm:$0xff] }
  0xf5   :  { %4772 = vmatpush.bf16.msrb.mxu3 %v9463_v16  ;;  %v9469_v16 = vld [vmem:[%s12185_s1 + $0x808] sm:$0xff] }
  0xf6   :  { %4734 = vmatpush.bf16.msrb.mxu0 %v9438_v22 }
  0xf7   :  { %4747 = vmatpush.bf16.msrb.mxu1 %v9446_v23  ;;  %v9468_v23 = vld [vmem:[%s12185_s1 + $0x800] sm:$0xff] }
  0xf8   :  { %4760 = vmatpush.bf16.msrb.mxu2 %v9454_v25  ;;  %v9484_v25 = vld [vmem:[%s12185_s1 + $0x880] sm:$0xff] }
  0xf9   :  { %4773 = vmatpush.bf16.msrb.mxu3 %v9462_v26  ;;  %v9492_v26 = vld [vmem:[%s12185_s1 + $0x8c0] sm:$0xff] }
  0xfa   :  { %4735 = vmatpush.bf16.msrb.mxu0 %v9437_v27  ;;  %v9507_v27 = vld [vmem:[%s12185_s1 + $0x938] sm:$0xff] }
  0xfb   :  { %4748 = vmatpush.bf16.msrb.mxu1 %v9445_v28  ;;  %v9515_v28 = vld [vmem:[%s12185_s1 + $0x978] sm:$0xff] }
  0xfc   :  { %4761 = vmatpush.bf16.msrb.mxu2 %v9453_v30  ;;  %v101_v30 = vld.sshfl [vmem:[#allocation1 + $0x10] sm:$0xff pattern:$0x73625140] }
  0xfd   :  { %4774 = vmatpush.bf16.msrb.mxu3 %v9461_v31  ;;  %v100_v31 = vld.sshfl [vmem:[#allocation1 + $0x8] sm:$0xff pattern:$0x73625140] }
  0xfe   :  { %4736 = vmatpush.bf16.msrb.mxu0 %v9436_v34  ;;  %v4530_v58 = vpop.f32.mrf.mxu0  ;;  %v9531_v34 = vld [vmem:[%s12185_s1 + $0x9f8] sm:$0xff] }
  0xff   :  { %4749 = vmatpush.bf16.msrb.mxu1 %v9444_v35  ;;  %v4531_v59 = vadd.f32 %v4530_v58, %v10665_v21  ;;  %v4543_v62 = vpop.f32.mrf.mxu1  ;;  %v233_v35 = vpack.c.bf16 %v99_v29, %v99_v29  ;;  %v9527_v58 = vld [vmem:[%s12185_s1 + $0x9d8] sm:$0xff]  ;;  %v9546_v29 = vld [vmem:[%s12185_s1 + $0xa70] sm:$0xff] }
 0x100   :  { %4762 = vmatpush.bf16.msrb.mxu2 %v9452_v36  ;;  %v235_v36 = vpack.c.bf16 %v101_v30, %v101_v30  ;;  %v9554_v30 = vld [vmem:[%s12185_s1 + $0xab0] sm:$0xff] }
 0x101   :  { %4775 = vmatpush.bf16.msrb.mxu3 %v9460_v37  ;;  %4737 = vmatmul.bf16.vlgmr.msrb.gmra.mxu0 %v229_v46  ;;  %v4544_v1 = vadd.f32 %v4543_v62, %v4531_v59  ;;  %v234_v37 = vpack.c.bf16 %v100_v31, %v100_v31  ;;  %v9529_v46 = vld [vmem:[%s12185_s1 + $0x9e8] sm:$0xff]  ;;  %v9562_v31 = vld [vmem:[%s12185_s1 + $0xaf0] sm:$0xff] }
 0x102   :  { %4781 = vmatpush.bf16.msra.mxu0 %v9475_v38  ;;  %4750 = vmatmul.bf16.vlgmr.msrb.gmra.mxu1 %v230_v48  ;;  %v236_v38 = vpack.c.bf16 %v102_v32, %v102_v32  ;;  %v9537_v32 = vld [vmem:[%s12185_s1 + $0xa28] sm:$0xff] }
 0x103   :  { %4794 = vmatpush.bf16.msra.mxu1 %v9483_v39  ;;  %4763 = vmatmul.bf16.vlgmr.msrb.gmra.mxu2 %v231_v47  ;;  %v9506_v39 = vld [vmem:[%s12185_s1 + $0x930] sm:$0xff] }
 0x104   :  { %4807 = vmatpush.bf16.msra.mxu2 %v9491_v44  ;;  %4776 = vmatmul.bf16.vlgmr.msrb.gmra.mxu3 %v232_v49  ;;  %v9513_v44 = vld [vmem:[%s12185_s1 + $0x968] sm:$0xff]  ;;  %v9504_v49 = vld [vmem:[%s12185_s1 + $0x920] sm:$0xff] }
 0x105   :  { %4820 = vmatpush.bf16.msra.mxu3 %v9499_v45  ;;  %v9521_v45 = vld [vmem:[%s12185_s1 + $0x9a8] sm:$0xff] }
 0x106   :  { %4782 = vmatpush.bf16.msra.mxu0 %v9474_v50  ;;  %v4556_v6 = vpop.f32.mrf.mxu2  ;;  %v4532_v9 = vpop.f32.mrf.mxu0  ;;  %v9512_v50 = vld [vmem:[%s12185_s1 + $0x960] sm:$0xff] }
 0x107   :  { %4795 = vmatpush.bf16.msra.mxu1 %v9482_v51  ;;  %v4557_v7 = vadd.f32 %v4556_v6, %v4544_v1  ;;  %v4569_v8 = vpop.f32.mrf.mxu3  ;;  %v4545_v13 = vpop.f32.mrf.mxu1  ;;  %v9510_v1 = vld [vmem:[%s12185_s1 + $0x950] sm:$0xff]  ;;  %v9509_v6 = vld [vmem:[%s12185_s1 + $0x948] sm:$0xff] }
 0x108   :  { %4808 = vmatpush.bf16.msra.mxu2 %v9490_v52  ;;  %v9520_v52 = vld [vmem:[%s12185_s1 + $0x9a0] sm:$0xff]  ;;  %v9525_v9 = vld [vmem:[%s12185_s1 + $0x9c8] sm:$0xff] }
 0x109   :  { %4821 = vmatpush.bf16.msra.mxu3 %v9498_v53  ;;  %v10767_v10 = vadd.f32 %v4569_v8, %v4557_v7  ;;  %v9528_v53 = vld [vmem:[%s12185_s1 + $0x9e0] sm:$0xff]  ;;  %v34_v7 = vld [vmem:[%s12184_s0 + $0x50] sm:$0xff]  ;;  %v9517_v8 = vld [vmem:[%s12185_s1 + $0x988] sm:$0xff] }
 0x10a   :  { %4783 = vmatpush.bf16.msra.mxu0 %v9473_v54  ;;  %107 = vst [vmem:[#allocation1] ss:$4 sm:$0xff] %v34_v7  ;;  %v9508_v13 = vld [vmem:[%s12185_s1 + $0x940] sm:$0xff] }
 0x10b   :  { %4796 = vmatpush.bf16.msra.mxu1 %v9481_v55  ;;  %v9503_v55 = vld [vmem:[%s12185_s1 + $0x918] sm:$0xff] }
 0x10c   :  { %4809 = vmatpush.bf16.msra.mxu2 %v9489_v56  ;;  %v9511_v56 = vld [vmem:[%s12185_s1 + $0x958] sm:$0xff] }
 0x10d   :  { %4822 = vmatpush.bf16.msra.mxu3 %v9497_v57  ;;  %v9519_v57 = vld [vmem:[%s12185_s1 + $0x998] sm:$0xff] }
 0x10e   :  { %4784 = vmatpush.bf16.msra.mxu0 %v9472_v60  ;;  %v4558_v21 = vpop.f32.mrf.mxu2 }
 0x10f   :  { %4797 = vmatpush.bf16.msra.mxu1 %v9480_v61  ;;  %v4571_v22 = vpop.f32.mrf.mxu3  ;;  %v106_v21 = vld.sshfl [vmem:[#allocation1 + $0x38] sm:$0xff pattern:$0x73625140] }
 0x110   :  { %4810 = vmatpush.bf16.msra.mxu2 %v9488_v63  ;;  %v9555_v22 = vld [vmem:[%s12185_s1 + $0xab8] sm:$0xff] }
 0x111   :  { %4823 = vmatpush.bf16.msra.mxu3 %v9496_v0  ;;  %v9502_v0 = vld [vmem:[%s12185_s1 + $0x910] sm:$0xff]  ;;  %v109_v7 = vld.sshfl [vmem:[#allocation1] sm:$0xff pattern:$0x73625140] }
 0x112   :  { %4785 = vmatpush.bf16.msra.mxu0 %v9471_v2 }
 0x113   :  { %4798 = vmatpush.bf16.msra.mxu1 %v9479_v3  ;;  %v9518_v3 = vld [vmem:[%s12185_s1 + $0x990] sm:$0xff] }
 0x114   :  { %4811 = vmatpush.bf16.msra.mxu2 %v9487_v4  ;;  %v9526_v4 = vld [vmem:[%s12185_s1 + $0x9d0] sm:$0xff] }
 0x115   :  { %4824 = vmatpush.bf16.msra.mxu3 %v9495_v5  ;;  %v9501_v5 = vld [vmem:[%s12185_s1 + $0x908] sm:$0xff] }
 0x116   :  { %4786 = vmatpush.bf16.msra.mxu0 %v9470_v11 }
 0x117   :  { %4799 = vmatpush.bf16.msra.mxu1 %v9478_v12  ;;  %v9500_v12 = vld [vmem:[%s12185_s1 + $0x900] sm:$0xff] }
 0x118   :  { %4812 = vmatpush.bf16.msra.mxu2 %v9486_v14  ;;  %v9516_v14 = vld [vmem:[%s12185_s1 + $0x980] sm:$0xff] }
 0x119   :  { %4825 = vmatpush.bf16.msra.mxu3 %v9494_v15  ;;  %v9524_v15 = vld [vmem:[%s12185_s1 + $0x9c0] sm:$0xff] }
 0x11a   :  { %4787 = vmatpush.bf16.msra.mxu0 %v9469_v16  ;;  %v9539_v16 = vld [vmem:[%s12185_s1 + $0xa38] sm:$0xff] }
 0x11b   :  { %4800 = vmatpush.bf16.msra.mxu1 %v9477_v17  ;;  %v9547_v17 = vld [vmem:[%s12185_s1 + $0xa78] sm:$0xff] }
 0x11c   :  { %4813 = vmatpush.bf16.msra.mxu2 %v9485_v19  ;;  %v105_v19 = vld.sshfl [vmem:[#allocation1 + $0x30] sm:$0xff pattern:$0x73625140] }
 0x11d   :  { %4826 = vmatpush.bf16.msra.mxu3 %v9493_v20  ;;  %v104_v20 = vld.sshfl [vmem:[#allocation1 + $0x28] sm:$0xff pattern:$0x73625140] }
 0x11e   :  { %4788 = vmatpush.bf16.msra.mxu0 %v9468_v23  ;;  %v4582_v47 = vpop.f32.mrf.mxu0  ;;  %v9563_v23 = vld [vmem:[%s12185_s1 + $0xaf8] sm:$0xff] }
 0x11f   :  { %4801 = vmatpush.bf16.msra.mxu1 %v9476_v24  ;;  %v4583_v48 = vadd.f32 %v4582_v47, %v10767_v10  ;;  %v4595_v51 = vpop.f32.mrf.mxu1  ;;  %v237_v24 = vpack.c.bf16 %v103_v18, %v103_v18  ;;  %v9559_v47 = vld [vmem:[%s12185_s1 + $0xad8] sm:$0xff]  ;;  %v9578_v18 = vld [vmem:[%s12185_s1 + $0xb70] sm:$0xff] }
 0x120   :  { %4814 = vmatpush.bf16.msra.mxu2 %v9484_v25  ;;  %v239_v25 = vpack.c.bf16 %v105_v19, %v105_v19  ;;  %v9586_v19 = vld [vmem:[%s12185_s1 + $0xbb0] sm:$0xff] }
 0x121   :  { %4827 = vmatpush.bf16.msra.mxu3 %v9492_v26  ;;  %4789 = vmatmul.bf16.vlgmr.msra.gmra.mxu0 %v233_v35  ;;  %v4596_v54 = vadd.f32 %v4595_v51, %v4583_v48  ;;  %v238_v26 = vpack.c.bf16 %v104_v20, %v104_v20  ;;  %v9561_v35 = vld [vmem:[%s12185_s1 + $0xae8] sm:$0xff]  ;;  %v9594_v20 = vld [vmem:[%s12185_s1 + $0xbf0] sm:$0xff] }
 0x122   :  { %4833 = vmatpush.bf16.msrb.mxu0 %v9507_v27  ;;  %4802 = vmatmul.bf16.vlgmr.msra.gmra.mxu1 %v234_v37  ;;  %v240_v27 = vpack.c.bf16 %v106_v21, %v106_v21  ;;  %v9569_v21 = vld [vmem:[%s12185_s1 + $0xb28] sm:$0xff] }
 0x123   :  { %4846 = vmatpush.bf16.msrb.mxu1 %v9515_v28  ;;  %4815 = vmatmul.bf16.vlgmr.msra.gmra.mxu2 %v235_v36  ;;  %v9538_v28 = vld [vmem:[%s12185_s1 + $0xa30] sm:$0xff] }
 0x124   :  { %4859 = vmatpush.bf16.msrb.mxu2 %v9523_v33  ;;  %4828 = vmatmul.bf16.vlgmr.msra.gmra.mxu3 %v236_v38  ;;  %v9545_v33 = vld [vmem:[%s12185_s1 + $0xa68] sm:$0xff]  ;;  %v9536_v38 = vld [vmem:[%s12185_s1 + $0xa20] sm:$0xff] }
 0x125   :  { %4872 = vmatpush.bf16.msrb.mxu3 %v9531_v34  ;;  %v9553_v34 = vld [vmem:[%s12185_s1 + $0xaa8] sm:$0xff] }
 0x126   :  { %4834 = vmatpush.bf16.msrb.mxu0 %v9506_v39  ;;  %v4608_v59 = vpop.f32.mrf.mxu2  ;;  %v4584_v62 = vpop.f32.mrf.mxu0  ;;  %v9544_v39 = vld [vmem:[%s12185_s1 + $0xa60] sm:$0xff] }
 0x127   :  { %4847 = vmatpush.bf16.msrb.mxu1 %v9514_v40  ;;  %v4609_v60 = vadd.f32 %v4608_v59, %v4596_v54  ;;  %v4621_v61 = vpop.f32.mrf.mxu3  ;;  %v4597_v2 = vpop.f32.mrf.mxu1  ;;  %v9542_v54 = vld [vmem:[%s12185_s1 + $0xa50] sm:$0xff]  ;;  %v9541_v59 = vld [vmem:[%s12185_s1 + $0xa48] sm:$0xff] }
 0x128   :  { %4860 = vmatpush.bf16.msrb.mxu2 %v9522_v41  ;;  %v9552_v41 = vld [vmem:[%s12185_s1 + $0xaa0] sm:$0xff]  ;;  %v9557_v62 = vld [vmem:[%s12185_s1 + $0xac8] sm:$0xff] }
 0x129   :  { %4873 = vmatpush.bf16.msrb.mxu3 %v9530_v42  ;;  %v10869_v63 = vadd.f32 %v4621_v61, %v4609_v60  ;;  %v9560_v42 = vld [vmem:[%s12185_s1 + $0xae0] sm:$0xff]  ;;  %v35_v60 = vld [vmem:[%s12184_s0 + $0x58] sm:$0xff]  ;;  %v9549_v61 = vld [vmem:[%s12185_s1 + $0xa88] sm:$0xff] }
 0x12a   :  { %4835 = vmatpush.bf16.msrb.mxu0 %v9505_v43  ;;  %108 = vst [vmem:[#allocation1 + $0x20] ss:$4 sm:$0xff] %v35_v60  ;;  %v9540_v2 = vld [vmem:[%s12185_s1 + $0xa40] sm:$0xff] }
 0x12b   :  { %4848 = vmatpush.bf16.msrb.mxu1 %v9513_v44  ;;  %v9535_v44 = vld [vmem:[%s12185_s1 + $0xa18] sm:$0xff] }
 0x12c   :  { %4861 = vmatpush.bf16.msrb.mxu2 %v9521_v45  ;;  %v9543_v45 = vld [vmem:[%s12185_s1 + $0xa58] sm:$0xff] }
 0x12d   :  { %4874 = vmatpush.bf16.msrb.mxu3 %v9529_v46  ;;  %v9551_v46 = vld [vmem:[%s12185_s1 + $0xa98] sm:$0xff] }
 0x12e   :  { %4836 = vmatpush.bf16.msrb.mxu0 %v9504_v49  ;;  %v4610_v10 = vpop.f32.mrf.mxu2 }
 0x12f   :  { %4849 = vmatpush.bf16.msrb.mxu1 %v9512_v50  ;;  %v4623_v11 = vpop.f32.mrf.mxu3  ;;  %v112_v10 = vld.sshfl [vmem:[#allocation1 + $0x18] sm:$0xff pattern:$0x73625140] }
 0x130   :  { %4862 = vmatpush.bf16.msrb.mxu2 %v9520_v52  ;;  %v9587_v11 = vld [vmem:[%s12185_s1 + $0xbb8] sm:$0xff] }
 0x131   :  { %4875 = vmatpush.bf16.msrb.mxu3 %v9528_v53  ;;  %v9534_v53 = vld [vmem:[%s12185_s1 + $0xa10] sm:$0xff]  ;;  %v113_v60 = vld.sshfl [vmem:[#allocation1 + $0x20] sm:$0xff pattern:$0x73625140] }
 0x132   :  { %4837 = vmatpush.bf16.msrb.mxu0 %v9503_v55 }
 0x133   :  { %4850 = vmatpush.bf16.msrb.mxu1 %v9511_v56  ;;  %v9550_v56 = vld [vmem:[%s12185_s1 + $0xa90] sm:$0xff] }
 0x134   :  { %4863 = vmatpush.bf16.msrb.mxu2 %v9519_v57  ;;  %v9558_v57 = vld [vmem:[%s12185_s1 + $0xad0] sm:$0xff] }
 0x135   :  { %4876 = vmatpush.bf16.msrb.mxu3 %v9527_v58  ;;  %v9533_v58 = vld [vmem:[%s12185_s1 + $0xa08] sm:$0xff] }
 0x136   :  { %4838 = vmatpush.bf16.msrb.mxu0 %v9502_v0 }
 0x137   :  { %4851 = vmatpush.bf16.msrb.mxu1 %v9510_v1  ;;  %v9532_v1 = vld [vmem:[%s12185_s1 + $0xa00] sm:$0xff] }
 0x138   :  { %4864 = vmatpush.bf16.msrb.mxu2 %v9518_v3  ;;  %v9548_v3 = vld [vmem:[%s12185_s1 + $0xa80] sm:$0xff] }
 0x139   :  { %4877 = vmatpush.bf16.msrb.mxu3 %v9526_v4  ;;  %v9556_v4 = vld [vmem:[%s12185_s1 + $0xac0] sm:$0xff] }
 0x13a   :  { %4839 = vmatpush.bf16.msrb.mxu0 %v9501_v5  ;;  %v9571_v5 = vld [vmem:[%s12185_s1 + $0xb38] sm:$0xff] }
 0x13b   :  { %4852 = vmatpush.bf16.msrb.mxu1 %v9509_v6  ;;  %v9579_v6 = vld [vmem:[%s12185_s1 + $0xb78] sm:$0xff] }
 0x13c   :  { %4865 = vmatpush.bf16.msrb.mxu2 %v9517_v8  ;;  %v111_v8 = vld.sshfl [vmem:[#allocation1 + $0x10] sm:$0xff pattern:$0x73625140] }
 0x13d   :  { %4878 = vmatpush.bf16.msrb.mxu3 %v9525_v9  ;;  %v110_v9 = vld.sshfl [vmem:[#allocation1 + $0x8] sm:$0xff pattern:$0x73625140] }
 0x13e   :  { %4840 = vmatpush.bf16.msrb.mxu0 %v9500_v12  ;;  %v4634_v36 = vpop.f32.mrf.mxu0  ;;  %v9595_v12 = vld [vmem:[%s12185_s1 + $0xbf8] sm:$0xff] }
 0x13f   :  { %4853 = vmatpush.bf16.msrb.mxu1 %v9508_v13  ;;  %v4635_v37 = vadd.f32 %v4634_v36, %v10869_v63  ;;  %v4647_v40 = vpop.f32.mrf.mxu1  ;;  %v241_v13 = vpack.c.bf16 %v109_v7, %v109_v7  ;;  %v9591_v36 = vld [vmem:[%s12185_s1 + $0xbd8] sm:$0xff]  ;;  %v9610_v7 = vld [vmem:[%s12185_s1 + $0xc70] sm:$0xff] }
 0x140   :  { %4866 = vmatpush.bf16.msrb.mxu2 %v9516_v14  ;;  %v243_v14 = vpack.c.bf16 %v111_v8, %v111_v8  ;;  %v9618_v8 = vld [vmem:[%s12185_s1 + $0xcb0] sm:$0xff] }
 0x141   :  { %4879 = vmatpush.bf16.msrb.mxu3 %v9524_v15  ;;  %4841 = vmatmul.bf16.vlgmr.msrb.gmra.mxu0 %v237_v24  ;;  %v4648_v43 = vadd.f32 %v4647_v40, %v4635_v37  ;;  %v242_v15 = vpack.c.bf16 %v110_v9, %v110_v9  ;;  %v9593_v24 = vld [vmem:[%s12185_s1 + $0xbe8] sm:$0xff]  ;;  %v9626_v9 = vld [vmem:[%s12185_s1 + $0xcf0] sm:$0xff] }
 0x142   :  { %4885 = vmatpush.bf16.msra.mxu0 %v9539_v16  ;;  %4854 = vmatmul.bf16.vlgmr.msrb.gmra.mxu1 %v238_v26  ;;  %v244_v16 = vpack.c.bf16 %v112_v10, %v112_v10  ;;  %v9601_v10 = vld [vmem:[%s12185_s1 + $0xc28] sm:$0xff] }
 0x143   :  { %4898 = vmatpush.bf16.msra.mxu1 %v9547_v17  ;;  %4867 = vmatmul.bf16.vlgmr.msrb.gmra.mxu2 %v239_v25  ;;  %v9570_v17 = vld [vmem:[%s12185_s1 + $0xb30] sm:$0xff] }
 0x144   :  { %4911 = vmatpush.bf16.msra.mxu2 %v9555_v22  ;;  %4880 = vmatmul.bf16.vlgmr.msrb.gmra.mxu3 %v240_v27  ;;  %v9577_v22 = vld [vmem:[%s12185_s1 + $0xb68] sm:$0xff]  ;;  %v9568_v27 = vld [vmem:[%s12185_s1 + $0xb20] sm:$0xff] }
 0x145   :  { %4924 = vmatpush.bf16.msra.mxu3 %v9563_v23  ;;  %v9585_v23 = vld [vmem:[%s12185_s1 + $0xba8] sm:$0xff] }
 0x146   :  { %4886 = vmatpush.bf16.msra.mxu0 %v9538_v28  ;;  %v4660_v48 = vpop.f32.mrf.mxu2  ;;  %v4636_v51 = vpop.f32.mrf.mxu0  ;;  %v9576_v28 = vld [vmem:[%s12185_s1 + $0xb60] sm:$0xff] }
 0x147   :  { %4899 = vmatpush.bf16.msra.mxu1 %v9546_v29  ;;  %v4661_v49 = vadd.f32 %v4660_v48, %v4648_v43  ;;  %v4673_v50 = vpop.f32.mrf.mxu3  ;;  %v4649_v55 = vpop.f32.mrf.mxu1  ;;  %v9574_v43 = vld [vmem:[%s12185_s1 + $0xb50] sm:$0xff]  ;;  %v9573_v48 = vld [vmem:[%s12185_s1 + $0xb48] sm:$0xff] }
 0x148   :  { %4912 = vmatpush.bf16.msra.mxu2 %v9554_v30  ;;  %v9584_v30 = vld [vmem:[%s12185_s1 + $0xba0] sm:$0xff]  ;;  %v9589_v51 = vld [vmem:[%s12185_s1 + $0xbc8] sm:$0xff] }
 0x149   :  { %4925 = vmatpush.bf16.msra.mxu3 %v9562_v31  ;;  %v10971_v52 = vadd.f32 %v4673_v50, %v4661_v49  ;;  %v9592_v31 = vld [vmem:[%s12185_s1 + $0xbe0] sm:$0xff]  ;;  %v9581_v50 = vld [vmem:[%s12185_s1 + $0xb88] sm:$0xff] }
 0x14a   :  { %4887 = vmatpush.bf16.msra.mxu0 %v9537_v32  ;;  %v36_v49 = vld [vmem:[%s12184_s0 + $0x60] sm:$0xff] }
 0x14b   :  { %4900 = vmatpush.bf16.msra.mxu1 %v9545_v33  ;;  %v9567_v33 = vld [vmem:[%s12185_s1 + $0xb18] sm:$0xff]  ;;  %117 = vst [vmem:[#allocation1] ss:$4 sm:$0xff] %v36_v49  ;;  %v9572_v55 = vld [vmem:[%s12185_s1 + $0xb40] sm:$0xff] }
 0x14c   :  { %4913 = vmatpush.bf16.msra.mxu2 %v9553_v34  ;;  %v9575_v34 = vld [vmem:[%s12185_s1 + $0xb58] sm:$0xff] }
 0x14d   :  { %4926 = vmatpush.bf16.msra.mxu3 %v9561_v35  ;;  %v9583_v35 = vld [vmem:[%s12185_s1 + $0xb98] sm:$0xff] }
 0x14e   :  { %4888 = vmatpush.bf16.msra.mxu0 %v9536_v38  ;;  %v4662_v63 = vpop.f32.mrf.mxu2 }
 0x14f   :  { %4901 = vmatpush.bf16.msra.mxu1 %v9544_v39  ;;  %v4675_v0 = vpop.f32.mrf.mxu3  ;;  %v116_v63 = vld.sshfl [vmem:[#allocation1 + $0x38] sm:$0xff pattern:$0x73625140] }
 0x150   :  { %4914 = vmatpush.bf16.msra.mxu2 %v9552_v41  ;;  %v9619_v0 = vld [vmem:[%s12185_s1 + $0xcb8] sm:$0xff] }
 0x151   :  { %4927 = vmatpush.bf16.msra.mxu3 %v9560_v42  ;;  %v9566_v42 = vld [vmem:[%s12185_s1 + $0xb10] sm:$0xff] }
 0x152   :  { %4889 = vmatpush.bf16.msra.mxu0 %v9535_v44  ;;  %v119_v49 = vld.sshfl [vmem:[#allocation1] sm:$0xff pattern:$0x73625140] }
 0x153   :  { %4902 = vmatpush.bf16.msra.mxu1 %v9543_v45  ;;  %v9582_v45 = vld [vmem:[%s12185_s1 + $0xb90] sm:$0xff] }
 0x154   :  { %4915 = vmatpush.bf16.msra.mxu2 %v9551_v46  ;;  %v9590_v46 = vld [vmem:[%s12185_s1 + $0xbd0] sm:$0xff] }
 0x155   :  { %4928 = vmatpush.bf16.msra.mxu3 %v9559_v47  ;;  %v9565_v47 = vld [vmem:[%s12185_s1 + $0xb08] sm:$0xff] }
 0x156   :  { %4890 = vmatpush.bf16.msra.mxu0 %v9534_v53 }
 0x157   :  { %4903 = vmatpush.bf16.msra.mxu1 %v9542_v54  ;;  %v9564_v54 = vld [vmem:[%s12185_s1 + $0xb00] sm:$0xff] }
 0x158   :  { %4916 = vmatpush.bf16.msra.mxu2 %v9550_v56  ;;  %v9580_v56 = vld [vmem:[%s12185_s1 + $0xb80] sm:$0xff] }
 0x159   :  { %4929 = vmatpush.bf16.msra.mxu3 %v9558_v57  ;;  %v9588_v57 = vld [vmem:[%s12185_s1 + $0xbc0] sm:$0xff] }
 0x15a   :  { %4891 = vmatpush.bf16.msra.mxu0 %v9533_v58  ;;  %v9603_v58 = vld [vmem:[%s12185_s1 + $0xc38] sm:$0xff] }
 0x15b   :  { %4904 = vmatpush.bf16.msra.mxu1 %v9541_v59  ;;  %v9611_v59 = vld [vmem:[%s12185_s1 + $0xc78] sm:$0xff] }
 0x15c   :  { %4917 = vmatpush.bf16.msra.mxu2 %v9549_v61  ;;  %v115_v61 = vld.sshfl [vmem:[#allocation1 + $0x30] sm:$0xff pattern:$0x73625140] }
 0x15d   :  { %4930 = vmatpush.bf16.msra.mxu3 %v9557_v62  ;;  %v114_v62 = vld.sshfl [vmem:[#allocation1 + $0x28] sm:$0xff pattern:$0x73625140] }
 0x15e   :  { %4892 = vmatpush.bf16.msra.mxu0 %v9532_v1  ;;  %v4686_v25 = vpop.f32.mrf.mxu0  ;;  %v9627_v1 = vld [vmem:[%s12185_s1 + $0xcf8] sm:$0xff] }
 0x15f   :  { %4905 = vmatpush.bf16.msra.mxu1 %v9540_v2  ;;  %v4687_v26 = vadd.f32 %v4686_v25, %v10971_v52  ;;  %v4699_v29 = vpop.f32.mrf.mxu1  ;;  %v245_v2 = vpack.c.bf16 %v113_v60, %v113_v60  ;;  %v9623_v25 = vld [vmem:[%s12185_s1 + $0xcd8] sm:$0xff]  ;;  %v9642_v60 = vld [vmem:[%s12185_s1 + $0xd70] sm:$0xff] }
 0x160   :  { %4918 = vmatpush.bf16.msra.mxu2 %v9548_v3  ;;  %v247_v3 = vpack.c.bf16 %v115_v61, %v115_v61  ;;  %v9650_v61 = vld [vmem:[%s12185_s1 + $0xdb0] sm:$0xff] }
 0x161   :  { %4931 = vmatpush.bf16.msra.mxu3 %v9556_v4  ;;  %4893 = vmatmul.bf16.vlgmr.msra.gmra.mxu0 %v241_v13  ;;  %v4700_v32 = vadd.f32 %v4699_v29, %v4687_v26  ;;  %v246_v4 = vpack.c.bf16 %v114_v62, %v114_v62  ;;  %v9625_v13 = vld [vmem:[%s12185_s1 + $0xce8] sm:$0xff]  ;;  %v9658_v62 = vld [vmem:[%s12185_s1 + $0xdf0] sm:$0xff] }
 0x162   :  { %4937 = vmatpush.bf16.msrb.mxu0 %v9571_v5  ;;  %4906 = vmatmul.bf16.vlgmr.msra.gmra.mxu1 %v242_v15  ;;  %v248_v5 = vpack.c.bf16 %v116_v63, %v116_v63  ;;  %v9633_v63 = vld [vmem:[%s12185_s1 + $0xd28] sm:$0xff] }
 0x163   :  { %4950 = vmatpush.bf16.msrb.mxu1 %v9579_v6  ;;  %4919 = vmatmul.bf16.vlgmr.msra.gmra.mxu2 %v243_v14  ;;  %v9602_v6 = vld [vmem:[%s12185_s1 + $0xc30] sm:$0xff] }
 0x164   :  { %4963 = vmatpush.bf16.msrb.mxu2 %v9587_v11  ;;  %4932 = vmatmul.bf16.vlgmr.msra.gmra.mxu3 %v244_v16  ;;  %v9609_v11 = vld [vmem:[%s12185_s1 + $0xc68] sm:$0xff]  ;;  %v9600_v16 = vld [vmem:[%s12185_s1 + $0xc20] sm:$0xff] }
 0x165   :  { %4976 = vmatpush.bf16.msrb.mxu3 %v9595_v12  ;;  %v9617_v12 = vld [vmem:[%s12185_s1 + $0xca8] sm:$0xff] }
 0x166   :  { %4938 = vmatpush.bf16.msrb.mxu0 %v9570_v17  ;;  %v4712_v37 = vpop.f32.mrf.mxu2  ;;  %v4688_v40 = vpop.f32.mrf.mxu0  ;;  %v9608_v17 = vld [vmem:[%s12185_s1 + $0xc60] sm:$0xff] }
 0x167   :  { %4951 = vmatpush.bf16.msrb.mxu1 %v9578_v18  ;;  %v4713_v38 = vadd.f32 %v4712_v37, %v4700_v32  ;;  %v4725_v39 = vpop.f32.mrf.mxu3  ;;  %v4701_v44 = vpop.f32.mrf.mxu1  ;;  %v9606_v32 = vld [vmem:[%s12185_s1 + $0xc50] sm:$0xff]  ;;  %v9605_v37 = vld [vmem:[%s12185_s1 + $0xc48] sm:$0xff] }
 0x168   :  { %4964 = vmatpush.bf16.msrb.mxu2 %v9586_v19  ;;  %v9616_v19 = vld [vmem:[%s12185_s1 + $0xca0] sm:$0xff]  ;;  %v9621_v40 = vld [vmem:[%s12185_s1 + $0xcc8] sm:$0xff] }
 0x169   :  { %4977 = vmatpush.bf16.msrb.mxu3 %v9594_v20  ;;  %v11073_v41 = vadd.f32 %v4725_v39, %v4713_v38  ;;  %v9624_v20 = vld [vmem:[%s12185_s1 + $0xce0] sm:$0xff]  ;;  %v37_v38 = vld [vmem:[%s12184_s0 + $0x68] sm:$0xff] }
 0x16a   :  { %4939 = vmatpush.bf16.msrb.mxu0 %v9569_v21  ;;  %v9613_v39 = vld [vmem:[%s12185_s1 + $0xc88] sm:$0xff]  ;;  %118 = vst [vmem:[#allocation1 + $0x20] ss:$4 sm:$0xff] %v37_v38  ;;  %v9604_v44 = vld [vmem:[%s12185_s1 + $0xc40] sm:$0xff] }
 0x16b   :  { %4952 = vmatpush.bf16.msrb.mxu1 %v9577_v22  ;;  %v9599_v22 = vld [vmem:[%s12185_s1 + $0xc18] sm:$0xff] }
 0x16c   :  { %4965 = vmatpush.bf16.msrb.mxu2 %v9585_v23  ;;  %v9607_v23 = vld [vmem:[%s12185_s1 + $0xc58] sm:$0xff] }
 0x16d   :  { %4978 = vmatpush.bf16.msrb.mxu3 %v9593_v24  ;;  %v9615_v24 = vld [vmem:[%s12185_s1 + $0xc98] sm:$0xff] }
 0x16e   :  { %4940 = vmatpush.bf16.msrb.mxu0 %v9568_v27  ;;  %v4714_v52 = vpop.f32.mrf.mxu2 }
 0x16f   :  { %4953 = vmatpush.bf16.msrb.mxu1 %v9576_v28  ;;  %v4727_v53 = vpop.f32.mrf.mxu3  ;;  %v122_v52 = vld.sshfl [vmem:[#allocation1 + $0x18] sm:$0xff pattern:$0x73625140] }
 0x170   :  { %4966 = vmatpush.bf16.msrb.mxu2 %v9584_v30  ;;  %v9651_v53 = vld [vmem:[%s12185_s1 + $0xdb8] sm:$0xff] }
 0x171   :  { %4979 = vmatpush.bf16.msrb.mxu3 %v9592_v31  ;;  %v9598_v31 = vld [vmem:[%s12185_s1 + $0xc10] sm:$0xff]  ;;  %v123_v38 = vld.sshfl [vmem:[#allocation1 + $0x20] sm:$0xff pattern:$0x73625140] }
 0x172   :  { %4941 = vmatpush.bf16.msrb.mxu0 %v9567_v33 }
 0x173   :  { %4954 = vmatpush.bf16.msrb.mxu1 %v9575_v34  ;;  %v9614_v34 = vld [vmem:[%s12185_s1 + $0xc90] sm:$0xff] }
 0x174   :  { %4967 = vmatpush.bf16.msrb.mxu2 %v9583_v35  ;;  %v9622_v35 = vld [vmem:[%s12185_s1 + $0xcd0] sm:$0xff] }
 0x175   :  { %4980 = vmatpush.bf16.msrb.mxu3 %v9591_v36  ;;  %v9597_v36 = vld [vmem:[%s12185_s1 + $0xc08] sm:$0xff] }
 0x176   :  { %4942 = vmatpush.bf16.msrb.mxu0 %v9566_v42 }
 0x177   :  { %4955 = vmatpush.bf16.msrb.mxu1 %v9574_v43  ;;  %v9596_v43 = vld [vmem:[%s12185_s1 + $0xc00] sm:$0xff] }
 0x178   :  { %4968 = vmatpush.bf16.msrb.mxu2 %v9582_v45  ;;  %v9612_v45 = vld [vmem:[%s12185_s1 + $0xc80] sm:$0xff] }
 0x179   :  { %4981 = vmatpush.bf16.msrb.mxu3 %v9590_v46  ;;  %v9620_v46 = vld [vmem:[%s12185_s1 + $0xcc0] sm:$0xff] }
 0x17a   :  { %4943 = vmatpush.bf16.msrb.mxu0 %v9565_v47  ;;  %v9635_v47 = vld [vmem:[%s12185_s1 + $0xd38] sm:$0xff] }
 0x17b   :  { %4956 = vmatpush.bf16.msrb.mxu1 %v9573_v48  ;;  %v9643_v48 = vld [vmem:[%s12185_s1 + $0xd78] sm:$0xff] }
 0x17c   :  { %4969 = vmatpush.bf16.msrb.mxu2 %v9581_v50  ;;  %v121_v50 = vld.sshfl [vmem:[#allocation1 + $0x10] sm:$0xff pattern:$0x73625140] }
 0x17d   :  { %4982 = vmatpush.bf16.msrb.mxu3 %v9589_v51  ;;  %v120_v51 = vld.sshfl [vmem:[#allocation1 + $0x8] sm:$0xff pattern:$0x73625140] }
 0x17e   :  { %4944 = vmatpush.bf16.msrb.mxu0 %v9564_v54  ;;  %v4738_v14 = vpop.f32.mrf.mxu0  ;;  %v9659_v54 = vld [vmem:[%s12185_s1 + $0xdf8] sm:$0xff] }
 0x17f   :  { %4957 = vmatpush.bf16.msrb.mxu1 %v9572_v55  ;;  %v4739_v15 = vadd.f32 %v4738_v14, %v11073_v41  ;;  %v4751_v18 = vpop.f32.mrf.mxu1  ;;  %v249_v55 = vpack.c.bf16 %v119_v49, %v119_v49  ;;  %v9655_v14 = vld [vmem:[%s12185_s1 + $0xdd8] sm:$0xff]  ;;  %v9674_v49 = vld [vmem:[%s12185_s1 + $0xe70] sm:$0xff] }
 0x180   :  { %4970 = vmatpush.bf16.msrb.mxu2 %v9580_v56  ;;  %v251_v56 = vpack.c.bf16 %v121_v50, %v121_v50  ;;  %v9682_v50 = vld [vmem:[%s12185_s1 + $0xeb0] sm:$0xff] }
 0x181   :  { %4983 = vmatpush.bf16.msrb.mxu3 %v9588_v57  ;;  %4945 = vmatmul.bf16.vlgmr.msrb.gmra.mxu0 %v245_v2  ;;  %v4752_v21 = vadd.f32 %v4751_v18, %v4739_v15  ;;  %v250_v57 = vpack.c.bf16 %v120_v51, %v120_v51  ;;  %v9657_v2 = vld [vmem:[%s12185_s1 + $0xde8] sm:$0xff]  ;;  %v9690_v51 = vld [vmem:[%s12185_s1 + $0xef0] sm:$0xff] }
 0x182   :  { %4989 = vmatpush.bf16.msra.mxu0 %v9603_v58  ;;  %4958 = vmatmul.bf16.vlgmr.msrb.gmra.mxu1 %v246_v4  ;;  %v252_v58 = vpack.c.bf16 %v122_v52, %v122_v52  ;;  %v9665_v52 = vld [vmem:[%s12185_s1 + $0xe28] sm:$0xff] }
 0x183   :  { %5002 = vmatpush.bf16.msra.mxu1 %v9611_v59  ;;  %4971 = vmatmul.bf16.vlgmr.msrb.gmra.mxu2 %v247_v3  ;;  %v9634_v59 = vld [vmem:[%s12185_s1 + $0xd30] sm:$0xff] }
 0x184   :  { %5015 = vmatpush.bf16.msra.mxu2 %v9619_v0  ;;  %4984 = vmatmul.bf16.vlgmr.msrb.gmra.mxu3 %v248_v5  ;;  %v9641_v0 = vld [vmem:[%s12185_s1 + $0xd68] sm:$0xff]  ;;  %v9632_v5 = vld [vmem:[%s12185_s1 + $0xd20] sm:$0xff] }
 0x185   :  { %5028 = vmatpush.bf16.msra.mxu3 %v9627_v1  ;;  %v9649_v1 = vld [vmem:[%s12185_s1 + $0xda8] sm:$0xff] }
 0x186   :  { %4990 = vmatpush.bf16.msra.mxu0 %v9602_v6  ;;  %v4764_v26 = vpop.f32.mrf.mxu2  ;;  %v4740_v29 = vpop.f32.mrf.mxu0  ;;  %v9640_v6 = vld [vmem:[%s12185_s1 + $0xd60] sm:$0xff] }
 0x187   :  { %5003 = vmatpush.bf16.msra.mxu1 %v9610_v7  ;;  %v4765_v27 = vadd.f32 %v4764_v26, %v4752_v21  ;;  %v4777_v28 = vpop.f32.mrf.mxu3  ;;  %v4753_v33 = vpop.f32.mrf.mxu1  ;;  %v9638_v21 = vld [vmem:[%s12185_s1 + $0xd50] sm:$0xff]  ;;  %v9637_v26 = vld [vmem:[%s12185_s1 + $0xd48] sm:$0xff] }
 0x188   :  { %5016 = vmatpush.bf16.msra.mxu2 %v9618_v8  ;;  %v9648_v8 = vld [vmem:[%s12185_s1 + $0xda0] sm:$0xff]  ;;  %v9653_v29 = vld [vmem:[%s12185_s1 + $0xdc8] sm:$0xff] }
 0x189   :  { %5029 = vmatpush.bf16.msra.mxu3 %v9626_v9  ;;  %v11175_v30 = vadd.f32 %v4777_v28, %v4765_v27  ;;  %v9656_v9 = vld [vmem:[%s12185_s1 + $0xde0] sm:$0xff]  ;;  %v38_v27 = vld [vmem:[%s12184_s0 + $0x70] sm:$0xff]  ;;  %v9645_v28 = vld [vmem:[%s12185_s1 + $0xd88] sm:$0xff] }
 0x18a   :  { %4991 = vmatpush.bf16.msra.mxu0 %v9601_v10  ;;  %127 = vst [vmem:[#allocation1] ss:$4 sm:$0xff] %v38_v27  ;;  %v9636_v33 = vld [vmem:[%s12185_s1 + $0xd40] sm:$0xff] }
 0x18b   :  { %5004 = vmatpush.bf16.msra.mxu1 %v9609_v11  ;;  %v9631_v11 = vld [vmem:[%s12185_s1 + $0xd18] sm:$0xff] }
 0x18c   :  { %5017 = vmatpush.bf16.msra.mxu2 %v9617_v12  ;;  %v9639_v12 = vld [vmem:[%s12185_s1 + $0xd58] sm:$0xff] }
 0x18d   :  { %5030 = vmatpush.bf16.msra.mxu3 %v9625_v13  ;;  %v9647_v13 = vld [vmem:[%s12185_s1 + $0xd98] sm:$0xff] }
 0x18e   :  { %4992 = vmatpush.bf16.msra.mxu0 %v9600_v16  ;;  %v4766_v41 = vpop.f32.mrf.mxu2 }
 0x18f   :  { %5005 = vmatpush.bf16.msra.mxu1 %v9608_v17  ;;  %v4779_v42 = vpop.f32.mrf.mxu3  ;;  %v126_v41 = vld.sshfl [vmem:[#allocation1 + $0x38] sm:$0xff pattern:$0x73625140] }
 0x190   :  { %5018 = vmatpush.bf16.msra.mxu2 %v9616_v19  ;;  %v9683_v42 = vld [vmem:[%s12185_s1 + $0xeb8] sm:$0xff] }
 0x191   :  { %5031 = vmatpush.bf16.msra.mxu3 %v9624_v20  ;;  %v9630_v20 = vld [vmem:[%s12185_s1 + $0xd10] sm:$0xff]  ;;  %v129_v27 = vld.sshfl [vmem:[#allocation1] sm:$0xff pattern:$0x73625140] }
 0x192   :  { %4993 = vmatpush.bf16.msra.mxu0 %v9599_v22 }
 0x193   :  { %5006 = vmatpush.bf16.msra.mxu1 %v9607_v23  ;;  %v9646_v23 = vld [vmem:[%s12185_s1 + $0xd90] sm:$0xff] }
 0x194   :  { %5019 = vmatpush.bf16.msra.mxu2 %v9615_v24  ;;  %v9654_v24 = vld [vmem:[%s12185_s1 + $0xdd0] sm:$0xff] }
 0x195   :  { %5032 = vmatpush.bf16.msra.mxu3 %v9623_v25  ;;  %v9629_v25 = vld [vmem:[%s12185_s1 + $0xd08] sm:$0xff] }
 0x196   :  { %4994 = vmatpush.bf16.msra.mxu0 %v9598_v31 }
 0x197   :  { %5007 = vmatpush.bf16.msra.mxu1 %v9606_v32  ;;  %v9628_v32 = vld [vmem:[%s12185_s1 + $0xd00] sm:$0xff] }
 0x198   :  { %5020 = vmatpush.bf16.msra.mxu2 %v9614_v34  ;;  %v9644_v34 = vld [vmem:[%s12185_s1 + $0xd80] sm:$0xff] }
 0x199   :  { %5033 = vmatpush.bf16.msra.mxu3 %v9622_v35  ;;  %v9652_v35 = vld [vmem:[%s12185_s1 + $0xdc0] sm:$0xff] }
 0x19a   :  { %4995 = vmatpush.bf16.msra.mxu0 %v9597_v36  ;;  %v9667_v36 = vld [vmem:[%s12185_s1 + $0xe38] sm:$0xff] }
 0x19b   :  { %5008 = vmatpush.bf16.msra.mxu1 %v9605_v37  ;;  %v9675_v37 = vld [vmem:[%s12185_s1 + $0xe78] sm:$0xff] }
 0x19c   :  { %5021 = vmatpush.bf16.msra.mxu2 %v9613_v39  ;;  %v125_v39 = vld.sshfl [vmem:[#allocation1 + $0x30] sm:$0xff pattern:$0x73625140] }
 0x19d   :  { %5034 = vmatpush.bf16.msra.mxu3 %v9621_v40  ;;  %v124_v40 = vld.sshfl [vmem:[#allocation1 + $0x28] sm:$0xff pattern:$0x73625140] }
 0x19e   :  { %4996 = vmatpush.bf16.msra.mxu0 %v9596_v43  ;;  %v4790_v3 = vpop.f32.mrf.mxu0  ;;  %v9691_v43 = vld [vmem:[%s12185_s1 + $0xef8] sm:$0xff] }
 0x19f   :  { %5009 = vmatpush.bf16.msra.mxu1 %v9604_v44  ;;  %v4791_v4 = vadd.f32 %v4790_v3, %v11175_v30  ;;  %v4803_v7 = vpop.f32.mrf.mxu1  ;;  %v253_v44 = vpack.c.bf16 %v123_v38, %v123_v38  ;;  %v9687_v3 = vld [vmem:[%s12185_s1 + $0xed8] sm:$0xff]  ;;  %v9706_v38 = vld [vmem:[%s12185_s1 + $0xf70] sm:$0xff] }
 0x1a0   :  { %5022 = vmatpush.bf16.msra.mxu2 %v9612_v45  ;;  %v255_v45 = vpack.c.bf16 %v125_v39, %v125_v39  ;;  %v9714_v39 = vld [vmem:[%s12185_s1 + $0xfb0] sm:$0xff] }
 0x1a1   :  { %5035 = vmatpush.bf16.msra.mxu3 %v9620_v46  ;;  %4997 = vmatmul.bf16.vlgmr.msra.gmra.mxu0 %v249_v55  ;;  %v4804_v10 = vadd.f32 %v4803_v7, %v4791_v4  ;;  %v254_v46 = vpack.c.bf16 %v124_v40, %v124_v40  ;;  %v9689_v55 = vld [vmem:[%s12185_s1 + $0xee8] sm:$0xff]  ;;  %v9722_v40 = vld [vmem:[%s12185_s1 + $0xff0] sm:$0xff] }
 0x1a2   :  { %5041 = vmatpush.bf16.msrb.mxu0 %v9635_v47  ;;  %5010 = vmatmul.bf16.vlgmr.msra.gmra.mxu1 %v250_v57  ;;  %v256_v47 = vpack.c.bf16 %v126_v41, %v126_v41  ;;  %v9697_v41 = vld [vmem:[%s12185_s1 + $0xf28] sm:$0xff] }
 0x1a3   :  { %5054 = vmatpush.bf16.msrb.mxu1 %v9643_v48  ;;  %5023 = vmatmul.bf16.vlgmr.msra.gmra.mxu2 %v251_v56  ;;  %v9666_v48 = vld [vmem:[%s12185_s1 + $0xe30] sm:$0xff] }
 0x1a4   :  { %5067 = vmatpush.bf16.msrb.mxu2 %v9651_v53  ;;  %5036 = vmatmul.bf16.vlgmr.msra.gmra.mxu3 %v252_v58  ;;  %v9673_v53 = vld [vmem:[%s12185_s1 + $0xe68] sm:$0xff]  ;;  %v9664_v58 = vld [vmem:[%s12185_s1 + $0xe20] sm:$0xff] }
 0x1a5   :  { %5080 = vmatpush.bf16.msrb.mxu3 %v9659_v54  ;;  %v9681_v54 = vld [vmem:[%s12185_s1 + $0xea8] sm:$0xff] }
 0x1a6   :  { %5042 = vmatpush.bf16.msrb.mxu0 %v9634_v59  ;;  %v4816_v15 = vpop.f32.mrf.mxu2  ;;  %v4792_v18 = vpop.f32.mrf.mxu0  ;;  %v9672_v59 = vld [vmem:[%s12185_s1 + $0xe60] sm:$0xff] }
 0x1a7   :  { %5055 = vmatpush.bf16.msrb.mxu1 %v9642_v60  ;;  %v4817_v16 = vadd.f32 %v4816_v15, %v4804_v10  ;;  %v4829_v17 = vpop.f32.mrf.mxu3  ;;  %v4805_v22 = vpop.f32.mrf.mxu1  ;;  %v9670_v10 = vld [vmem:[%s12185_s1 + $0xe50] sm:$0xff]  ;;  %v9661_v15 = vld [vmem:[%s12185_s1 + $0xe08] sm:$0xff] }
 0x1a8   :  { %5068 = vmatpush.bf16.msrb.mxu2 %v9650_v61  ;;  %v9680_v61 = vld [vmem:[%s12185_s1 + $0xea0] sm:$0xff]  ;;  %v9685_v18 = vld [vmem:[%s12185_s1 + $0xec8] sm:$0xff] }
 0x1a9   :  { %5081 = vmatpush.bf16.msrb.mxu3 %v9658_v62  ;;  %v11277_v19 = vadd.f32 %v4829_v17, %v4817_v16  ;;  %v9688_v62 = vld [vmem:[%s12185_s1 + $0xee0] sm:$0xff]  ;;  %v9669_v16 = vld [vmem:[%s12185_s1 + $0xe48] sm:$0xff] }
 0x1aa   :  { %5043 = vmatpush.bf16.msrb.mxu0 %v9633_v63  ;;  %v9677_v17 = vld [vmem:[%s12185_s1 + $0xe88] sm:$0xff]  ;;  %v9668_v22 = vld [vmem:[%s12185_s1 + $0xe40] sm:$0xff] }
 0x1ab   :  { %5056 = vmatpush.bf16.msrb.mxu1 %v9641_v0  ;;  %v9663_v0 = vld [vmem:[%s12185_s1 + $0xe18] sm:$0xff] }
 0x1ac   :  { %5069 = vmatpush.bf16.msrb.mxu2 %v9649_v1  ;;  %v9671_v1 = vld [vmem:[%s12185_s1 + $0xe58] sm:$0xff] }
 0x1ad   :  { %5082 = vmatpush.bf16.msrb.mxu3 %v9657_v2  ;;  %v9679_v2 = vld [vmem:[%s12185_s1 + $0xe98] sm:$0xff] }
 0x1ae   :  { %5044 = vmatpush.bf16.msrb.mxu0 %v9632_v5  ;;  %v4818_v30 = vpop.f32.mrf.mxu2 }
 0x1af   :  { %5057 = vmatpush.bf16.msrb.mxu1 %v9640_v6  ;;  %v4831_v31 = vpop.f32.mrf.mxu3  ;;  %v132_v30 = vld.sshfl [vmem:[#allocation1 + $0x18] sm:$0xff pattern:$0x73625140] }
 0x1b0   :  { %5070 = vmatpush.bf16.msrb.mxu2 %v9648_v8  ;;  %v9715_v31 = vld [vmem:[%s12185_s1 + $0xfb8] sm:$0xff] }
 0x1b1   :  { %5083 = vmatpush.bf16.msrb.mxu3 %v9656_v9  ;;  %v9662_v9 = vld [vmem:[%s12185_s1 + $0xe10] sm:$0xff] }
 0x1b2   :  { %5045 = vmatpush.bf16.msrb.mxu0 %v9631_v11 }
 0x1b3   :  { %5058 = vmatpush.bf16.msrb.mxu1 %v9639_v12  ;;  %v9678_v12 = vld [vmem:[%s12185_s1 + $0xe90] sm:$0xff] }
 0x1b4   :  { %5071 = vmatpush.bf16.msrb.mxu2 %v9647_v13  ;;  %v9686_v13 = vld [vmem:[%s12185_s1 + $0xed0] sm:$0xff] }
 0x1b5   :  { %5084 = vmatpush.bf16.msrb.mxu3 %v9655_v14  ;;  %v39_v14 = vld [vmem:[%s12184_s0 + $0x78] sm:$0xff] }
 0x1b6   :  { %5046 = vmatpush.bf16.msrb.mxu0 %v9630_v20  ;;  %128 = vst [vmem:[#allocation1 + $0x20] ss:$4 sm:$0xff] %v39_v14 }
 0x1b7   :  { %5059 = vmatpush.bf16.msrb.mxu1 %v9638_v21  ;;  %v9660_v21 = vld [vmem:[%s12185_s1 + $0xe00] sm:$0xff] }
 0x1b8   :  { %5072 = vmatpush.bf16.msrb.mxu2 %v9646_v23  ;;  %v9676_v23 = vld [vmem:[%s12185_s1 + $0xe80] sm:$0xff] }
 0x1b9   :  { %5085 = vmatpush.bf16.msrb.mxu3 %v9654_v24  ;;  %v9684_v24 = vld [vmem:[%s12185_s1 + $0xec0] sm:$0xff] }
 0x1ba   :  { %5047 = vmatpush.bf16.msrb.mxu0 %v9629_v25  ;;  %v9699_v25 = vld [vmem:[%s12185_s1 + $0xf38] sm:$0xff] }
 0x1bb   :  { %5060 = vmatpush.bf16.msrb.mxu1 %v9637_v26  ;;  %v9707_v26 = vld [vmem:[%s12185_s1 + $0xf78] sm:$0xff] }
 0x1bc   :  { %5073 = vmatpush.bf16.msrb.mxu2 %v9645_v28  ;;  %v131_v28 = vld.sshfl [vmem:[#allocation1 + $0x10] sm:$0xff pattern:$0x73625140] }
 0x1bd   :  { %5086 = vmatpush.bf16.msrb.mxu3 %v9653_v29  ;;  %v130_v29 = vld.sshfl [vmem:[#allocation1 + $0x8] sm:$0xff pattern:$0x73625140] }
 0x1be   :  { %5048 = vmatpush.bf16.msrb.mxu0 %v9628_v32  ;;  %v4842_v56 = vpop.f32.mrf.mxu0  ;;  %v9723_v32 = vld [vmem:[%s12185_s1 + $0xff8] sm:$0xff]  ;;  %v134_v14 = vld.sshfl [vmem:[#allocation1 + $0x28] sm:$0xff pattern:$0x73625140] }
 0x1bf   :  { %5061 = vmatpush.bf16.msrb.mxu1 %v9636_v33  ;;  %v4843_v57 = vadd.f32 %v4842_v56, %v11277_v19  ;;  %v4855_v60 = vpop.f32.mrf.mxu1  ;;  %v257_v33 = vpack.c.bf16 %v129_v27, %v129_v27  ;;  %v9719_v56 = vld [vmem:[%s12185_s1 + $0xfd8] sm:$0xff] }
 0x1c0   :  { %5074 = vmatpush.bf16.msrb.mxu2 %v9644_v34  ;;  %v259_v34 = vpack.c.bf16 %v131_v28, %v131_v28 }
 0x1c1   :  { %5087 = vmatpush.bf16.msrb.mxu3 %v9652_v35  ;;  %5049 = vmatmul.bf16.vlgmr.msrb.gmra.mxu0 %v253_v44  ;;  %v4856_v63 = vadd.f32 %v4855_v60, %v4843_v57  ;;  %v258_v35 = vpack.c.bf16 %v130_v29, %v130_v29  ;;  %v9721_v44 = vld [vmem:[%s12185_s1 + $0xfe8] sm:$0xff] }
 0x1c2   :  { %5093 = vmatpush.bf16.msra.mxu0 %v9667_v36  ;;  %5062 = vmatmul.bf16.vlgmr.msrb.gmra.mxu1 %v254_v46  ;;  %v260_v36 = vpack.c.bf16 %v132_v30, %v132_v30 }
 0x1c3   :  { %5106 = vmatpush.bf16.msra.mxu1 %v9675_v37  ;;  %5075 = vmatmul.bf16.vlgmr.msrb.gmra.mxu2 %v255_v45  ;;  %v9698_v37 = vld [vmem:[%s12185_s1 + $0xf30] sm:$0xff] }
 0x1c4   :  { %5119 = vmatpush.bf16.msra.mxu2 %v9683_v42  ;;  %5088 = vmatmul.bf16.vlgmr.msrb.gmra.mxu3 %v256_v47  ;;  %v9705_v42 = vld [vmem:[%s12185_s1 + $0xf68] sm:$0xff]  ;;  %v9696_v47 = vld [vmem:[%s12185_s1 + $0xf20] sm:$0xff] }
 0x1c5   :  { %5132 = vmatpush.bf16.msra.mxu3 %v9691_v43  ;;  %v9713_v43 = vld [vmem:[%s12185_s1 + $0xfa8] sm:$0xff] }
 0x1c6   :  { %5094 = vmatpush.bf16.msra.mxu0 %v9666_v48  ;;  %v4868_v4 = vpop.f32.mrf.mxu2  ;;  %v4844_v7 = vpop.f32.mrf.mxu0  ;;  %v9704_v48 = vld [vmem:[%s12185_s1 + $0xf60] sm:$0xff] }
 0x1c7   :  { %5107 = vmatpush.bf16.msra.mxu1 %v9674_v49  ;;  %v4869_v5 = vadd.f32 %v4868_v4, %v4856_v63  ;;  %v4881_v6 = vpop.f32.mrf.mxu3  ;;  %v4857_v11 = vpop.f32.mrf.mxu1  ;;  %v9702_v63 = vld [vmem:[%s12185_s1 + $0xf50] sm:$0xff]  ;;  %v9701_v4 = vld [vmem:[%s12185_s1 + $0xf48] sm:$0xff] }
 0x1c8   :  { %5120 = vmatpush.bf16.msra.mxu2 %v9682_v50  ;;  %v9712_v50 = vld [vmem:[%s12185_s1 + $0xfa0] sm:$0xff] }
 0x1c9   :  { %5133 = vmatpush.bf16.msra.mxu3 %v9690_v51  ;;  %v11379_v8 = vadd.f32 %v4881_v6, %v4869_v5  ;;  %v9720_v51 = vld [vmem:[%s12185_s1 + $0xfe0] sm:$0xff]  ;;  %v9709_v5 = vld [vmem:[%s12185_s1 + $0xf88] sm:$0xff] }
 0x1ca   :  { %5095 = vmatpush.bf16.msra.mxu0 %v9665_v52  ;;  %v9717_v6 = vld [vmem:[%s12185_s1 + $0xfc8] sm:$0xff]  ;;  %v9708_v11 = vld [vmem:[%s12185_s1 + $0xf80] sm:$0xff] }
 0x1cb   :  { %5108 = vmatpush.bf16.msra.mxu1 %v9673_v53  ;;  %v9695_v53 = vld [vmem:[%s12185_s1 + $0xf18] sm:$0xff] }
 0x1cc   :  { %5121 = vmatpush.bf16.msra.mxu2 %v9681_v54  ;;  %v9703_v54 = vld [vmem:[%s12185_s1 + $0xf58] sm:$0xff] }
 0x1cd   :  { %5134 = vmatpush.bf16.msra.mxu3 %v9689_v55  ;;  %v9711_v55 = vld [vmem:[%s12185_s1 + $0xf98] sm:$0xff] }
 0x1ce   :  { %5096 = vmatpush.bf16.msra.mxu0 %v9664_v58  ;;  %v4870_v19 = vpop.f32.mrf.mxu2 }
 0x1cf   :  { %5109 = vmatpush.bf16.msra.mxu1 %v9672_v59  ;;  %v4883_v20 = vpop.f32.mrf.mxu3 }
 0x1d0   :  { %5122 = vmatpush.bf16.msra.mxu2 %v9680_v61 }
 0x1d1   :  { %5135 = vmatpush.bf16.msra.mxu3 %v9688_v62  ;;  %v9694_v62 = vld [vmem:[%s12185_s1 + $0xf10] sm:$0xff] }
 0x1d2   :  { %5097 = vmatpush.bf16.msra.mxu0 %v9663_v0 }
 0x1d3   :  { %5110 = vmatpush.bf16.msra.mxu1 %v9671_v1  ;;  %v9710_v1 = vld [vmem:[%s12185_s1 + $0xf90] sm:$0xff] }
 0x1d4   :  { %5123 = vmatpush.bf16.msra.mxu2 %v9679_v2  ;;  %v9718_v2 = vld [vmem:[%s12185_s1 + $0xfd0] sm:$0xff] }
 0x1d5   :  { %5136 = vmatpush.bf16.msra.mxu3 %v9687_v3  ;;  %v9693_v3 = vld [vmem:[%s12185_s1 + $0xf08] sm:$0xff] }
 0x1d6   :  { %5098 = vmatpush.bf16.msra.mxu0 %v9662_v9 }
 0x1d7   :  { %5111 = vmatpush.bf16.msra.mxu1 %v9670_v10  ;;  %v9700_v10 = vld [vmem:[%s12185_s1 + $0xf40] sm:$0xff] }
 0x1d8   :  { %5124 = vmatpush.bf16.msra.mxu2 %v9678_v12  ;;  %v9716_v12 = vld [vmem:[%s12185_s1 + $0xfc0] sm:$0xff] }
 0x1d9   :  { %5137 = vmatpush.bf16.msra.mxu3 %v9686_v13  ;;  %v133_v13 = vld.sshfl [vmem:[#allocation1 + $0x20] sm:$0xff pattern:$0x73625140] }
 0x1da   :  { %5099 = vmatpush.bf16.msra.mxu0 %v9661_v15  ;;  %v135_v15 = vld.sshfl [vmem:[#allocation1 + $0x30] sm:$0xff pattern:$0x73625140] }
 0x1db   :  { %5112 = vmatpush.bf16.msra.mxu1 %v9669_v16  ;;  %v136_v16 = vld.sshfl [vmem:[#allocation1 + $0x38] sm:$0xff pattern:$0x73625140]  ;;  %v263_v19 = vpack.c.bf16 %v135_v15, %v135_v15 }
 0x1dc   :  { %5125 = vmatpush.bf16.msra.mxu2 %v9677_v17  ;;  %v261_v17 = vpack.c.bf16 %v133_v13, %v133_v13  ;;  %v264_v20 = vpack.c.bf16 %v136_v16, %v136_v16  ;;  %v9727_v13 = vld [vmem:[%s12187_s3 + $0x1c] sm:$0xf] }
 0x1dd   :  { %5138 = vmatpush.bf16.msra.mxu3 %v9685_v18  ;;  %v262_v18 = vpack.c.bf16 %v134_v14, %v134_v14  ;;  %v8920_v16 = vld [vmem:[%s12187_s3 + $0x118] sm:$0xf0] }
 0x1de   :  { %5100 = vmatpush.bf16.msra.mxu0 %v9660_v21  ;;  %v4894_v45 = vpop.f32.mrf.mxu0 }
 0x1df   :  { %5113 = vmatpush.bf16.msra.mxu1 %v9668_v22  ;;  %v4895_v46 = vadd.f32 %v4894_v45, %v11379_v8  ;;  %v4907_v49 = vpop.f32.mrf.mxu1  ;;  %v9692_v8 = vld [vmem:[%s12185_s1 + $0xf00] sm:$0xff] }
 0x1e0   :  { %5126 = vmatpush.bf16.msra.mxu2 %v9676_v23 }
 0x1e1   :  { %5139 = vmatpush.bf16.msra.mxu3 %v9684_v24  ;;  %5101 = vmatmul.bf16.vlgmr.msra.gmra.mxu0 %v257_v33  ;;  %v4908_v52 = vadd.f32 %v4907_v49, %v4895_v46 }
 0x1e2   :  { %5145 = vmatpush.bf16.msrb.mxu0 %v9699_v25  ;;  %5114 = vmatmul.bf16.vlgmr.msra.gmra.mxu1 %v258_v35 }
 0x1e3   :  { %5158 = vmatpush.bf16.msrb.mxu1 %v9707_v26  ;;  %5127 = vmatmul.bf16.vlgmr.msra.gmra.mxu2 %v259_v34 }
 0x1e4   :  { %5171 = vmatpush.bf16.msrb.mxu2 %v9715_v31  ;;  %5140 = vmatmul.bf16.vlgmr.msra.gmra.mxu3 %v260_v36 }
 0x1e5   :  { %5184 = vmatpush.bf16.msrb.mxu3 %v9723_v32 }
 0x1e6   :  { %5146 = vmatpush.bf16.msrb.mxu0 %v9698_v37  ;;  %v4920_v57 = vpop.f32.mrf.mxu2  ;;  %v4896_v60 = vpop.f32.mrf.mxu0 }
 0x1e7   :  { %5159 = vmatpush.bf16.msrb.mxu1 %v9706_v38  ;;  %v4921_v58 = vadd.f32 %v4920_v57, %v4908_v52  ;;  %v4933_v59 = vpop.f32.mrf.mxu3  ;;  %v4909_v0 = vpop.f32.mrf.mxu1  ;;  %v9757_v52 = vld [vmem:[%s12187_s3 + $0x104] sm:$0xf0]  ;;  %v9724_v60 = vld [vmem:[%s12187_s3 + $0x4] sm:$0xf] }
 0x1e8   :  { %5172 = vmatpush.bf16.msrb.mxu2 %v9714_v39 }
 0x1e9   :  { %5185 = vmatpush.bf16.msrb.mxu3 %v9722_v40  ;;  %v4934_v61 = vadd.f32 %v4933_v59, %v4921_v58 }
 0x1ea   :  { %5147 = vmatpush.bf16.msrb.mxu0 %v9697_v41 }
 0x1eb   :  { %5160 = vmatpush.bf16.msrb.mxu1 %v9705_v42 }
 0x1ec   :  { %5173 = vmatpush.bf16.msrb.mxu2 %v9713_v43 }
 0x1ed   :  { %5186 = vmatpush.bf16.msrb.mxu3 %v9721_v44 }
 0x1ee   :  { %5148 = vmatpush.bf16.msrb.mxu0 %v9696_v47  ;;  %v4922_v7 = vpop.f32.mrf.mxu2 }
 0x1ef   :  { %5161 = vmatpush.bf16.msrb.mxu1 %v9704_v48  ;;  %v4935_v9 = vpop.f32.mrf.mxu3 }
 0x1f0   :  { %5174 = vmatpush.bf16.msrb.mxu2 %v9712_v50 }
 0x1f1   :  { %5187 = vmatpush.bf16.msrb.mxu3 %v9720_v51  ;;  %v8902_v51 = vld [vmem:[%s12187_s3 + $0x8] sm:$0xf] }
 0x1f2   :  { %5149 = vmatpush.bf16.msrb.mxu0 %v9695_v53  ;;  %v9725_v53 = vld [vmem:[%s12187_s3 + $0xc] sm:$0xf] }
 0x1f3   :  { %5162 = vmatpush.bf16.msrb.mxu1 %v9703_v54 }
 0x1f4   :  { %5175 = vmatpush.bf16.msrb.mxu2 %v9711_v55  ;;  %v8903_v55 = vor.u32 %v9757_v52, %v8902_v51 }
 0x1f5   :  { %5188 = vmatpush.bf16.msrb.mxu3 %v9719_v56  ;;  %v8904_v56 = vld [vmem:[%s12187_s3 + $0x108] sm:$0xf0] }
 0x1f6   :  { %5150 = vmatpush.bf16.msrb.mxu0 %v9694_v62  ;;  %v8907_v58 = vor.u32 %v9725_v53, %v8904_v56  ;;  %v9763_v56 = vld [vmem:[%s12187_s3 + $0x134] sm:$0xf0] }
 0x1f7   :  { %5163 = vmatpush.bf16.msrb.mxu1 %v9702_v63 }
 0x1f8   :  { %5176 = vmatpush.bf16.msrb.mxu2 %v9710_v1 }
 0x1f9   :  { %5189 = vmatpush.bf16.msrb.mxu3 %v9718_v2 }
 0x1fa   :  { %5151 = vmatpush.bf16.msrb.mxu0 %v9693_v3  ;;  %v8894_v3 = vld [vmem:[%s12187_s3] sm:$0xf] }
 0x1fb   :  { %5164 = vmatpush.bf16.msrb.mxu1 %v9701_v4  ;;  %v9756_v4 = vld [vmem:[%s12187_s3 + $0xfc] sm:$0xf0] }
 0x1fc   :  { %5177 = vmatpush.bf16.msrb.mxu2 %v9709_v5 }
 0x1fd   :  { %5190 = vmatpush.bf16.msrb.mxu3 %v9717_v6  ;;  %v8895_v6 = vor.u32 %v9756_v4, %v8894_v3  ;;  %v8966_v3 = vld [vmem:[%s12187_s3 + $0x48] sm:$0xf] }
 0x1fe   :  { %5152 = vmatpush.bf16.msrb.mxu0 %v9692_v8  ;;  %v4946_v21 = vpop.f32.mrf.mxu0  ;;  %v9765_v4 = vld [vmem:[%s12187_s3 + $0x144] sm:$0xf0] }
 0x1ff   :  { %5165 = vmatpush.bf16.msrb.mxu1 %v9700_v10  ;;  %v4947_v22 = vadd.f32 %v4946_v21, %v4934_v61  ;;  %v4959_v23 = vpop.f32.mrf.mxu1  ;;  %v8896_v61 = vld [vmem:[%s12187_s3 + $0x100] sm:$0xf0]  ;;  %v8910_v21 = vld [vmem:[%s12187_s3 + $0x10] sm:$0xf] }
 0x200   :  { %5178 = vmatpush.bf16.msrb.mxu2 %v9708_v11  ;;  %v8899_v63 = vor.u32 %v9724_v60, %v8896_v61  ;;  %v8918_v11 = vld [vmem:[%s12187_s3 + $0x18] sm:$0xf]  ;;  %v8944_v60 = vld [vmem:[%s12187_s3 + $0x130] sm:$0xf0]  ;;  %v8942_v61 = vld [vmem:[%s12187_s3 + $0x30] sm:$0xf] }
 0x201   :  { %5191 = vmatpush.bf16.msrb.mxu3 %v9716_v12  ;;  %5153 = vmatmul.bf16.vlgmr.msrb.gmra.mxu0 %v261_v17  ;;  %v4960_v24 = vadd.f32 %v4959_v23, %v4947_v22  ;;  %v9759_v12 = vld [vmem:[%s12187_s3 + $0x114] sm:$0xf0]  ;;  %v9726_v17 = vld [vmem:[%s12187_s3 + $0x14] sm:$0xf]  ;;  %v9758_v22 = vld [vmem:[%s12187_s3 + $0x10c] sm:$0xf0] }
 0x202   :  { %5166 = vmatmul.bf16.vlgmr.msrb.gmra.mxu1 %v262_v18  ;;  %5740 = vmatpush.bf16.msra.mxu0 %v8895_v6  ;;  %v8919_v15 = vor.u32 %v9759_v12, %v8918_v11  ;;  %v8912_v18 = vld [vmem:[%s12187_s3 + $0x110] sm:$0xf0]  ;;  %v8968_v6 = vld [vmem:[%s12187_s3 + $0x148] sm:$0xf0]  ;;  %v8967_v11 = vor.u32 %v9765_v4, %v8966_v3  ;;  %v9048_v3 = vld [vmem:[%s12187_s3 + $0x198] sm:$0xf0] }
 0x203   :  { %5179 = vmatmul.bf16.vlgmr.msrb.gmra.mxu2 %v263_v19  ;;  %5753 = vmatpush.bf16.msra.mxu1 %v8899_v63  ;;  %v8923_v19 = vor.u32 %v9727_v13, %v8920_v16  ;;  %v9767_v16 = vld [vmem:[%s12187_s3 + $0x154] sm:$0xf0]  ;;  %v9742_v4 = vld [vmem:[%s12187_s3 + $0x94] sm:$0xf] }
 0x204   :  { %5192 = vmatmul.bf16.vlgmr.msrb.gmra.mxu3 %v264_v20  ;;  %5766 = vmatpush.bf16.msra.mxu2 %v8903_v55  ;;  %v8915_v20 = vor.u32 %v9726_v17, %v8912_v18  ;;  %v8950_v55 = vld [vmem:[%s12187_s3 + $0x38] sm:$0xf]  ;;  %v9735_v17 = vld [vmem:[%s12187_s3 + $0x5c] sm:$0xf] }
 0x205   :  { %5779 = vmatpush.bf16.msra.mxu3 %v8907_v58  ;;  %v8952_v58 = vld [vmem:[%s12187_s3 + $0x138] sm:$0xf0]  ;;  %v8951_v63 = vor.u32 %v9763_v56, %v8950_v55  ;;  %v9032_v55 = vld [vmem:[%s12187_s3 + $0x188] sm:$0xf0]  ;;  %v9740_v56 = vld [vmem:[%s12187_s3 + $0x84] sm:$0xf] }
 0x206   :  { %v4972_v25 = vpop.f32.mrf.mxu2  ;;  %v4948_v28 = vpop.f32.mrf.mxu0  ;;  %v8984_v18 = vld [vmem:[%s12187_s3 + $0x158] sm:$0xf0] }
 0x207   :  { %v4973_v26 = vadd.f32 %v4972_v25, %v4960_v24  ;;  %v4985_v27 = vpop.f32.mrf.mxu3  ;;  %v4961_v30 = vpop.f32.mrf.mxu1  ;;  %v8911_v24 = vor.u32 %v9758_v22, %v8910_v21  ;;  %5805 = vmatpush.bf16.msrb.mxu1 %v8915_v20  ;;  %v8976_v20 = vld [vmem:[%s12187_s3 + $0x150] sm:$0xf0]  ;;  %v8974_v21 = vld [vmem:[%s12187_s3 + $0x50] sm:$0xf] }
 0x208   :  { %5818 = vmatpush.bf16.msrb.mxu2 %v8919_v15  ;;  %v8982_v15 = vld [vmem:[%s12187_s3 + $0x58] sm:$0xf]  ;;  %v9766_v22 = vld [vmem:[%s12187_s3 + $0x14c] sm:$0xf0] }
 0x209   :  { %v4986_v29 = vadd.f32 %v4985_v27, %v4973_v26  ;;  %5831 = vmatpush.bf16.msrb.mxu3 %v8923_v19  ;;  %5792 = vmatpush.bf16.msrb.mxu0 %v8911_v24  ;;  %v9734_v19 = vld [vmem:[%s12187_s3 + $0x54] sm:$0xf]  ;;  %v8987_v24 = vor.u32 %v9735_v17, %v8984_v18  ;;  %v9064_v17 = vld [vmem:[%s12187_s3 + $0x1a8] sm:$0xf0]  ;;  %v9744_v18 = vld [vmem:[%s12187_s3 + $0xa4] sm:$0xf] }
 0x20e   :  { %v4974_v31 = vpop.f32.mrf.mxu2 }
 0x20f   :  { %v4987_v32 = vpop.f32.mrf.mxu3 }
 0x21e   :  { %v4998_v33 = vpop.f32.mrf.mxu0 }
 0x21f   :  { %v4999_v34 = vadd.f32 %v4998_v33, %v4986_v29  ;;  %v5011_v35 = vpop.f32.mrf.mxu1 }
 0x221   :  { %v5012_v36 = vadd.f32 %v5011_v35, %v4999_v34 }
 0x226   :  { %v5024_v37 = vpop.f32.mrf.mxu2  ;;  %v5000_v40 = vpop.f32.mrf.mxu0 }
 0x227   :  { %v5025_v38 = vadd.f32 %v5024_v37, %v5012_v36  ;;  %v5037_v39 = vpop.f32.mrf.mxu3  ;;  %v5013_v42 = vpop.f32.mrf.mxu1  ;;  %v9761_v40 = vld [vmem:[%s12187_s3 + $0x124] sm:$0xf0] }
 0x228   :  { %v8936_v42 = vld [vmem:[%s12187_s3 + $0x128] sm:$0xf0] }
 0x229   :  { %v5038_v41 = vadd.f32 %v5037_v39, %v5025_v38  ;;  %v8934_v39 = vld [vmem:[%s12187_s3 + $0x28] sm:$0xf] }
 0x22e   :  { %v5026_v43 = vpop.f32.mrf.mxu2 }
 0x22f   :  { %v5039_v44 = vpop.f32.mrf.mxu3  ;;  %v9728_v43 = vld [vmem:[%s12187_s3 + $0x24] sm:$0xf] }
 0x230   :  { %v8928_v44 = vld [vmem:[%s12187_s3 + $0x120] sm:$0xf0] }
 0x231   :  { %v8931_v53 = vor.u32 %v9728_v43, %v8928_v44  ;;  %v9738_v43 = vld [vmem:[%s12187_s3 + $0x74] sm:$0xf] }
 0x232   :  { %v9008_v44 = vld [vmem:[%s12187_s3 + $0x170] sm:$0xf0] }
 0x23e   :  { %v5050_v45 = vpop.f32.mrf.mxu0 }
 0x23f   :  { %v5063_v46 = vpop.f32.mrf.mxu1  ;;  %v5051_v1 = vadd.f32 %v5050_v45, %v5038_v41  ;;  %v9729_v41 = vld [vmem:[%s12187_s3 + $0x2c] sm:$0xf] }
 0x241   :  { %v5064_v8 = vadd.f32 %v5063_v46, %v5051_v1  ;;  %v8926_v46 = vld [vmem:[%s12187_s3 + $0x20] sm:$0xf] }
 0x246   :  { %v5076_v47 = vpop.f32.mrf.mxu2  ;;  %v5052_v49 = vpop.f32.mrf.mxu0 }
 0x247   :  { %v5089_v48 = vpop.f32.mrf.mxu3  ;;  %v5065_v50 = vpop.f32.mrf.mxu1  ;;  %v5077_v9 = vadd.f32 %v5076_v47, %v5064_v8  ;;  %v9760_v47 = vld [vmem:[%s12187_s3 + $0x11c] sm:$0xf0]  ;;  %v8935_v49 = vor.u32 %v9761_v40, %v8934_v39  ;;  %v8960_v8 = vld [vmem:[%s12187_s3 + $0x140] sm:$0xf0]  ;;  %v9014_v39 = vld [vmem:[%s12187_s3 + $0x78] sm:$0xf] }
 0x248   :  { %v8939_v50 = vor.u32 %v9729_v41, %v8936_v42  ;;  %v9771_v40 = vld [vmem:[%s12187_s3 + $0x174] sm:$0xf0]  ;;  %v9739_v41 = vld [vmem:[%s12187_s3 + $0x7c] sm:$0xf] }
 0x249   :  { %v5090_v23 = vadd.f32 %v5089_v48, %v5077_v9  ;;  %v8958_v9 = vld [vmem:[%s12187_s3 + $0x40] sm:$0xf]  ;;  %v9016_v42 = vld [vmem:[%s12187_s3 + $0x178] sm:$0xf0] }
 0x24e   :  { %v5078_v54 = vpop.f32.mrf.mxu2 }
 0x24f   :  { %v5091_v57 = vpop.f32.mrf.mxu3  ;;  %v8927_v54 = vor.u32 %v9760_v47, %v8926_v46  ;;  %v9770_v46 = vld [vmem:[%s12187_s3 + $0x16c] sm:$0xf0]  ;;  %v9015_v47 = vor.u32 %v9771_v40, %v9014_v39 }
 0x250   :  { %v9731_v57 = vld [vmem:[%s12187_s3 + $0x3c] sm:$0xf] }
 0x25e   :  { %v5102_v59 = vpop.f32.mrf.mxu0 }
 0x25f   :  { %v5115_v62 = vpop.f32.mrf.mxu1  ;;  %v5103_v25 = vadd.f32 %v5102_v59, %v5090_v23  ;;  %v9730_v59 = vld [vmem:[%s12187_s3 + $0x34] sm:$0xf]  ;;  %v8983_v23 = vor.u32 %v9767_v16, %v8982_v15  ;;  %v9777_v15 = vld [vmem:[%s12187_s3 + $0x1a4] sm:$0xf0]  ;;  %v9745_v16 = vld [vmem:[%s12187_s3 + $0xac] sm:$0xf] }
 0x260   :  { %v8947_v1 = vor.u32 %v9730_v59, %v8944_v60  ;;  %v9772_v59 = vld [vmem:[%s12187_s3 + $0x17c] sm:$0xf0] }
 0x261   :  { %v5116_v26 = vadd.f32 %v5115_v62, %v5103_v25  ;;  %v9762_v62 = vld [vmem:[%s12187_s3 + $0x12c] sm:$0xf0]  ;;  %v8979_v25 = vor.u32 %v9734_v19, %v8976_v20  ;;  %v9056_v19 = vld [vmem:[%s12187_s3 + $0x1a0] sm:$0xf0]  ;;  %v9054_v20 = vld [vmem:[%s12187_s3 + $0xa0] sm:$0xf] }
 0x266   :  { %v5128_v0 = vpop.f32.mrf.mxu2  ;;  %v5104_v5 = vpop.f32.mrf.mxu0 }
 0x267   :  { %v5141_v2 = vpop.f32.mrf.mxu3  ;;  %v5117_v7 = vpop.f32.mrf.mxu1  ;;  %v5129_v27 = vadd.f32 %v5128_v0, %v5116_v26  ;;  %v8955_v0 = vor.u32 %v9731_v57, %v8952_v58  ;;  %v9733_v5 = vld [vmem:[%s12187_s3 + $0x4c] sm:$0xf]  ;;  %v8975_v26 = vor.u32 %v9766_v22, %v8974_v21  ;;  %v9024_v57 = vld [vmem:[%s12187_s3 + $0x180] sm:$0xf0]  ;;  %v9022_v58 = vld [vmem:[%s12187_s3 + $0x80] sm:$0xf] }
 0x268   :  { %v9732_v7 = vld [vmem:[%s12187_s3 + $0x44] sm:$0xf]  ;;  %v8971_v12 = vor.u32 %v9733_v5, %v8968_v6  ;;  %v9040_v5 = vld [vmem:[%s12187_s3 + $0x190] sm:$0xf0]  ;;  %v9038_v6 = vld [vmem:[%s12187_s3 + $0x90] sm:$0xf] }
 0x269   :  { %v5142_v28 = vadd.f32 %v5141_v2, %v5129_v27  ;;  %v8943_v2 = vor.u32 %v9762_v62, %v8942_v61  ;;  %v8963_v13 = vor.u32 %v9732_v7, %v8960_v8  ;;  %v8998_v27 = vld [vmem:[%s12187_s3 + $0x68] sm:$0xf]  ;;  %v9027_v62 = vor.u32 %v9740_v56, %v9024_v57  ;;  %v9774_v7 = vld [vmem:[%s12187_s3 + $0x18c] sm:$0xf0]  ;;  %v9776_v21 = vld [vmem:[%s12187_s3 + $0x19c] sm:$0xf0] }
 0x26e   :  { %v5130_v10 = vpop.f32.mrf.mxu2 }
 0x26f   :  { %v5143_v14 = vpop.f32.mrf.mxu3  ;;  %v9764_v10 = vld [vmem:[%s12187_s3 + $0x13c] sm:$0xf0] }
 0x270   :  { %v8959_v14 = vor.u32 %v9764_v10, %v8958_v9  ;;  %v9043_v10 = vor.u32 %v9742_v4, %v9040_v5 }
 0x27e   :  { %v5154_v29 = vpop.f32.mrf.mxu0 }
 0x27f   :  { %v5167_v30 = vpop.f32.mrf.mxu1  ;;  %v5155_v31 = vadd.f32 %v5154_v29, %v5142_v28  ;;  %v9769_v28 = vld [vmem:[%s12187_s3 + $0x164] sm:$0xf0]  ;;  %v9737_v29 = vld [vmem:[%s12187_s3 + $0x6c] sm:$0xf] }
 0x281   :  { %v5168_v32 = vadd.f32 %v5167_v30, %v5155_v31  ;;  %v9000_v30 = vld [vmem:[%s12187_s3 + $0x168] sm:$0xf0]  ;;  %v9736_v31 = vld [vmem:[%s12187_s3 + $0x64] sm:$0xf] }
 0x286   :  { %v5180_v33 = vpop.f32.mrf.mxu2  ;;  %v5156_v36 = vpop.f32.mrf.mxu0 }
 0x287   :  { %v5193_v34 = vpop.f32.mrf.mxu3  ;;  %v5181_v35 = vadd.f32 %v5180_v33, %v5168_v32  ;;  %v5169_v37 = vpop.f32.mrf.mxu1  ;;  %v8992_v32 = vld [vmem:[%s12187_s3 + $0x160] sm:$0xf0]  ;;  %v8990_v33 = vld [vmem:[%s12187_s3 + $0x60] sm:$0xf]  ;;  %v9003_v36 = vor.u32 %v9737_v29, %v9000_v30 }
 0x288   :  { %v8995_v37 = vor.u32 %v9736_v31, %v8992_v32 }
 0x289   :  { %v5194_v38 = vadd.f32 %v5193_v34, %v5181_v35  ;;  %v9768_v34 = vld [vmem:[%s12187_s3 + $0x15c] sm:$0xf0]  ;;  %v8999_v35 = vor.u32 %v9769_v28, %v8998_v27  ;;  %v9059_v27 = vor.u32 %v9744_v18, %v9056_v19  ;;  %v9055_v28 = vor.u32 %v9776_v21, %v9054_v20  ;;  %v11909_v19 = vld [vmem:[%s12188_s4 + $0x8] sm:$0xff] }
 0x28b   :  { %v5197_v45 = vmax.f32 %v5194_v38, 0.0  ;;  %v8991_v38 = vor.u32 %v9768_v34, %v8990_v33 }
 0x28d   :  { %5199 = vst.msk [vmem:[#allocation2] sm:$0x3] %vm5198_vm0, %v5197_v45  ;;  %v11589_v48 = vpack.c.bf16 %v5197_v45, %v5197_v45  ;;  %v9006_v45 = vld [vmem:[%s12187_s3 + $0x70] sm:$0xf] }
 0x28e   :  { %v5182_v51 = vpop.f32.mrf.mxu2  ;;  %6834 = dma.vmem_to_hbm [thread:$0]  %s6830_s23, 32, %s6832_s26, [#allocation3]  }
 0x28f   :  { %v5195_v52 = vpop.f32.mrf.mxu3  ;;  %9148 = vmatmul.msk.bf16.vlgmr.msra.gmra.mxu0 %vm5729_vm1, %v11589_v48  ;;  %9149 = vmatmul.msk.bf16.vlgmr.msra.gmra.mxu1 %vm5729_vm1, %v11589_v48  ;;  %v9007_v51 = vor.u32 %v9770_v46, %v9006_v45 }
 0x290   :  { %9150 = vmatmul.msk.bf16.vlgmr.msra.gmra.mxu2 %vm5729_vm1, %v11589_v48  ;;  %9151 = vmatmul.msk.bf16.vlgmr.msra.gmra.mxu3 %vm5729_vm1, %v11589_v48  ;;  %v9030_v52 = vld [vmem:[%s12187_s3 + $0x88] sm:$0xf] }
 0x291   :  { %5870 = vmatpush.bf16.msra.mxu2 %v8935_v49  ;;  %5883 = vmatpush.bf16.msra.mxu3 %v8939_v50  ;;  %v9019_v49 = vor.u32 %v9739_v41, %v9016_v42  ;;  %v9011_v50 = vor.u32 %v9738_v43, %v9008_v44 }
 0x292   :  { %5857 = vmatpush.bf16.msra.mxu1 %v8931_v53  ;;  %5844 = vmatpush.bf16.msra.mxu0 %v8927_v54  ;;  %v9773_v53 = vld [vmem:[%s12187_s3 + $0x184] sm:$0xf0]  ;;  %v9741_v54 = vld [vmem:[%s12187_s3 + $0x8c] sm:$0xf] }
 0x293   :  { %v9031_v60 = vor.u32 %v9773_v53, %v9030_v52  ;;  %v9035_v61 = vor.u32 %v9741_v54, %v9032_v55  ;;  %v9747_v52 = vld [vmem:[%s12187_s3 + $0xbc] sm:$0xf]  ;;  %v9746_v54 = vld [vmem:[%s12187_s3 + $0xb4] sm:$0xf] }
 0x294   :  { %v9080_v53 = vld [vmem:[%s12187_s3 + $0x1b8] sm:$0xf0] }
 0x29f   :  { %9152 = vmatmul.msk.bf16.vlgmr.msrb.gmra.mxu0 %vm5729_vm1, %v11589_v48  ;;  %9153 = vmatmul.msk.bf16.vlgmr.msrb.gmra.mxu1 %vm5729_vm1, %v11589_v48 }
 0x2a0   :  { %9154 = vmatmul.msk.bf16.vlgmr.msrb.gmra.mxu2 %vm5729_vm1, %v11589_v48  ;;  %9155 = vmatmul.msk.bf16.vlgmr.msrb.gmra.mxu3 %vm5729_vm1, %v11589_v48 }
 0x2a1   :  { %5922 = vmatpush.bf16.msrb.mxu2 %v8951_v63  ;;  %5935 = vmatpush.bf16.msrb.mxu3 %v8955_v0  ;;  %v9023_v63 = vor.u32 %v9772_v59, %v9022_v58  ;;  %v9046_v0 = vld [vmem:[%s12187_s3 + $0x98] sm:$0xf]  ;;  %v9072_v58 = vld [vmem:[%s12187_s3 + $0x1b0] sm:$0xf0]  ;;  %v9070_v59 = vld [vmem:[%s12187_s3 + $0xb0] sm:$0xf] }
 0x2a2   :  { %5909 = vmatpush.bf16.msrb.mxu1 %v8947_v1  ;;  %5896 = vmatpush.bf16.msrb.mxu0 %v8943_v2  ;;  %v9775_v1 = vld [vmem:[%s12187_s3 + $0x194] sm:$0xf0]  ;;  %v9743_v2 = vld [vmem:[%s12187_s3 + $0x9c] sm:$0xf] }
 0x2a3   :  { %v9047_v8 = vor.u32 %v9775_v1, %v9046_v0  ;;  %v9051_v9 = vor.u32 %v9743_v2, %v9048_v3  ;;  %v9083_v0 = vor.u32 %v9747_v52, %v9080_v53  ;;  %v9075_v2 = vor.u32 %v9746_v54, %v9072_v58 }
 0x2af   :  { %9156 = vmatmul.msk.bf16.vlgmr.msra.gmra.mxu0 %vm5729_vm1, %v11589_v48  ;;  %9157 = vmatmul.msk.bf16.vlgmr.msra.gmra.mxu1 %vm5729_vm1, %v11589_v48 }
 0x2b0   :  { %9158 = vmatmul.msk.bf16.vlgmr.msra.gmra.mxu2 %vm5729_vm1, %v11589_v48  ;;  %9159 = vmatmul.msk.bf16.vlgmr.msra.gmra.mxu3 %vm5729_vm1, %v11589_v48 }
 0x2b1   :  { %5974 = vmatpush.bf16.msra.mxu2 %v8967_v11  ;;  %5987 = vmatpush.bf16.msra.mxu3 %v8971_v12  ;;  %v9039_v11 = vor.u32 %v9774_v7, %v9038_v6  ;;  %v11826_v12 = vld [vmem:[%s12188_s4] sm:$0xff] }
 0x2b2   :  { %5961 = vmatpush.bf16.msra.mxu1 %v8963_v13  ;;  %5948 = vmatpush.bf16.msra.mxu0 %v8959_v14  ;;  %v5282_v13 = vperm.slane %v11826_v12, 1  ;;  %v9062_v14 = vld [vmem:[%s12187_s3 + $0xa8] sm:$0xf]  ;;  %v5281_v29 = vperm.slane %v11826_v12, 0  ;;  %v5283_v30 = vperm.slane %v11826_v12, 2  ;;  %v5284_v31 = vperm.slane %v11826_v12, 3 }
 0x2b3   :  { %v5286_v46 = vperm.slane %v11826_v12, 5  ;;  %v5285_v4 = vperm.slane %v11826_v12, 4  ;;  %v5287_v5 = vperm.slane %v11826_v12, 6  ;;  %v5288_v6 = vperm.slane %v11826_v12, 7 }
 0x2bf   :  { %9160 = vmatmul.msk.bf16.vlgmr.msrb.gmra.mxu0 %vm5729_vm1, %v11589_v48  ;;  %9161 = vmatmul.msk.bf16.vlgmr.msrb.gmra.mxu1 %vm5729_vm1, %v11589_v48 }
 0x2c0   :  { %9162 = vmatmul.msk.bf16.vlgmr.msrb.gmra.mxu2 %vm5729_vm1, %v11589_v48  ;;  %9163 = vmatmul.msk.bf16.vlgmr.msrb.gmra.mxu3 %vm5729_vm1, %v11589_v48 }
 0x2c1   :  { %6026 = vmatpush.bf16.msrb.mxu2 %v8983_v23  ;;  %6039 = vmatpush.bf16.msrb.mxu3 %v8987_v24  ;;  %v9063_v24 = vor.u32 %v9777_v15, %v9062_v14 }
 0x2c2   :  { %6013 = vmatpush.bf16.msrb.mxu1 %v8979_v25  ;;  %6000 = vmatpush.bf16.msrb.mxu0 %v8975_v26  ;;  %v9067_v25 = vor.u32 %v9745_v16, %v9064_v17 }
 0x2cf   :  { %9164 = vmatmul.msk.bf16.vlgmr.msra.gmra.mxu0 %vm5729_vm1, %v11589_v48  ;;  %9165 = vmatmul.msk.bf16.vlgmr.msra.gmra.mxu1 %vm5729_vm1, %v11589_v48 }
 0x2d0   :  { %9166 = vmatmul.msk.bf16.vlgmr.msra.gmra.mxu2 %vm5729_vm1, %v11589_v48  ;;  %9167 = vmatmul.msk.bf16.vlgmr.msra.gmra.mxu3 %vm5729_vm1, %v11589_v48 }
 0x2d1   :  { %6078 = vmatpush.bf16.msra.mxu2 %v8999_v35  ;;  %6091 = vmatpush.bf16.msra.mxu3 %v9003_v36 }
 0x2d2   :  { %6065 = vmatpush.bf16.msra.mxu1 %v8995_v37  ;;  %6052 = vmatpush.bf16.msra.mxu0 %v8991_v38 }
 0x2df   :  { %9168 = vmatmul.msk.bf16.vlgmr.msrb.gmra.mxu0 %vm5729_vm1, %v11589_v48  ;;  %9169 = vmatmul.msk.bf16.vlgmr.msrb.gmra.mxu1 %vm5729_vm1, %v11589_v48 }
 0x2e0   :  { %9170 = vmatmul.msk.bf16.vlgmr.msrb.gmra.mxu2 %vm5729_vm1, %v11589_v48  ;;  %9171 = vmatmul.msk.bf16.vlgmr.msrb.gmra.mxu3 %vm5729_vm1, %v11589_v48 }
 0x2e1   :  { %6130 = vmatpush.bf16.msrb.mxu2 %v9015_v47  ;;  %6143 = vmatpush.bf16.msrb.mxu3 %v9019_v49  ;;  %v9078_v47 = vld [vmem:[%s12187_s3 + $0xb8] sm:$0xf] }
 0x2e2   :  { %6117 = vmatpush.bf16.msrb.mxu1 %v9011_v50  ;;  %6104 = vmatpush.bf16.msrb.mxu0 %v9007_v51  ;;  %v9779_v49 = vld [vmem:[%s12187_s3 + $0x1b4] sm:$0xf0] }
 0x2ef   :  { %9172 = vmatmul.msk.bf16.vlgmr.msra.gmra.mxu0 %vm5729_vm1, %v11589_v48  ;;  %9173 = vmatmul.msk.bf16.vlgmr.msra.gmra.mxu1 %vm5729_vm1, %v11589_v48 }
 0x2f0   :  { %9174 = vmatmul.msk.bf16.vlgmr.msra.gmra.mxu2 %vm5729_vm1, %v11589_v48  ;;  %9175 = vmatmul.msk.bf16.vlgmr.msra.gmra.mxu3 %vm5729_vm1, %v11589_v48 }
 0x2f1   :  { %6182 = vmatpush.bf16.msra.mxu2 %v9031_v60  ;;  %6195 = vmatpush.bf16.msra.mxu3 %v9035_v61  ;;  %v9778_v60 = vld [vmem:[%s12187_s3 + $0x1ac] sm:$0xf0] }
 0x2f2   :  { %6169 = vmatpush.bf16.msra.mxu1 %v9027_v62  ;;  %6156 = vmatpush.bf16.msra.mxu0 %v9023_v63  ;;  %v9079_v63 = vor.u32 %v9779_v49, %v9078_v47  ;;  %v9071_v3 = vor.u32 %v9778_v60, %v9070_v59 }
 0x2ff   :  { %9176 = vmatmul.msk.bf16.vlgmr.msrb.gmra.mxu0 %vm5729_vm1, %v11589_v48  ;;  %9177 = vmatmul.msk.bf16.vlgmr.msrb.gmra.mxu1 %vm5729_vm1, %v11589_v48 }
 0x300   :  { %9178 = vmatmul.msk.bf16.vlgmr.msrb.gmra.mxu2 %vm5729_vm1, %v11589_v48  ;;  %9179 = vmatmul.msk.bf16.vlgmr.msrb.gmra.mxu3 %vm5729_vm1, %v11589_v48 }
 0x301   :  { %6234 = vmatpush.bf16.msrb.mxu2 %v9047_v8  ;;  %6247 = vmatpush.bf16.msrb.mxu3 %v9051_v9 }
 0x302   :  { %6221 = vmatpush.bf16.msrb.mxu1 %v9043_v10  ;;  %6208 = vmatpush.bf16.msrb.mxu0 %v9039_v11 }
 0x30c   :  { %v5742_v22 = vpop.f32.mrf.mxu0  ;;  %v5755_v23 = vpop.f32.mrf.mxu1 }
 0x30d   :  { %v5756_v26 = vadd.f32 %v5755_v23, %v5282_v13  ;;  %v5743_v35 = vadd.f32 %v5742_v22, %v5281_v29  ;;  %v5290_v22 = vperm.slane %v11909_v19, 1  ;;  %v9094_v23 = vld [vmem:[%s12187_s3 + $0xc8] sm:$0xf]  ;;  %v9748_v29 = vld [vmem:[%s12187_s3 + $0xc4] sm:$0xf] }
 0x30f   :  { %9180 = vmatmul.msk.bf16.vlgmr.msra.gmra.mxu0 %vm5729_vm1, %v11589_v48  ;;  %9181 = vmatmul.msk.bf16.vlgmr.msra.gmra.mxu1 %vm5729_vm1, %v11589_v48  ;;  %v6566_v32 = vmax.f32 %v5756_v26, 0.0  ;;  %v6565_v43 = vmax.f32 %v5743_v35, 0.0  ;;  %v9780_v35 = vld [vmem:[%s12187_s3 + $0x1bc] sm:$0xf0] }
 0x310   :  { %9182 = vmatmul.msk.bf16.vlgmr.msra.gmra.mxu2 %vm5729_vm1, %v11589_v48  ;;  %9183 = vmatmul.msk.bf16.vlgmr.msra.gmra.mxu3 %vm5729_vm1, %v11589_v48 }
 0x311   :  { %6286 = vmatpush.bf16.msra.mxu2 %v9063_v24  ;;  %6299 = vmatpush.bf16.msra.mxu3 %v9067_v25  ;;  %v6693_v40 = vrot.slane %v6566_v32, 6  ;;  %v9781_v24 = vld [vmem:[%s12187_s3 + $0x1c4] sm:$0xf0] }
 0x312   :  { %6273 = vmatpush.bf16.msra.mxu1 %v9059_v27  ;;  %6260 = vmatpush.bf16.msra.mxu0 %v9055_v28  ;;  %v9749_v27 = vld [vmem:[%s12187_s3 + $0xcc] sm:$0xf] }
 0x313   :  { %v5768_v33 = vpop.f32.mrf.mxu2  ;;  %v5781_v34 = vpop.f32.mrf.mxu3  ;;  %v6742_v50 = vsel %vm6741_vm2, %v6565_v43, %v6693_v40  ;;  %v9096_v28 = vld [vmem:[%s12187_s3 + $0x1c8] sm:$0xf0]  ;;  %v5289_v43 = vperm.slane %v11909_v19, 0 }
 0x314   :  { %v5769_v36 = vadd.f32 %v5768_v33, %v5283_v30  ;;  %v5782_v37 = vadd.f32 %v5781_v34, %v5284_v31  ;;  %v5744_v38 = vpop.f32.mrf.mxu0  ;;  %v5757_v39 = vpop.f32.mrf.mxu1  ;;  %v9088_v33 = vld [vmem:[%s12187_s3 + $0x1c0] sm:$0xf0]  ;;  %v9086_v34 = vld [vmem:[%s12187_s3 + $0xc0] sm:$0xf] }
 0x315   :  { %v9095_v38 = vor.u32 %v9781_v24, %v9094_v23  ;;  %v9099_v39 = vor.u32 %v9749_v27, %v9096_v28 }
 0x316   :  { %v6567_v41 = vmax.f32 %v5769_v36, 0.0  ;;  %v6568_v42 = vmax.f32 %v5782_v37, 0.0 }
 0x318   :  { %v6694_v44 = vrot.slane %v6567_v41, 4  ;;  %v6695_v45 = vrot.slane %v6568_v42, 2  ;;  %v9091_v41 = vor.u32 %v9748_v29, %v9088_v33  ;;  %v9087_v42 = vor.u32 %v9780_v35, %v9086_v34  ;;  %v11998_v33 = vld [vmem:[%s12188_s4 + $0x10] sm:$0xff] }
 0x31a   :  { %v6744_v51 = vsel %vm6743_vm3, %v6694_v44, %v6695_v45  ;;  %v5291_v44 = vperm.slane %v11909_v19, 2  ;;  %v5292_v45 = vperm.slane %v11909_v19, 3 }
 0x31b   :  { %v6746_v55 = vsel %vm6745_vm4, %v6742_v50, %v6744_v51  ;;  %v5770_v56 = vpop.f32.mrf.mxu2  ;;  %v5783_v57 = vpop.f32.mrf.mxu3 }
 0x31c   :  { %6808 = vst [vmem:[%s12190_s6] sm:$0xff] %v6746_v55  ;;  %v5794_v61 = vpop.f32.mrf.mxu0  ;;  %v5807_v62 = vpop.f32.mrf.mxu1 }
 0x31d   :  { %v5808_v1 = vadd.f32 %v5807_v62, %v5286_v46  ;;  %v5795_v10 = vadd.f32 %v5794_v61, %v5285_v4  ;;  %v5294_v61 = vperm.slane %v11909_v19, 5  ;;  %v9110_v62 = vld [vmem:[%s12187_s3 + $0xd8] sm:$0xf]  ;;  %v9750_v4 = vld [vmem:[%s12187_s3 + $0xd4] sm:$0xf] }
 0x31f   :  { %9184 = vmatmul.msk.bf16.vlgmr.msrb.gmra.mxu0 %vm5729_vm1, %v11589_v48  ;;  %9185 = vmatmul.msk.bf16.vlgmr.msrb.gmra.mxu1 %vm5729_vm1, %v11589_v48  ;;  %v6570_v7 = vmax.f32 %v5808_v1, 0.0  ;;  %v6569_v12 = vmax.f32 %v5795_v10, 0.0  ;;  %v9782_v10 = vld [vmem:[%s12187_s3 + $0x1cc] sm:$0xf0] }
 0x320   :  { %9186 = vmatmul.msk.bf16.vlgmr.msrb.gmra.mxu2 %vm5729_vm1, %v11589_v48  ;;  %9187 = vmatmul.msk.bf16.vlgmr.msrb.gmra.mxu3 %vm5729_vm1, %v11589_v48 }
 0x321   :  { %6338 = vmatpush.bf16.msrb.mxu2 %v9079_v63  ;;  %6351 = vmatpush.bf16.msrb.mxu3 %v9083_v0  ;;  %v6696_v16 = vrot.slane %v6570_v7, 6  ;;  %v9783_v63 = vld [vmem:[%s12187_s3 + $0x1d4] sm:$0xf0] }
 0x322   :  { %6325 = vmatpush.bf16.msrb.mxu1 %v9075_v2  ;;  %6312 = vmatpush.bf16.msrb.mxu0 %v9071_v3  ;;  %v9751_v2 = vld [vmem:[%s12187_s3 + $0xdc] sm:$0xf] }
 0x323   :  { %v5820_v8 = vpop.f32.mrf.mxu2  ;;  %v5833_v9 = vpop.f32.mrf.mxu3  ;;  %v6747_v25 = vsel %vm6741_vm2, %v6569_v12, %v6696_v16  ;;  %v9112_v3 = vld [vmem:[%s12187_s3 + $0x1d8] sm:$0xf0]  ;;  %v5293_v12 = vperm.slane %v11909_v19, 4 }
 0x324   :  { %v5821_v11 = vadd.f32 %v5820_v8, %v5287_v5  ;;  %v5834_v13 = vadd.f32 %v5833_v9, %v5288_v6  ;;  %v5796_v14 = vpop.f32.mrf.mxu0  ;;  %v5809_v15 = vpop.f32.mrf.mxu1  ;;  %v9104_v8 = vld [vmem:[%s12187_s3 + $0x1d0] sm:$0xf0]  ;;  %v9102_v9 = vld [vmem:[%s12187_s3 + $0xd0] sm:$0xf] }
 0x325   :  { %v9111_v14 = vor.u32 %v9783_v63, %v9110_v62  ;;  %v9115_v15 = vor.u32 %v9751_v2, %v9112_v3 }
 0x326   :  { %v6571_v17 = vmax.f32 %v5821_v11, 0.0  ;;  %v6572_v18 = vmax.f32 %v5834_v13, 0.0 }
 0x328   :  { %v6697_v20 = vrot.slane %v6571_v17, 4  ;;  %v6698_v21 = vrot.slane %v6572_v18, 2  ;;  %v9107_v17 = vor.u32 %v9750_v4, %v9104_v8  ;;  %v9103_v18 = vor.u32 %v9782_v10, %v9102_v9 }
 0x32a   :  { %v6748_v26 = vsel %vm6743_vm3, %v6697_v20, %v6698_v21  ;;  %v5295_v20 = vperm.slane %v11909_v19, 6  ;;  %v5296_v21 = vperm.slane %v11909_v19, 7 }
 0x32b   :  { %v6749_v30 = vsel %vm6745_vm4, %v6747_v25, %v6748_v26  ;;  %v5822_v31 = vpop.f32.mrf.mxu2  ;;  %v5835_v32 = vpop.f32.mrf.mxu3 }
 0x32c   :  { %6809 = vst [vmem:[%s12190_s6 + $0x8] sm:$0xff] %v6749_v30  ;;  %v5846_v36 = vpop.f32.mrf.mxu0  ;;  %v5859_v37 = vpop.f32.mrf.mxu1 }
 0x32d   :  { %v5860_v40 = vadd.f32 %v5859_v37, %v5290_v22  ;;  %v5847_v50 = vadd.f32 %v5846_v36, %v5289_v43  ;;  %v5298_v36 = vperm.slane %v11998_v33, 1  ;;  %v9126_v37 = vld [vmem:[%s12187_s3 + $0xe8] sm:$0xf]  ;;  %v9752_v43 = vld [vmem:[%s12187_s3 + $0xe4] sm:$0xf] }
 0x32f   :  { %9188 = vmatmul.msk.bf16.vlgmr.msra.gmra.mxu0 %vm5729_vm1, %v11589_v48  ;;  %9189 = vmatmul.msk.bf16.vlgmr.msra.gmra.mxu1 %vm5729_vm1, %v11589_v48  ;;  %v6574_v46 = vmax.f32 %v5860_v40, 0.0  ;;  %v6573_v58 = vmax.f32 %v5847_v50, 0.0  ;;  %v9784_v50 = vld [vmem:[%s12187_s3 + $0x1dc] sm:$0xf0] }
 0x330   :  { %9190 = vmatmul.msk.bf16.vlgmr.msra.gmra.mxu2 %vm5729_vm1, %v11589_v48  ;;  %9191 = vmatmul.msk.bf16.vlgmr.msra.gmra.mxu3 %vm5729_vm1, %v11589_v48 }
 0x331   :  { %6390 = vmatpush.bf16.msra.mxu2 %v9095_v38  ;;  %6403 = vmatpush.bf16.msra.mxu3 %v9099_v39  ;;  %v6699_v55 = vrot.slane %v6574_v46, 6  ;;  %v9785_v38 = vld [vmem:[%s12187_s3 + $0x1e4] sm:$0xf0] }
 0x332   :  { %6377 = vmatpush.bf16.msra.mxu1 %v9091_v41  ;;  %6364 = vmatpush.bf16.msra.mxu0 %v9087_v42  ;;  %v9753_v41 = vld [vmem:[%s12187_s3 + $0xec] sm:$0xf] }
 0x333   :  { %v5872_v47 = vpop.f32.mrf.mxu2  ;;  %v5885_v49 = vpop.f32.mrf.mxu3  ;;  %v6750_v0 = vsel %vm6741_vm2, %v6573_v58, %v6699_v55  ;;  %v9128_v42 = vld [vmem:[%s12187_s3 + $0x1e8] sm:$0xf0]  ;;  %v5297_v58 = vperm.slane %v11998_v33, 0 }
 0x334   :  { %v5873_v51 = vadd.f32 %v5872_v47, %v5291_v44  ;;  %v5886_v52 = vadd.f32 %v5885_v49, %v5292_v45  ;;  %v5848_v53 = vpop.f32.mrf.mxu0  ;;  %v5861_v54 = vpop.f32.mrf.mxu1  ;;  %v9120_v47 = vld [vmem:[%s12187_s3 + $0x1e0] sm:$0xf0]  ;;  %v9118_v49 = vld [vmem:[%s12187_s3 + $0xe0] sm:$0xf] }
 0x335   :  { %v9127_v53 = vor.u32 %v9785_v38, %v9126_v37  ;;  %v9131_v54 = vor.u32 %v9753_v41, %v9128_v42 }
 0x336   :  { %v6575_v56 = vmax.f32 %v5873_v51, 0.0  ;;  %v6576_v57 = vmax.f32 %v5886_v52, 0.0 }
 0x338   :  { %v6700_v59 = vrot.slane %v6575_v56, 4  ;;  %v6701_v60 = vrot.slane %v6576_v57, 2  ;;  %v9123_v56 = vor.u32 %v9752_v43, %v9120_v47  ;;  %v9119_v57 = vor.u32 %v9784_v50, %v9118_v49  ;;  %v5268_v47 = vld [vmem:[%s12188_s4 + $0x18] sm:$0xff] }
 0x33a   :  { %v6751_v1 = vsel %vm6743_vm3, %v6700_v59, %v6701_v60  ;;  %v5299_v59 = vperm.slane %v11998_v33, 2  ;;  %v5300_v60 = vperm.slane %v11998_v33, 3 }
 0x33b   :  { %v6752_v5 = vsel %vm6745_vm4, %v6750_v0, %v6751_v1  ;;  %v5874_v6 = vpop.f32.mrf.mxu2  ;;  %v5887_v7 = vpop.f32.mrf.mxu3 }
 0x33c   :  { %6810 = vst [vmem:[%s12190_s6 + $0x10] sm:$0xff] %v6752_v5  ;;  %v5898_v11 = vpop.f32.mrf.mxu0  ;;  %v5911_v13 = vpop.f32.mrf.mxu1 }
 0x33d   :  { %v5912_v16 = vadd.f32 %v5911_v13, %v5294_v61  ;;  %v5899_v25 = vadd.f32 %v5898_v11, %v5293_v12  ;;  %v5302_v11 = vperm.slane %v11998_v33, 5  ;;  %v9142_v13 = vld [vmem:[%s12187_s3 + $0xf8] sm:$0xf]  ;;  %v9754_v12 = vld [vmem:[%s12187_s3 + $0xf4] sm:$0xf] }
 0x33f   :  { %9192 = vmatmul.msk.bf16.vlgmr.msrb.gmra.mxu0 %vm5729_vm1, %v11589_v48  ;;  %9193 = vmatmul.msk.bf16.vlgmr.msrb.gmra.mxu1 %vm5729_vm1, %v11589_v48  ;;  %v6578_v22 = vmax.f32 %v5912_v16, 0.0  ;;  %v6577_v19 = vmax.f32 %v5899_v25, 0.0  ;;  %v9786_v25 = vld [vmem:[%s12187_s3 + $0x1ec] sm:$0xf0] }
 0x340   :  { %9194 = vmatmul.msk.bf16.vlgmr.msrb.gmra.mxu2 %vm5729_vm1, %v11589_v48  ;;  %9195 = vmatmul.msk.bf16.vlgmr.msrb.gmra.mxu3 %vm5729_vm1, %v11589_v48 }
 0x341   :  { %6442 = vmatpush.bf16.msrb.mxu2 %v9111_v14  ;;  %6455 = vmatpush.bf16.msrb.mxu3 %v9115_v15  ;;  %v6702_v30 = vrot.slane %v6578_v22, 6  ;;  %v9787_v14 = vld [vmem:[%s12187_s3 + $0x1f4] sm:$0xf0] }
 0x342   :  { %6429 = vmatpush.bf16.msrb.mxu1 %v9107_v17  ;;  %6416 = vmatpush.bf16.msrb.mxu0 %v9103_v18  ;;  %v9755_v17 = vld [vmem:[%s12187_s3 + $0xfc] sm:$0xf] }
 0x343   :  { %v5924_v23 = vpop.f32.mrf.mxu2  ;;  %v5937_v24 = vpop.f32.mrf.mxu3  ;;  %v6753_v39 = vsel %vm6741_vm2, %v6577_v19, %v6702_v30  ;;  %v9144_v18 = vld [vmem:[%s12187_s3 + $0x1f8] sm:$0xf0]  ;;  %v5301_v19 = vperm.slane %v11998_v33, 4 }
 0x344   :  { %v5925_v26 = vadd.f32 %v5924_v23, %v5295_v20  ;;  %v5938_v27 = vadd.f32 %v5937_v24, %v5296_v21  ;;  %v5900_v28 = vpop.f32.mrf.mxu0  ;;  %v5913_v29 = vpop.f32.mrf.mxu1  ;;  %v9136_v23 = vld [vmem:[%s12187_s3 + $0x1f0] sm:$0xf0]  ;;  %v9134_v24 = vld [vmem:[%s12187_s3 + $0xf0] sm:$0xf] }
 0x345   :  { %v9143_v28 = vor.u32 %v9787_v14, %v9142_v13  ;;  %v9147_v29 = vor.u32 %v9755_v17, %v9144_v18 }
 0x346   :  { %v6579_v31 = vmax.f32 %v5925_v26, 0.0  ;;  %v6580_v32 = vmax.f32 %v5938_v27, 0.0 }
 0x348   :  { %v6703_v34 = vrot.slane %v6579_v31, 4  ;;  %v6704_v35 = vrot.slane %v6580_v32, 2  ;;  %v9139_v31 = vor.u32 %v9754_v12, %v9136_v23  ;;  %v9135_v32 = vor.u32 %v9786_v25, %v9134_v24 }
 0x349   :  { %v5309_v23 = vperm.slane %v5268_v47, 4  ;;  %v5311_v24 = vperm.slane %v5268_v47, 6  ;;  %v5312_v25 = vperm.slane %v5268_v47, 7 }
 0x34a   :  { %v6754_v40 = vsel %vm6743_vm3, %v6703_v34, %v6704_v35  ;;  %v5303_v34 = vperm.slane %v11998_v33, 6  ;;  %v5304_v35 = vperm.slane %v11998_v33, 7 }
 0x34b   :  { %v6755_v44 = vsel %vm6745_vm4, %v6753_v39, %v6754_v40  ;;  %v5926_v45 = vpop.f32.mrf.mxu2  ;;  %v5939_v46 = vpop.f32.mrf.mxu3 }
 0x34c   :  { %6811 = vst [vmem:[%s12190_s6 + $0x18] sm:$0xff] %v6755_v44  ;;  %v5950_v51 = vpop.f32.mrf.mxu0  ;;  %v5963_v52 = vpop.f32.mrf.mxu1 }
 0x34d   :  { %v5964_v55 = vadd.f32 %v5963_v52, %v5298_v36  ;;  %v5951_v0 = vadd.f32 %v5950_v51, %v5297_v58 }
 0x34f   :  { %9196 = vmatmul.msk.bf16.vlgmr.msra.gmra.mxu0 %vm5729_vm1, %v11589_v48  ;;  %9197 = vmatmul.msk.bf16.vlgmr.msra.gmra.mxu1 %vm5729_vm1, %v11589_v48  ;;  %v6582_v61 = vmax.f32 %v5964_v55, 0.0  ;;  %v6581_v8 = vmax.f32 %v5951_v0, 0.0 }
 0x350   :  { %9198 = vmatmul.msk.bf16.vlgmr.msra.gmra.mxu2 %vm5729_vm1, %v11589_v48  ;;  %9199 = vmatmul.msk.bf16.vlgmr.msra.gmra.mxu3 %vm5729_vm1, %v11589_v48 }
 0x351   :  { %6494 = vmatpush.bf16.msra.mxu2 %v9127_v53  ;;  %6507 = vmatpush.bf16.msra.mxu3 %v9131_v54  ;;  %v6705_v5 = vrot.slane %v6582_v61, 6  ;;  %v5306_v53 = vperm.slane %v5268_v47, 1  ;;  %v5307_v61 = vperm.slane %v5268_v47, 2 }
 0x352   :  { %6481 = vmatpush.bf16.msra.mxu1 %v9123_v56  ;;  %6468 = vmatpush.bf16.msra.mxu0 %v9119_v57 }
 0x353   :  { %v5976_v62 = vpop.f32.mrf.mxu2  ;;  %v5989_v63 = vpop.f32.mrf.mxu3  ;;  %v6756_v15 = vsel %vm6741_vm2, %v6581_v8, %v6705_v5 }
 0x354   :  { %v5977_v1 = vadd.f32 %v5976_v62, %v5299_v59  ;;  %v5990_v2 = vadd.f32 %v5989_v63, %v5300_v60  ;;  %v5952_v3 = vpop.f32.mrf.mxu0  ;;  %v5965_v4 = vpop.f32.mrf.mxu1  ;;  %v5305_v60 = vperm.slane %v5268_v47, 0  ;;  %v5308_v62 = vperm.slane %v5268_v47, 3 }
 0x356   :  { %v6583_v6 = vmax.f32 %v5977_v1, 0.0  ;;  %v6584_v7 = vmax.f32 %v5990_v2, 0.0 }
 0x358   :  { %v6706_v9 = vrot.slane %v6583_v6, 4  ;;  %v6707_v10 = vrot.slane %v6584_v7, 2 }
 0x35a   :  { %v6757_v16 = vsel %vm6743_vm3, %v6706_v9, %v6707_v10 }
 0x35b   :  { %v6758_v20 = vsel %vm6745_vm4, %v6756_v15, %v6757_v16  ;;  %v5978_v21 = vpop.f32.mrf.mxu2  ;;  %v5991_v22 = vpop.f32.mrf.mxu3  ;;  %v5310_v16 = vperm.slane %v5268_v47, 5 }
 0x35c   :  { %6812 = vst [vmem:[%s12190_s6 + $0x20] sm:$0xff] %v6758_v20  ;;  %v6002_v26 = vpop.f32.mrf.mxu0  ;;  %v6015_v27 = vpop.f32.mrf.mxu1 }
 0x35d   :  { %v6016_v30 = vadd.f32 %v6015_v27, %v5302_v11  ;;  %v6003_v39 = vadd.f32 %v6002_v26, %v5301_v19 }
 0x35f   :  { %9200 = vmatmul.msk.bf16.vlgmr.msrb.gmra.mxu0 %vm5729_vm1, %v11589_v48  ;;  %9201 = vmatmul.msk.bf16.vlgmr.msrb.gmra.mxu1 %vm5729_vm1, %v11589_v48  ;;  %v6586_v36 = vmax.f32 %v6016_v30, 0.0  ;;  %v6585_v33 = vmax.f32 %v6003_v39, 0.0 }
 0x360   :  { %9202 = vmatmul.msk.bf16.vlgmr.msrb.gmra.mxu2 %vm5729_vm1, %v11589_v48  ;;  %9203 = vmatmul.msk.bf16.vlgmr.msrb.gmra.mxu3 %vm5729_vm1, %v11589_v48 }
 0x361   :  { %6546 = vmatpush.bf16.msrb.mxu2 %v9143_v28  ;;  %6559 = vmatpush.bf16.msrb.mxu3 %v9147_v29  ;;  %v6708_v44 = vrot.slane %v6586_v36, 6 }
 0x362   :  { %6533 = vmatpush.bf16.msrb.mxu1 %v9139_v31  ;;  %6520 = vmatpush.bf16.msrb.mxu0 %v9135_v32 }
 0x363   :  { %v6028_v37 = vpop.f32.mrf.mxu2  ;;  %v6041_v38 = vpop.f32.mrf.mxu3  ;;  %v6759_v51 = vsel %vm6741_vm2, %v6585_v33, %v6708_v44 }
 0x364   :  { %v6029_v40 = vadd.f32 %v6028_v37, %v5303_v34  ;;  %v6042_v41 = vadd.f32 %v6041_v38, %v5304_v35  ;;  %v6004_v42 = vpop.f32.mrf.mxu0  ;;  %v6017_v43 = vpop.f32.mrf.mxu1  ;;  %v5269_v37 = vld [vmem:[%s12188_s4 + $0x20] sm:$0xff] }
 0x365   :  { %v5314_v42 = vperm.slane %v5269_v37, 1 }
 0x366   :  { %v6587_v45 = vmax.f32 %v6029_v40, 0.0  ;;  %v6588_v46 = vmax.f32 %v6042_v41, 0.0 }
 0x368   :  { %v6709_v49 = vrot.slane %v6587_v45, 4  ;;  %v6710_v50 = vrot.slane %v6588_v46, 2 }
 0x36a   :  { %v6760_v52 = vsel %vm6743_vm3, %v6709_v49, %v6710_v50  ;;  %v5313_v49 = vperm.slane %v5269_v37, 0  ;;  %v5315_v50 = vperm.slane %v5269_v37, 2 }
 0x36b   :  { %v6761_v54 = vsel %vm6745_vm4, %v6759_v51, %v6760_v52  ;;  %v6030_v55 = vpop.f32.mrf.mxu2  ;;  %v6043_v56 = vpop.f32.mrf.mxu3  ;;  %v5316_v51 = vperm.slane %v5269_v37, 3 }
 0x36c   :  { %6813 = vst [vmem:[%s12190_s6 + $0x28] sm:$0xff] %v6761_v54  ;;  %v6054_v57 = vpop.f32.mrf.mxu0  ;;  %v6067_v58 = vpop.f32.mrf.mxu1 }
 0x36d   :  { %v6068_v59 = vadd.f32 %v6067_v58, %v5306_v53  ;;  %v6055_v2 = vadd.f32 %v6054_v57, %v5305_v60 }
 0x36f   :  { %9204 = vmatmul.msk.bf16.vlgmr.msra.gmra.mxu0 %vm5729_vm1, %v11589_v48  ;;  %9205 = vmatmul.msk.bf16.vlgmr.msra.gmra.mxu1 %vm5729_vm1, %v11589_v48  ;;  %v6590_v63 = vmax.f32 %v6068_v59, 0.0  ;;  %v6589_v10 = vmax.f32 %v6055_v2, 0.0 }
 0x370   :  { %9206 = vmatmul.msk.bf16.vlgmr.msra.gmra.mxu2 %vm5729_vm1, %v11589_v48  ;;  %9207 = vmatmul.msk.bf16.vlgmr.msra.gmra.mxu3 %vm5729_vm1, %v11589_v48 }
 0x371   :  { %v6711_v7 = vrot.slane %v6590_v63, 6 }
 0x373   :  { %v6080_v0 = vpop.f32.mrf.mxu2  ;;  %v6093_v1 = vpop.f32.mrf.mxu3  ;;  %v6762_v14 = vsel %vm6741_vm2, %v6589_v10, %v6711_v7 }
 0x374   :  { %v6081_v3 = vadd.f32 %v6080_v0, %v5307_v61  ;;  %v6094_v4 = vadd.f32 %v6093_v1, %v5308_v62  ;;  %v6056_v5 = vpop.f32.mrf.mxu0  ;;  %v6069_v6 = vpop.f32.mrf.mxu1 }
 0x376   :  { %v6591_v8 = vmax.f32 %v6081_v3, 0.0  ;;  %v6592_v9 = vmax.f32 %v6094_v4, 0.0  ;;  %v5318_v4 = vperm.slane %v5269_v37, 5 }
 0x378   :  { %v6712_v11 = vrot.slane %v6591_v8, 4  ;;  %v6713_v13 = vrot.slane %v6592_v9, 2 }
 0x37a   :  { %v6763_v15 = vsel %vm6743_vm3, %v6712_v11, %v6713_v13  ;;  %v5317_v11 = vperm.slane %v5269_v37, 4  ;;  %v5319_v13 = vperm.slane %v5269_v37, 6 }
 0x37b   :  { %v6764_v17 = vsel %vm6745_vm4, %v6762_v14, %v6763_v15  ;;  %v6082_v18 = vpop.f32.mrf.mxu2  ;;  %v6095_v12 = vpop.f32.mrf.mxu3  ;;  %v5320_v14 = vperm.slane %v5269_v37, 7 }
 0x37c   :  { %6814 = vst [vmem:[%s12190_s6 + $0x30] sm:$0xff] %v6764_v17  ;;  %v6106_v20 = vpop.f32.mrf.mxu0  ;;  %v6119_v21 = vpop.f32.mrf.mxu1 }
 0x37d   :  { %v6120_v22 = vadd.f32 %v6119_v21, %v5310_v16  ;;  %v6107_v29 = vadd.f32 %v6106_v20, %v5309_v23 }
 0x37f   :  { %9208 = vmatmul.msk.bf16.vlgmr.msrb.gmra.mxu0 %vm5729_vm1, %v11589_v48  ;;  %9209 = vmatmul.msk.bf16.vlgmr.msrb.gmra.mxu1 %vm5729_vm1, %v11589_v48  ;;  %v6594_v26 = vmax.f32 %v6120_v22, 0.0  ;;  %v6593_v38 = vmax.f32 %v6107_v29, 0.0 }
 0x380   :  { %9210 = vmatmul.msk.bf16.vlgmr.msrb.gmra.mxu2 %vm5729_vm1, %v11589_v48  ;;  %9211 = vmatmul.msk.bf16.vlgmr.msrb.gmra.mxu3 %vm5729_vm1, %v11589_v48 }
 0x381   :  { %v6714_v34 = vrot.slane %v6594_v26, 6  ;;  %v5270_v26 = vld [vmem:[%s12188_s4 + $0x28] sm:$0xff] }
 0x383   :  { %v6132_v27 = vpop.f32.mrf.mxu2  ;;  %v6145_v28 = vpop.f32.mrf.mxu3  ;;  %v6765_v40 = vsel %vm6741_vm2, %v6593_v38, %v6714_v34 }
 0x384   :  { %v6133_v30 = vadd.f32 %v6132_v27, %v5311_v24  ;;  %v6146_v31 = vadd.f32 %v6145_v28, %v5312_v25  ;;  %v6108_v32 = vpop.f32.mrf.mxu0  ;;  %v6121_v19 = vpop.f32.mrf.mxu1 }
 0x385   :  { %v5322_v32 = vperm.slane %v5270_v26, 1 }
 0x386   :  { %v6595_v35 = vmax.f32 %v6133_v30, 0.0  ;;  %v6596_v36 = vmax.f32 %v6146_v31, 0.0 }
 0x388   :  { %v6715_v39 = vrot.slane %v6595_v35, 4  ;;  %v6716_v48 = vrot.slane %v6596_v36, 2 }
 0x38a   :  { %v6766_v41 = vsel %vm6743_vm3, %v6715_v39, %v6716_v48  ;;  %v5321_v39 = vperm.slane %v5270_v26, 0  ;;  %v5323_v48 = vperm.slane %v5270_v26, 2 }
 0x38b   :  { %v6767_v43 = vsel %vm6745_vm4, %v6765_v40, %v6766_v41  ;;  %v6134_v44 = vpop.f32.mrf.mxu2  ;;  %v6147_v45 = vpop.f32.mrf.mxu3  ;;  %v5324_v40 = vperm.slane %v5270_v26, 3 }
 0x38c   :  { %6815 = vst [vmem:[%s12190_s6 + $0x38] sm:$0xff] %v6767_v43  ;;  %v6158_v46 = vpop.f32.mrf.mxu0  ;;  %v6171_v47 = vpop.f32.mrf.mxu1 }
 0x38d   :  { %v6172_v33 = vadd.f32 %v6171_v47, %v5314_v42  ;;  %v6159_v55 = vadd.f32 %v6158_v46, %v5313_v49 }
 0x38f   :  { %v6598_v52 = vmax.f32 %v6172_v33, 0.0  ;;  %v6597_v63 = vmax.f32 %v6159_v55, 0.0 }
 0x391   :  { %v6717_v60 = vrot.slane %v6598_v52, 6 }
 0x393   :  { %v6184_v53 = vpop.f32.mrf.mxu2  ;;  %v6197_v54 = vpop.f32.mrf.mxu3  ;;  %v6768_v2 = vsel %vm6741_vm2, %v6597_v63, %v6717_v60 }
 0x394   :  { %v6185_v56 = vadd.f32 %v6184_v53, %v5315_v50  ;;  %v6198_v57 = vadd.f32 %v6197_v54, %v5316_v51  ;;  %v6160_v58 = vpop.f32.mrf.mxu0  ;;  %v6173_v59 = vpop.f32.mrf.mxu1 }
 0x396   :  { %v6599_v61 = vmax.f32 %v6185_v56, 0.0  ;;  %v6600_v62 = vmax.f32 %v6198_v57, 0.0  ;;  %v5326_v57 = vperm.slane %v5270_v26, 5 }
 0x398   :  { %v6718_v0 = vrot.slane %v6599_v61, 4  ;;  %v6719_v1 = vrot.slane %v6600_v62, 2 }
 0x39a   :  { %v6769_v3 = vsel %vm6743_vm3, %v6718_v0, %v6719_v1  ;;  %v5325_v0 = vperm.slane %v5270_v26, 4  ;;  %v5327_v1 = vperm.slane %v5270_v26, 6 }
 0x39b   :  { %v6770_v5 = vsel %vm6745_vm4, %v6768_v2, %v6769_v3  ;;  %v6186_v6 = vpop.f32.mrf.mxu2  ;;  %v6199_v7 = vpop.f32.mrf.mxu3  ;;  %v5328_v2 = vperm.slane %v5270_v26, 7 }
 0x39c   :  { %6816 = vst [vmem:[%s12190_s6 + $0x40] sm:$0xff] %v6770_v5  ;;  %v6210_v8 = vpop.f32.mrf.mxu0  ;;  %v6223_v9 = vpop.f32.mrf.mxu1 }
 0x39d   :  { %v6224_v10 = vadd.f32 %v6223_v9, %v5318_v4  ;;  %v6211_v18 = vadd.f32 %v6210_v8, %v5317_v11 }
 0x39f   :  { %v6602_v15 = vmax.f32 %v6224_v10, 0.0  ;;  %v6601_v27 = vmax.f32 %v6211_v18, 0.0 }
 0x3a1   :  { %v6720_v23 = vrot.slane %v6602_v15, 6  ;;  %v5271_v15 = vld [vmem:[%s12188_s4 + $0x30] sm:$0xff] }
 0x3a3   :  { %v6236_v16 = vpop.f32.mrf.mxu2  ;;  %v6249_v17 = vpop.f32.mrf.mxu3  ;;  %v6771_v30 = vsel %vm6741_vm2, %v6601_v27, %v6720_v23 }
 0x3a4   :  { %v6237_v12 = vadd.f32 %v6236_v16, %v5319_v13  ;;  %v6250_v20 = vadd.f32 %v6249_v17, %v5320_v14  ;;  %v6212_v21 = vpop.f32.mrf.mxu0  ;;  %v6225_v22 = vpop.f32.mrf.mxu1 }
 0x3a5   :  { %v5330_v21 = vperm.slane %v5271_v15, 1 }
 0x3a6   :  { %v6603_v24 = vmax.f32 %v6237_v12, 0.0  ;;  %v6604_v25 = vmax.f32 %v6250_v20, 0.0 }
 0x3a8   :  { %v6721_v28 = vrot.slane %v6603_v24, 4  ;;  %v6722_v29 = vrot.slane %v6604_v25, 2 }
 0x3aa   :  { %v6772_v31 = vsel %vm6743_vm3, %v6721_v28, %v6722_v29  ;;  %v5329_v28 = vperm.slane %v5271_v15, 0  ;;  %v5331_v29 = vperm.slane %v5271_v15, 2 }
 0x3ab   :  { %v6773_v19 = vsel %vm6745_vm4, %v6771_v30, %v6772_v31  ;;  %v6238_v34 = vpop.f32.mrf.mxu2  ;;  %v6251_v35 = vpop.f32.mrf.mxu3  ;;  %v5332_v30 = vperm.slane %v5271_v15, 3 }
 0x3ac   :  { %6817 = vst [vmem:[%s12190_s6 + $0x48] sm:$0xff] %v6773_v19  ;;  %v6262_v36 = vpop.f32.mrf.mxu0  ;;  %v6275_v37 = vpop.f32.mrf.mxu1 }
 0x3ad   :  { %v6276_v38 = vadd.f32 %v6275_v37, %v5322_v32  ;;  %v6263_v44 = vadd.f32 %v6262_v36, %v5321_v39 }
 0x3af   :  { %v6606_v41 = vmax.f32 %v6276_v38, 0.0  ;;  %v6605_v52 = vmax.f32 %v6263_v44, 0.0 }
 0x3b1   :  { %v6723_v49 = vrot.slane %v6606_v41, 6 }
 0x3b3   :  { %v6288_v42 = vpop.f32.mrf.mxu2  ;;  %v6301_v43 = vpop.f32.mrf.mxu3  ;;  %v6774_v55 = vsel %vm6741_vm2, %v6605_v52, %v6723_v49 }
 0x3b4   :  { %v6289_v45 = vadd.f32 %v6288_v42, %v5323_v48  ;;  %v6302_v46 = vadd.f32 %v6301_v43, %v5324_v40  ;;  %v6264_v47 = vpop.f32.mrf.mxu0  ;;  %v6277_v33 = vpop.f32.mrf.mxu1 }
 0x3b6   :  { %v6607_v50 = vmax.f32 %v6289_v45, 0.0  ;;  %v6608_v51 = vmax.f32 %v6302_v46, 0.0  ;;  %v5334_v46 = vperm.slane %v5271_v15, 5 }
 0x3b8   :  { %v6724_v53 = vrot.slane %v6607_v50, 4  ;;  %v6725_v54 = vrot.slane %v6608_v51, 2 }
 0x3ba   :  { %v6775_v56 = vsel %vm6743_vm3, %v6724_v53, %v6725_v54  ;;  %v5333_v53 = vperm.slane %v5271_v15, 4  ;;  %v5335_v54 = vperm.slane %v5271_v15, 6 }
 0x3bb   :  { %v6776_v58 = vsel %vm6745_vm4, %v6774_v55, %v6775_v56  ;;  %v6290_v59 = vpop.f32.mrf.mxu2  ;;  %v6303_v60 = vpop.f32.mrf.mxu3  ;;  %v5336_v55 = vperm.slane %v5271_v15, 7 }
 0x3bc   :  { %6818 = vst [vmem:[%s12190_s6 + $0x50] sm:$0xff] %v6776_v58  ;;  %v6314_v61 = vpop.f32.mrf.mxu0  ;;  %v6327_v62 = vpop.f32.mrf.mxu1 }
 0x3bd   :  { %v6328_v63 = vadd.f32 %v6327_v62, %v5326_v57  ;;  %v6315_v6 = vadd.f32 %v6314_v61, %v5325_v0 }
 0x3bf   :  { %v6610_v3 = vmax.f32 %v6328_v63, 0.0  ;;  %v6609_v16 = vmax.f32 %v6315_v6, 0.0 }
 0x3c1   :  { %v6726_v11 = vrot.slane %v6610_v3, 6  ;;  %v5272_v3 = vld [vmem:[%s12188_s4 + $0x38] sm:$0xff] }
 0x3c3   :  { %v6340_v4 = vpop.f32.mrf.mxu2  ;;  %v6353_v5 = vpop.f32.mrf.mxu3  ;;  %v6777_v12 = vsel %vm6741_vm2, %v6609_v16, %v6726_v11 }
 0x3c4   :  { %v6341_v7 = vadd.f32 %v6340_v4, %v5327_v1  ;;  %v6354_v8 = vadd.f32 %v6353_v5, %v5328_v2  ;;  %v6316_v9 = vpop.f32.mrf.mxu0  ;;  %v6329_v10 = vpop.f32.mrf.mxu1 }
 0x3c5   :  { %v5338_v9 = vperm.slane %v5272_v3, 1 }
 0x3c6   :  { %v6611_v13 = vmax.f32 %v6341_v7, 0.0  ;;  %v6612_v14 = vmax.f32 %v6354_v8, 0.0 }
 0x3c8   :  { %v6727_v17 = vrot.slane %v6611_v13, 4  ;;  %v6728_v18 = vrot.slane %v6612_v14, 2 }
 0x3ca   :  { %v6778_v20 = vsel %vm6743_vm3, %v6727_v17, %v6728_v18  ;;  %v5337_v17 = vperm.slane %v5272_v3, 0  ;;  %v5339_v18 = vperm.slane %v5272_v3, 2 }
 0x3cb   :  { %v6779_v22 = vsel %vm6745_vm4, %v6777_v12, %v6778_v20  ;;  %v6342_v23 = vpop.f32.mrf.mxu2  ;;  %v6355_v24 = vpop.f32.mrf.mxu3  ;;  %v5340_v12 = vperm.slane %v5272_v3, 3 }
 0x3cc   :  { %6819 = vst [vmem:[%s12190_s6 + $0x58] sm:$0xff] %v6779_v22  ;;  %v6366_v25 = vpop.f32.mrf.mxu0  ;;  %v6379_v26 = vpop.f32.mrf.mxu1 }
 0x3cd   :  { %v6380_v27 = vadd.f32 %v6379_v26, %v5330_v21  ;;  %v6367_v34 = vadd.f32 %v6366_v25, %v5329_v28 }
 0x3cf   :  { %v6614_v31 = vmax.f32 %v6380_v27, 0.0  ;;  %v6613_v41 = vmax.f32 %v6367_v34, 0.0 }
 0x3d1   :  { %v6729_v39 = vrot.slane %v6614_v31, 6 }
 0x3d3   :  { %v6392_v32 = vpop.f32.mrf.mxu2  ;;  %v6405_v19 = vpop.f32.mrf.mxu3  ;;  %v6780_v44 = vsel %vm6741_vm2, %v6613_v41, %v6729_v39 }
 0x3d4   :  { %v6393_v35 = vadd.f32 %v6392_v32, %v5331_v29  ;;  %v6406_v36 = vadd.f32 %v6405_v19, %v5332_v30  ;;  %v6368_v37 = vpop.f32.mrf.mxu0  ;;  %v6381_v38 = vpop.f32.mrf.mxu1 }
 0x3d6   :  { %v6615_v48 = vmax.f32 %v6393_v35, 0.0  ;;  %v6616_v40 = vmax.f32 %v6406_v36, 0.0  ;;  %v5342_v36 = vperm.slane %v5272_v3, 5 }
 0x3d8   :  { %v6730_v42 = vrot.slane %v6615_v48, 4  ;;  %v6731_v43 = vrot.slane %v6616_v40, 2 }
 0x3da   :  { %v6781_v45 = vsel %vm6743_vm3, %v6730_v42, %v6731_v43  ;;  %v5341_v42 = vperm.slane %v5272_v3, 4  ;;  %v5343_v43 = vperm.slane %v5272_v3, 6 }
 0x3db   :  { %v6782_v47 = vsel %vm6745_vm4, %v6780_v44, %v6781_v45  ;;  %v6394_v33 = vpop.f32.mrf.mxu2  ;;  %v6407_v49 = vpop.f32.mrf.mxu3  ;;  %v5344_v44 = vperm.slane %v5272_v3, 7 }
 0x3dc   :  { %6820 = vst [vmem:[%s12190_s6 + $0x60] sm:$0xff] %v6782_v47  ;;  %v6418_v50 = vpop.f32.mrf.mxu0  ;;  %v6431_v51 = vpop.f32.mrf.mxu1 }
 0x3dd   :  { %v6432_v52 = vadd.f32 %v6431_v51, %v5334_v46  ;;  %v6419_v59 = vadd.f32 %v6418_v50, %v5333_v53 }
 0x3df   :  { %v6618_v56 = vmax.f32 %v6432_v52, 0.0  ;;  %v6617_v4 = vmax.f32 %v6419_v59, 0.0 }
 0x3e1   :  { %v6732_v0 = vrot.slane %v6618_v56, 6 }
 0x3e3   :  { %v6444_v57 = vpop.f32.mrf.mxu2  ;;  %v6457_v58 = vpop.f32.mrf.mxu3  ;;  %v6783_v7 = vsel %vm6741_vm2, %v6617_v4, %v6732_v0 }
 0x3e4   :  { %v6445_v60 = vadd.f32 %v6444_v57, %v5335_v54  ;;  %v6458_v61 = vadd.f32 %v6457_v58, %v5336_v55  ;;  %v6420_v62 = vpop.f32.mrf.mxu0  ;;  %v6433_v63 = vpop.f32.mrf.mxu1 }
 0x3e6   :  { %v6619_v1 = vmax.f32 %v6445_v60, 0.0  ;;  %v6620_v2 = vmax.f32 %v6458_v61, 0.0 }
 0x3e8   :  { %v6733_v5 = vrot.slane %v6619_v1, 4  ;;  %v6734_v6 = vrot.slane %v6620_v2, 2 }
 0x3ea   :  { %v6784_v8 = vsel %vm6743_vm3, %v6733_v5, %v6734_v6 }
 0x3eb   :  { %v6785_v10 = vsel %vm6745_vm4, %v6783_v7, %v6784_v8  ;;  %v6446_v11 = vpop.f32.mrf.mxu2  ;;  %v6459_v13 = vpop.f32.mrf.mxu3 }
 0x3ec   :  { %6821 = vst [vmem:[%s12190_s6 + $0x68] sm:$0xff] %v6785_v10  ;;  %v6470_v14 = vpop.f32.mrf.mxu0  ;;  %v6483_v15 = vpop.f32.mrf.mxu1 }
 0x3ed   :  { %v6484_v16 = vadd.f32 %v6483_v15, %v5338_v9  ;;  %v6471_v23 = vadd.f32 %v6470_v14, %v5337_v17 }
 0x3ef   :  { %v6622_v20 = vmax.f32 %v6484_v16, 0.0  ;;  %v6621_v31 = vmax.f32 %v6471_v23, 0.0 }
 0x3f1   :  { %v6735_v28 = vrot.slane %v6622_v20, 6 }
 0x3f3   :  { %v6496_v21 = vpop.f32.mrf.mxu2  ;;  %v6509_v22 = vpop.f32.mrf.mxu3  ;;  %v6786_v34 = vsel %vm6741_vm2, %v6621_v31, %v6735_v28 }
 0x3f4   :  { %v6497_v24 = vadd.f32 %v6496_v21, %v5339_v18  ;;  %v6510_v25 = vadd.f32 %v6509_v22, %v5340_v12  ;;  %v6472_v26 = vpop.f32.mrf.mxu0  ;;  %v6485_v27 = vpop.f32.mrf.mxu1 }
 0x3f6   :  { %v6623_v29 = vmax.f32 %v6497_v24, 0.0  ;;  %v6624_v30 = vmax.f32 %v6510_v25, 0.0 }
 0x3f8   :  { %v6736_v32 = vrot.slane %v6623_v29, 4  ;;  %v6737_v19 = vrot.slane %v6624_v30, 2 }
 0x3fa   :  { %v6787_v35 = vsel %vm6743_vm3, %v6736_v32, %v6737_v19 }
 0x3fb   :  { %v6788_v37 = vsel %vm6745_vm4, %v6786_v34, %v6787_v35  ;;  %v6498_v38 = vpop.f32.mrf.mxu2  ;;  %v6511_v39 = vpop.f32.mrf.mxu3 }
 0x3fc   :  { %6822 = vst [vmem:[%s12190_s6 + $0x70] sm:$0xff] %v6788_v37  ;;  %v6522_v48 = vpop.f32.mrf.mxu0  ;;  %v6535_v40 = vpop.f32.mrf.mxu1 }
 0x3fd   :  { %v6536_v41 = vadd.f32 %v6535_v40, %v5342_v36  ;;  %v6523_v33 = vadd.f32 %v6522_v48, %v5341_v42 }
 0x3ff   :  { %v6626_v45 = vmax.f32 %v6536_v41, 0.0  ;;  %v6625_v56 = vmax.f32 %v6523_v33, 0.0 }
 0x401   :  { %v6738_v53 = vrot.slane %v6626_v45, 6 }
 0x403   :  { %v6548_v46 = vpop.f32.mrf.mxu2  ;;  %v6561_v47 = vpop.f32.mrf.mxu3  ;;  %v6789_v59 = vsel %vm6741_vm2, %v6625_v56, %v6738_v53 }
 0x404   :  { %v6549_v49 = vadd.f32 %v6548_v46, %v5343_v43  ;;  %v6562_v50 = vadd.f32 %v6561_v47, %v5344_v44  ;;  %v6524_v51 = vpop.f32.mrf.mxu0  ;;  %v6537_v52 = vpop.f32.mrf.mxu1 }
 0x406   :  { %v6627_v54 = vmax.f32 %v6549_v49, 0.0  ;;  %v6628_v55 = vmax.f32 %v6562_v50, 0.0 }
 0x408   :  { %v6739_v57 = vrot.slane %v6627_v54, 4  ;;  %v6740_v58 = vrot.slane %v6628_v55, 2 }
 0x40a   :  { %v6790_v60 = vsel %vm6743_vm3, %v6739_v57, %v6740_v58 }
 0x40b   :  { %v6791_v61 = vsel %vm6745_vm4, %v6789_v59, %v6790_v60  ;;  %v6550_v62 = vpop.f32.mrf.mxu2  ;;  %v6563_v63 = vpop.f32.mrf.mxu3 }
 0x40c   :  { %6823 = vst [vmem:[%s12190_s6 + $0x78] sm:$0xff] %v6791_v61 }
 0x40d   :  { %9814 = dma.done.wait [#allocation3], 32  }
 0x40e   :  { %9815 = vsyncadd [#allocation3], 4294967264 }
 0x40f   :  { %6843 = vsyncpa [#allocation3], 1 }

</bundles_post_ra>
